<compile_context>
chip_gen: v5e
topology: v5e:2x2
jax: 0.10.0
libtpu: 0.0.40
codegen_flags: <defaults>
</compile_context>

<pallas_src>
import functools

import jax
import jax.numpy as jnp
from jax.experimental import pallas as pl
from jax.experimental.pallas import tpu as pltpu


# ---------------------------------------------------------------------------
# Fused Conv2d(3x3, padding=1) + bias + ReLU [+ MaxPool2d(2,2)]
# ---------------------------------------------------------------------------
def _conv_block_kernel(x_ref, w_ref, b_ref, o_ref, xpad_ref, *, pool):
    # x_ref:   (1, H, W, Cin)  bf16 activation block
    # w_ref:   (9*Cin, Cout)   bf16 packed conv weight, rows ordered (kh,kw,cin)
    # b_ref:   (1, Cout)       f32 bias
    # o_ref:   (1, Ho, Wo, Cout) bf16
    # xpad_ref: VMEM scratch (H+2, W+16, Cin) bf16 zero-halo image
    H, W, Cin = x_ref.shape[1], x_ref.shape[2], x_ref.shape[3]
    Cout = o_ref.shape[3]
    Hp, Wp = xpad_ref.shape[0], xpad_ref.shape[1]
    COL0 = 8  # sublane-aligned interior column offset inside the scratch

    # Zero only the halo that will actually be read (2 rows + 2 columns);
    # the interior is fully overwritten below, so no full-memset pass.
    zrow = jnp.zeros((1, Wp, Cin), xpad_ref.dtype)
    xpad_ref[pl.ds(0, 1), :, :] = zrow
    xpad_ref[pl.ds(H + 1, 1), :, :] = zrow
    zcol = jnp.zeros((Hp, 1, Cin), xpad_ref.dtype)
    xpad_ref[:, pl.ds(COL0 - 1, 1), :] = zcol
    xpad_ref[:, pl.ds(COL0 + W, 1), :] = zcol

    # Interior copy at a sublane-aligned (multiple-of-8) column start.
    xpad_ref[pl.ds(1, H), pl.ds(COL0, W), :] = x_ref[0]

    # 3x3 conv as 9 accumulating MXU dots over a tightly packed contraction
    # (K = Cin per tap, no zero-padded channels); f32 vreg accumulator,
    # bias folded into the accumulator init.
    acc = jnp.broadcast_to(b_ref[...], (H * W, Cout))
    for kh in range(3):
        for kw in range(3):
            t = kh * 3 + kw
            win = xpad_ref[pl.ds(kh, H), pl.ds(COL0 - 1 + kw, W), :]
            acc = acc + jnp.dot(
                win.reshape(H * W, Cin),
                w_ref[pl.ds(t * Cin, Cin), :],
                preferred_element_type=jnp.float32)
    y = jnp.maximum(acc, 0.0)  # ReLU in f32

    if pool:
        # Fused 2x2/stride-2 max-pool: reduce the H-pair axis first (halves
        # the data fed to the more expensive W-pair/sublane reduction).
        y = y.reshape(H // 2, 2, W // 2, 2, Cout)
        y = jnp.max(y, axis=1)   # H-pair
        y = jnp.max(y, axis=2)   # W-pair
        o_ref[0] = y.astype(o_ref.dtype)
    else:
        o_ref[0] = y.reshape(H, W, Cout).astype(o_ref.dtype)


def conv3x3_relu(x, w, b, *, pool):
    """x: (B, H, W, Cin) bf16 NHWC, w: (9*Cin, Cout) bf16, b: (1, Cout) f32."""
    B, H, W, Cin = x.shape
    Cout = w.shape[1]
    Ho, Wo = (H // 2, W // 2) if pool else (H, W)
    Wp = W + 16  # room for sublane-aligned interior (col 8) + right halo
    return pl.pallas_call(
        functools.partial(_conv_block_kernel, pool=pool),
        out_shape=jax.ShapeDtypeStruct((B, Ho, Wo, Cout), jnp.bfloat16),
        grid=(B,),
        in_specs=[
            pl.BlockSpec((1, H, W, Cin), lambda bi: (bi, 0, 0, 0)),
            # Constant weights/bias: single VMEM-resident copy, no
            # double-buffered pipelining of constant-index blocks.
            pl.BlockSpec(memory_space=pltpu.MemorySpace.VMEM),
            pl.BlockSpec(memory_space=pltpu.MemorySpace.VMEM),
        ],
        out_specs=pl.BlockSpec((1, Ho, Wo, Cout), lambda bi: (bi, 0, 0, 0)),
        scratch_shapes=[pltpu.VMEM((H + 2, Wp, Cin), jnp.bfloat16)],
        compiler_params=pltpu.CompilerParams(
            dimension_semantics=("parallel",)),
    )(x, w, b)


# ---------------------------------------------------------------------------
# Standalone MaxPool2d(2,2) (only used for an 'M' not preceded by a conv)
# ---------------------------------------------------------------------------
def _maxpool_kernel(x_ref, o_ref):
    H, W, C = x_ref.shape[1], x_ref.shape[2], x_ref.shape[3]
    y = x_ref[0].reshape(H // 2, 2, W // 2, 2, C)
    y = jnp.max(y, axis=1)
    o_ref[0] = jnp.max(y, axis=2)


def maxpool2x2(x):
    B, H, W, C = x.shape
    return pl.pallas_call(
        _maxpool_kernel,
        out_shape=jax.ShapeDtypeStruct((B, H // 2, W // 2, C), x.dtype),
        grid=(B,),
        in_specs=[pl.BlockSpec((1, H, W, C), lambda bi: (bi, 0, 0, 0))],
        out_specs=pl.BlockSpec((1, H // 2, W // 2, C),
                               lambda bi: (bi, 0, 0, 0)),
        compiler_params=pltpu.CompilerParams(
            dimension_semantics=("parallel",)),
    )(x)


# ---------------------------------------------------------------------------
# Linear (+ optional ReLU) as a standard (N, K)-gridded matmul
# ---------------------------------------------------------------------------
def _linear_kernel(x_ref, w_ref, b_ref, o_ref, acc_ref, *, relu):
    k = pl.program_id(1)

    @pl.when(k == 0)
    def _init():
        acc_ref[...] = jnp.zeros_like(acc_ref)

    acc_ref[...] += jnp.dot(x_ref[...], w_ref[...],
                            preferred_element_type=jnp.float32)

    @pl.when(k == pl.num_programs(1) - 1)
    def _finalize():
        y = acc_ref[...] + b_ref[...]
        if relu:
            y = jnp.maximum(y, 0.0)
        o_ref[...] = y.astype(o_ref.dtype)


def linear(x, w, b, *, relu, out_dtype):
    """x: (B, K) bf16, w: (K, N) bf16, b: (1, N) f32."""
    B, K = x.shape
    N = w.shape[1]
    tn = 128 if N % 128 == 0 else N
    tk = 512 if K % 512 == 0 else K
    return pl.pallas_call(
        functools.partial(_linear_kernel, relu=relu),
        out_shape=jax.ShapeDtypeStruct((B, N), out_dtype),
        grid=(N // tn, K // tk),
        in_specs=[
            pl.BlockSpec((B, tk), lambda n, k: (0, k)),
            pl.BlockSpec((tk, tn), lambda n, k: (k, n)),
            pl.BlockSpec((1, tn), lambda n, k: (0, n)),
        ],
        out_specs=pl.BlockSpec((B, tn), lambda n, k: (0, n)),
        scratch_shapes=[pltpu.VMEM((B, tn), jnp.float32)],
        compiler_params=pltpu.CompilerParams(
            dimension_semantics=("parallel", "arbitrary")),
    )(x, w, b)


# ---------------------------------------------------------------------------
# Parameter init (mirrors the PyTorch VGG init, pre-laid-out for the kernels)
# ---------------------------------------------------------------------------
def init_vgg_params(cfg, H, W, out, key):
    feats = []
    plan = []  # ('conv', idx, fused_pool) or ('pool',)
    in_c, h, w_sp = 3, H, W
    i = 0
    while i < len(cfg):
        v = cfg[i]
        if v == 'M':
            plan.append(('pool',))
            h, w_sp = h // 2, w_sp // 2
            i += 1
            continue
        pool = (i + 1 < len(cfg) and cfg[i + 1] == 'M')
        key, wkey = jax.random.split(key)
        n = 3 * 3 * v  # kernel_size[0]*kernel_size[1]*out_channels
        w_conv = (jax.random.normal(wkey, (3, 3, in_c, v), jnp.float32)
                  * (2.0 / n) ** 0.5)
        # Packed (kh, kw, cin) rows, no zero-padded channels, bf16 in HBM.
        w_p = w_conv.reshape(9 * in_c, v).astype(jnp.bfloat16)
        b_p = jnp.zeros((1, v), jnp.float32)  # conv bias zero-init
        feats.append((w_p, b_p))
        plan.append(('conv', len(feats) - 1, pool))
        in_c = v
        if pool:
            h, w_sp = h // 2, w_sp // 2
            i += 2
        else:
            i += 1

    # Classifier: Linear(size,size)+ReLU, Linear(size,size)+ReLU, Linear(size,out)
    size = in_c * h * w_sp
    dims_in, dims_out = [size, size, size], [size, size, out]
    cls = []
    for li in range(3):
        key, wkey, bkey = jax.random.split(key, 3)
        bound = dims_in[li] ** -0.5  # PyTorch default nn.Linear init range
        w_l = jax.random.uniform(wkey, (dims_in[li], dims_out[li]),
                                 jnp.float32, -bound, bound)
        b_l = jax.random.uniform(bkey, (1, dims_out[li]), jnp.float32,
                                 -bound, bound)
        cls.append([w_l, b_l])

    # Fold the torch NCHW flatten order (c,h,w) into fc1's rows so the runtime
    # NHWC flatten (h,w,c) needs no transpose.
    w0, b0 = cls[0]
    w0 = (w0.reshape(in_c, h, w_sp, size)
            .transpose(1, 2, 0, 3)
            .reshape(h * w_sp * in_c, size))
    cls[0] = [w0, b0]

    cls = [(wl.astype(jnp.bfloat16), bl) for wl, bl in cls]
    return feats, cls, plan


# ---------------------------------------------------------------------------
# Forward (matches VGG.forward: features -> flatten -> classifier)
# ---------------------------------------------------------------------------
def vgg_forward(feats, cls, plan, x_nchw):
    B = x_nchw.shape[0]
    # One NCHW -> NHWC conversion + bf16 cast at the network input.
    x = jnp.transpose(x_nchw, (0, 2, 3, 1)).astype(jnp.bfloat16)
    for step in plan:
        if step[0] == 'conv':
            _, idx, pool = step
            w, b = feats[idx]
            x = conv3x3_relu(x, w, b, pool=pool)
        else:
            x = maxpool2x2(x)
    # Flatten (h, w, c); the NCHW permutation is folded into fc1's rows.
    x = x.reshape(B, -1)
    (w0, b0), (w1, b1), (w2, b2) = cls
    h1 = linear(x, w0, b0, relu=True, out_dtype=jnp.bfloat16)
    h2 = linear(h1, w1, b1, relu=True, out_dtype=jnp.bfloat16)
    y = linear(h2, w2, b2, relu=False, out_dtype=jnp.float32)
    return y


if __name__ == "__main__":
    # Small VGG-style config: two conv blocks, each followed by a 2x2 maxpool.
    cfg = [8, 'M', 16, 'M']
    B, H, W = 2, 16, 16
    out = 10

    key = jax.random.PRNGKey(0)
    pkey, xkey = jax.random.split(key)
    feats, cls, plan = init_vgg_params(cfg, H, W, out, pkey)
    x = jax.random.normal(xkey, (B, 3, H, W), jnp.float32)  # NCHW like PyTorch

    fwd = jax.jit(lambda xx: vgg_forward(feats, cls, plan, xx))
    y = fwd(x)
    jax.block_until_ready(y)
    assert y.shape == (B, out) and y.dtype == jnp.float32
    print("KERNEL_OK")
</pallas_src>

<mosaic_0001>
module attributes {stable_mosaic.version = 11 : i64} {
  func.func @_conv_block_kernel(%arg0: i32, %arg1: memref<1x16x16x3xbf16, #tpu.memory_space<vmem>>, %arg2: memref<27x8xbf16, #tpu.memory_space<vmem>>, %arg3: memref<1x8xf32, #tpu.memory_space<vmem>>, %arg4: memref<1x8x8x8xbf16, #tpu.memory_space<vmem>>, %arg5: memref<18x32x3xbf16, #tpu.memory_space<vmem>>) attributes {dimension_semantics = [#tpu.dimension_semantics<parallel>], iteration_bounds = array<i64: 2>, scalar_prefetch = 0 : i64, scratch_operands = 1 : i64, tpu.core_type = #tpu.core_type<tc>, window_params = [{transform_indices = @transform_0, window_bounds = array<i64: 1, 16, 16, 3>}, {pipeline_mode = #tpu.pipeline_mode<synchronous>, transform_indices = @transform_1, window_bounds = array<i64: 27, 8>}, {pipeline_mode = #tpu.pipeline_mode<synchronous>, transform_indices = @transform_2, window_bounds = array<i64: 1, 8>}, {transform_indices = @transform_3, window_bounds = array<i64: 1, 8, 8, 8>}]} {
    %cst = arith.constant 0.000000e+00 : bf16
    %0 = vector.broadcast %cst : bf16 to vector<1x32x3xbf16>
    %c0 = arith.constant 0 : index
    %c0_0 = arith.constant 0 : index
    %c0_1 = arith.constant 0 : index
    %1 = vector.load %arg5[%c0, %c0_0, %c0_1] : memref<18x32x3xbf16, #tpu.memory_space<vmem>>, vector<1x32x3xbf16>
    tpu.vector_store %arg5[%c0, %c0_0, %c0_1], %0 {strides = array<i32>} : memref<18x32x3xbf16, #tpu.memory_space<vmem>>, vector<1x32x3xbf16>,
    %c17 = arith.constant 17 : index
    %c0_2 = arith.constant 0 : index
    %c0_3 = arith.constant 0 : index
    %2 = vector.load %arg5[%c17, %c0_2, %c0_3] : memref<18x32x3xbf16, #tpu.memory_space<vmem>>, vector<1x32x3xbf16>
    tpu.vector_store %arg5[%c17, %c0_2, %c0_3], %0 {strides = array<i32>} : memref<18x32x3xbf16, #tpu.memory_space<vmem>>, vector<1x32x3xbf16>,
    %cst_4 = arith.constant 0.000000e+00 : bf16
    %3 = vector.broadcast %cst_4 : bf16 to vector<18x1x3xbf16>
    %c0_5 = arith.constant 0 : index
    %c7 = arith.constant 7 : index
    %c0_6 = arith.constant 0 : index
    %4 = vector.load %arg5[%c0_5, %c7, %c0_6] : memref<18x32x3xbf16, #tpu.memory_space<vmem>>, vector<18x1x3xbf16>
    tpu.vector_store %arg5[%c0_5, %c7, %c0_6], %3 {strides = array<i32>} : memref<18x32x3xbf16, #tpu.memory_space<vmem>>, vector<18x1x3xbf16>,
    %c0_7 = arith.constant 0 : index
    %c24 = arith.constant 24 : index
    %c0_8 = arith.constant 0 : index
    %5 = vector.load %arg5[%c0_7, %c24, %c0_8] : memref<18x32x3xbf16, #tpu.memory_space<vmem>>, vector<18x1x3xbf16>
    tpu.vector_store %arg5[%c0_7, %c24, %c0_8], %3 {strides = array<i32>} : memref<18x32x3xbf16, #tpu.memory_space<vmem>>, vector<18x1x3xbf16>,
    %c0_9 = arith.constant 0 : index
    %c0_10 = arith.constant 0 : index
    %c0_11 = arith.constant 0 : index
    %c0_12 = arith.constant 0 : index
    %6 = vector.load %arg1[%c0_9, %c0_10, %c0_11, %c0_12] : memref<1x16x16x3xbf16, #tpu.memory_space<vmem>>, vector<1x16x16x3xbf16>
    %7 = vector.shape_cast %6 : vector<1x16x16x3xbf16> to vector<16x16x3xbf16>
    %c1 = arith.constant 1 : index
    %c8 = arith.constant 8 : index
    %c0_13 = arith.constant 0 : index
    %8 = vector.load %arg5[%c1, %c8, %c0_13] : memref<18x32x3xbf16, #tpu.memory_space<vmem>>, vector<16x16x3xbf16>
    tpu.vector_store %arg5[%c1, %c8, %c0_13], %7 {strides = array<i32>} : memref<18x32x3xbf16, #tpu.memory_space<vmem>>, vector<16x16x3xbf16>,
    %c0_14 = arith.constant 0 : index
    %c0_15 = arith.constant 0 : index
    %9 = vector.load %arg3[%c0_14, %c0_15] : memref<1x8xf32, #tpu.memory_space<vmem>>, vector<1x8xf32>
    %10 = vector.shape_cast %9 : vector<1x8xf32> to vector<1x8xf32>
    %11 = vector.broadcast %10 : vector<1x8xf32> to vector<256x8xf32>
    %c0_16 = arith.constant 0 : index
    %c7_17 = arith.constant 7 : index
    %c0_18 = arith.constant 0 : index
    %12 = vector.load %arg5[%c0_16, %c7_17, %c0_18] : memref<18x32x3xbf16, #tpu.memory_space<vmem>>, vector<16x16x3xbf16>
    %13 = vector.shape_cast %12 : vector<16x16x3xbf16> to vector<256x3xbf16>
    %c0_19 = arith.constant 0 : index
    %c0_20 = arith.constant 0 : index
    %14 = vector.load %arg2[%c0_19, %c0_20] : memref<27x8xbf16, #tpu.memory_space<vmem>>, vector<3x8xbf16>
    %cst_21 = arith.constant dense<0.000000e+00> : vector<256x8xf32>
    %15 = tpu.matmul %13, %14, %cst_21 {dimension_numbers = #tpu.dot_dimension_numbers<[1], [0], [0], [1], [0, 0, 1, 1], [], []>} : vector<256x3xbf16>, vector<3x8xbf16>, vector<256x8xf32> -> vector<256x8xf32>
    %16 = arith.addf %11, %15 : vector<256x8xf32>
    %c0_22 = arith.constant 0 : index
    %c8_23 = arith.constant 8 : index
    %c0_24 = arith.constant 0 : index
    %17 = vector.load %arg5[%c0_22, %c8_23, %c0_24] : memref<18x32x3xbf16, #tpu.memory_space<vmem>>, vector<16x16x3xbf16>
    %18 = vector.shape_cast %17 : vector<16x16x3xbf16> to vector<256x3xbf16>
    %c3 = arith.constant 3 : index
    %c0_25 = arith.constant 0 : index
    %19 = vector.load %arg2[%c3, %c0_25] : memref<27x8xbf16, #tpu.memory_space<vmem>>, vector<3x8xbf16>
    %cst_26 = arith.constant dense<0.000000e+00> : vector<256x8xf32>
    %20 = tpu.matmul %18, %19, %cst_26 {dimension_numbers = #tpu.dot_dimension_numbers<[1], [0], [0], [1], [0, 0, 1, 1], [], []>} : vector<256x3xbf16>, vector<3x8xbf16>, vector<256x8xf32> -> vector<256x8xf32>
    %21 = arith.addf %16, %20 : vector<256x8xf32>
    %c0_27 = arith.constant 0 : index
    %c9 = arith.constant 9 : index
    %c0_28 = arith.constant 0 : index
    %22 = vector.load %arg5[%c0_27, %c9, %c0_28] : memref<18x32x3xbf16, #tpu.memory_space<vmem>>, vector<16x16x3xbf16>
    %23 = vector.shape_cast %22 : vector<16x16x3xbf16> to vector<256x3xbf16>
    %c6 = arith.constant 6 : index
    %c0_29 = arith.constant 0 : index
    %24 = vector.load %arg2[%c6, %c0_29] : memref<27x8xbf16, #tpu.memory_space<vmem>>, vector<3x8xbf16>
    %cst_30 = arith.constant dense<0.000000e+00> : vector<256x8xf32>
    %25 = tpu.matmul %23, %24, %cst_30 {dimension_numbers = #tpu.dot_dimension_numbers<[1], [0], [0], [1], [0, 0, 1, 1], [], []>} : vector<256x3xbf16>, vector<3x8xbf16>, vector<256x8xf32> -> vector<256x8xf32>
    %26 = arith.addf %21, %25 : vector<256x8xf32>
    %c1_31 = arith.constant 1 : index
    %c7_32 = arith.constant 7 : index
    %c0_33 = arith.constant 0 : index
    %27 = vector.load %arg5[%c1_31, %c7_32, %c0_33] : memref<18x32x3xbf16, #tpu.memory_space<vmem>>, vector<16x16x3xbf16>
    %28 = vector.shape_cast %27 : vector<16x16x3xbf16> to vector<256x3xbf16>
    %c9_34 = arith.constant 9 : index
    %c0_35 = arith.constant 0 : index
    %29 = vector.load %arg2[%c9_34, %c0_35] : memref<27x8xbf16, #tpu.memory_space<vmem>>, vector<3x8xbf16>
    %cst_36 = arith.constant dense<0.000000e+00> : vector<256x8xf32>
    %30 = tpu.matmul %28, %29, %cst_36 {dimension_numbers = #tpu.dot_dimension_numbers<[1], [0], [0], [1], [0, 0, 1, 1], [], []>} : vector<256x3xbf16>, vector<3x8xbf16>, vector<256x8xf32> -> vector<256x8xf32>
    %31 = arith.addf %26, %30 : vector<256x8xf32>
    %c1_37 = arith.constant 1 : index
    %c8_38 = arith.constant 8 : index
    %c0_39 = arith.constant 0 : index
    %32 = vector.load %arg5[%c1_37, %c8_38, %c0_39] : memref<18x32x3xbf16, #tpu.memory_space<vmem>>, vector<16x16x3xbf16>
    %33 = vector.shape_cast %32 : vector<16x16x3xbf16> to vector<256x3xbf16>
    %c12 = arith.constant 12 : index
    %c0_40 = arith.constant 0 : index
    %34 = vector.load %arg2[%c12, %c0_40] : memref<27x8xbf16, #tpu.memory_space<vmem>>, vector<3x8xbf16>
    %cst_41 = arith.constant dense<0.000000e+00> : vector<256x8xf32>
    %35 = tpu.matmul %33, %34, %cst_41 {dimension_numbers = #tpu.dot_dimension_numbers<[1], [0], [0], [1], [0, 0, 1, 1], [], []>} : vector<256x3xbf16>, vector<3x8xbf16>, vector<256x8xf32> -> vector<256x8xf32>
    %36 = arith.addf %31, %35 : vector<256x8xf32>
    %c1_42 = arith.constant 1 : index
    %c9_43 = arith.constant 9 : index
    %c0_44 = arith.constant 0 : index
    %37 = vector.load %arg5[%c1_42, %c9_43, %c0_44] : memref<18x32x3xbf16, #tpu.memory_space<vmem>>, vector<16x16x3xbf16>
    %38 = vector.shape_cast %37 : vector<16x16x3xbf16> to vector<256x3xbf16>
    %c15 = arith.constant 15 : index
    %c0_45 = arith.constant 0 : index
    %39 = vector.load %arg2[%c15, %c0_45] : memref<27x8xbf16, #tpu.memory_space<vmem>>, vector<3x8xbf16>
    %cst_46 = arith.constant dense<0.000000e+00> : vector<256x8xf32>
    %40 = tpu.matmul %38, %39, %cst_46 {dimension_numbers = #tpu.dot_dimension_numbers<[1], [0], [0], [1], [0, 0, 1, 1], [], []>} : vector<256x3xbf16>, vector<3x8xbf16>, vector<256x8xf32> -> vector<256x8xf32>
    %41 = arith.addf %36, %40 : vector<256x8xf32>
    %c2 = arith.constant 2 : index
    %c7_47 = arith.constant 7 : index
    %c0_48 = arith.constant 0 : index
    %42 = vector.load %arg5[%c2, %c7_47, %c0_48] : memref<18x32x3xbf16, #tpu.memory_space<vmem>>, vector<16x16x3xbf16>
    %43 = vector.shape_cast %42 : vector<16x16x3xbf16> to vector<256x3xbf16>
    %c18 = arith.constant 18 : index
    %c0_49 = arith.constant 0 : index
    %44 = vector.load %arg2[%c18, %c0_49] : memref<27x8xbf16, #tpu.memory_space<vmem>>, vector<3x8xbf16>
    %cst_50 = arith.constant dense<0.000000e+00> : vector<256x8xf32>
    %45 = tpu.matmul %43, %44, %cst_50 {dimension_numbers = #tpu.dot_dimension_numbers<[1], [0], [0], [1], [0, 0, 1, 1], [], []>} : vector<256x3xbf16>, vector<3x8xbf16>, vector<256x8xf32> -> vector<256x8xf32>
    %46 = arith.addf %41, %45 : vector<256x8xf32>
    %c2_51 = arith.constant 2 : index
    %c8_52 = arith.constant 8 : index
    %c0_53 = arith.constant 0 : index
    %47 = vector.load %arg5[%c2_51, %c8_52, %c0_53] : memref<18x32x3xbf16, #tpu.memory_space<vmem>>, vector<16x16x3xbf16>
    %48 = vector.shape_cast %47 : vector<16x16x3xbf16> to vector<256x3xbf16>
    %c21 = arith.constant 21 : index
    %c0_54 = arith.constant 0 : index
    %49 = vector.load %arg2[%c21, %c0_54] : memref<27x8xbf16, #tpu.memory_space<vmem>>, vector<3x8xbf16>
    %cst_55 = arith.constant dense<0.000000e+00> : vector<256x8xf32>
    %50 = tpu.matmul %48, %49, %cst_55 {dimension_numbers = #tpu.dot_dimension_numbers<[1], [0], [0], [1], [0, 0, 1, 1], [], []>} : vector<256x3xbf16>, vector<3x8xbf16>, vector<256x8xf32> -> vector<256x8xf32>
    %51 = arith.addf %46, %50 : vector<256x8xf32>
    %c2_56 = arith.constant 2 : index
    %c9_57 = arith.constant 9 : index
    %c0_58 = arith.constant 0 : index
    %52 = vector.load %arg5[%c2_56, %c9_57, %c0_58] : memref<18x32x3xbf16, #tpu.memory_space<vmem>>, vector<16x16x3xbf16>
    %53 = vector.shape_cast %52 : vector<16x16x3xbf16> to vector<256x3xbf16>
    %c24_59 = arith.constant 24 : index
    %c0_60 = arith.constant 0 : index
    %54 = vector.load %arg2[%c24_59, %c0_60] : memref<27x8xbf16, #tpu.memory_space<vmem>>, vector<3x8xbf16>
    %cst_61 = arith.constant dense<0.000000e+00> : vector<256x8xf32>
    %55 = tpu.matmul %53, %54, %cst_61 {dimension_numbers = #tpu.dot_dimension_numbers<[1], [0], [0], [1], [0, 0, 1, 1], [], []>} : vector<256x3xbf16>, vector<3x8xbf16>, vector<256x8xf32> -> vector<256x8xf32>
    %56 = arith.addf %51, %55 : vector<256x8xf32>
    %cst_62 = arith.constant 0.000000e+00 : f32
    %57 = vector.broadcast %cst_62 : f32 to vector<256x8xf32>
    %58 = arith.maximumf %56, %57 : vector<256x8xf32>
    %59 = vector.shape_cast %58 : vector<256x8xf32> to vector<8x2x8x2x8xf32>
    %cst_63 = arith.constant dense<0xFF800000> : vector<8x8x2x8xf32>
    %60 = vector.multi_reduction <maximumf>, %59, %cst_63 [1] : vector<8x2x8x2x8xf32> to vector<8x8x2x8xf32>
    %cst_64 = arith.constant dense<0xFF800000> : vector<8x8x8xf32>
    %61 = vector.multi_reduction <maximumf>, %60, %cst_64 [2] : vector<8x8x2x8xf32> to vector<8x8x8xf32>
    %62 = arith.truncf %61 : vector<8x8x8xf32> to vector<8x8x8xbf16>
    %c0_65 = arith.constant 0 : index
    %c0_66 = arith.constant 0 : index
    %c0_67 = arith.constant 0 : index
    %c0_68 = arith.constant 0 : index
    %63 = vector.load %arg4[%c0_65, %c0_66, %c0_67, %c0_68] : memref<1x8x8x8xbf16, #tpu.memory_space<vmem>>, vector<1x8x8x8xbf16>
    %64 = vector.shape_cast %63 : vector<1x8x8x8xbf16> to vector<8x8x8xbf16>
    %65 = vector.shape_cast %62 : vector<8x8x8xbf16> to vector<1x8x8x8xbf16>
    tpu.vector_store %arg4[%c0_65, %c0_66, %c0_67, %c0_68], %65 {strides = array<i32>} : memref<1x8x8x8xbf16, #tpu.memory_space<vmem>>, vector<1x8x8x8xbf16>,
    return
  }
  func.func @transform_0(%arg0: i32) -> (i32, i32, i32, i32) {
    %c0_i32 = arith.constant 0 : i32
    %c0_i32_0 = arith.constant 0 : i32
    %c0_i32_1 = arith.constant 0 : i32
    %c0_i32_2 = arith.constant 0 : i32
    return %arg0, %c0_i32, %c0_i32_0, %c0_i32_1 : i32, i32, i32, i32
  }
  func.func @transform_1(%arg0: i32) -> (i32, i32) {
    %c0_i32 = arith.constant 0 : i32
    %c0_i32_0 = arith.constant 0 : i32
    %c0_i32_1 = arith.constant 0 : i32
    return %c0_i32, %c0_i32_0 : i32, i32
  }
  func.func @transform_2(%arg0: i32) -> (i32, i32) {
    %c0_i32 = arith.constant 0 : i32
    %c0_i32_0 = arith.constant 0 : i32
    %c0_i32_1 = arith.constant 0 : i32
    return %c0_i32, %c0_i32_0 : i32, i32
  }
  func.func @transform_3(%arg0: i32) -> (i32, i32, i32, i32) {
    %c0_i32 = arith.constant 0 : i32
    %c0_i32_0 = arith.constant 0 : i32
    %c0_i32_1 = arith.constant 0 : i32
    %c0_i32_2 = arith.constant 0 : i32
    return %arg0, %c0_i32, %c0_i32_0, %c0_i32_1 : i32, i32, i32, i32
  }
}

module attributes {stable_mosaic.version = 11 : i64} {
  func.func @_linear_kernel(%arg0: i32, %arg1: i32, %arg2: memref<2x256xbf16, #tpu.memory_space<vmem>>, %arg3: memref<256x128xbf16, #tpu.memory_space<vmem>>, %arg4: memref<1x128xf32, #tpu.memory_space<vmem>>, %arg5: memref<2x128xbf16, #tpu.memory_space<vmem>>, %arg6: memref<2x128xf32, #tpu.memory_space<vmem>>) attributes {dimension_semantics = [#tpu.dimension_semantics<parallel>, #tpu.dimension_semantics<arbitrary>], iteration_bounds = array<i64: 2, 1>, scalar_prefetch = 0 : i64, scratch_operands = 1 : i64, tpu.core_type = #tpu.core_type<tc>, window_params = [{transform_indices = @transform_0, window_bounds = array<i64: 2, 256>}, {transform_indices = @transform_1, window_bounds = array<i64: 256, 128>}, {transform_indices = @transform_2, window_bounds = array<i64: 1, 128>}, {transform_indices = @transform_3, window_bounds = array<i64: 2, 128>}]} {
    %c0_i32 = arith.constant 0 : i32
    %0 = arith.cmpi eq, %arg1, %c0_i32 : i32
    %1 = arith.extui %0 : i1 to i32
    %c0_i32_0 = arith.constant 0 : i32
    %2 = arith.cmpi ne, %1, %c0_i32_0 : i32
    scf.if %2 {
      %cst_10 = arith.constant 0.000000e+00 : f32
      %12 = vector.broadcast %cst_10 : f32 to vector<2x128xf32>
      %c0_11 = arith.constant 0 : index
      %c0_12 = arith.constant 0 : index
      %13 = vector.load %arg6[%c0_11, %c0_12] : memref<2x128xf32, #tpu.memory_space<vmem>>, vector<2x128xf32>
      tpu.vector_store %arg6[%c0_11, %c0_12], %12 {strides = array<i32>} : memref<2x128xf32, #tpu.memory_space<vmem>>, vector<2x128xf32>,
    } else {
    }
    %c0 = arith.constant 0 : index
    %c0_1 = arith.constant 0 : index
    %3 = vector.load %arg6[%c0, %c0_1] : memref<2x128xf32, #tpu.memory_space<vmem>>, vector<2x128xf32>
    %c0_2 = arith.constant 0 : index
    %c0_3 = arith.constant 0 : index
    %4 = vector.load %arg2[%c0_2, %c0_3] : memref<2x256xbf16, #tpu.memory_space<vmem>>, vector<2x256xbf16>
    %c0_4 = arith.constant 0 : index
    %c0_5 = arith.constant 0 : index
    %5 = vector.load %arg3[%c0_4, %c0_5] : memref<256x128xbf16, #tpu.memory_space<vmem>>, vector<256x128xbf16>
    %cst = arith.constant dense<0.000000e+00> : vector<2x128xf32>
    %6 = tpu.matmul %4, %5, %cst {dimension_numbers = #tpu.dot_dimension_numbers<[1], [0], [0], [1], [0, 0, 1, 1], [], []>} : vector<2x256xbf16>, vector<256x128xbf16>, vector<2x128xf32> -> vector<2x128xf32>
    %7 = arith.addf %3, %6 : vector<2x128xf32>
    %c0_6 = arith.constant 0 : index
    %c0_7 = arith.constant 0 : index
    %8 = vector.load %arg6[%c0_6, %c0_7] : memref<2x128xf32, #tpu.memory_space<vmem>>, vector<2x128xf32>
    tpu.vector_store %arg6[%c0_6, %c0_7], %7 {strides = array<i32>} : memref<2x128xf32, #tpu.memory_space<vmem>>, vector<2x128xf32>,
    %c0_i32_8 = arith.constant 0 : i32
    %9 = arith.cmpi eq, %arg1, %c0_i32_8 : i32
    %10 = arith.extui %9 : i1 to i32
    %c0_i32_9 = arith.constant 0 : i32
    %11 = arith.cmpi ne, %10, %c0_i32_9 : i32
    scf.if %11 {
      %c0_10 = arith.constant 0 : index
      %c0_11 = arith.constant 0 : index
      %12 = vector.load %arg6[%c0_10, %c0_11] : memref<2x128xf32, #tpu.memory_space<vmem>>, vector<2x128xf32>
      %c0_12 = arith.constant 0 : index
      %c0_13 = arith.constant 0 : index
      %13 = vector.load %arg4[%c0_12, %c0_13] : memref<1x128xf32, #tpu.memory_space<vmem>>, vector<1x128xf32>
      %14 = vector.broadcast %13 : vector<1x128xf32> to vector<2x128xf32>
      %15 = arith.addf %12, %14 : vector<2x128xf32>
      %cst_14 = arith.constant 0.000000e+00 : f32
      %16 = vector.broadcast %cst_14 : f32 to vector<2x128xf32>
      %17 = arith.maximumf %15, %16 : vector<2x128xf32>
      %18 = arith.truncf %17 : vector<2x128xf32> to vector<2x128xbf16>
      %c0_15 = arith.constant 0 : index
      %c0_16 = arith.constant 0 : index
      %19 = vector.load %arg5[%c0_15, %c0_16] : memref<2x128xbf16, #tpu.memory_space<vmem>>, vector<2x128xbf16>
      tpu.vector_store %arg5[%c0_15, %c0_16], %18 {strides = array<i32>} : memref<2x128xbf16, #tpu.memory_space<vmem>>, vector<2x128xbf16>,
    } else {
    }
    return
  }
  func.func @transform_0(%arg0: i32, %arg1: i32) -> (i32, i32) {
    %c0_i32 = arith.constant 0 : i32
    %c0_i32_0 = arith.constant 0 : i32
    return %c0_i32, %arg1 : i32, i32
  }
  func.func @transform_1(%arg0: i32, %arg1: i32) -> (i32, i32) {
    %c0_i32 = arith.constant 0 : i32
    return %arg1, %arg0 : i32, i32
  }
  func.func @transform_2(%arg0: i32, %arg1: i32) -> (i32, i32) {
    %c0_i32 = arith.constant 0 : i32
    %c0_i32_0 = arith.constant 0 : i32
    return %c0_i32, %arg0 : i32, i32
  }
  func.func @transform_3(%arg0: i32, %arg1: i32) -> (i32, i32) {
    %c0_i32 = arith.constant 0 : i32
    %c0_i32_0 = arith.constant 0 : i32
    return %c0_i32, %arg0 : i32, i32
  }
}

module attributes {stable_mosaic.version = 11 : i64} {
  func.func @_conv_block_kernel(%arg0: i32, %arg1: memref<1x8x8x8xbf16, #tpu.memory_space<vmem>>, %arg2: memref<72x16xbf16, #tpu.memory_space<vmem>>, %arg3: memref<1x16xf32, #tpu.memory_space<vmem>>, %arg4: memref<1x4x4x16xbf16, #tpu.memory_space<vmem>>, %arg5: memref<10x24x8xbf16, #tpu.memory_space<vmem>>) attributes {dimension_semantics = [#tpu.dimension_semantics<parallel>], iteration_bounds = array<i64: 2>, scalar_prefetch = 0 : i64, scratch_operands = 1 : i64, tpu.core_type = #tpu.core_type<tc>, window_params = [{transform_indices = @transform_0, window_bounds = array<i64: 1, 8, 8, 8>}, {pipeline_mode = #tpu.pipeline_mode<synchronous>, transform_indices = @transform_1, window_bounds = array<i64: 72, 16>}, {pipeline_mode = #tpu.pipeline_mode<synchronous>, transform_indices = @transform_2, window_bounds = array<i64: 1, 16>}, {transform_indices = @transform_3, window_bounds = array<i64: 1, 4, 4, 16>}]} {
    %cst = arith.constant 0.000000e+00 : bf16
    %0 = vector.broadcast %cst : bf16 to vector<1x24x8xbf16>
    %c0 = arith.constant 0 : index
    %c0_0 = arith.constant 0 : index
    %c0_1 = arith.constant 0 : index
    %1 = vector.load %arg5[%c0, %c0_0, %c0_1] : memref<10x24x8xbf16, #tpu.memory_space<vmem>>, vector<1x24x8xbf16>
    tpu.vector_store %arg5[%c0, %c0_0, %c0_1], %0 {strides = array<i32>} : memref<10x24x8xbf16, #tpu.memory_space<vmem>>, vector<1x24x8xbf16>,
    %c9 = arith.constant 9 : index
    %c0_2 = arith.constant 0 : index
    %c0_3 = arith.constant 0 : index
    %2 = vector.load %arg5[%c9, %c0_2, %c0_3] : memref<10x24x8xbf16, #tpu.memory_space<vmem>>, vector<1x24x8xbf16>
    tpu.vector_store %arg5[%c9, %c0_2, %c0_3], %0 {strides = array<i32>} : memref<10x24x8xbf16, #tpu.memory_space<vmem>>, vector<1x24x8xbf16>,
    %cst_4 = arith.constant 0.000000e+00 : bf16
    %3 = vector.broadcast %cst_4 : bf16 to vector<10x1x8xbf16>
    %c0_5 = arith.constant 0 : index
    %c7 = arith.constant 7 : index
    %c0_6 = arith.constant 0 : index
    %4 = vector.load %arg5[%c0_5, %c7, %c0_6] : memref<10x24x8xbf16, #tpu.memory_space<vmem>>, vector<10x1x8xbf16>
    tpu.vector_store %arg5[%c0_5, %c7, %c0_6], %3 {strides = array<i32>} : memref<10x24x8xbf16, #tpu.memory_space<vmem>>, vector<10x1x8xbf16>,
    %c0_7 = arith.constant 0 : index
    %c16 = arith.constant 16 : index
    %c0_8 = arith.constant 0 : index
    %5 = vector.load %arg5[%c0_7, %c16, %c0_8] : memref<10x24x8xbf16, #tpu.memory_space<vmem>>, vector<10x1x8xbf16>
    tpu.vector_store %arg5[%c0_7, %c16, %c0_8], %3 {strides = array<i32>} : memref<10x24x8xbf16, #tpu.memory_space<vmem>>, vector<10x1x8xbf16>,
    %c0_9 = arith.constant 0 : index
    %c0_10 = arith.constant 0 : index
    %c0_11 = arith.constant 0 : index
    %c0_12 = arith.constant 0 : index
    %6 = vector.load %arg1[%c0_9, %c0_10, %c0_11, %c0_12] : memref<1x8x8x8xbf16, #tpu.memory_space<vmem>>, vector<1x8x8x8xbf16>
    %7 = vector.shape_cast %6 : vector<1x8x8x8xbf16> to vector<8x8x8xbf16>
    %c1 = arith.constant 1 : index
    %c8 = arith.constant 8 : index
    %c0_13 = arith.constant 0 : index
    %8 = vector.load %arg5[%c1, %c8, %c0_13] : memref<10x24x8xbf16, #tpu.memory_space<vmem>>, vector<8x8x8xbf16>
    tpu.vector_store %arg5[%c1, %c8, %c0_13], %7 {strides = array<i32>} : memref<10x24x8xbf16, #tpu.memory_space<vmem>>, vector<8x8x8xbf16>,
    %c0_14 = arith.constant 0 : index
    %c0_15 = arith.constant 0 : index
    %9 = vector.load %arg3[%c0_14, %c0_15] : memref<1x16xf32, #tpu.memory_space<vmem>>, vector<1x16xf32>
    %10 = vector.shape_cast %9 : vector<1x16xf32> to vector<1x16xf32>
    %11 = vector.broadcast %10 : vector<1x16xf32> to vector<64x16xf32>
    %c0_16 = arith.constant 0 : index
    %c7_17 = arith.constant 7 : index
    %c0_18 = arith.constant 0 : index
    %12 = vector.load %arg5[%c0_16, %c7_17, %c0_18] : memref<10x24x8xbf16, #tpu.memory_space<vmem>>, vector<8x8x8xbf16>
    %13 = vector.shape_cast %12 : vector<8x8x8xbf16> to vector<64x8xbf16>
    %c0_19 = arith.constant 0 : index
    %c0_20 = arith.constant 0 : index
    %14 = vector.load %arg2[%c0_19, %c0_20] : memref<72x16xbf16, #tpu.memory_space<vmem>>, vector<8x16xbf16>
    %cst_21 = arith.constant dense<0.000000e+00> : vector<64x16xf32>
    %15 = tpu.matmul %13, %14, %cst_21 {dimension_numbers = #tpu.dot_dimension_numbers<[1], [0], [0], [1], [0, 0, 1, 1], [], []>} : vector<64x8xbf16>, vector<8x16xbf16>, vector<64x16xf32> -> vector<64x16xf32>
    %16 = arith.addf %11, %15 : vector<64x16xf32>
    %c0_22 = arith.constant 0 : index
    %c8_23 = arith.constant 8 : index
    %c0_24 = arith.constant 0 : index
    %17 = vector.load %arg5[%c0_22, %c8_23, %c0_24] : memref<10x24x8xbf16, #tpu.memory_space<vmem>>, vector<8x8x8xbf16>
    %18 = vector.shape_cast %17 : vector<8x8x8xbf16> to vector<64x8xbf16>
    %c8_25 = arith.constant 8 : index
    %c0_26 = arith.constant 0 : index
    %19 = vector.load %arg2[%c8_25, %c0_26] : memref<72x16xbf16, #tpu.memory_space<vmem>>, vector<8x16xbf16>
    %cst_27 = arith.constant dense<0.000000e+00> : vector<64x16xf32>
    %20 = tpu.matmul %18, %19, %cst_27 {dimension_numbers = #tpu.dot_dimension_numbers<[1], [0], [0], [1], [0, 0, 1, 1], [], []>} : vector<64x8xbf16>, vector<8x16xbf16>, vector<64x16xf32> -> vector<64x16xf32>
    %21 = arith.addf %16, %20 : vector<64x16xf32>
    %c0_28 = arith.constant 0 : index
    %c9_29 = arith.constant 9 : index
    %c0_30 = arith.constant 0 : index
    %22 = vector.load %arg5[%c0_28, %c9_29, %c0_30] : memref<10x24x8xbf16, #tpu.memory_space<vmem>>, vector<8x8x8xbf16>
    %23 = vector.shape_cast %22 : vector<8x8x8xbf16> to vector<64x8xbf16>
    %c16_31 = arith.constant 16 : index
    %c0_32 = arith.constant 0 : index
    %24 = vector.load %arg2[%c16_31, %c0_32] : memref<72x16xbf16, #tpu.memory_space<vmem>>, vector<8x16xbf16>
    %cst_33 = arith.constant dense<0.000000e+00> : vector<64x16xf32>
    %25 = tpu.matmul %23, %24, %cst_33 {dimension_numbers = #tpu.dot_dimension_numbers<[1], [0], [0], [1], [0, 0, 1, 1], [], []>} : vector<64x8xbf16>, vector<8x16xbf16>, vector<64x16xf32> -> vector<64x16xf32>
    %26 = arith.addf %21, %25 : vector<64x16xf32>
    %c1_34 = arith.constant 1 : index
    %c7_35 = arith.constant 7 : index
    %c0_36 = arith.constant 0 : index
    %27 = vector.load %arg5[%c1_34, %c7_35, %c0_36] : memref<10x24x8xbf16, #tpu.memory_space<vmem>>, vector<8x8x8xbf16>
    %28 = vector.shape_cast %27 : vector<8x8x8xbf16> to vector<64x8xbf16>
    %c24 = arith.constant 24 : index
    %c0_37 = arith.constant 0 : index
    %29 = vector.load %arg2[%c24, %c0_37] : memref<72x16xbf16, #tpu.memory_space<vmem>>, vector<8x16xbf16>
    %cst_38 = arith.constant dense<0.000000e+00> : vector<64x16xf32>
    %30 = tpu.matmul %28, %29, %cst_38 {dimension_numbers = #tpu.dot_dimension_numbers<[1], [0], [0], [1], [0, 0, 1, 1], [], []>} : vector<64x8xbf16>, vector<8x16xbf16>, vector<64x16xf32> -> vector<64x16xf32>
    %31 = arith.addf %26, %30 : vector<64x16xf32>
    %c1_39 = arith.constant 1 : index
    %c8_40 = arith.constant 8 : index
    %c0_41 = arith.constant 0 : index
    %32 = vector.load %arg5[%c1_39, %c8_40, %c0_41] : memref<10x24x8xbf16, #tpu.memory_space<vmem>>, vector<8x8x8xbf16>
    %33 = vector.shape_cast %32 : vector<8x8x8xbf16> to vector<64x8xbf16>
    %c32 = arith.constant 32 : index
    %c0_42 = arith.constant 0 : index
    %34 = vector.load %arg2[%c32, %c0_42] : memref<72x16xbf16, #tpu.memory_space<vmem>>, vector<8x16xbf16>
    %cst_43 = arith.constant dense<0.000000e+00> : vector<64x16xf32>
    %35 = tpu.matmul %33, %34, %cst_43 {dimension_numbers = #tpu.dot_dimension_numbers<[1], [0], [0], [1], [0, 0, 1, 1], [], []>} : vector<64x8xbf16>, vector<8x16xbf16>, vector<64x16xf32> -> vector<64x16xf32>
    %36 = arith.addf %31, %35 : vector<64x16xf32>
    %c1_44 = arith.constant 1 : index
    %c9_45 = arith.constant 9 : index
    %c0_46 = arith.constant 0 : index
    %37 = vector.load %arg5[%c1_44, %c9_45, %c0_46] : memref<10x24x8xbf16, #tpu.memory_space<vmem>>, vector<8x8x8xbf16>
    %38 = vector.shape_cast %37 : vector<8x8x8xbf16> to vector<64x8xbf16>
    %c40 = arith.constant 40 : index
    %c0_47 = arith.constant 0 : index
    %39 = vector.load %arg2[%c40, %c0_47] : memref<72x16xbf16, #tpu.memory_space<vmem>>, vector<8x16xbf16>
    %cst_48 = arith.constant dense<0.000000e+00> : vector<64x16xf32>
    %40 = tpu.matmul %38, %39, %cst_48 {dimension_numbers = #tpu.dot_dimension_numbers<[1], [0], [0], [1], [0, 0, 1, 1], [], []>} : vector<64x8xbf16>, vector<8x16xbf16>, vector<64x16xf32> -> vector<64x16xf32>
    %41 = arith.addf %36, %40 : vector<64x16xf32>
    %c2 = arith.constant 2 : index
    %c7_49 = arith.constant 7 : index
    %c0_50 = arith.constant 0 : index
    %42 = vector.load %arg5[%c2, %c7_49, %c0_50] : memref<10x24x8xbf16, #tpu.memory_space<vmem>>, vector<8x8x8xbf16>
    %43 = vector.shape_cast %42 : vector<8x8x8xbf16> to vector<64x8xbf16>
    %c48 = arith.constant 48 : index
    %c0_51 = arith.constant 0 : index
    %44 = vector.load %arg2[%c48, %c0_51] : memref<72x16xbf16, #tpu.memory_space<vmem>>, vector<8x16xbf16>
    %cst_52 = arith.constant dense<0.000000e+00> : vector<64x16xf32>
    %45 = tpu.matmul %43, %44, %cst_52 {dimension_numbers = #tpu.dot_dimension_numbers<[1], [0], [0], [1], [0, 0, 1, 1], [], []>} : vector<64x8xbf16>, vector<8x16xbf16>, vector<64x16xf32> -> vector<64x16xf32>
    %46 = arith.addf %41, %45 : vector<64x16xf32>
    %c2_53 = arith.constant 2 : index
    %c8_54 = arith.constant 8 : index
    %c0_55 = arith.constant 0 : index
    %47 = vector.load %arg5[%c2_53, %c8_54, %c0_55] : memref<10x24x8xbf16, #tpu.memory_space<vmem>>, vector<8x8x8xbf16>
    %48 = vector.shape_cast %47 : vector<8x8x8xbf16> to vector<64x8xbf16>
    %c56 = arith.constant 56 : index
    %c0_56 = arith.constant 0 : index
    %49 = vector.load %arg2[%c56, %c0_56] : memref<72x16xbf16, #tpu.memory_space<vmem>>, vector<8x16xbf16>
    %cst_57 = arith.constant dense<0.000000e+00> : vector<64x16xf32>
    %50 = tpu.matmul %48, %49, %cst_57 {dimension_numbers = #tpu.dot_dimension_numbers<[1], [0], [0], [1], [0, 0, 1, 1], [], []>} : vector<64x8xbf16>, vector<8x16xbf16>, vector<64x16xf32> -> vector<64x16xf32>
    %51 = arith.addf %46, %50 : vector<64x16xf32>
    %c2_58 = arith.constant 2 : index
    %c9_59 = arith.constant 9 : index
    %c0_60 = arith.constant 0 : index
    %52 = vector.load %arg5[%c2_58, %c9_59, %c0_60] : memref<10x24x8xbf16, #tpu.memory_space<vmem>>, vector<8x8x8xbf16>
    %53 = vector.shape_cast %52 : vector<8x8x8xbf16> to vector<64x8xbf16>
    %c64 = arith.constant 64 : index
    %c0_61 = arith.constant 0 : index
    %54 = vector.load %arg2[%c64, %c0_61] : memref<72x16xbf16, #tpu.memory_space<vmem>>, vector<8x16xbf16>
    %cst_62 = arith.constant dense<0.000000e+00> : vector<64x16xf32>
    %55 = tpu.matmul %53, %54, %cst_62 {dimension_numbers = #tpu.dot_dimension_numbers<[1], [0], [0], [1], [0, 0, 1, 1], [], []>} : vector<64x8xbf16>, vector<8x16xbf16>, vector<64x16xf32> -> vector<64x16xf32>
    %56 = arith.addf %51, %55 : vector<64x16xf32>
    %cst_63 = arith.constant 0.000000e+00 : f32
    %57 = vector.broadcast %cst_63 : f32 to vector<64x16xf32>
    %58 = arith.maximumf %56, %57 : vector<64x16xf32>
    %59 = vector.shape_cast %58 : vector<64x16xf32> to vector<4x2x4x2x16xf32>
    %cst_64 = arith.constant dense<0xFF800000> : vector<4x4x2x16xf32>
    %60 = vector.multi_reduction <maximumf>, %59, %cst_64 [1] : vector<4x2x4x2x16xf32> to vector<4x4x2x16xf32>
    %cst_65 = arith.constant dense<0xFF800000> : vector<4x4x16xf32>
    %61 = vector.multi_reduction <maximumf>, %60, %cst_65 [2] : vector<4x4x2x16xf32> to vector<4x4x16xf32>
    %62 = arith.truncf %61 : vector<4x4x16xf32> to vector<4x4x16xbf16>
    %c0_66 = arith.constant 0 : index
    %c0_67 = arith.constant 0 : index
    %c0_68 = arith.constant 0 : index
    %c0_69 = arith.constant 0 : index
    %63 = vector.load %arg4[%c0_66, %c0_67, %c0_68, %c0_69] : memref<1x4x4x16xbf16, #tpu.memory_space<vmem>>, vector<1x4x4x16xbf16>
    %64 = vector.shape_cast %63 : vector<1x4x4x16xbf16> to vector<4x4x16xbf16>
    %65 = vector.shape_cast %62 : vector<4x4x16xbf16> to vector<1x4x4x16xbf16>
    tpu.vector_store %arg4[%c0_66, %c0_67, %c0_68, %c0_69], %65 {strides = array<i32>} : memref<1x4x4x16xbf16, #tpu.memory_space<vmem>>, vector<1x4x4x16xbf16>,
    return
  }
  func.func @transform_0(%arg0: i32) -> (i32, i32, i32, i32) {
    %c0_i32 = arith.constant 0 : i32
    %c0_i32_0 = arith.constant 0 : i32
    %c0_i32_1 = arith.constant 0 : i32
    %c0_i32_2 = arith.constant 0 : i32
    return %arg0, %c0_i32, %c0_i32_0, %c0_i32_1 : i32, i32, i32, i32
  }
  func.func @transform_1(%arg0: i32) -> (i32, i32) {
    %c0_i32 = arith.constant 0 : i32
    %c0_i32_0 = arith.constant 0 : i32
    %c0_i32_1 = arith.constant 0 : i32
    return %c0_i32, %c0_i32_0 : i32, i32
  }
  func.func @transform_2(%arg0: i32) -> (i32, i32) {
    %c0_i32 = arith.constant 0 : i32
    %c0_i32_0 = arith.constant 0 : i32
    %c0_i32_1 = arith.constant 0 : i32
    return %c0_i32, %c0_i32_0 : i32, i32
  }
  func.func @transform_3(%arg0: i32) -> (i32, i32, i32, i32) {
    %c0_i32 = arith.constant 0 : i32
    %c0_i32_0 = arith.constant 0 : i32
    %c0_i32_1 = arith.constant 0 : i32
    %c0_i32_2 = arith.constant 0 : i32
    return %arg0, %c0_i32, %c0_i32_0, %c0_i32_1 : i32, i32, i32, i32
  }
}

module attributes {stable_mosaic.version = 11 : i64} {
  func.func @_linear_kernel(%arg0: i32, %arg1: i32, %arg2: memref<2x256xbf16, #tpu.memory_space<vmem>>, %arg3: memref<256x128xbf16, #tpu.memory_space<vmem>>, %arg4: memref<1x128xf32, #tpu.memory_space<vmem>>, %arg5: memref<2x128xbf16, #tpu.memory_space<vmem>>, %arg6: memref<2x128xf32, #tpu.memory_space<vmem>>) attributes {dimension_semantics = [#tpu.dimension_semantics<parallel>, #tpu.dimension_semantics<arbitrary>], iteration_bounds = array<i64: 2, 1>, scalar_prefetch = 0 : i64, scratch_operands = 1 : i64, tpu.core_type = #tpu.core_type<tc>, window_params = [{transform_indices = @transform_0, window_bounds = array<i64: 2, 256>}, {transform_indices = @transform_1, window_bounds = array<i64: 256, 128>}, {transform_indices = @transform_2, window_bounds = array<i64: 1, 128>}, {transform_indices = @transform_3, window_bounds = array<i64: 2, 128>}]} {
    %c0_i32 = arith.constant 0 : i32
    %0 = arith.cmpi eq, %arg1, %c0_i32 : i32
    %1 = arith.extui %0 : i1 to i32
    %c0_i32_0 = arith.constant 0 : i32
    %2 = arith.cmpi ne, %1, %c0_i32_0 : i32
    scf.if %2 {
      %cst_10 = arith.constant 0.000000e+00 : f32
      %12 = vector.broadcast %cst_10 : f32 to vector<2x128xf32>
      %c0_11 = arith.constant 0 : index
      %c0_12 = arith.constant 0 : index
      %13 = vector.load %arg6[%c0_11, %c0_12] : memref<2x128xf32, #tpu.memory_space<vmem>>, vector<2x128xf32>
      tpu.vector_store %arg6[%c0_11, %c0_12], %12 {strides = array<i32>} : memref<2x128xf32, #tpu.memory_space<vmem>>, vector<2x128xf32>,
    } else {
    }
    %c0 = arith.constant 0 : index
    %c0_1 = arith.constant 0 : index
    %3 = vector.load %arg6[%c0, %c0_1] : memref<2x128xf32, #tpu.memory_space<vmem>>, vector<2x128xf32>
    %c0_2 = arith.constant 0 : index
    %c0_3 = arith.constant 0 : index
    %4 = vector.load %arg2[%c0_2, %c0_3] : memref<2x256xbf16, #tpu.memory_space<vmem>>, vector<2x256xbf16>
    %c0_4 = arith.constant 0 : index
    %c0_5 = arith.constant 0 : index
    %5 = vector.load %arg3[%c0_4, %c0_5] : memref<256x128xbf16, #tpu.memory_space<vmem>>, vector<256x128xbf16>
    %cst = arith.constant dense<0.000000e+00> : vector<2x128xf32>
    %6 = tpu.matmul %4, %5, %cst {dimension_numbers = #tpu.dot_dimension_numbers<[1], [0], [0], [1], [0, 0, 1, 1], [], []>} : vector<2x256xbf16>, vector<256x128xbf16>, vector<2x128xf32> -> vector<2x128xf32>
    %7 = arith.addf %3, %6 : vector<2x128xf32>
    %c0_6 = arith.constant 0 : index
    %c0_7 = arith.constant 0 : index
    %8 = vector.load %arg6[%c0_6, %c0_7] : memref<2x128xf32, #tpu.memory_space<vmem>>, vector<2x128xf32>
    tpu.vector_store %arg6[%c0_6, %c0_7], %7 {strides = array<i32>} : memref<2x128xf32, #tpu.memory_space<vmem>>, vector<2x128xf32>,
    %c0_i32_8 = arith.constant 0 : i32
    %9 = arith.cmpi eq, %arg1, %c0_i32_8 : i32
    %10 = arith.extui %9 : i1 to i32
    %c0_i32_9 = arith.constant 0 : i32
    %11 = arith.cmpi ne, %10, %c0_i32_9 : i32
    scf.if %11 {
      %c0_10 = arith.constant 0 : index
      %c0_11 = arith.constant 0 : index
      %12 = vector.load %arg6[%c0_10, %c0_11] : memref<2x128xf32, #tpu.memory_space<vmem>>, vector<2x128xf32>
      %c0_12 = arith.constant 0 : index
      %c0_13 = arith.constant 0 : index
      %13 = vector.load %arg4[%c0_12, %c0_13] : memref<1x128xf32, #tpu.memory_space<vmem>>, vector<1x128xf32>
      %14 = vector.broadcast %13 : vector<1x128xf32> to vector<2x128xf32>
      %15 = arith.addf %12, %14 : vector<2x128xf32>
      %cst_14 = arith.constant 0.000000e+00 : f32
      %16 = vector.broadcast %cst_14 : f32 to vector<2x128xf32>
      %17 = arith.maximumf %15, %16 : vector<2x128xf32>
      %18 = arith.truncf %17 : vector<2x128xf32> to vector<2x128xbf16>
      %c0_15 = arith.constant 0 : index
      %c0_16 = arith.constant 0 : index
      %19 = vector.load %arg5[%c0_15, %c0_16] : memref<2x128xbf16, #tpu.memory_space<vmem>>, vector<2x128xbf16>
      tpu.vector_store %arg5[%c0_15, %c0_16], %18 {strides = array<i32>} : memref<2x128xbf16, #tpu.memory_space<vmem>>, vector<2x128xbf16>,
    } else {
    }
    return
  }
  func.func @transform_0(%arg0: i32, %arg1: i32) -> (i32, i32) {
    %c0_i32 = arith.constant 0 : i32
    %c0_i32_0 = arith.constant 0 : i32
    return %c0_i32, %arg1 : i32, i32
  }
  func.func @transform_1(%arg0: i32, %arg1: i32) -> (i32, i32) {
    %c0_i32 = arith.constant 0 : i32
    return %arg1, %arg0 : i32, i32
  }
  func.func @transform_2(%arg0: i32, %arg1: i32) -> (i32, i32) {
    %c0_i32 = arith.constant 0 : i32
    %c0_i32_0 = arith.constant 0 : i32
    return %c0_i32, %arg0 : i32, i32
  }
  func.func @transform_3(%arg0: i32, %arg1: i32) -> (i32, i32) {
    %c0_i32 = arith.constant 0 : i32
    %c0_i32_0 = arith.constant 0 : i32
    return %c0_i32, %arg0 : i32, i32
  }
}

module attributes {stable_mosaic.version = 11 : i64} {
  func.func @_linear_kernel(%arg0: i32, %arg1: i32, %arg2: memref<2x256xbf16, #tpu.memory_space<vmem>>, %arg3: memref<256x10xbf16, #tpu.memory_space<vmem>>, %arg4: memref<1x10xf32, #tpu.memory_space<vmem>>, %arg5: memref<2x10xf32, #tpu.memory_space<vmem>>, %arg6: memref<2x10xf32, #tpu.memory_space<vmem>>) attributes {dimension_semantics = [#tpu.dimension_semantics<parallel>, #tpu.dimension_semantics<arbitrary>], iteration_bounds = array<i64: 1, 1>, scalar_prefetch = 0 : i64, scratch_operands = 1 : i64, tpu.core_type = #tpu.core_type<tc>, window_params = [{transform_indices = @transform_0, window_bounds = array<i64: 2, 256>}, {transform_indices = @transform_1, window_bounds = array<i64: 256, 10>}, {transform_indices = @transform_2, window_bounds = array<i64: 1, 10>}, {transform_indices = @transform_3, window_bounds = array<i64: 2, 10>}]} {
    %c0_i32 = arith.constant 0 : i32
    %0 = arith.cmpi eq, %arg1, %c0_i32 : i32
    %1 = arith.extui %0 : i1 to i32
    %c0_i32_0 = arith.constant 0 : i32
    %2 = arith.cmpi ne, %1, %c0_i32_0 : i32
    scf.if %2 {
      %cst_10 = arith.constant 0.000000e+00 : f32
      %12 = vector.broadcast %cst_10 : f32 to vector<2x10xf32>
      %c0_11 = arith.constant 0 : index
      %c0_12 = arith.constant 0 : index
      %13 = vector.load %arg6[%c0_11, %c0_12] : memref<2x10xf32, #tpu.memory_space<vmem>>, vector<2x10xf32>
      tpu.vector_store %arg6[%c0_11, %c0_12], %12 {strides = array<i32>} : memref<2x10xf32, #tpu.memory_space<vmem>>, vector<2x10xf32>,
    } else {
    }
    %c0 = arith.constant 0 : index
    %c0_1 = arith.constant 0 : index
    %3 = vector.load %arg6[%c0, %c0_1] : memref<2x10xf32, #tpu.memory_space<vmem>>, vector<2x10xf32>
    %c0_2 = arith.constant 0 : index
    %c0_3 = arith.constant 0 : index
    %4 = vector.load %arg2[%c0_2, %c0_3] : memref<2x256xbf16, #tpu.memory_space<vmem>>, vector<2x256xbf16>
    %c0_4 = arith.constant 0 : index
    %c0_5 = arith.constant 0 : index
    %5 = vector.load %arg3[%c0_4, %c0_5] : memref<256x10xbf16, #tpu.memory_space<vmem>>, vector<256x10xbf16>
    %cst = arith.constant dense<0.000000e+00> : vector<2x10xf32>
    %6 = tpu.matmul %4, %5, %cst {dimension_numbers = #tpu.dot_dimension_numbers<[1], [0], [0], [1], [0, 0, 1, 1], [], []>} : vector<2x256xbf16>, vector<256x10xbf16>, vector<2x10xf32> -> vector<2x10xf32>
    %7 = arith.addf %3, %6 : vector<2x10xf32>
    %c0_6 = arith.constant 0 : index
    %c0_7 = arith.constant 0 : index
    %8 = vector.load %arg6[%c0_6, %c0_7] : memref<2x10xf32, #tpu.memory_space<vmem>>, vector<2x10xf32>
    tpu.vector_store %arg6[%c0_6, %c0_7], %7 {strides = array<i32>} : memref<2x10xf32, #tpu.memory_space<vmem>>, vector<2x10xf32>,
    %c0_i32_8 = arith.constant 0 : i32
    %9 = arith.cmpi eq, %arg1, %c0_i32_8 : i32
    %10 = arith.extui %9 : i1 to i32
    %c0_i32_9 = arith.constant 0 : i32
    %11 = arith.cmpi ne, %10, %c0_i32_9 : i32
    scf.if %11 {
      %c0_10 = arith.constant 0 : index
      %c0_11 = arith.constant 0 : index
      %12 = vector.load %arg6[%c0_10, %c0_11] : memref<2x10xf32, #tpu.memory_space<vmem>>, vector<2x10xf32>
      %c0_12 = arith.constant 0 : index
      %c0_13 = arith.constant 0 : index
      %13 = vector.load %arg4[%c0_12, %c0_13] : memref<1x10xf32, #tpu.memory_space<vmem>>, vector<1x10xf32>
      %14 = vector.broadcast %13 : vector<1x10xf32> to vector<2x10xf32>
      %15 = arith.addf %12, %14 : vector<2x10xf32>
      %c0_14 = arith.constant 0 : index
      %c0_15 = arith.constant 0 : index
      %16 = vector.load %arg5[%c0_14, %c0_15] : memref<2x10xf32, #tpu.memory_space<vmem>>, vector<2x10xf32>
      tpu.vector_store %arg5[%c0_14, %c0_15], %15 {strides = array<i32>} : memref<2x10xf32, #tpu.memory_space<vmem>>, vector<2x10xf32>,
    } else {
    }
    return
  }
  func.func @transform_0(%arg0: i32, %arg1: i32) -> (i32, i32) {
    %c0_i32 = arith.constant 0 : i32
    %c0_i32_0 = arith.constant 0 : i32
    return %c0_i32, %arg1 : i32, i32
  }
  func.func @transform_1(%arg0: i32, %arg1: i32) -> (i32, i32) {
    %c0_i32 = arith.constant 0 : i32
    return %arg1, %arg0 : i32, i32
  }
  func.func @transform_2(%arg0: i32, %arg1: i32) -> (i32, i32) {
    %c0_i32 = arith.constant 0 : i32
    %c0_i32_0 = arith.constant 0 : i32
    return %c0_i32, %arg0 : i32, i32
  }
  func.func @transform_3(%arg0: i32, %arg1: i32) -> (i32, i32) {
    %c0_i32 = arith.constant 0 : i32
    %c0_i32_0 = arith.constant 0 : i32
    return %c0_i32, %arg0 : i32, i32
  }
}

</mosaic_0001>

<bundles_post_ra>
// kernel: _lambda_.7
= control target key start
LH: loop header
LB: loop body
LE: loop exit
PB: predicated region body
PF: predicated region fallthrough
CT: control target
= control target key end

     0   :  { %8 = vsyncpa [#allocation4], 0  ;;  %s879_s0 = inlined_call_operand.vmem [shape: bf16[2,256], index: 0, kind: input, shape index: {}]   ;;  %s880_s1 = inlined_call_operand.hbm [shape: bf16[256,256], index: 1, kind: input, shape index: {}]   ;;  %s881_s2 = inlined_call_operand.vmem [shape: f32[1,256], index: 2, kind: input, shape index: {}]   ;;  %s882_s3 = inlined_call_operand.vmem [shape: bf16[2,256], index: 3, kind: output, shape index: {}]  }
   0x1   :  { %10 = vsyncpa [#allocation4 + $0x1], 0  ;;  %s767_s12 = smov 0   ;;  %s769_s13 = smov 0  }
   0x2   :  { %s771_s14 = smov 0   ;;  %s773_s15 = smov 0  }
   0x3   :  { %s775_s16 = smov 0   ;;  %s777_s17 = smov 0  }
   0x4 LB: > { %s510_s18 = sadd.s32 4294967295, %s741_s17   ;;  %s28_s19 = sadd.s32 1, %s737_s16  ;;  %s741_s17 = sphi %s777_s17, %s16_s17   ;;  %s737_s16 = sphi %s775_s16, %s889_s16   ;;  %s733_s15 = sphi %s773_s15, %s888_s15   ;;  %s729_s14 = sphi %s771_s14, %s887_s14   ;;  %s725_s13 = sphi %s769_s13, %s886_s13   ;;  %s721_s12 = sphi %s767_s12, %s885_s12  }
   0x5   : > { %p30_p0 = scmp.ge.s32.totalorder %s28_s19, 2  ;;  %s63_s20 = sadd.s32 1, %s729_s14 }
   0x6   : > { %p70_p1 = scmp.ne.s32.totalorder %s729_s14, %s725_s13  ;;  %p71_p2 = scmp.eq.s32.totalorder %s741_s17, 0 }
   0x7   : > { %s891_s19 = smov (%p30_p0, %s28_s19), 0  ;;  %p76_p4 = scmp.ne.s32.totalorder %s725_s13, %s721_s12 }
   0x8   : > { %p803_p3 = por %p71_p2, %p70_p1  ;;  %s59_s22 = ssub.s32 %s737_s16, %s891_s19 }
   0x9   : > { %p77_p5 = scmp.eq.s32.totalorder %s510_s18, 0  ;;  %p61_p6 = scmp.eq.s32.totalorder %s59_s22, 0 }
   0xa   : > { %p607_p8 = scmp.lt.s32.totalorder %s741_s17, 2  ;;  %s160_s25 = sand.u32 1, %s729_s14  }
   0xb   : > { %p810_p7 = por %p77_p5, %p76_p4  ;;  %s516_s26 = sshll.u32 %s737_s16, 2 }
   0xc   : > { %s816_s24 = scalar_select %p61_p6, %s729_s14, %s63_s20  }
   0xd   : > { %s515_s27 = sshll.u32 %s160_s25, 7  ;;  %s171_s30 = scalar_lea.hbm %s880_s1, %s516_s26 }
   0xe   : > { %s172_s4 = sshll.u32 %s171_s30, 4  ;;  %s164_s5 = scalar_lea.vmem [#allocation3], %s515_s27  ;;  %s173_s4 = int_to_ptr.hbm [resolvable:$true] %s172_s4 }
   0xf   : > { %s174_s6 = sshll.u32 %s164_s5, 4  ;;  %p604_p9 = pnand %p607_p8, %p803_p3  ;;  %s175_s6 = int_to_ptr.vmem [resolvable:$true] %s174_s6 }
  0x10   : > { %p517_p10 = scmp.ge.s32.totalorder %s741_s17, 1  ;;  %s161_s7 = scalar_lea.sflag [#allocation4], %s160_s25 }
  0x11   : > { %s743_s8 = smov 128   ;;  %s744_s9 = smov 64  }
  0x12   : > { %s745_s10 = smov 4   ;;  %p188_p11 = scmp.lt.s32.totalorder %s741_s17, 3 }
  0x13   : > { %606 = dma.hbm_to_vmem [thread:$0]  (!%p604_p9), %s173_s4, 2048, %s175_s6, %s161_s7, %s743_s8, %s744_s9, %s745_s10  }
  0x14   : > { %p189_p12 = pnand %p517_p10, %p188_p11 }
  0x15   : > { %s194_s11 = sand.u32 (!%p189_p12), 1, %s725_s13  }
  0x16   : > { %192 = sbr.rel (%p189_p12) target bundleno = 206 (0xce), region = 32  ;;  %s518_s12 = sshll.u32 (!%p189_p12), %s194_s11, 7 }
  0x17   : > { %s195_s18 = scalar_lea.sflag (!%p189_p12), [#allocation4], %s194_s11  ;;  %s828_s20 = scalar_lea.vmem (!%p189_p12), [#allocation3], %s518_s12 }
  0x1b   : > { %716 = dma.done.wait (%p810_p7), %s195_s18, 2048  }
  0x1c   : > { %718 = vsyncadd (%p810_p7), %s195_s18, 4294965248  ;;  %v592_v0 = vld [vmem:[%s828_s20 + $0x38] sm:$0xff]  ;;  %v591_v2 = vld [vmem:[%s828_s20 + $0x30] sm:$0xff]  ;;  %p233_p13 = scmp.lt.s32.totalorder %s733_s15, 1  ;;  %v746_v19 = vmov 0.0  }
  0x1d   : > { %v600_v1 = vld [vmem:[%s828_s20 + $0x78] sm:$0xff]  ;;  %380 = vmatpush.bf16.msra.mxu0 %v592_v0  ;;  %v599_v3 = vld [vmem:[%s828_s20 + $0x70] sm:$0xff]  ;;  %v590_v5 = vld [vmem:[%s828_s20 + $0x28] sm:$0xff]  ;;  %243 = vst [vmem:[#allocation2] sm:$0x3] %v746_v19 }
  0x1e   : > { %393 = vmatpush.bf16.msra.mxu1 %v600_v1  ;;  %v245_v4 = vld [vmem:[%s879_s0] sm:$0x3]  ;;  %v598_v6 = vld [vmem:[%s828_s20 + $0x68] sm:$0xff]  ;;  %v589_v7 = vld [vmem:[%s828_s20 + $0x20] sm:$0xff]  ;;  %s893_s15 = smov (!%p233_p13, %s733_s15), 1 }
  0x1f   : > { %279 = vst [vmem:[#allocation1] ss:$9 sm:$0xff] %v245_v4  ;;  %v597_v8 = vld [vmem:[%s828_s20 + $0x60] sm:$0xff]  ;;  %v588_v9 = vld [vmem:[%s828_s20 + $0x18] sm:$0xff]  ;;  %v587_v11 = vld [vmem:[%s828_s20 + $0x10] sm:$0xff]  ;;  %s235_s26 = scalar_lea.vmem %s881_s2, %s893_s15  ;;  %s238_s29 = scalar_lea.vmem %s882_s3, %s893_s15 }
  0x20   : > { %v596_v10 = vld [vmem:[%s828_s20 + $0x58] sm:$0xff]  ;;  %v595_v12 = vld [vmem:[%s828_s20 + $0x50] sm:$0xff]  ;;  %v586_v13 = vld [vmem:[%s828_s20 + $0x8] sm:$0xff] }
  0x21   : > { %381 = vmatpush.bf16.msra.mxu0 %v591_v2  ;;  %v594_v14 = vld [vmem:[%s828_s20 + $0x48] sm:$0xff]  ;;  %v585_v15 = vld [vmem:[%s828_s20] sm:$0xff]  ;;  %v660_v27 = vld [vmem:[%s235_s26] ss:$0 sm:$0xff] }
  0x22   : > { %394 = vmatpush.bf16.msra.mxu1 %v599_v3  ;;  %v593_v16 = vld [vmem:[%s828_s20 + $0x40] sm:$0xff] }
  0x24   : > { %v244_v21 = vld [vmem:[#allocation2] sm:$0x3] }
  0x25   : > { %382 = vmatpush.bf16.msra.mxu0 %v590_v5 }
  0x26   : > { %395 = vmatpush.bf16.msra.mxu1 %v598_v6  ;;  %v280_v17 = vld [vmem:[#allocation1] sm:$0xff]  ;;  %v281_v18 = vld [vmem:[#allocation1 + $0x9] sm:$0xff] }
  0x29   : > { %383 = vmatpush.bf16.msra.mxu0 %v589_v7 }
  0x2a   : > { %396 = vmatpush.bf16.msra.mxu1 %v597_v8 }
  0x2d   : > { %384 = vmatpush.bf16.msra.mxu0 %v588_v9 }
  0x2e   : > { %397 = vmatpush.bf16.msra.mxu1 %v596_v10 }
  0x31   : > { %385 = vmatpush.bf16.msra.mxu0 %v587_v11 }
  0x32   : > { %398 = vmatpush.bf16.msra.mxu1 %v595_v12 }
  0x35   : > { %386 = vmatpush.bf16.msra.mxu0 %v586_v13 }
  0x36   : > { %399 = vmatpush.bf16.msra.mxu1 %v594_v14 }
  0x39   : > { %387 = vmatpush.bf16.msra.mxu0 %v585_v15 }
  0x3a   : > { %400 = vmatpush.bf16.msra.mxu1 %v593_v16 }
  0x3c   : > { %388 = vmatmul.bf16.vlgmr.msra.gmra.mxu0 %v280_v17 }
  0x3d   : > { %401 = vmatmul.bf16.vlgmr.msra.gmra.mxu1 %v281_v18 }
  0xb9   : > { %v389_v20 = vpop.f32.mrf.mxu0 }
  0xba   : > { %v402_v22 = vpop.f32.mrf.mxu1 }
  0xbb   : > { %v403_v23 = vadd.f32 %v402_v22, %v389_v20 }
  0xbd   : > { %v406_v24 = vadd.f32 %v403_v23, %v244_v21 }
  0xbf   : > { %407 = vst [vmem:[#allocation2] sm:$0x3] %v406_v24 }
  0xc1   : > { %v391_v25 = vpop.f32.mrf.mxu0 }
  0xc2   : > { %v404_v26 = vpop.f32.mrf.mxu1 }
  0xc6   : > { %v411_v28 = vld [vmem:[#allocation2] sm:$0x3] }
  0xc7   : > { %v416_v29 = vadd.f32 %v660_v27, %v411_v28 }
  0xc9   : > { %v417_v30 = vmax.f32 %v416_v29, 0.0 }
  0xcb   : > { %v418_v31 = vpack.c.bf16 %v417_v30, %v417_v30 }
  0xcd   : > { %419 = vst [vmem:[%s238_s29] sm:$0x1] %v418_v31 }
  0xce PF: > { %s16_s17 = sadd.s32 1, %s741_s17   ;;  %s885_s12 = smov %s725_s13 }
  0xcf   : > { %p13_p0 = scmp.ge.s32.totalorder %s16_s17, 4   ;;  %s886_s13 = smov %s729_s14 }
  0xd0   : > { %s887_s14 = smov %s816_s24  ;;  %s888_s15 = smov %s737_s16 }
  0xd1   : > { %s889_s16 = smov %s891_s19  ;;  %15 = sbr.rel (!%p13_p0) target bundleno = 4 (0x4), region = 86 }
  0xd6   :  { %437 = vsyncpa [#allocation4], 1 }
  0xd7   :  { %439 = vsyncpa [#allocation4 + $0x1], 1 }

// kernel: _lambda_.8
= control target key start
LH: loop header
LB: loop body
LE: loop exit
PB: predicated region body
PF: predicated region fallthrough
CT: control target
= control target key end

     0   :  { %s845_s12 = smov 0   ;;  %s847_s13 = smov 0   ;;  %s985_s0 = inlined_call_operand.vmem [shape: bf16[2,256], index: 0, kind: input, shape index: {}]   ;;  %s986_s1 = inlined_call_operand.vmem [shape: bf16[256,256], index: 1, kind: input, shape index: {}]   ;;  %s987_s2 = inlined_call_operand.vmem [shape: f32[1,256], index: 2, kind: input, shape index: {}]   ;;  %s988_s3 = inlined_call_operand.vmem [shape: bf16[2,256], index: 3, kind: output, shape index: {}]  }
   0x1   :  { %s849_s14 = smov 0   ;;  %s851_s15 = smov 0  }
   0x2   :  { %s853_s16 = smov 0  }
   0x3 LB: > { %s25_s17 = sadd.s32 1, %s818_s15  ;;  %p67_p1 = scmp.ne.s32.totalorder %s810_s13, %s806_s12  ;;  %s822_s16 = sphi %s853_s16, %s13_s16   ;;  %s818_s15 = sphi %s851_s15, %s992_s15   ;;  %s814_s14 = sphi %s849_s14, %s991_s14   ;;  %s810_s13 = sphi %s847_s13, %s990_s13   ;;  %s806_s12 = sphi %s845_s12, %s989_s12  }
   0x4   : > { %p27_p0 = scmp.ge.s32.totalorder %s25_s17, 2  ;;  %p68_p2 = scmp.eq.s32.totalorder %s822_s16, 0 }
   0x5   : > { %s60_s19 = sadd.s32 1, %s810_s13  ;;  %p655_p5 = scmp.ge.s32.totalorder %s822_s16, 2 }
   0x6   : > { %s994_s17 = smov (%p27_p0, %s25_s17), 0  ;;  %p69_p3 = por %p68_p2, %p67_p1 }
   0x7   : > { %s56_s18 = ssub.s32 %s818_s15, %s994_s17  ;;  %153 = sbr.rel (%p655_p5) target bundleno = 48 (0x30), region = 20 }
   0x8   : > { %p58_p4 = scmp.eq.s32.totalorder %s56_s18, 0 }
   0xa   : > { %s880_s20 = scalar_select %p58_p4, %s810_s13, %s60_s19  }
   0xc   : > { %156 = sbr.rel (!%p69_p3) target bundleno = 48 (0x30), region = 24  ;;  %s158_s21 = sand.u32 (%p69_p3), 1, %s810_s13  }
   0xd   : > { %s657_s22 = sshll.u32 (%p69_p3), %s818_s15, 2  ;;  %s656_s23 = sshll.u32 (%p69_p3), %s158_s21, 7 }
   0xe   : > { %s888_s26 = scalar_lea.vmem (%p69_p3), %s986_s1, %s657_s22  ;;  %s892_s27 = scalar_lea.vmem (%p69_p3), [#allocation3], %s656_s23 }
   0xf   : > { %v182_v0 = vld [vmem:[%s888_s26] sm:$0xf] (%p69_p3)  ;;  %v184_v1 = vld [vmem:[%s888_s26 + $0x8] sm:$0xf] (%p69_p3)  ;;  %v186_v2 = vld [vmem:[%s888_s26 + $0x10] sm:$0xf] (%p69_p3) }
  0x10   : > { %183 = vst [vmem:[%s892_s27] sm:$0xf] (%p69_p3), %v182_v0  ;;  %v188_v3 = vld [vmem:[%s888_s26 + $0x18] sm:$0xf] (%p69_p3)  ;;  %v190_v4 = vld [vmem:[%s888_s26 + $0x20] sm:$0xf] (%p69_p3) }
  0x11   : > { %185 = vst [vmem:[%s892_s27 + $0x4] sm:$0xf] %v184_v1  ;;  %v192_v5 = vld [vmem:[%s888_s26 + $0x28] sm:$0xf]  ;;  %v194_v6 = vld [vmem:[%s888_s26 + $0x30] sm:$0xf] }
  0x12   : > { %187 = vst [vmem:[%s892_s27 + $0x8] sm:$0xf] %v186_v2  ;;  %v196_v7 = vld [vmem:[%s888_s26 + $0x38] sm:$0xf]  ;;  %v198_v8 = vld [vmem:[%s888_s26 + $0x40] sm:$0xf] }
  0x13   : > { %189 = vst [vmem:[%s892_s27 + $0xc] sm:$0xf] %v188_v3  ;;  %v200_v9 = vld [vmem:[%s888_s26 + $0x48] sm:$0xf]  ;;  %v202_v10 = vld [vmem:[%s888_s26 + $0x50] sm:$0xf] }
  0x14   : > { %191 = vst [vmem:[%s892_s27 + $0x10] sm:$0xf] %v190_v4  ;;  %v204_v11 = vld [vmem:[%s888_s26 + $0x58] sm:$0xf]  ;;  %v206_v12 = vld [vmem:[%s888_s26 + $0x60] sm:$0xf] }
  0x15   : > { %193 = vst [vmem:[%s892_s27 + $0x14] sm:$0xf] %v192_v5  ;;  %v208_v13 = vld [vmem:[%s888_s26 + $0x68] sm:$0xf]  ;;  %v210_v14 = vld [vmem:[%s888_s26 + $0x70] sm:$0xf] }
  0x16   : > { %195 = vst [vmem:[%s892_s27 + $0x18] sm:$0xf] %v194_v6  ;;  %v212_v15 = vld [vmem:[%s888_s26 + $0x78] sm:$0xf]  ;;  %v214_v16 = vld [vmem:[%s888_s26 + $0x80] sm:$0xf] }
  0x17   : > { %197 = vst [vmem:[%s892_s27 + $0x1c] sm:$0xf] %v196_v7  ;;  %v216_v17 = vld [vmem:[%s888_s26 + $0x88] sm:$0xf]  ;;  %v218_v18 = vld [vmem:[%s888_s26 + $0x90] sm:$0xf] }
  0x18   : > { %199 = vst [vmem:[%s892_s27 + $0x20] sm:$0xf] %v198_v8  ;;  %v220_v19 = vld [vmem:[%s888_s26 + $0x98] sm:$0xf]  ;;  %v222_v20 = vld [vmem:[%s888_s26 + $0xa0] sm:$0xf] }
  0x19   : > { %201 = vst [vmem:[%s892_s27 + $0x24] sm:$0xf] %v200_v9  ;;  %v224_v21 = vld [vmem:[%s888_s26 + $0xa8] sm:$0xf]  ;;  %v226_v22 = vld [vmem:[%s888_s26 + $0xb0] sm:$0xf] }
  0x1a   : > { %203 = vst [vmem:[%s892_s27 + $0x28] sm:$0xf] %v202_v10  ;;  %v228_v23 = vld [vmem:[%s888_s26 + $0xb8] sm:$0xf]  ;;  %v230_v24 = vld [vmem:[%s888_s26 + $0xc0] sm:$0xf] }
  0x1b   : > { %205 = vst [vmem:[%s892_s27 + $0x2c] sm:$0xf] %v204_v11  ;;  %v232_v25 = vld [vmem:[%s888_s26 + $0xc8] sm:$0xf]  ;;  %v234_v26 = vld [vmem:[%s888_s26 + $0xd0] sm:$0xf] }
  0x1c   : > { %207 = vst [vmem:[%s892_s27 + $0x30] sm:$0xf] %v206_v12  ;;  %v236_v27 = vld [vmem:[%s888_s26 + $0xd8] sm:$0xf]  ;;  %v238_v28 = vld [vmem:[%s888_s26 + $0xe0] sm:$0xf] }
  0x1d   : > { %209 = vst [vmem:[%s892_s27 + $0x34] sm:$0xf] %v208_v13  ;;  %v240_v29 = vld [vmem:[%s888_s26 + $0xe8] sm:$0xf]  ;;  %v242_v30 = vld [vmem:[%s888_s26 + $0xf0] sm:$0xf] }
  0x1e   : > { %211 = vst [vmem:[%s892_s27 + $0x38] sm:$0xf] %v210_v14  ;;  %v244_v31 = vld [vmem:[%s888_s26 + $0xf8] sm:$0xf] }
  0x1f   : > { %213 = vst [vmem:[%s892_s27 + $0x3c] sm:$0xf] %v212_v15 }
  0x20   : > { %215 = vst [vmem:[%s892_s27 + $0x40] sm:$0xf] %v214_v16 }
  0x21   : > { %217 = vst [vmem:[%s892_s27 + $0x44] sm:$0xf] %v216_v17 }
  0x22   : > { %219 = vst [vmem:[%s892_s27 + $0x48] sm:$0xf] %v218_v18 }
  0x23   : > { %221 = vst [vmem:[%s892_s27 + $0x4c] sm:$0xf] %v220_v19 }
  0x24   : > { %223 = vst [vmem:[%s892_s27 + $0x50] sm:$0xf] %v222_v20 }
  0x25   : > { %225 = vst [vmem:[%s892_s27 + $0x54] sm:$0xf] %v224_v21 }
  0x26   : > { %227 = vst [vmem:[%s892_s27 + $0x58] sm:$0xf] %v226_v22 }
  0x27   : > { %229 = vst [vmem:[%s892_s27 + $0x5c] sm:$0xf] %v228_v23 }
  0x28   : > { %231 = vst [vmem:[%s892_s27 + $0x60] sm:$0xf] %v230_v24 }
  0x29   : > { %233 = vst [vmem:[%s892_s27 + $0x64] sm:$0xf] %v232_v25 }
  0x2a   : > { %235 = vst [vmem:[%s892_s27 + $0x68] sm:$0xf] %v234_v26 }
  0x2b   : > { %237 = vst [vmem:[%s892_s27 + $0x6c] sm:$0xf] %v236_v27 }
  0x2c   : > { %239 = vst [vmem:[%s892_s27 + $0x70] sm:$0xf] %v238_v28 }
  0x2d   : > { %241 = vst [vmem:[%s892_s27 + $0x74] sm:$0xf] %v240_v29 }
  0x2e   : > { %243 = vst [vmem:[%s892_s27 + $0x78] sm:$0xf] %v242_v30 }
  0x2f   : > { %245 = vst [vmem:[%s892_s27 + $0x7c] sm:$0xf] %v244_v31 }
  0x30 PF: > { %p658_p6 = scmp.ge.s32.totalorder %s822_s16, 1  ;;  %p338_p7 = scmp.lt.s32.totalorder %s822_s16, 3 }
  0x32   : > { %p339_p8 = pnand %p658_p6, %p338_p7 }
  0x33   : > { %s345_s28 = sand.u32 (!%p339_p8), 1, %s806_s12   ;;  %p379_p9 = scmp.lt.s32.totalorder (!%p339_p8), %s814_s14, 1 }
  0x34   : > { %342 = sbr.rel (%p339_p8) target bundleno = 235 (0xeb), region = 69  ;;  %s659_s4 = sshll.u32 (!%p339_p8), %s345_s28, 7 }
  0x35   : > { %s347_s5 = scalar_lea.vmem (!%p339_p8), [#allocation3], %s659_s4 }
  0x39   : > { %v391_v32 = vld [vmem:[%s985_s0] sm:$0x3]  ;;  %v733_v33 = vld [vmem:[%s347_s5 + $0x38] sm:$0xff]  ;;  %v731_v37 = vld [vmem:[%s347_s5 + $0x28] sm:$0xff]  ;;  %s996_s14 = smov (!%p379_p9, %s814_s14), 1  ;;  %v824_v51 = vmov 0.0  }
  0x3a   : > { %425 = vst [vmem:[#allocation1] ss:$9 sm:$0xff] %v391_v32  ;;  %v741_v34 = vld [vmem:[%s347_s5 + $0x78] sm:$0xff]  ;;  %526 = vmatpush.bf16.msra.mxu0 %v733_v33  ;;  %v732_v35 = vld [vmem:[%s347_s5 + $0x30] sm:$0xff]  ;;  %v739_v38 = vld [vmem:[%s347_s5 + $0x68] sm:$0xff]  ;;  %s381_s8 = scalar_lea.vmem %s987_s2, %s996_s14  ;;  %s384_s11 = scalar_lea.vmem %s988_s3, %s996_s14 }
  0x3b   : > { %539 = vmatpush.bf16.msra.mxu1 %v741_v34  ;;  %v740_v36 = vld [vmem:[%s347_s5 + $0x70] sm:$0xff]  ;;  %v730_v39 = vld [vmem:[%s347_s5 + $0x20] sm:$0xff]  ;;  %v729_v41 = vld [vmem:[%s347_s5 + $0x18] sm:$0xff]  ;;  %389 = vst [vmem:[#allocation2] sm:$0x3] %v824_v51 }
  0x3c   : > { %v738_v40 = vld [vmem:[%s347_s5 + $0x60] sm:$0xff]  ;;  %v737_v42 = vld [vmem:[%s347_s5 + $0x58] sm:$0xff]  ;;  %v728_v43 = vld [vmem:[%s347_s5 + $0x10] sm:$0xff] }
  0x3d   : > { %v736_v44 = vld [vmem:[%s347_s5 + $0x50] sm:$0xff]  ;;  %v727_v45 = vld [vmem:[%s347_s5 + $0x8] sm:$0xff]  ;;  %v726_v47 = vld [vmem:[%s347_s5] sm:$0xff] }
  0x3e   : > { %527 = vmatpush.bf16.msra.mxu0 %v732_v35  ;;  %v735_v46 = vld [vmem:[%s347_s5 + $0x48] sm:$0xff]  ;;  %v734_v48 = vld [vmem:[%s347_s5 + $0x40] sm:$0xff]  ;;  %v783_v59 = vld [vmem:[%s381_s8] ss:$0 sm:$0xff] }
  0x3f   : > { %540 = vmatpush.bf16.msra.mxu1 %v740_v36 }
  0x41   : > { %v426_v49 = vld [vmem:[#allocation1] sm:$0xff]  ;;  %v427_v50 = vld [vmem:[#allocation1 + $0x9] sm:$0xff] }
  0x42   : > { %528 = vmatpush.bf16.msra.mxu0 %v731_v37  ;;  %v390_v53 = vld [vmem:[#allocation2] sm:$0x3] }
  0x43   : > { %541 = vmatpush.bf16.msra.mxu1 %v739_v38 }
  0x46   : > { %529 = vmatpush.bf16.msra.mxu0 %v730_v39 }
  0x47   : > { %542 = vmatpush.bf16.msra.mxu1 %v738_v40 }
  0x4a   : > { %530 = vmatpush.bf16.msra.mxu0 %v729_v41 }
  0x4b   : > { %543 = vmatpush.bf16.msra.mxu1 %v737_v42 }
  0x4e   : > { %531 = vmatpush.bf16.msra.mxu0 %v728_v43 }
  0x4f   : > { %544 = vmatpush.bf16.msra.mxu1 %v736_v44 }
  0x52   : > { %532 = vmatpush.bf16.msra.mxu0 %v727_v45 }
  0x53   : > { %545 = vmatpush.bf16.msra.mxu1 %v735_v46 }
  0x56   : > { %533 = vmatpush.bf16.msra.mxu0 %v726_v47 }
  0x57   : > { %546 = vmatpush.bf16.msra.mxu1 %v734_v48 }
  0x59   : > { %534 = vmatmul.bf16.vlgmr.msra.gmra.mxu0 %v426_v49 }
  0x5a   : > { %547 = vmatmul.bf16.vlgmr.msra.gmra.mxu1 %v427_v50 }
  0xd6   : > { %v535_v52 = vpop.f32.mrf.mxu0 }
  0xd7   : > { %v548_v54 = vpop.f32.mrf.mxu1 }
  0xd8   : > { %v549_v55 = vadd.f32 %v548_v54, %v535_v52 }
  0xda   : > { %v552_v56 = vadd.f32 %v549_v55, %v390_v53 }
  0xdc   : > { %553 = vst [vmem:[#allocation2] sm:$0x3] %v552_v56 }
  0xde   : > { %v537_v57 = vpop.f32.mrf.mxu0 }
  0xdf   : > { %v550_v58 = vpop.f32.mrf.mxu1 }
  0xe3   : > { %v557_v60 = vld [vmem:[#allocation2] sm:$0x3] }
  0xe4   : > { %v562_v61 = vadd.f32 %v783_v59, %v557_v60 }
  0xe6   : > { %v563_v62 = vmax.f32 %v562_v61, 0.0 }
  0xe8   : > { %v564_v63 = vpack.c.bf16 %v563_v62, %v563_v62 }
  0xea   : > { %565 = vst [vmem:[%s384_s11] sm:$0x1] %v564_v63 }
  0xeb PF: > { %s13_s16 = sadd.s32 1, %s822_s16   ;;  %s989_s12 = smov %s810_s13 }
  0xec   : > { %p10_p10 = scmp.ge.s32.totalorder %s13_s16, 4   ;;  %s990_s13 = smov %s880_s20 }
  0xed   : > { %s991_s14 = smov %s818_s15  ;;  %s992_s15 = smov %s994_s17 }
  0xee   :  { %12 = sbr.rel (!%p10_p10) target bundleno = 3 (0x3), region = 122 }

// kernel: _lambda_.9
= control target key start
LH: loop header
LB: loop body
LE: loop exit
PB: predicated region body
PF: predicated region fallthrough
CT: control target
= control target key end

     0   :  { %s403_s0 = inlined_call_operand.vmem [shape: bf16[2,256], index: 0, kind: input, shape index: {}]   ;;  %s404_s1 = inlined_call_operand.vmem [shape: bf16[256,10], index: 1, kind: input, shape index: {}]   ;;  %s405_s2 = inlined_call_operand.vmem [shape: f32[1,10], index: 2, kind: input, shape index: {}]   ;;  %s406_s3 = inlined_call_operand.hbm [shape: f32[2,10], index: 3, kind: output, shape index: {}]  }
   0x1   :  { %v283_v0 = vld [vmem:[%s404_s1 + $0x38] sm:$0xff]  ;;  %v282_v2 = vld [vmem:[%s404_s1 + $0x30] sm:$0xff]  ;;  %v22_v4 = vld [vmem:[%s403_s0] sm:$0x3] }
   0x2   :  { %v291_v1 = vld [vmem:[%s404_s1 + $0x78] sm:$0xff]  ;;  %157 = vmatpush.bf16.msra.mxu0 %v283_v0  ;;  %v290_v3 = vld [vmem:[%s404_s1 + $0x70] sm:$0xff] }
   0x3   :  { %170 = vmatpush.bf16.msra.mxu1 %v291_v1 }
   0x4   :  { %8 = vsyncpa [#allocation4], 0  ;;  %v281_v5 = vld [vmem:[%s404_s1 + $0x28] sm:$0xff]  ;;  %56 = vst [vmem:[#allocation1] ss:$9 sm:$0xff] %v22_v4  ;;  %v280_v7 = vld [vmem:[%s404_s1 + $0x20] sm:$0xff] }
   0x5   :  { %v289_v6 = vld [vmem:[%s404_s1 + $0x68] sm:$0xff]  ;;  %v288_v8 = vld [vmem:[%s404_s1 + $0x60] sm:$0xff]  ;;  %v279_v9 = vld [vmem:[%s404_s1 + $0x18] sm:$0xff]  ;;  %vm19_vm0 = vcmask 74752   ;;  %v321_v19 = vmov 0.0   ;;  %s322_s19 = smov [#allocation3]  }
   0x6   :  { %158 = vmatpush.bf16.msra.mxu0 %v282_v2  ;;  %v287_v10 = vld [vmem:[%s404_s1 + $0x58] sm:$0xff]  ;;  %v278_v11 = vld [vmem:[%s404_s1 + $0x10] sm:$0xff]  ;;  %v277_v13 = vld [vmem:[%s404_s1 + $0x8] sm:$0xff]  ;;  %20 = vst.msk [vmem:[#allocation2] sm:$0x3] %vm19_vm0, %v321_v19  ;;  %s201_s20 = sshll.u32 %s322_s19, 4  ;;  %s202_s20 = int_to_ptr.vmem [resolvable:$true] %s201_s20 }
   0x7   :  { %171 = vmatpush.bf16.msra.mxu1 %v290_v3  ;;  %v286_v12 = vld [vmem:[%s404_s1 + $0x50] sm:$0xff]  ;;  %v285_v14 = vld [vmem:[%s404_s1 + $0x48] sm:$0xff]  ;;  %v276_v15 = vld [vmem:[%s404_s1] sm:$0xff]  ;;  %s203_s23 = sshll.u32 %s406_s3, 4  ;;  %s204_s23 = int_to_ptr.hbm [resolvable:$true] %s203_s23 }
   0x8   :  { %v284_v16 = vld [vmem:[%s404_s1 + $0x40] sm:$0xff] }
   0x9   :  { %v294_v27 = vld [vmem:[%s405_s2] ss:$0 sm:$0xff] }
   0xa   :  { %159 = vmatpush.bf16.msra.mxu0 %v281_v5 }
   0xb   :  { %172 = vmatpush.bf16.msra.mxu1 %v289_v6  ;;  %v57_v17 = vld [vmem:[#allocation1] sm:$0xff]  ;;  %v58_v18 = vld [vmem:[#allocation1 + $0x9] sm:$0xff] }
   0xd   :  { %v21_v21 = vld [vmem:[#allocation2] sm:$0x3] }
   0xe   :  { %160 = vmatpush.bf16.msra.mxu0 %v280_v7 }
   0xf   :  { %173 = vmatpush.bf16.msra.mxu1 %v288_v8 }
  0x12   :  { %161 = vmatpush.bf16.msra.mxu0 %v279_v9 }
  0x13   :  { %174 = vmatpush.bf16.msra.mxu1 %v287_v10 }
  0x16   :  { %162 = vmatpush.bf16.msra.mxu0 %v278_v11 }
  0x17   :  { %175 = vmatpush.bf16.msra.mxu1 %v286_v12 }
  0x1a   :  { %163 = vmatpush.bf16.msra.mxu0 %v277_v13 }
  0x1b   :  { %176 = vmatpush.bf16.msra.mxu1 %v285_v14 }
  0x1e   :  { %164 = vmatpush.bf16.msra.mxu0 %v276_v15 }
  0x1f   :  { %177 = vmatpush.bf16.msra.mxu1 %v284_v16 }
  0x21   :  { %165 = vmatmul.bf16.vlgmr.msra.gmra.mxu0 %v57_v17 }
  0x22   :  { %178 = vmatmul.bf16.vlgmr.msra.gmra.mxu1 %v58_v18 }
  0x9e   :  { %v166_v20 = vpop.f32.mrf.mxu0 }
  0x9f   :  { %v179_v22 = vpop.f32.mrf.mxu1 }
  0xa0   :  { %v180_v23 = vadd.f32 %v179_v22, %v166_v20 }
  0xa2   :  { %v183_v24 = vadd.f32 %v180_v23, %v21_v21 }
  0xa4   :  { %185 = vst.msk [vmem:[#allocation2] sm:$0x3] %vm19_vm0, %v183_v24 }
  0xa6   :  { %v168_v25 = vpop.f32.mrf.mxu0 }
  0xa7   :  { %v181_v26 = vpop.f32.mrf.mxu1 }
  0xab   :  { %v189_v28 = vld [vmem:[#allocation2] sm:$0x3] }
  0xac   :  { %v194_v29 = vadd.f32 %v294_v27, %v189_v28 }
  0xae   :  { %195 = vst.msk [vmem:[#allocation3] sm:$0x3] %vm19_vm0, %v194_v29 }
  0xaf   :  { %206 = dma.vmem_to_hbm [thread:$0]  %s202_s20, 32, %s204_s23, [#allocation4]  }
  0xb0   :  { %319 = dma.done.wait [#allocation4], 32  }
  0xb1   :  { %320 = vsyncadd [#allocation4], 4294967264 }
  0xb2   :  { %211 = vsyncpa [#allocation4], 1 }

// kernel: _lambda_.6
= control target key start
LH: loop header
LB: loop body
LE: loop exit
PB: predicated region body
PF: predicated region fallthrough
CT: control target
= control target key end

     0   :  { %s2302_s12 = smov 0   ;;  %s2711_s0 = inlined_call_operand.vmem [shape: bf16[2,8,8,8], index: 0, kind: input, shape index: {}]   ;;  %s2712_s1 = inlined_call_operand.vmem [shape: bf16[72,16], index: 1, kind: input, shape index: {}]   ;;  %s2713_s2 = inlined_call_operand.vmem [shape: f32[1,16], index: 2, kind: input, shape index: {}]   ;;  %s2714_s3 = inlined_call_operand.vmem [shape: bf16[2,4,4,16], index: 3, kind: output, shape index: {}]  }
   0x1 LB: > { %s2127_s13 = sadd.s32 4294967295, %s2279_s12   ;;  %p2131_p0 = scmp.ge.s32.totalorder %s2279_s12, 1  ;;  %s2279_s12 = sphi %s2302_s12, %s13_s12  }
   0x2   : > { %p137_p1 = scmp.lt.s32.totalorder %s2279_s12, 3 }
   0x4   : > { %p138_p2 = pnand %p2131_p0, %p137_p1 }
   0x5   : > { %p161_p3 = scmp.lt.s32.totalorder (!%p138_p2), %s2127_s13, 1 }
   0x6   : > { %141 = sbr.rel (%p138_p2) target bundleno = 379 (0x17b), region = 32 }
   0xb   : > { %v389_v0 = vld [vmem:[%s2712_s1] sm:$0xf]  ;;  %vm415_vm0 = vcmask 1043456   ;;  %vm180_vm1 = vcmask 60419   ;;  %vm181_vm2 = vsmask.f32 7950 }
   0xc   : > { %v417_v1 = vsel %vm415_vm0, %v389_v0, 0  ;;  %v189_v2 = vld [vmem:[#allocation2 + $0x18] sm:$0x8]  ;;  %s2724_s13 = smov (!%p161_p3, %s2127_s13), 1  ;;  %vm2316_vm3 = vmand %vm180_vm1, %vm181_vm2  ;;  %v192_v4 = vld [vmem:[#allocation2 + $0x24] sm:$0x8] }
   0xd   : > { %2260 = vmatpush.bf16.msra.mxu1 %v417_v1  ;;  %2261 = vmatpush.bf16.msra.mxu2 %v417_v1  ;;  %v190_v5 = vsel %vm2316_vm3, 0, %v189_v2  ;;  %v193_v6 = vsel %vm2316_vm3, 0, %v192_v4  ;;  %v195_v7 = vld [vmem:[#allocation2 + $0x30] sm:$0x8]  ;;  %s2246_s16 = sshll.u32 %s2724_s13, 5  ;;  %vm172_vm4 = vcmask 60416  }
   0xe   : > { %2262 = vmatpush.bf16.msra.mxu3 %v417_v1  ;;  %426 = vmatpush.bf16.msra.mxu0 %v417_v1  ;;  %191 = vst [vmem:[#allocation2 + $0x18] sm:$0x8] %v190_v5  ;;  %v196_v8 = vsel %vm2316_vm3, 0, %v195_v7  ;;  %v198_v9 = vld [vmem:[#allocation2 + $0x3c] sm:$0x8]  ;;  %s2330_s19 = scalar_lea.vmem %s2711_s0, %s2246_s16  ;;  %vm402_vm7 = vcmask 64512  }
   0xf   : > { %194 = vst [vmem:[#allocation2 + $0x24] sm:$0x8] %v193_v6  ;;  %v199_v10 = vsel %vm2316_vm3, 0, %v198_v9  ;;  %v201_v11 = vld [vmem:[#allocation2 + $0x48] sm:$0x8]  ;;  %v2281_v55 = vmov 0  }
  0x10   : > { %v247_v12 = vld [vmem:[%s2330_s19 + $0x4] sm:$0xf]  ;;  %v248_v13 = vld [vmem:[%s2330_s19 + $0x8] sm:$0xf]  ;;  %197 = vst [vmem:[#allocation2 + $0x30] sm:$0x8] %v196_v8 }
  0x11   : > { %vm214_vm5 = vsmask.f32 256  ;;  %256 = vst.msk [vmem:[#allocation2 + $0x1c] sm:$0xf] %vm172_vm4, %v247_v12  ;;  %v249_v14 = vld [vmem:[%s2330_s19 + $0xc] sm:$0xf] }
  0x12   : > { %257 = vst.msk [vmem:[#allocation2 + $0x28] sm:$0xf] %vm172_vm4, %v248_v13  ;;  %v250_v15 = vld [vmem:[%s2330_s19 + $0x10] sm:$0xf]  ;;  %v204_v16 = vld [vmem:[#allocation2 + $0x54] sm:$0x8] }
  0x13   : > { %vm283_vm6 = vsmask.f32 4368  ;;  %200 = vst [vmem:[#allocation2 + $0x3c] sm:$0x8] %v199_v10  ;;  %v202_v17 = vsel %vm2316_vm3, 0, %v201_v11  ;;  %v205_v18 = vsel %vm2316_vm3, 0, %v204_v16 }
  0x14   : > { %258 = vst.msk [vmem:[#allocation2 + $0x34] sm:$0xf] %vm172_vm4, %v249_v14  ;;  %v251_v19 = vld [vmem:[%s2330_s19 + $0x14] sm:$0xf]  ;;  %v660_v20 = vld [vmem:[%s2712_s1 + $0x8] sm:$0xf]  ;;  %vm2356_vm8 = vmor %vm214_vm5, %vm283_vm6 }
  0x15   : > { %v271_v21 = vld [vmem:[#allocation2 + $0x18] sm:$0x8]  ;;  %259 = vst.msk [vmem:[#allocation2 + $0x40] sm:$0xf] %vm172_vm4, %v250_v15  ;;  %v686_v22 = vsel %vm415_vm0, %v660_v20, 0  ;;  %vm213_vm9 = vcmask 57344  }
  0x16   : > { %v273_v23 = vld [vmem:[#allocation2 + $0x24] sm:$0x8]  ;;  %v312_v24 = vshrl.u32 %v271_v21, 16  ;;  %203 = vst [vmem:[#allocation2 + $0x48] sm:$0x8] %v202_v17  ;;  %695 = vmatpush.bf16.msrb.mxu2 %v686_v22  ;;  %vm2398_vm10 = vmand %vm213_vm9, %vm214_vm5  ;;  %vm1692_vm14 = vcmask 123904  }
  0x17   : > { %v275_v25 = vld [vmem:[#allocation2 + $0x30] sm:$0x8]  ;;  %206 = vst [vmem:[#allocation2 + $0x54] sm:$0x8] %v205_v18  ;;  %v325_v28 = vshrl.u32 %v273_v23, 16  ;;  %vm1901_vm15 = vcmask 1041408  }
  0x18   : > { %v252_v26 = vld [vmem:[%s2330_s19 + $0x18] sm:$0xf]  ;;  %v272_v27 = vld [vmem:[#allocation2 + $0x1c] sm:$0xf]  ;;  %260 = vst.msk [vmem:[#allocation2 + $0x4c] sm:$0xf] %vm172_vm4, %v251_v19 }
  0x19   : > { %v274_v29 = vld [vmem:[#allocation2 + $0x28] sm:$0xf]  ;;  %v317_v30 = vshrl.u32 %v272_v27, 16  ;;  %v320_v31 = vshll.u32 %v272_v27, 16  ;;  %v338_v32 = vshrl.u32 %v275_v25, 16  ;;  %v2138_v33 = vrot.slane %v312_v24, 11 }
  0x1a   : > { %v330_v34 = vshrl.u32 %v274_v29, 16  ;;  %v333_v35 = vshll.u32 %v274_v29, 16  ;;  %v277_v36 = vld [vmem:[#allocation2 + $0x3c] sm:$0x8]  ;;  %261 = vst.msk [vmem:[#allocation2 + $0x58] sm:$0xf] %vm172_vm4, %v252_v26 }
  0x1b   : > { %v319_v37 = vrot.slane %v317_v30, 7  ;;  %v276_v38 = vld [vmem:[#allocation2 + $0x34] sm:$0xf]  ;;  %v351_v39 = vshrl.u32 %v277_v36, 16  ;;  %v2139_v41 = vrot.slane %v325_v28, 11  ;;  %v2140_v47 = vrot.slane %v338_v32, 11 }
  0x1c   : > { %v332_v42 = vrot.slane %v330_v34, 7  ;;  %v278_v43 = vld [vmem:[#allocation2 + $0x40] sm:$0xf]  ;;  %v343_v44 = vshrl.u32 %v276_v38, 16  ;;  %v346_v45 = vshll.u32 %v276_v38, 16  ;;  %vm2021_vm1 = vcmask 1042434  }
  0x1d   : > { %v322_v46 = vor.u32 %v320_v31, %v319_v37  ;;  %v356_v48 = vshrl.u32 %v278_v43, 16  ;;  %v359_v49 = vshll.u32 %v278_v43, 16  ;;  %v279_v50 = vld [vmem:[#allocation2 + $0x48] sm:$0x8]  ;;  %173 = vst.msk [vmem:[#allocation2] sm:$0xf] %vm172_vm4, %v2281_v55 }
  0x1e   : > { %v335_v51 = vor.u32 %v333_v35, %v332_v42  ;;  %v345_v52 = vrot.slane %v343_v44, 7  ;;  %v281_v53 = vld [vmem:[#allocation2 + $0x54] sm:$0x8]  ;;  %v364_v54 = vshrl.u32 %v279_v50, 16  ;;  %v2141_v57 = vrot.slane %v351_v39, 11  ;;  %s2247_s11 = sshll.u32 %s2724_s13, 3 }
  0x1f   : > { %v323_v56 = vsel %vm2356_vm8, %v2138_v33, %v322_v46  ;;  %v358_v58 = vrot.slane %v356_v48, 7  ;;  %v280_v59 = vld [vmem:[#allocation2 + $0x4c] sm:$0xf]  ;;  %174 = vst.msk [vmem:[#allocation2 + $0x4] sm:$0xf] %vm172_vm4, %v2281_v55  ;;  %v377_v63 = vshrl.u32 %v281_v53, 16  ;;  %s2660_s15 = scalar_lea.vmem %s2714_s3, %s2247_s11 }
  0x20   : > { %v336_v60 = vsel %vm2356_vm8, %v2139_v41, %v335_v51  ;;  %v392_v61 = vunpack.c.l.b16 %v323_v56  ;;  %v348_v62 = vor.u32 %v346_v45, %v345_v52  ;;  %v186_v0 = vld [vmem:[#allocation2 + $0xc] sm:$0x8]  ;;  %v246_v1 = vld [vmem:[%s2330_s19] sm:$0xf]  ;;  %v369_v5 = vshrl.u32 %v280_v59, 16 }
  0x21   : > { %v393_v2 = vunpack.c.l.b16 %v336_v60  ;;  %v361_v4 = vor.u32 %v359_v49, %v358_v58  ;;  %v372_v6 = vshll.u32 %v280_v59, 16  ;;  %255 = vst.msk [vmem:[#allocation2 + $0x10] sm:$0xf] %vm172_vm4, %v246_v1  ;;  %v845_v7 = vld [vmem:[%s2712_s1 + $0xc] sm:$0xf]  ;;  %v2142_v10 = vrot.slane %v364_v54, 11 }
  0x22   : > { %v349_v8 = vsel %vm2356_vm8, %v2140_v47, %v348_v62  ;;  %v282_v9 = vld [vmem:[#allocation2 + $0x58] sm:$0xf]  ;;  %v187_v11 = vsel %vm2316_vm3, 0, %v186_v0  ;;  %175 = vst.msk [vmem:[#allocation2 + $0x8] sm:$0xf] %vm172_vm4, %v2281_v55  ;;  %v371_v15 = vrot.slane %v369_v5, 7 }
  0x23   : > { %v399_v12 = vpack.c.b16 %v393_v2, %v392_v61  ;;  %v362_v13 = vsel %vm2356_vm8, %v2141_v57, %v361_v4  ;;  %v394_v14 = vunpack.c.l.b16 %v349_v8  ;;  %188 = vst [vmem:[#allocation2 + $0xc] sm:$0x8] %v187_v11  ;;  %v456_v16 = vld [vmem:[%s2712_s1 + $0x4] sm:$0xf]  ;;  %v382_v18 = vshrl.u32 %v282_v9, 16 }
  0x24   : > { %v395_v17 = vunpack.c.l.b16 %v362_v13  ;;  %v385_v19 = vshll.u32 %v282_v9, 16  ;;  %177 = vst.msk [vmem:[#allocation2 + $0x6c] sm:$0xf] %vm172_vm4, %v2281_v55  ;;  %v871_v20 = vsel %vm415_vm0, %v845_v7, 0  ;;  %v374_v21 = vor.u32 %v372_v6, %v371_v15  ;;  %v183_v23 = vld [vmem:[#allocation2] sm:$0x8] }
  0x25   : > { %2145 = vmatmul.msk.bf16.vlgmr.msra.gmra.mxu1 %vm402_vm7, %v399_v12  ;;  %v2143_v22 = vrot.slane %v377_v63, 11  ;;  %178 = vst.msk [vmem:[#allocation2 + $0x70] sm:$0xf] %vm172_vm4, %v2281_v55  ;;  %880 = vmatpush.bf16.msrb.mxu3 %v871_v20  ;;  %v490_v24 = vsel %vm415_vm0, %v456_v16, 0  ;;  %v384_v26 = vrot.slane %v382_v18, 7  ;;  %v184_v27 = vsel %vm2316_vm3, 0, %v183_v23 }
  0x26   : > { %v400_v25 = vpack.c.b16 %v395_v17, %v394_v14  ;;  %v268_v28 = vld [vmem:[#allocation2 + $0x4] sm:$0xf]  ;;  %179 = vst.msk [vmem:[#allocation2 + $0x74] sm:$0xf] %vm172_vm4, %v2281_v55  ;;  %499 = vmatpush.bf16.msrb.mxu1 %v490_v24  ;;  %v375_v29 = vsel %vm2356_vm8, %v2142_v10, %v374_v21  ;;  %v910_v31 = vld [vmem:[%s2712_s1 + $0x10] sm:$0xf] }
  0x27   : > { %185 = vst [vmem:[#allocation2] sm:$0x8] %v184_v27  ;;  %v291_v30 = vshrl.u32 %v268_v28, 16  ;;  %v387_v32 = vor.u32 %v385_v19, %v384_v26  ;;  %v294_v34 = vshll.u32 %v268_v28, 16  ;;  %v944_v35 = vsel %vm415_vm0, %v910_v31, 0 }
  0x28   : > { %2146 = vmatmul.msk.bf16.vlgmr.msra.gmra.mxu2 %vm402_vm7, %v400_v25  ;;  %v270_v33 = vld [vmem:[#allocation2 + $0x10] sm:$0xf]  ;;  %v396_v36 = vunpack.c.l.b16 %v375_v29  ;;  %953 = vmatpush.bf16.msrb.mxu0 %v944_v35  ;;  %v219_v45 = vld [vmem:[#allocation2 + $0x14] sm:$0x1]  ;;  %v2150_v49 = vld [vmem:[#allocation2 + $0x4] sm:$0xf] }
  0x29   : > { %v293_v37 = vrot.slane %v291_v30, 7  ;;  %v304_v38 = vshrl.u32 %v270_v33, 16  ;;  %v307_v39 = vshll.u32 %v270_v33, 16  ;;  %v388_v42 = vsel %vm2356_vm8, %v2143_v22, %v387_v32  ;;  %v216_v44 = vld [vmem:[#allocation2 + $0x8] sm:$0x1] }
  0x2a   : > { %v269_v43 = vld [vmem:[#allocation2 + $0xc] sm:$0x8]  ;;  %v397_v46 = vunpack.c.l.b16 %v388_v42  ;;  %v2248_v50 = vld [vmem:[#allocation2 + $0xc] sm:$0xf0]  ;;  %v529_v51 = vld [vmem:[#allocation2 + $0x4] sm:$0xf] }
  0x2b   : > { %v299_v47 = vshrl.u32 %v269_v43, 16  ;;  %v306_v48 = vrot.slane %v304_v38, 7  ;;  %v531_v52 = vld [vmem:[#allocation2 + $0x10] sm:$0xf]  ;;  %v217_v53 = vsel %vm2398_vm10, 0, %v216_v44  ;;  %v220_v54 = vsel %vm2398_vm10, 0, %v219_v45 }
  0x2c   : > { %vm545_vm11 = vsmask.f32 3328  ;;  %vm546_vm12 = vsmask.f32 7440  ;;  %v401_v55 = vpack.c.b16 %v397_v46, %v396_v36  ;;  %218 = vst [vmem:[#allocation2 + $0x8] sm:$0x1] %v217_v53  ;;  %v296_v61 = vor.u32 %v294_v34, %v293_v37 }
  0x2d   : > { %v2137_v56 = vrot.slane %v299_v47, 11  ;;  %v309_v57 = vor.u32 %v307_v39, %v306_v48  ;;  %v549_v58 = vshrl.u32 %v529_v51, 16  ;;  %v725_v59 = vld [vmem:[#allocation2 + $0xc] sm:$0x8]  ;;  %221 = vst [vmem:[#allocation2 + $0x14] sm:$0x1] %v220_v54  ;;  %v2151_v7 = vor.u32 %v2248_v50, %v2150_v49  ;;  %vm2422_vm13 = vmor %vm545_vm11, %vm546_vm12 }
  0x2e   : > { %v267_v60 = vld [vmem:[#allocation2] sm:$0x8]  ;;  %v552_v62 = vshll.u32 %v529_v51, 16  ;;  %v563_v63 = vshrl.u32 %v531_v52, 16  ;;  %2147 = vmatmul.msk.bf16.vlgmr.msra.gmra.mxu3 %vm402_vm7, %v401_v55  ;;  %v566_v4 = vshll.u32 %v531_v52, 16  ;;  %v742_v14 = vshrl.u32 %v725_v59, 16 }
  0x2f   : > { %v286_v0 = vshrl.u32 %v267_v60, 16  ;;  %v310_v1 = vsel %vm2356_vm8, %v2137_v56, %v309_v57  ;;  %v551_v2 = vrot.slane %v549_v58, 4  ;;  %v726_v5 = vld [vmem:[#allocation2 + $0x10] sm:$0xf]  ;;  %v727_v10 = vld [vmem:[#allocation2 + $0x18] sm:$0x8] }
  0x30   : > { %v391_v6 = vunpack.c.l.b16 %v310_v1  ;;  %v554_v8 = vrot.slane %v552_v62, 5  ;;  %v565_v9 = vrot.slane %v563_v63, 4  ;;  %v728_v11 = vld [vmem:[#allocation2 + $0x1c] sm:$0xf]  ;;  %v568_v13 = vrot.slane %v566_v4, 5 }
  0x31   : > { %v2136_v12 = vrot.slane %v286_v0, 11  ;;  %v747_v15 = vshrl.u32 %v726_v5, 16  ;;  %v750_v17 = vshll.u32 %v726_v5, 16  ;;  %v755_v18 = vshrl.u32 %v727_v10, 16  ;;  %v1297_v24 = vld [vmem:[%s2712_s1 + $0x18] sm:$0xf] }
  0x32   : > { %v555_v16 = vor.u32 %v554_v8, %v551_v2  ;;  %v760_v19 = vshrl.u32 %v728_v11, 16  ;;  %v569_v21 = vor.u32 %v568_v13, %v565_v9  ;;  %v2172_v22 = vrot.slane %v742_v14, 11  ;;  %v1362_v25 = vld [vmem:[%s2712_s1 + $0x1c] sm:$0xf]  ;;  %v1111_v42 = vld [vmem:[%s2712_s1 + $0x14] sm:$0xf] }
  0x33   : > { %v297_v20 = vsel %vm2356_vm8, %v2136_v12, %v296_v61  ;;  %v749_v23 = vrot.slane %v747_v15, 7  ;;  %v530_v27 = vld [vmem:[#allocation2 + $0x8] sm:$0x1]  ;;  %v2173_v29 = vrot.slane %v755_v18, 11  ;;  %v763_v35 = vshll.u32 %v728_v11, 16 }
  0x34   : > { %v390_v26 = vunpack.c.l.b16 %v297_v20  ;;  %v556_v28 = vrot.slane %v555_v16, 4  ;;  %v762_v30 = vrot.slane %v760_v19, 7  ;;  %v532_v31 = vld [vmem:[#allocation2 + $0x14] sm:$0x1]  ;;  %v558_v32 = vshll.u32 %v530_v27, 16 }
  0x35   : > { %2164 = vmatmul.msk.bf16.vlgmr.msrb.gmra.mxu1 %vm402_vm7, %v2151_v7  ;;  %v570_v33 = vrot.slane %v569_v21, 4  ;;  %v752_v34 = vor.u32 %v750_v17, %v749_v23  ;;  %v572_v38 = vshll.u32 %v532_v31, 16  ;;  %v1323_v39 = vsel %vm415_vm0, %v1297_v24, 0  ;;  %v1563_v43 = vld [vmem:[%s2712_s1 + $0x20] sm:$0xf] }
  0x36   : > { %v398_v36 = vpack.c.b16 %v391_v6, %v390_v26  ;;  %v560_v44 = vrot.slane %v558_v32, 5  ;;  %v765_v46 = vor.u32 %v763_v35, %v762_v30  ;;  %1332 = vmatpush.bf16.msra.mxu2 %v1323_v39  ;;  %v1396_v47 = vsel %vm415_vm0, %v1362_v25, 0  ;;  %v222_v52 = vld [vmem:[#allocation2 + $0x20] sm:$0x1]  ;;  %v225_v56 = vld [vmem:[#allocation2 + $0x2c] sm:$0x1] }
  0x37   : > { %v753_v45 = vsel %vm2356_vm8, %v2172_v22, %v752_v34  ;;  %v574_v48 = vrot.slane %v572_v38, 5  ;;  %1405 = vmatpush.bf16.msra.mxu3 %v1396_v47  ;;  %v1137_v50 = vsel %vm415_vm0, %v1111_v42, 0  ;;  %v1589_v51 = vsel %vm415_vm0, %v1563_v43, 0  ;;  %v533_v57 = vld [vmem:[#allocation2 + $0x1c] sm:$0xf] }
  0x38   : > { %2144 = vmatmul.msk.bf16.vlgmr.msra.gmra.mxu0 %vm402_vm7, %v398_v36  ;;  %v846_v49 = vunpack.c.l.b16 %v753_v45  ;;  %v561_v53 = vsel %vm2422_vm13, %v556_v28, %v560_v44  ;;  %v766_v54 = vsel %vm2356_vm8, %v2173_v29, %v765_v46  ;;  %1146 = vmatpush.bf16.msra.mxu1 %v1137_v50  ;;  %v223_v55 = vsel %vm2398_vm10, 0, %v222_v52  ;;  %v535_v62 = vld [vmem:[#allocation2 + $0x28] sm:$0xf]  ;;  %v2154_v5 = vld [vmem:[#allocation2 + $0x1c] sm:$0xf] }
  0x39   : > { %1598 = vmatpush.bf16.msra.mxu0 %v1589_v51  ;;  %v575_v58 = vsel %vm2422_vm13, %v570_v33, %v574_v48  ;;  %v661_v59 = vunpack.c.l.b16 %v561_v53  ;;  %v847_v60 = vunpack.c.l.b16 %v766_v54  ;;  %224 = vst [vmem:[#allocation2 + $0x20] sm:$0x1] %v223_v55  ;;  %v226_v61 = vsel %vm2398_vm10, 0, %v225_v56  ;;  %v2249_v6 = vld [vmem:[#allocation2 + $0x24] sm:$0xf0] }
  0x3a   : > { %v662_v63 = vunpack.c.l.b16 %v575_v58  ;;  %227 = vst [vmem:[#allocation2 + $0x2c] sm:$0x1] %v226_v61  ;;  %v577_v0 = vshrl.u32 %v533_v57, 16  ;;  %v580_v1 = vshll.u32 %v533_v57, 16  ;;  %v591_v2 = vshrl.u32 %v535_v62, 16 }
  0x3b   : > { %v854_v4 = vpack.c.b16 %v847_v60, %v846_v49  ;;  %v594_v7 = vshll.u32 %v535_v62, 16  ;;  %v729_v8 = vld [vmem:[#allocation2 + $0x24] sm:$0x8]  ;;  %v730_v9 = vld [vmem:[#allocation2 + $0x28] sm:$0xf]  ;;  %v2155_v29 = vor.u32 %v2249_v6, %v2154_v5  ;;  %vm2018_vm0 = vcmask 1041409  }
  0x3c   : > { %v669_v10 = vpack.c.b16 %v662_v63, %v661_v59  ;;  %v579_v11 = vrot.slane %v577_v0, 4  ;;  %v582_v12 = vrot.slane %v580_v1, 5  ;;  %v593_v13 = vrot.slane %v591_v2, 4  ;;  %v731_v14 = vld [vmem:[#allocation2 + $0x30] sm:$0x8] }
  0x3d   : > { %v596_v15 = vrot.slane %v594_v7, 5  ;;  %v732_v16 = vld [vmem:[#allocation2 + $0x34] sm:$0xf]  ;;  %v768_v17 = vshrl.u32 %v729_v8, 16  ;;  %v773_v18 = vshrl.u32 %v730_v9, 16  ;;  %v776_v19 = vshll.u32 %v730_v9, 16 }
  0x3e   : > { %2168 = vmatmul.msk.bf16.vlgmr.msrb.gmra.mxu2 %vm402_vm7, %v669_v10  ;;  %2180 = vmatmul.msk.bf16.vlgmr.msrb.gmra.mxu3 %vm402_vm7, %v854_v4  ;;  %v583_v20 = vor.u32 %v582_v12, %v579_v11  ;;  %v781_v21 = vshrl.u32 %v731_v14, 16  ;;  %v786_v22 = vshrl.u32 %v732_v16, 16  ;;  %v789_v23 = vshll.u32 %v732_v16, 16  ;;  %v2186_v24 = vld [vmem:[#allocation2 + $0x10] sm:$0xf] }
  0x3f   : > { %v2252_v25 = vld [vmem:[#allocation2 + $0x18] sm:$0xf0]  ;;  %v597_v26 = vor.u32 %v596_v15, %v593_v13  ;;  %v2174_v27 = vrot.slane %v768_v17, 11  ;;  %v775_v28 = vrot.slane %v773_v18, 7  ;;  %v228_v44 = vld [vmem:[#allocation2 + $0x38] sm:$0x1] }
  0x40   : > { %v534_v30 = vld [vmem:[#allocation2 + $0x20] sm:$0x1]  ;;  %v2175_v31 = vrot.slane %v781_v21, 11  ;;  %v788_v32 = vrot.slane %v786_v22, 7  ;;  %v584_v34 = vrot.slane %v583_v20, 4  ;;  %v2187_v38 = vor.u32 %v2252_v25, %v2186_v24 }
  0x41   : > { %v536_v33 = vld [vmem:[#allocation2 + $0x2c] sm:$0x1]  ;;  %v586_v35 = vshll.u32 %v534_v30, 16  ;;  %v778_v36 = vor.u32 %v776_v19, %v775_v28  ;;  %v598_v39 = vrot.slane %v597_v26, 4  ;;  %v231_v45 = vld [vmem:[#allocation2 + $0x44] sm:$0x1] }
  0x42   : > { %v600_v42 = vshll.u32 %v536_v33, 16  ;;  %v791_v43 = vor.u32 %v789_v23, %v788_v32  ;;  %v229_v48 = vsel %vm2398_vm10, 0, %v228_v44  ;;  %v232_v49 = vsel %vm2398_vm10, 0, %v231_v45  ;;  %v537_v50 = vld [vmem:[#allocation2 + $0x34] sm:$0xf] }
  0x43   : > { %v588_v46 = vrot.slane %v586_v35, 5  ;;  %v779_v47 = vsel %vm2356_vm8, %v2174_v27, %v778_v36  ;;  %230 = vst [vmem:[#allocation2 + $0x38] sm:$0x1] %v229_v48  ;;  %v539_v54 = vld [vmem:[#allocation2 + $0x40] sm:$0xf]  ;;  %v605_v55 = vshrl.u32 %v537_v50, 16 }
  0x44   : > { %v602_v51 = vrot.slane %v600_v42, 5  ;;  %v792_v52 = vsel %vm2356_vm8, %v2175_v31, %v791_v43  ;;  %v848_v53 = vunpack.c.l.b16 %v779_v47  ;;  %233 = vst [vmem:[#allocation2 + $0x44] sm:$0x1] %v232_v49  ;;  %v608_v58 = vshll.u32 %v537_v50, 16  ;;  %v733_v60 = vld [vmem:[#allocation2 + $0x3c] sm:$0x8] }
  0x45   : > { %2165 = vmatmul.msk.bf16.gmra.mxu1 %vm402_vm7, %v2155_v29  ;;  %v589_v56 = vsel %vm2422_vm13, %v584_v34, %v588_v46  ;;  %v849_v57 = vunpack.c.l.b16 %v792_v52  ;;  %v619_v59 = vshrl.u32 %v539_v54, 16  ;;  %v607_v63 = vrot.slane %v605_v55, 4  ;;  %v734_v1 = vld [vmem:[#allocation2 + $0x40] sm:$0xf]  ;;  %v735_v2 = vld [vmem:[#allocation2 + $0x48] sm:$0x8] }
  0x46   : > { %v603_v61 = vsel %vm2422_vm13, %v598_v39, %v602_v51  ;;  %v663_v62 = vunpack.c.l.b16 %v589_v56  ;;  %v622_v0 = vshll.u32 %v539_v54, 16  ;;  %v610_v5 = vrot.slane %v608_v58, 5  ;;  %v736_v7 = vld [vmem:[#allocation2 + $0x4c] sm:$0xf]  ;;  %v234_v20 = vld [vmem:[#allocation2 + $0x50] sm:$0x1] }
  0x47   : > { %v664_v4 = vunpack.c.l.b16 %v603_v61  ;;  %v621_v6 = vrot.slane %v619_v59, 4  ;;  %v855_v8 = vpack.c.b16 %v849_v57, %v848_v53  ;;  %v794_v10 = vshrl.u32 %v733_v60, 16  ;;  %v2158_v21 = vld [vmem:[#allocation2 + $0x34] sm:$0xf]  ;;  %v2250_v22 = vld [vmem:[#allocation2 + $0x3c] sm:$0xf0] }
  0x48   : > { %2200 = vmatmul.msk.bf16.vlgmr.msrb.gmra.mxu0 %vm402_vm7, %v2187_v38  ;;  %v624_v9 = vrot.slane %v622_v0, 5  ;;  %v799_v11 = vshrl.u32 %v734_v1, 16  ;;  %v611_v12 = vor.u32 %v610_v5, %v607_v63  ;;  %v802_v13 = vshll.u32 %v734_v1, 16  ;;  %v2190_v27 = vld [vmem:[#allocation2 + $0x28] sm:$0xf] }
  0x49   : > { %v807_v14 = vshrl.u32 %v735_v2, 16  ;;  %v812_v15 = vshrl.u32 %v736_v7, 16  ;;  %v670_v16 = vpack.c.b16 %v664_v4, %v663_v62  ;;  %v815_v19 = vshll.u32 %v736_v7, 16  ;;  %v2253_v28 = vld [vmem:[#allocation2 + $0x30] sm:$0xf0] }
  0x4a   : > { %v625_v17 = vor.u32 %v624_v9, %v621_v6  ;;  %v801_v18 = vrot.slane %v799_v11, 7  ;;  %v538_v23 = vld [vmem:[#allocation2 + $0x38] sm:$0x1]  ;;  %v612_v24 = vrot.slane %v611_v12, 4  ;;  %v2176_v25 = vrot.slane %v794_v10, 11 }
  0x4b   : > { %v814_v26 = vrot.slane %v812_v15, 7  ;;  %v540_v29 = vld [vmem:[#allocation2 + $0x44] sm:$0x1]  ;;  %v614_v30 = vshll.u32 %v538_v23, 16  ;;  %v2177_v31 = vrot.slane %v807_v14, 11  ;;  %v235_v35 = vsel %vm2398_vm10, 0, %v234_v20 }
  0x4c   : > { %v237_v32 = vld [vmem:[#allocation2 + $0x5c] sm:$0x1]  ;;  %v626_v33 = vrot.slane %v625_v17, 4  ;;  %v628_v34 = vshll.u32 %v540_v29, 16  ;;  %v541_v38 = vld [vmem:[#allocation2 + $0x4c] sm:$0xf]  ;;  %v804_v42 = vor.u32 %v802_v13, %v801_v18  ;;  %v2159_v49 = vor.u32 %v2250_v22, %v2158_v21 }
  0x4d   : > { %v238_v36 = vsel %vm2398_vm10, 0, %v237_v32  ;;  %v616_v39 = vrot.slane %v614_v30, 5  ;;  %v817_v43 = vor.u32 %v815_v19, %v814_v26  ;;  %236 = vst [vmem:[#allocation2 + $0x50] sm:$0x1] %v235_v35  ;;  %v543_v44 = vld [vmem:[#allocation2 + $0x58] sm:$0xf]  ;;  %v2191_v52 = vor.u32 %v2253_v28, %v2190_v27 }
  0x4e   : > { %2169 = vmatmul.msk.bf16.gmra.mxu2 %vm402_vm7, %v670_v16  ;;  %2181 = vmatmul.msk.bf16.gmra.mxu3 %vm402_vm7, %v855_v8  ;;  %v633_v45 = vshrl.u32 %v541_v38, 16  ;;  %v630_v46 = vrot.slane %v628_v34, 5  ;;  %239 = vst [vmem:[#allocation2 + $0x5c] sm:$0x1] %v238_v36  ;;  %v636_v47 = vshll.u32 %v541_v38, 16  ;;  %v647_v50 = vshrl.u32 %v543_v44, 16 }
  0x4f   : > { %v207_v48 = vld [vmem:[#allocation2 + $0x60] sm:$0x8]  ;;  %v253_v51 = vld [vmem:[%s2330_s19 + $0x1c] sm:$0xf]  ;;  %v650_v54 = vshll.u32 %v543_v44, 16  ;;  %v805_v55 = vsel %vm2356_vm8, %v2176_v25, %v804_v42  ;;  %v818_v56 = vsel %vm2356_vm8, %v2177_v31, %v817_v43  ;;  %v617_v60 = vsel %vm2422_vm13, %v612_v24, %v616_v39 }
  0x50   : > { %v635_v53 = vrot.slane %v633_v45, 4  ;;  %262 = vst.msk [vmem:[#allocation2 + $0x64] sm:$0xf] %vm172_vm4, %v253_v51  ;;  %v638_v57 = vrot.slane %v636_v47, 5  ;;  %v208_v58 = vsel %vm2316_vm3, 0, %v207_v48  ;;  %v631_v61 = vsel %vm2422_vm13, %v626_v33, %v630_v46 }
  0x51   : > { %v738_v59 = vld [vmem:[#allocation2 + $0x58] sm:$0xf]  ;;  %v649_v62 = vrot.slane %v647_v50, 4  ;;  %v652_v63 = vrot.slane %v650_v54, 5  ;;  %209 = vst [vmem:[#allocation2 + $0x60] sm:$0x8] %v208_v58  ;;  %v850_v1 = vunpack.c.l.b16 %v805_v55  ;;  %v851_v2 = vunpack.c.l.b16 %v818_v56 }
  0x52   : > { %v737_v0 = vld [vmem:[#allocation2 + $0x54] sm:$0x8]  ;;  %v825_v5 = vshrl.u32 %v738_v59, 16  ;;  %v665_v6 = vunpack.c.l.b16 %v617_v60  ;;  %v666_v7 = vunpack.c.l.b16 %v631_v61  ;;  %v639_v9 = vor.u32 %v638_v57, %v635_v53  ;;  %v983_v13 = vld [vmem:[#allocation2 + $0x10] sm:$0xf] }
  0x53   : > { %v820_v10 = vshrl.u32 %v737_v0, 16  ;;  %v653_v12 = vor.u32 %v652_v63, %v649_v62  ;;  %v1000_v16 = vshrl.u32 %v983_v13, 16  ;;  %v828_v18 = vshll.u32 %v738_v59, 16  ;;  %v985_v21 = vld [vmem:[#allocation2 + $0x1c] sm:$0xf] }
  0x54   : > { %v542_v4 = vld [vmem:[#allocation2 + $0x50] sm:$0x1]  ;;  %v827_v17 = vrot.slane %v825_v5, 7  ;;  %v671_v22 = vpack.c.b16 %v666_v7, %v665_v6  ;;  %v856_v23 = vpack.c.b16 %v851_v2, %v850_v1  ;;  %v640_v24 = vrot.slane %v639_v9, 4  ;;  %v2162_v27 = vld [vmem:[#allocation2 + $0x4c] sm:$0xf] }
  0x55   : > { %2166 = vmatmul.msk.bf16.gmra.mxu1 %vm402_vm7, %v2159_v49  ;;  %v544_v8 = vld [vmem:[#allocation2 + $0x5c] sm:$0x1]  ;;  %v642_v11 = vshll.u32 %v542_v4, 16  ;;  %v2178_v26 = vrot.slane %v820_v10, 11  ;;  %v654_v29 = vrot.slane %v653_v12, 4  ;;  %v1002_v34 = vrot.slane %v1000_v16, 4 }
  0x56   : > { %v656_v14 = vshll.u32 %v544_v8, 16  ;;  %v984_v33 = vld [vmem:[#allocation2 + $0x14] sm:$0x1]  ;;  %v1003_v35 = vshll.u32 %v983_v13, 16  ;;  %v1014_v36 = vshrl.u32 %v985_v21, 16  ;;  %v830_v39 = vor.u32 %v828_v18, %v827_v17 }
  0x57   : > { %v740_v15 = vld [vmem:[#allocation2 + $0x64] sm:$0xf]  ;;  %v644_v28 = vrot.slane %v642_v11, 5  ;;  %v2251_v38 = vld [vmem:[#allocation2 + $0x54] sm:$0xf0]  ;;  %v1017_v45 = vshll.u32 %v985_v21, 16 }
  0x58   : > { %2201 = vmatmul.msk.bf16.gmra.mxu0 %vm402_vm7, %v2191_v52  ;;  %v838_v19 = vshrl.u32 %v740_v15, 16  ;;  %v841_v20 = vshll.u32 %v740_v15, 16  ;;  %v739_v25 = vld [vmem:[#allocation2 + $0x60] sm:$0x8]  ;;  %v658_v32 = vrot.slane %v656_v14, 5  ;;  %v1005_v47 = vrot.slane %v1003_v35, 5 }
  0x59   : > { %v833_v30 = vshrl.u32 %v739_v25, 16  ;;  %v986_v44 = vld [vmem:[#allocation2 + $0x20] sm:$0x1]  ;;  %v1016_v48 = vrot.slane %v1014_v36, 4  ;;  %v1178_v49 = vld [vmem:[#allocation2 + $0x1c] sm:$0xf]  ;;  %v645_v51 = vsel %vm2422_vm13, %v640_v24, %v644_v28  ;;  %v2163_v55 = vor.u32 %v2251_v38, %v2162_v27 }
  0x5a   : > { %v840_v31 = vrot.slane %v838_v19, 7  ;;  %v2194_v46 = vld [vmem:[#allocation2 + $0x40] sm:$0xf]  ;;  %v2254_v50 = vld [vmem:[#allocation2 + $0x48] sm:$0xf0]  ;;  %v1009_v52 = vshll.u32 %v984_v33, 16  ;;  %v659_v56 = vsel %vm2422_vm13, %v654_v29, %v658_v32  ;;  %v1006_v57 = vor.u32 %v1005_v47, %v1002_v34 }
  0x5b   : > { %v2179_v42 = vrot.slane %v833_v30, 11  ;;  %v1019_v53 = vrot.slane %v1017_v45, 5  ;;  %v1180_v54 = vld [vmem:[#allocation2 + $0x28] sm:$0xf]  ;;  %v1023_v58 = vshll.u32 %v986_v44, 16  ;;  %v831_v60 = vsel %vm2356_vm8, %v2178_v26, %v830_v39 }
  0x5c   : > { %v843_v43 = vor.u32 %v841_v20, %v840_v31  ;;  %v1177_v59 = vld [vmem:[#allocation2 + $0x18] sm:$0x8]  ;;  %v1199_v63 = vshrl.u32 %v1178_v49, 16  ;;  %v2195_v0 = vor.u32 %v2254_v50, %v2194_v46  ;;  %v667_v1 = vunpack.c.l.b16 %v645_v51  ;;  %v1179_v2 = vld [vmem:[#allocation2 + $0x24] sm:$0x8] }
  0x5d   : > { %v1020_v62 = vor.u32 %v1019_v53, %v1016_v48  ;;  %v1212_v4 = vshrl.u32 %v1180_v54, 16  ;;  %v668_v5 = vunpack.c.l.b16 %v659_v56  ;;  %v1007_v6 = vrot.slane %v1006_v57, 4  ;;  %v1435_v9 = vld [vmem:[#allocation2 + $0x1c] sm:$0xf]  ;;  %v1437_v17 = vld [vmem:[#allocation2 + $0x28] sm:$0xf] }
  0x5e   : > { %2170 = vmatmul.msk.bf16.gmra.mxu2 %vm402_vm7, %v671_v22  ;;  %2182 = vmatmul.msk.bf16.gmra.mxu3 %vm402_vm7, %v856_v23  ;;  %v844_v61 = vsel %vm2356_vm8, %v2179_v42, %v843_v43  ;;  %v1011_v7 = vrot.slane %v1009_v52, 5  ;;  %v1194_v8 = vshrl.u32 %v1177_v59, 16  ;;  %v852_v10 = vunpack.c.l.b16 %v831_v60  ;;  %v987_v25 = vld [vmem:[#allocation2 + $0x28] sm:$0xf]  ;;  %v989_v30 = vld [vmem:[#allocation2 + $0x34] sm:$0xf] }
  0x5f   : > { %v853_v11 = vunpack.c.l.b16 %v844_v61  ;;  %v1021_v12 = vrot.slane %v1020_v62, 4  ;;  %v1025_v13 = vrot.slane %v1023_v58, 5  ;;  %v1201_v14 = vrot.slane %v1199_v63, 7  ;;  %v1436_v38 = vld [vmem:[#allocation2 + $0x20] sm:$0x1] }
  0x60   : > { %v1202_v15 = vshll.u32 %v1178_v49, 16  ;;  %v1207_v16 = vshrl.u32 %v1179_v2, 16  ;;  %v1214_v18 = vrot.slane %v1212_v4, 7  ;;  %v1215_v19 = vshll.u32 %v1180_v54, 16  ;;  %v988_v49 = vld [vmem:[#allocation2 + $0x2c] sm:$0x1] }
  0x61   : > { %v1452_v20 = vshrl.u32 %v1435_v9, 16  ;;  %v1455_v21 = vshll.u32 %v1435_v9, 16  ;;  %v672_v22 = vpack.c.b16 %v668_v5, %v667_v1  ;;  %v1012_v23 = vsel %vm2422_vm13, %v1007_v6, %v1011_v7  ;;  %v1438_v51 = vld [vmem:[#allocation2 + $0x2c] sm:$0x1]  ;;  %v990_v53 = vld [vmem:[#allocation2 + $0x38] sm:$0x1] }
  0x62   : > { %v2208_v24 = vrot.slane %v1194_v8, 11  ;;  %v857_v26 = vpack.c.b16 %v853_v11, %v852_v10  ;;  %v1026_v27 = vsel %vm2422_vm13, %v1021_v12, %v1025_v13  ;;  %v1466_v28 = vshrl.u32 %v1437_v17, 16  ;;  %v2198_v59 = vld [vmem:[#allocation2 + $0x58] sm:$0xf]  ;;  %v2255_v60 = vld [vmem:[#allocation2 + $0x60] sm:$0xf0] }
  0x63   : > { %v1469_v29 = vshll.u32 %v1437_v17, 16  ;;  %v1204_v31 = vor.u32 %v1202_v15, %v1201_v14  ;;  %v2209_v32 = vrot.slane %v1207_v16, 11  ;;  %v1028_v33 = vshrl.u32 %v987_v25, 16  ;;  %v1182_v5 = vld [vmem:[#allocation2 + $0x34] sm:$0xf] }
  0x64   : > { %v1031_v34 = vshll.u32 %v987_v25, 16  ;;  %v1112_v35 = vunpack.c.l.b16 %v1012_v23  ;;  %v1217_v36 = vor.u32 %v1215_v19, %v1214_v18  ;;  %v1454_v39 = vrot.slane %v1452_v20, 4  ;;  %v1184_v6 = vld [vmem:[#allocation2 + $0x40] sm:$0xf]  ;;  %v2222_v9 = vld [vmem:[#allocation2 + $0x1c] sm:$0xf] }
  0x65   : > { %2167 = vmatmul.msk.bf16.gmra.mxu1 %vm402_vm7, %v2163_v55  ;;  %v1457_v42 = vrot.slane %v1455_v21, 5  ;;  %v1113_v43 = vunpack.c.l.b16 %v1026_v27  ;;  %v1030_v44 = vrot.slane %v1028_v33, 4  ;;  %v1042_v46 = vshrl.u32 %v989_v30, 16  ;;  %v2256_v11 = vld [vmem:[#allocation2 + $0x24] sm:$0xf0] }
  0x66   : > { %v1033_v45 = vrot.slane %v1031_v34, 5  ;;  %v1468_v47 = vrot.slane %v1466_v28, 4  ;;  %v1471_v48 = vrot.slane %v1469_v29, 5  ;;  %v1045_v50 = vshll.u32 %v989_v30, 16  ;;  %v1181_v14 = vld [vmem:[#allocation2 + $0x30] sm:$0x8] }
  0x67   : > { %v1461_v52 = vshll.u32 %v1436_v38, 16  ;;  %v1044_v54 = vrot.slane %v1042_v46, 4  ;;  %v1205_v55 = vsel %vm2356_vm8, %v2208_v24, %v1204_v31  ;;  %v1218_v56 = vsel %vm2356_vm8, %v2209_v32, %v1217_v36  ;;  %v1183_v17 = vld [vmem:[#allocation2 + $0x3c] sm:$0x8]  ;;  %v1441_v31 = vld [vmem:[#allocation2 + $0x40] sm:$0xf] }
  0x68   : > { %2202 = vmatmul.msk.bf16.gmra.mxu0 %vm402_vm7, %v2195_v0  ;;  %v1458_v57 = vor.u32 %v1457_v42, %v1454_v39  ;;  %v1047_v58 = vrot.slane %v1045_v50, 5  ;;  %v1120_v61 = vpack.c.b16 %v1113_v43, %v1112_v35  ;;  %v1034_v62 = vor.u32 %v1033_v45, %v1030_v44  ;;  %v991_v36 = vld [vmem:[#allocation2 + $0x40] sm:$0xf]  ;;  %v993_v44 = vld [vmem:[#allocation2 + $0x4c] sm:$0xf] }
  0x69   : > { %v1037_v63 = vshll.u32 %v988_v49, 16  ;;  %v1472_v0 = vor.u32 %v1471_v48, %v1468_v47  ;;  %v1475_v1 = vshll.u32 %v1438_v51, 16  ;;  %v1051_v4 = vshll.u32 %v990_v53, 16 }
  0x6a   : > { %v1048_v2 = vor.u32 %v1047_v58, %v1044_v54  ;;  %v1298_v7 = vunpack.c.l.b16 %v1205_v55  ;;  %v1299_v8 = vunpack.c.l.b16 %v1218_v56  ;;  %v2199_v10 = vor.u32 %v2255_v60, %v2198_v59 }
  0x6b   : > { %v1459_v12 = vrot.slane %v1458_v57, 4  ;;  %v1463_v13 = vrot.slane %v1461_v52, 5  ;;  %v1035_v15 = vrot.slane %v1034_v62, 4  ;;  %v1039_v16 = vrot.slane %v1037_v63, 5  ;;  %v1440_v57 = vld [vmem:[#allocation2 + $0x38] sm:$0x1] }
  0x6c   : > { %v1225_v18 = vshrl.u32 %v1182_v5, 16  ;;  %v1238_v19 = vshrl.u32 %v1184_v6, 16  ;;  %v1473_v20 = vrot.slane %v1472_v0, 4  ;;  %v1477_v21 = vrot.slane %v1475_v1, 5  ;;  %v992_v0 = vld [vmem:[#allocation2 + $0x44] sm:$0x1] }
  0x6d   : > { %v1053_v23 = vrot.slane %v1051_v4, 5  ;;  %v1306_v24 = vpack.c.b16 %v1299_v8, %v1298_v7  ;;  %v2223_v25 = vor.u32 %v2256_v11, %v2222_v9  ;;  %v1464_v27 = vsel %vm2422_vm13, %v1459_v12, %v1463_v13  ;;  %v1186_v11 = vld [vmem:[#allocation2 + $0x4c] sm:$0xf] }
  0x6e   : > { %2171 = vmatmul.msk.bf16.gmra.mxu2 %vm402_vm7, %v672_v22  ;;  %2183 = vmatmul.msk.bf16.gmra.mxu3 %vm402_vm7, %v857_v26  ;;  %v1049_v22 = vrot.slane %v1048_v2, 4  ;;  %v1439_v26 = vld [vmem:[#allocation2 + $0x34] sm:$0xf]  ;;  %v1220_v28 = vshrl.u32 %v1181_v14, 16  ;;  %v1228_v29 = vshll.u32 %v1182_v5, 16  ;;  %v1233_v30 = vshrl.u32 %v1183_v17, 16 }
  0x6f   : > { %v1040_v32 = vsel %vm2422_vm13, %v1035_v15, %v1039_v16  ;;  %v1227_v33 = vrot.slane %v1225_v18, 7  ;;  %v1240_v34 = vrot.slane %v1238_v19, 7  ;;  %v1241_v35 = vshll.u32 %v1184_v6, 16  ;;  %v1442_v5 = vld [vmem:[#allocation2 + $0x44] sm:$0x1] }
  0x70   : > { %v1478_v38 = vsel %vm2422_vm13, %v1473_v20, %v1477_v21  ;;  %v1054_v39 = vsel %vm2422_vm13, %v1049_v22, %v1053_v23  ;;  %v1480_v42 = vshrl.u32 %v1439_v26, 16  ;;  %v1483_v43 = vshll.u32 %v1439_v26, 16  ;;  %v994_v6 = vld [vmem:[#allocation2 + $0x50] sm:$0x1]  ;;  %v2523_v20 = vld [vmem:[#allocation2 + $0x58] sm:$0xf] }
  0x71   : > { %v1494_v45 = vshrl.u32 %v1441_v31, 16  ;;  %v1497_v46 = vshll.u32 %v1441_v31, 16  ;;  %v1056_v47 = vshrl.u32 %v991_v36, 16  ;;  %v1059_v48 = vshll.u32 %v991_v36, 16  ;;  %v2525_v21 = vld [vmem:[#allocation2 + $0x34] sm:$0xf] }
  0x72   : > { %v1114_v49 = vunpack.c.l.b16 %v1040_v32  ;;  %v2210_v50 = vrot.slane %v1220_v28, 11  ;;  %v2211_v51 = vrot.slane %v1233_v30, 11  ;;  %v1070_v52 = vshrl.u32 %v993_v44, 16  ;;  %v2257_v22 = vld [vmem:[#allocation2 + $0x3c] sm:$0xf0] }
  0x73   : > { %v1115_v53 = vunpack.c.l.b16 %v1054_v39  ;;  %v1230_v54 = vor.u32 %v1228_v29, %v1227_v33  ;;  %v1243_v55 = vor.u32 %v1241_v35, %v1240_v34  ;;  %v1073_v56 = vshll.u32 %v993_v44, 16  ;;  %v1185_v28 = vld [vmem:[#allocation2 + $0x48] sm:$0x8]  ;;  %v1187_v29 = vld [vmem:[#allocation2 + $0x54] sm:$0x8] }
  0x74   : > { %v1482_v58 = vrot.slane %v1480_v42, 4  ;;  %v1485_v59 = vrot.slane %v1483_v43, 5  ;;  %v1058_v60 = vrot.slane %v1056_v47, 4  ;;  %v1496_v62 = vrot.slane %v1494_v45, 4  ;;  %v240_v34 = vld [vmem:[#allocation2 + $0x68] sm:$0x1] }
  0x75   : > { %2204 = vmatmul.msk.bf16.vlgmr.msra.gmra.mxu1 %vm402_vm7, %v1120_v61  ;;  %v1061_v61 = vrot.slane %v1059_v48, 5  ;;  %v1499_v63 = vrot.slane %v1497_v46, 5  ;;  %v1072_v1 = vrot.slane %v1070_v52, 4  ;;  %v1075_v2 = vrot.slane %v1073_v56, 5  ;;  %v1443_v42 = vld [vmem:[#allocation2 + $0x4c] sm:$0xf] }
  0x76   : > { %v1564_v4 = vunpack.c.l.b16 %v1464_v27  ;;  %v1565_v7 = vunpack.c.l.b16 %v1478_v38  ;;  %v1121_v8 = vpack.c.b16 %v1115_v53, %v1114_v49  ;;  %v1231_v9 = vsel %vm2356_vm8, %v2210_v50, %v1230_v54  ;;  %v1445_v47 = vld [vmem:[#allocation2 + $0x58] sm:$0xf]  ;;  %v210_v53 = vld [vmem:[#allocation2 + $0x6c] sm:$0x8] }
  0x77   : > { %v1244_v12 = vsel %vm2356_vm8, %v2211_v51, %v1243_v55  ;;  %v1486_v13 = vor.u32 %v1485_v59, %v1482_v58  ;;  %v1062_v14 = vor.u32 %v1061_v61, %v1058_v60  ;;  %v1065_v15 = vshll.u32 %v992_v0, 16  ;;  %v995_v52 = vld [vmem:[#allocation2 + $0x58] sm:$0xf] }
  0x78   : > { %2203 = vmatmul.msk.bf16.gmra.mxu0 %vm402_vm7, %v2199_v10  ;;  %v1489_v10 = vshll.u32 %v1440_v57, 16  ;;  %v1500_v16 = vor.u32 %v1499_v63, %v1496_v62  ;;  %v1503_v17 = vshll.u32 %v1442_v5, 16  ;;  %v1076_v18 = vor.u32 %v1075_v2, %v1072_v1  ;;  %v997_v57 = vld [vmem:[#allocation2 + $0x64] sm:$0xf] }
  0x79   : > { %v1079_v19 = vshll.u32 %v994_v6, 16  ;;  %v1251_v23 = vshrl.u32 %v1186_v11, 16  ;;  %v1301_v26 = vunpack.c.l.b16 %v1244_v12  ;;  %v1487_v30 = vrot.slane %v1486_v13, 4 }
  0x7a   : > { %v1491_v27 = vrot.slane %v1489_v10, 5  ;;  %v1063_v31 = vrot.slane %v1062_v14, 4  ;;  %v1067_v32 = vrot.slane %v1065_v15, 5  ;;  %v1264_v33 = vshrl.u32 %v2523_v20, 16  ;;  %v1444_v10 = vld [vmem:[#allocation2 + $0x50] sm:$0x1] }
  0x7b   : > { %v1501_v35 = vrot.slane %v1500_v16, 4  ;;  %v1505_v36 = vrot.slane %v1503_v17, 5  ;;  %v1077_v38 = vrot.slane %v1076_v18, 4  ;;  %v1081_v39 = vrot.slane %v1079_v19, 5  ;;  %v996_v15 = vld [vmem:[#allocation2 + $0x5c] sm:$0x1] }
  0x7c   : > { %v1246_v43 = vshrl.u32 %v1185_v28, 16  ;;  %v1253_v44 = vrot.slane %v1251_v23, 7  ;;  %v1254_v45 = vshll.u32 %v1186_v11, 16  ;;  %v1259_v46 = vshrl.u32 %v1187_v29, 16 }
  0x7d   : > { %v2227_v49 = vor.u32 %v2257_v22, %v2525_v21  ;;  %v1267_v50 = vshll.u32 %v2523_v20, 16  ;;  %v241_v51 = vsel %vm2398_vm10, 0, %v240_v34  ;;  %v1492_v54 = vsel %vm2422_vm13, %v1487_v30, %v1491_v27  ;;  %v243_v21 = vld [vmem:[#allocation2 + $0x74] sm:$0x1] }
  0x7e   : > { %2216 = vmatmul.msk.bf16.vlgmr.msra.gmra.mxu2 %vm402_vm7, %v1306_v24  ;;  %2236 = vmatmul.msk.bf16.vlgmr.msra.gmra.mxu3 %vm402_vm7, %v2223_v25  ;;  %v1572_v24 = vpack.c.b16 %v1565_v7, %v1564_v4  ;;  %v1300_v25 = vunpack.c.l.b16 %v1231_v9  ;;  %v1068_v55 = vsel %vm2422_vm13, %v1063_v31, %v1067_v32  ;;  %v1266_v56 = vrot.slane %v1264_v33, 7  ;;  %242 = vst [vmem:[#allocation2 + $0x68] sm:$0x1] %v241_v51 }
  0x7f   : > { %v1084_v58 = vshrl.u32 %v995_v52, 16  ;;  %v1082_v59 = vsel %vm2422_vm13, %v1077_v38, %v1081_v39  ;;  %v1508_v60 = vshrl.u32 %v1443_v42, 16  ;;  %v1511_v61 = vshll.u32 %v1443_v42, 16  ;;  %v1190_v42 = vld [vmem:[#allocation2 + $0x64] sm:$0xf] }
  0x80   : > { %v1307_v48 = vpack.c.b16 %v1301_v26, %v1300_v25  ;;  %v1087_v62 = vshll.u32 %v995_v52, 16  ;;  %v1522_v63 = vshrl.u32 %v1445_v47, 16  ;;  %v1525_v0 = vshll.u32 %v1445_v47, 16 }
  0x81   : > { %v1098_v1 = vshrl.u32 %v997_v57, 16  ;;  %v1101_v2 = vshll.u32 %v997_v57, 16  ;;  %v1506_v4 = vsel %vm2422_vm13, %v1501_v35, %v1505_v36  ;;  %v1116_v5 = vunpack.c.l.b16 %v1068_v55  ;;  %v1189_v55 = vld [vmem:[#allocation2 + $0x60] sm:$0x8] }
  0x82   : > { %v2212_v6 = vrot.slane %v1246_v43, 11  ;;  %v211_v7 = vsel %vm2316_vm3, 0, %v210_v53  ;;  %v1256_v9 = vor.u32 %v1254_v45, %v1253_v44  ;;  %v1086_v11 = vrot.slane %v1084_v58, 4  ;;  %v1192_v43 = vld [vmem:[#allocation2 + $0x70] sm:$0xf] }
  0x83   : > { %v1089_v12 = vrot.slane %v1087_v62, 5  ;;  %212 = vst [vmem:[#allocation2 + $0x6c] sm:$0x8] %v211_v7  ;;  %v1510_v13 = vrot.slane %v1508_v60, 4  ;;  %v1513_v14 = vrot.slane %v1511_v61, 5  ;;  %v1100_v16 = vrot.slane %v1098_v1, 4 }
  0x84   : > { %v1103_v17 = vrot.slane %v1101_v2, 5  ;;  %v2213_v18 = vrot.slane %v1259_v46, 11  ;;  %v1269_v19 = vor.u32 %v1267_v50, %v1266_v56  ;;  %v1524_v20 = vrot.slane %v1522_v63, 4  ;;  %v2230_v45 = vld [vmem:[#allocation2 + $0x4c] sm:$0xf] }
  0x85   : > { %2205 = vmatmul.msk.bf16.gmra.mxu1 %vm402_vm7, %v1121_v8  ;;  %v1117_v8 = vunpack.c.l.b16 %v1082_v59  ;;  %v1527_v3 = vrot.slane %v1525_v0, 5  ;;  %v1566_v22 = vunpack.c.l.b16 %v1492_v54  ;;  %v1567_v23 = vunpack.c.l.b16 %v1506_v4  ;;  %v998_v26 = vld [vmem:[#allocation2 + $0x68] sm:$0x1]  ;;  %v2258_v50 = vld [vmem:[#allocation2 + $0x54] sm:$0xf0] }
  0x86   : > { %v1517_v25 = vshll.u32 %v1444_v10, 16  ;;  %v1257_v28 = vsel %vm2356_vm8, %v2212_v6, %v1256_v9  ;;  %v1090_v29 = vor.u32 %v1089_v12, %v1086_v11  ;;  %v1093_v30 = vshll.u32 %v996_v15, 16  ;;  %v1447_v61 = vld [vmem:[#allocation2 + $0x64] sm:$0xf]  ;;  %v1449_v2 = vld [vmem:[#allocation2 + $0x70] sm:$0xf] }
  0x87   : > { %v1122_v27 = vpack.c.b16 %v1117_v8, %v1116_v5  ;;  %v1514_v31 = vor.u32 %v1513_v14, %v1510_v13  ;;  %v1104_v32 = vor.u32 %v1103_v17, %v1100_v16  ;;  %v1107_v33 = vshll.u32 %v998_v26, 16 }
  0x88   : > { %2240 = vmatmul.msk.bf16.vlgmr.msra.gmra.mxu0 %vm402_vm7, %v1572_v24  ;;  %v1446_v24 = vld [vmem:[#allocation2 + $0x5c] sm:$0x1]  ;;  %v244_v34 = vsel %vm2398_vm10, 0, %v243_v21  ;;  %v1270_v35 = vsel %vm2356_vm8, %v2213_v18, %v1269_v19  ;;  %v1528_v36 = vor.u32 %v1527_v3, %v1524_v20  ;;  %v1573_v39 = vpack.c.b16 %v1567_v23, %v1566_v22 }
  0x89   : > { %v1531_v38 = vshll.u32 %v1446_v24, 16  ;;  %245 = vst [vmem:[#allocation2 + $0x74] sm:$0x1] %v244_v34  ;;  %v1302_v44 = vunpack.c.l.b16 %v1257_v28  ;;  %v1519_v46 = vrot.slane %v1517_v25, 5  ;;  %v1091_v47 = vrot.slane %v1090_v29, 4 }
  0x8a   : > { %v1515_v41 = vrot.slane %v1514_v31, 4  ;;  %v1105_v51 = vrot.slane %v1104_v32, 4  ;;  %v1109_v52 = vrot.slane %v1107_v33, 5  ;;  %v1529_v53 = vrot.slane %v1528_v36, 4  ;;  %v1191_v60 = vld [vmem:[#allocation2 + $0x6c] sm:$0x8] }
  0x8b   : > { %v1533_v54 = vrot.slane %v1531_v38, 5  ;;  %v1277_v56 = vshrl.u32 %v1190_v42, 16  ;;  %v1290_v57 = vshrl.u32 %v1192_v43, 16  ;;  %v2231_v58 = vor.u32 %v2258_v50, %v2230_v45 }
  0x8c   : > { %v1520_v63 = vsel %vm2422_vm13, %v1515_v41, %v1519_v46  ;;  %v1110_v0 = vsel %vm2422_vm13, %v1105_v51, %v1109_v52  ;;  %v1272_v1 = vshrl.u32 %v1189_v55, 16  ;;  %v1280_v6 = vshll.u32 %v1190_v42, 16  ;;  %v2259_v42 = vld [vmem:[#allocation2 + $0x6c] sm:$0xf0]  ;;  %v2581_v55 = vld [vmem:[%s2713_s2] ss:$0 sm:$0xff] }
  0x8d   : > { %v1534_v4 = vsel %vm2422_vm13, %v1529_v53, %v1533_v54  ;;  %v1279_v5 = vrot.slane %v1277_v56, 7  ;;  %v1292_v7 = vrot.slane %v1290_v57, 7  ;;  %v1285_v9 = vshrl.u32 %v1191_v60, 16 }
  0x8e   : > { %2217 = vmatmul.msk.bf16.gmra.mxu2 %vm402_vm7, %v1307_v48  ;;  %2237 = vmatmul.msk.bf16.gmra.mxu3 %vm402_vm7, %v2227_v49  ;;  %v1095_v48 = vrot.slane %v1093_v30, 5  ;;  %v1303_v49 = vunpack.c.l.b16 %v1270_v35  ;;  %v1293_v10 = vshll.u32 %v1192_v43, 16  ;;  %v1536_v11 = vshrl.u32 %v1447_v61, 16 }
  0x8f   : > { %v1119_v12 = vunpack.c.l.b16 %v1110_v0  ;;  %v1539_v13 = vshll.u32 %v1447_v61, 16  ;;  %v1550_v14 = vshrl.u32 %v1449_v2, 16  ;;  %v1553_v15 = vshll.u32 %v1449_v2, 16 }
  0x90   : > { %v1096_v59 = vsel %vm2422_vm13, %v1091_v47, %v1095_v48  ;;  %v1308_v62 = vpack.c.b16 %v1303_v49, %v1302_v44  ;;  %v1568_v16 = vunpack.c.l.b16 %v1520_v63  ;;  %v1569_v17 = vunpack.c.l.b16 %v1534_v4  ;;  %v1450_v28 = vld [vmem:[#allocation2 + $0x74] sm:$0x1] }
  0x91   : > { %v1118_v8 = vunpack.c.l.b16 %v1096_v59  ;;  %v2214_v18 = vrot.slane %v1272_v1, 11  ;;  %v1282_v19 = vor.u32 %v1280_v6, %v1279_v5  ;;  %v2215_v20 = vrot.slane %v1285_v9, 11 }
  0x92   : > { %v1295_v3 = vor.u32 %v1293_v10, %v1292_v7  ;;  %v1538_v21 = vrot.slane %v1536_v11, 4  ;;  %v1541_v23 = vrot.slane %v1539_v13, 5  ;;  %v1552_v24 = vrot.slane %v1550_v14, 4 }
  0x93   : > { %v1123_v22 = vpack.c.b16 %v1119_v12, %v1118_v8  ;;  %v1555_v25 = vrot.slane %v1553_v15, 5  ;;  %v1574_v29 = vpack.c.b16 %v1569_v17, %v1568_v16  ;;  %v1283_v30 = vsel %vm2356_vm8, %v2214_v18, %v1282_v19 }
  0x94   : > { %v1296_v31 = vsel %vm2356_vm8, %v2215_v20, %v1295_v3  ;;  %v1542_v32 = vor.u32 %v1541_v23, %v1538_v21  ;;  %v1559_v35 = vshll.u32 %v1450_v28, 16  ;;  %v1304_v36 = vunpack.c.l.b16 %v1283_v30 }
  0x95   : > { %2206 = vmatmul.msk.bf16.gmra.mxu1 %vm402_vm7, %v1122_v27  ;;  %v1448_v27 = vld [vmem:[#allocation2 + $0x68] sm:$0x1]  ;;  %v1556_v34 = vor.u32 %v1555_v25, %v1552_v24  ;;  %v1305_v38 = vunpack.c.l.b16 %v1296_v31  ;;  %vm2024_vm2 = vcmask 1043459  }
  0x96   : > { %v1545_v33 = vshll.u32 %v1448_v27, 16  ;;  %v1543_v43 = vrot.slane %v1542_v32, 4  ;;  %v1561_v46 = vrot.slane %v1559_v35, 5 }
  0x97   : > { %v1557_v45 = vrot.slane %v1556_v34, 4  ;;  %v1309_v40 = vpack.c.b16 %v1305_v38, %v1304_v36 }
  0x98   : > { %2241 = vmatmul.msk.bf16.gmra.mxu0 %vm402_vm7, %v1573_v39  ;;  %v2234_v39 = vld [vmem:[#allocation2 + $0x64] sm:$0xf]  ;;  %v1547_v44 = vrot.slane %v1545_v33, 5 }
  0x99   : > { %v2235_v48 = vor.u32 %v2259_v42, %v2234_v39  ;;  %v1562_v50 = vsel %vm2422_vm13, %v1557_v45, %v1561_v46 }
  0x9a   : > { %v1548_v49 = vsel %vm2422_vm13, %v1543_v43, %v1547_v44  ;;  %v1571_v52 = vunpack.c.l.b16 %v1562_v50 }
  0x9b   : > { %v1570_v51 = vunpack.c.l.b16 %v1548_v49 }
  0x9d   : > { %v1575_v56 = vpack.c.b16 %v1571_v52, %v1570_v51 }
  0x9e   : > { %2218 = vmatmul.msk.bf16.gmra.mxu2 %vm402_vm7, %v1308_v62  ;;  %2238 = vmatmul.msk.bf16.gmra.mxu3 %vm402_vm7, %v2231_v58 }
  0xa2   : > { %v433_v26 = vpop.f32.mrf.mxu1 }
  0xa3   : > { %v450_v63 = vadd.f32 %v2581_v55, %v433_v26 }
  0xa5   : > { %2207 = vmatmul.msk.bf16.gmra.mxu1 %vm402_vm7, %v1123_v22 }
  0xa8   : > { %2242 = vmatmul.msk.bf16.gmra.mxu0 %vm402_vm7, %v1574_v29 }
  0xaa   : > { %v2570_v47 = vpop.f32.mrf.mxu1 }
  0xab   : > { %v438_v41 = vpop.f32.mrf.mxu2 }
  0xac   : > { %v452_v13 = vadd.f32 %v2581_v55, %v438_v41 }
  0xae   : > { %2219 = vmatmul.msk.bf16.gmra.mxu2 %vm402_vm7, %v1309_v40  ;;  %2239 = vmatmul.msk.bf16.gmra.mxu3 %vm402_vm7, %v2235_v48 }
  0xb1   : > { %v443_v53 = vpop.f32.mrf.mxu3 }
  0xb2   : > { %v501_v54 = vpop.f32.mrf.mxu1  ;;  %v454_v27 = vadd.f32 %v2581_v55, %v443_v53 }
  0xb3   : > { %v440_v37 = vpop.f32.mrf.mxu2 }
  0xb4   : > { %v453_v21 = vadd.f32 %v2581_v55, %v440_v37 }
  0xb5   : > { %v428_v57 = vpop.f32.mrf.mxu0 }
  0xb6   : > { %v448_v58 = vadd.f32 %v2581_v55, %v428_v57 }
  0xb8   : > { %2243 = vmatmul.msk.bf16.gmra.mxu0 %vm402_vm7, %v1575_v56  ;;  %v521_v59 = vadd.f32 %v501_v54, %v448_v58 }
  0xb9   : > { %v445_v60 = vpop.f32.mrf.mxu3 }
  0xba   : > { %v503_v61 = vpop.f32.mrf.mxu1  ;;  %v455_v36 = vadd.f32 %v2581_v55, %v445_v60 }
  0xbd   : > { %v430_v62 = vpop.f32.mrf.mxu0 }
  0xbe   : > { %v449_v37 = vadd.f32 %v2581_v55, %v430_v62 }
  0xc1   : > { %v697_v0 = vpop.f32.mrf.mxu2  ;;  %v882_v1 = vpop.f32.mrf.mxu3 }
  0xc2   : > { %v717_v2 = vadd.f32 %v697_v0, %v521_v59  ;;  %v506_v4 = vpop.f32.mrf.mxu1 }
  0xc3   : > { %v523_v5 = vadd.f32 %v506_v4, %v450_v63  ;;  %v522_v63 = vadd.f32 %v503_v61, %v449_v37 }
  0xc4   : > { %v902_v7 = vadd.f32 %v882_v1, %v717_v2 }
  0xc5   : > { %v955_v6 = vpop.f32.mrf.mxu0 }
  0xc6   : > { %v975_v8 = vadd.f32 %v955_v6, %v902_v7 }
  0xc9   : > { %v699_v9 = vpop.f32.mrf.mxu2  ;;  %v884_v10 = vpop.f32.mrf.mxu3 }
  0xca   : > { %v508_v11 = vpop.f32.mrf.mxu1  ;;  %v718_v1 = vadd.f32 %v699_v9, %v522_v63 }
  0xcd   : > { %v957_v12 = vpop.f32.mrf.mxu0 }
  0xd1   : > { %v702_v14 = vpop.f32.mrf.mxu2  ;;  %v887_v15 = vpop.f32.mrf.mxu3 }
  0xd2   : > { %v719_v16 = vadd.f32 %v702_v14, %v523_v5  ;;  %v511_v17 = vpop.f32.mrf.mxu1 }
  0xd3   : > { %v525_v18 = vadd.f32 %v511_v17, %v452_v13  ;;  %v903_v13 = vadd.f32 %v884_v10, %v718_v1 }
  0xd4   : > { %v904_v20 = vadd.f32 %v887_v15, %v719_v16  ;;  %v451_v16 = vadd.f32 %v2581_v55, %v2570_v47 }
  0xd5   : > { %v960_v19 = vpop.f32.mrf.mxu0  ;;  %v976_v17 = vadd.f32 %v957_v12, %v903_v13 }
  0xd6   : > { %v2587_v3 = vadd.f32 %v960_v19, %v904_v20 }
  0xd9   : > { %v704_v22 = vpop.f32.mrf.mxu2  ;;  %v889_v23 = vpop.f32.mrf.mxu3 }
  0xda   : > { %v513_v24 = vpop.f32.mrf.mxu1 }
  0xdb   : > { %v526_v25 = vadd.f32 %v513_v24, %v453_v21 }
  0xdd   : > { %v2590_v26 = vpop.f32.mrf.mxu0 }
  0xe1   : > { %v707_v28 = vpop.f32.mrf.mxu2  ;;  %v892_v29 = vpop.f32.mrf.mxu3 }
  0xe2   : > { %v721_v30 = vadd.f32 %v707_v28, %v525_v18  ;;  %v516_v31 = vpop.f32.mrf.mxu1  ;;  %v524_v18 = vadd.f32 %v508_v11, %v451_v16 }
  0xe3   : > { %v527_v32 = vadd.f32 %v516_v31, %v454_v27 }
  0xe4   : > { %v906_v34 = vadd.f32 %v892_v29, %v721_v30  ;;  %v720_v21 = vadd.f32 %v704_v22, %v524_v18 }
  0xe5   : > { %v965_v33 = vpop.f32.mrf.mxu0 }
  0xe6   : > { %v2593_v35 = vadd.f32 %v965_v33, %v906_v34  ;;  %v905_v28 = vadd.f32 %v889_v23, %v720_v21 }
  0xe8   : > { %v978_v22 = vadd.f32 %v2590_v26, %v905_v28 }
  0xe9   : > { %v709_v38 = vpop.f32.mrf.mxu2  ;;  %v894_v39 = vpop.f32.mrf.mxu3 }
  0xea   : > { %v722_v42 = vadd.f32 %v709_v38, %v526_v25  ;;  %v518_v43 = vpop.f32.mrf.mxu1 }
  0xeb   : > { %v528_v44 = vadd.f32 %v518_v43, %v455_v36 }
  0xec   : > { %v907_v46 = vadd.f32 %v894_v39, %v722_v42 }
  0xed   : > { %v967_v45 = vpop.f32.mrf.mxu0 }
  0xee   : > { %v2596_v40 = vadd.f32 %v967_v45, %v907_v46 }
  0xf1   : > { %v712_v48 = vpop.f32.mrf.mxu2  ;;  %v897_v49 = vpop.f32.mrf.mxu3 }
  0xf2   : > { %v723_v50 = vadd.f32 %v712_v48, %v527_v32  ;;  %v1148_v41 = vpop.f32.mrf.mxu1 }
  0xf3   : > { %v1168_v2 = vadd.f32 %v1148_v41, %v975_v8 }
  0xf4   : > { %v908_v52 = vadd.f32 %v897_v49, %v723_v50 }
  0xf5   : > { %v970_v51 = vpop.f32.mrf.mxu0 }
  0xf6   : > { %v2598_v53 = vadd.f32 %v970_v51, %v908_v52 }
  0xf9   : > { %v714_v54 = vpop.f32.mrf.mxu2  ;;  %v899_v56 = vpop.f32.mrf.mxu3 }
  0xfa   : > { %v724_v57 = vadd.f32 %v714_v54, %v528_v44  ;;  %v1150_v58 = vpop.f32.mrf.mxu1 }
  0xfb   : > { %v1169_v19 = vadd.f32 %v1150_v58, %v976_v17 }
  0xfc   : > { %v909_v60 = vadd.f32 %v899_v56, %v724_v57 }
  0xfd   : > { %v972_v59 = vpop.f32.mrf.mxu0 }
  0xfe   : > { %v2601_v0 = vadd.f32 %v972_v59, %v909_v60 }
 0x101   : > { %v1334_v4 = vpop.f32.mrf.mxu2  ;;  %v1407_v5 = vpop.f32.mrf.mxu3 }
 0x102   : > { %v1354_v6 = vadd.f32 %v1334_v4, %v1168_v2  ;;  %v1153_v7 = vpop.f32.mrf.mxu1 }
 0x103   : > { %v1170_v31 = vadd.f32 %v1153_v7, %v2587_v3 }
 0x104   : > { %v1427_v15 = vadd.f32 %v1407_v5, %v1354_v6 }
 0x105   : > { %v1600_v14 = vpop.f32.mrf.mxu0 }
 0x106   : > { %v1620_v62 = vadd.f32 %v1600_v14, %v1427_v15 }
 0x108   : > { %v1628_v8 = vmax.f32 %v1620_v62, 0.0 }
 0x109   : > { %v1336_v20 = vpop.f32.mrf.mxu2  ;;  %v1409_v61 = vpop.f32.mrf.mxu3 }
 0x10a   : > { %v1155_v24 = vpop.f32.mrf.mxu1  ;;  %v1355_v9 = vadd.f32 %v1336_v20, %v1169_v19  ;;  %v1644_v29 = vrot.slane %v1628_v8, 2  ;;  %v1645_v30 = vrot.slane %v1628_v8, 4  ;;  %v1646_v47 = vrot.slane %v1628_v8, 6 }
 0x10b   : > { %v1693_v32 = vsel %vm1692_vm14, %v1628_v8, -inf  ;;  %v1171_v59 = vadd.f32 %v1155_v24, %v978_v22 }
 0x10c   : > { %v1428_v27 = vadd.f32 %v1409_v61, %v1355_v9  ;;  %v1696_v42 = vsel %vm1692_vm14, %v1644_v29, -inf  ;;  %v1699_v43 = vsel %vm1692_vm14, %v1645_v30, -inf  ;;  %v1702_v46 = vsel %vm1692_vm14, %v1646_v47, -inf }
 0x10d   : > { %v1602_v25 = vpop.f32.mrf.mxu0 }
 0x10e   : > { %v1621_v10 = vadd.f32 %v1602_v25, %v1428_v27 }
 0x110   : > { %v1629_v55 = vmax.f32 %v1621_v10, 0.0 }
 0x111   : > { %v1339_v11 = vpop.f32.mrf.mxu2  ;;  %v1412_v12 = vpop.f32.mrf.mxu3 }
 0x112   : > { %v1356_v33 = vadd.f32 %v1339_v11, %v1170_v31  ;;  %v1158_v34 = vpop.f32.mrf.mxu1  ;;  %v1647_v36 = vrot.slane %v1629_v55, 2  ;;  %v1648_v38 = vrot.slane %v1629_v55, 4  ;;  %v1649_v39 = vrot.slane %v1629_v55, 6 }
 0x113   : > { %v1694_v23 = vsel %vm1692_vm14, %v1629_v55, -inf  ;;  %v1172_v25 = vadd.f32 %v1158_v34, %v2593_v35 }
 0x114   : > { %v1695_v3 = vmax.f32 %v1693_v32, %v1694_v23  ;;  %v1429_v45 = vadd.f32 %v1412_v12, %v1356_v33  ;;  %v1697_v48 = vsel %vm1692_vm14, %v1647_v36, -inf  ;;  %v1700_v49 = vsel %vm1692_vm14, %v1648_v38, -inf }
 0x115   : > { %v1605_v44 = vpop.f32.mrf.mxu0  ;;  %v1703_v26 = vsel %vm1692_vm14, %v1649_v39, -inf  ;;  %v1698_v50 = vmax.f32 %v1696_v42, %v1697_v48  ;;  %v1701_v41 = vmax.f32 %v1699_v43, %v1700_v49 }
 0x116   : > { %v1704_v51 = vmax.f32 %v1702_v46, %v1703_v26  ;;  %v1741_v52 = vsel %vm1692_vm14, %v1695_v3, -inf  ;;  %v1622_v56 = vadd.f32 %v1605_v44, %v1429_v45 }
 0x117   : > { %v1742_v54 = vrot.slane %v1741_v52, 4  ;;  %v1748_v57 = vsel %vm1692_vm14, %v1698_v50, -inf  ;;  %v1755_v58 = vsel %vm1692_vm14, %v1701_v41, -inf }
 0x118   : > { %v1762_v37 = vsel %vm1692_vm14, %v1704_v51, -inf  ;;  %v1749_v63 = vrot.slane %v1748_v57, 4  ;;  %v1756_v1 = vrot.slane %v1755_v58, 4  ;;  %v1630_v6 = vmax.f32 %v1622_v56, 0.0 }
 0x119   : > { %v1743_v60 = vmax.f32 %v1741_v52, %v1742_v54  ;;  %v1763_v2 = vrot.slane %v1762_v37, 4  ;;  %v1341_v4 = vpop.f32.mrf.mxu2  ;;  %v1414_v5 = vpop.f32.mrf.mxu3 }
 0x11a   : > { %v1357_v7 = vadd.f32 %v1341_v4, %v1171_v59  ;;  %v1160_v13 = vpop.f32.mrf.mxu1  ;;  %v1750_v15 = vmax.f32 %v1748_v57, %v1749_v63  ;;  %v1757_v16 = vmax.f32 %v1755_v58, %v1756_v1  ;;  %v1650_v18 = vrot.slane %v1630_v6, 2 }
 0x11b   : > { %v1744_v14 = vrot.slane %v1743_v60, 2  ;;  %v1764_v17 = vmax.f32 %v1762_v37, %v1763_v2  ;;  %v1651_v62 = vrot.slane %v1630_v6, 4  ;;  %v1652_v9 = vrot.slane %v1630_v6, 6 }
 0x11c   : > { %v1751_v61 = vrot.slane %v1750_v15, 2  ;;  %v1758_v21 = vrot.slane %v1757_v16, 2  ;;  %v1430_v8 = vadd.f32 %v1414_v5, %v1357_v7  ;;  %v1705_v30 = vsel %vm1692_vm14, %v1630_v6, -inf }
 0x11d   : > { %v1607_v19 = vpop.f32.mrf.mxu0  ;;  %v1745_v20 = vmax.f32 %v1743_v60, %v1744_v14  ;;  %v1765_v24 = vrot.slane %v1764_v17, 2  ;;  %v1708_v31 = vsel %vm1692_vm14, %v1650_v18, -inf  ;;  %v1711_v47 = vsel %vm1692_vm14, %v1651_v62, -inf }
 0x11e   : > { %v1752_v28 = vmax.f32 %v1750_v15, %v1751_v61  ;;  %v1759_v10 = vmax.f32 %v1757_v16, %v1758_v21  ;;  %v1623_v55 = vadd.f32 %v1607_v19, %v1430_v8  ;;  %v1714_v36 = vsel %vm1692_vm14, %v1652_v9, -inf }
 0x11f   : > { %v1746_v27 = vrot.slane %v1745_v20, 1  ;;  %v1766_v29 = vmax.f32 %v1764_v17, %v1765_v24  ;;  %v1173_v39 = vadd.f32 %v1160_v13, %v2596_v40 }
 0x120   : > { %v1753_v12 = vrot.slane %v1752_v28, 1  ;;  %v1760_v32 = vrot.slane %v1759_v10, 1  ;;  %v1631_v38 = vmax.f32 %v1623_v55, 0.0 }
 0x121   : > { %v1747_v11 = vmax.f32 %v1745_v20, %v1746_v27  ;;  %v1767_v33 = vrot.slane %v1766_v29, 1  ;;  %v1344_v22 = vpop.f32.mrf.mxu2  ;;  %v1417_v34 = vpop.f32.mrf.mxu3 }
 0x122   : > { %v1358_v35 = vadd.f32 %v1344_v22, %v1172_v25  ;;  %v1163_v23 = vpop.f32.mrf.mxu1  ;;  %v1754_v42 = vmax.f32 %v1752_v28, %v1753_v12  ;;  %v1761_v43 = vmax.f32 %v1759_v10, %v1760_v32  ;;  %v1653_v45 = vrot.slane %v1631_v38, 2 }
 0x123   : > { %v1768_v3 = vmax.f32 %v1766_v29, %v1767_v33  ;;  %v1853_v44 = vpack.c.bf16 %v1747_v11, %v1747_v11  ;;  %v1654_v46 = vrot.slane %v1631_v38, 4  ;;  %v1655_v48 = vrot.slane %v1631_v38, 6 }
 0x124   : > { %v1706_v49 = vsel %vm1692_vm14, %v1631_v38, -inf  ;;  %v1854_v26 = vpack.c.bf16 %v1754_v42, %v1754_v42  ;;  %v1855_v50 = vpack.c.bf16 %v1761_v43, %v1761_v43  ;;  %v1709_v54 = vsel %vm1692_vm14, %v1653_v45, -inf }
 0x125   : > { %v1856_v41 = vpack.c.bf16 %v1768_v3, %v1768_v3  ;;  %v1885_v51 = vrot.slane %v1853_v44, 2  ;;  %v1707_v52 = vmax.f32 %v1705_v30, %v1706_v49  ;;  %v1712_v56 = vsel %vm1692_vm14, %v1654_v46, -inf  ;;  %v1610_v57 = vpop.f32.mrf.mxu0 }
 0x126   : > { %v1715_v40 = vsel %vm1692_vm14, %v1655_v48, -inf  ;;  %v1886_v58 = vrot.slane %v1854_v26, 2  ;;  %v1887_v37 = vrot.slane %v1855_v50, 2  ;;  %v1710_v63 = vmax.f32 %v1708_v31, %v1709_v54 }
 0x127   : > { %v1888_v59 = vrot.slane %v1856_v41, 2  ;;  %v1904_v60 = vsel %vm1901_vm15, %v1853_v44, %v1885_v51  ;;  %v1713_v1 = vmax.f32 %v1711_v47, %v1712_v56  ;;  %v1716_v2 = vmax.f32 %v1714_v36, %v1715_v40 }
 0x128   : > { %1950 = vst [vmem:[#allocation1] ss:$2 sm:$0xff] %v1904_v60  ;;  %v1769_v4 = vsel %vm1692_vm14, %v1707_v52, -inf  ;;  %v1907_v5 = vsel %vm1901_vm15, %v1854_v26, %v1886_v58  ;;  %v1910_v6 = vsel %vm1901_vm15, %v1855_v50, %v1887_v37  ;;  %v1776_v15 = vsel %vm1692_vm14, %v1710_v63, -inf }
 0x129   : > { %v1913_v7 = vsel %vm1901_vm15, %v1856_v41, %v1888_v59  ;;  %v1770_v13 = vrot.slane %v1769_v4, 4  ;;  %v1346_v14 = vpop.f32.mrf.mxu2  ;;  %1954 = vst [vmem:[#allocation1 + $0x10] ss:$2 sm:$0xff] %v1907_v5  ;;  %v1783_v16 = vsel %vm1692_vm14, %v1713_v1, -inf  ;;  %v1790_v17 = vsel %vm1692_vm14, %v1716_v2, -inf  ;;  %v1419_v8 = vpop.f32.mrf.mxu3 }
 0x12a   : > { %v1431_v18 = vadd.f32 %v1417_v34, %v1358_v35  ;;  %1958 = vst [vmem:[#allocation1 + $0x20] ss:$2 sm:$0xff] %v1910_v6  ;;  %v1777_v19 = vrot.slane %v1776_v15, 4  ;;  %v1784_v20 = vrot.slane %v1783_v16, 4  ;;  %v1791_v61 = vrot.slane %v1790_v17, 4  ;;  %v1165_v21 = vpop.f32.mrf.mxu1 }
 0x12b   : > { %v1771_v62 = vmax.f32 %v1769_v4, %v1770_v13  ;;  %1962 = vst [vmem:[#allocation1 + $0x30] ss:$2 sm:$0xff] %v1913_v7  ;;  %v1359_v9 = vadd.f32 %v1346_v14, %v1173_v39  ;;  %v1174_v30 = vadd.f32 %v1163_v23, %v2598_v53  ;;  %v2639_v31 = vadd.f32 %v1165_v21, %v2601_v0 }
 0x12c   : > { %v1624_v24 = vadd.f32 %v1610_v57, %v1431_v18  ;;  %v1778_v27 = vmax.f32 %v1776_v15, %v1777_v19  ;;  %v1785_v28 = vmax.f32 %v1783_v16, %v1784_v20  ;;  %v1792_v10 = vmax.f32 %v1790_v17, %v1791_v61 }
 0x12d   : > { %v1772_v25 = vrot.slane %v1771_v62, 2  ;;  %v1612_v38 = vpop.f32.mrf.mxu0  ;;  %v1432_v35 = vadd.f32 %v1419_v8, %v1359_v9 }
 0x12e   : > { %v1632_v29 = vmax.f32 %v1624_v24, 0.0  ;;  %v1779_v55 = vrot.slane %v1778_v27, 2  ;;  %v1786_v11 = vrot.slane %v1785_v28, 2  ;;  %v1793_v12 = vrot.slane %v1792_v10, 2 }
 0x12f   : > { %v1773_v47 = vmax.f32 %v1771_v62, %v1772_v25  ;;  %v1951_v32 = vld.sshfl [vmem:[#allocation1] sm:$0xff pattern:$0x75643120]  ;;  %v1625_v1 = vadd.f32 %v1612_v38, %v1432_v35 }
 0x130   : > { %v2001_v33 = vunpack.c.l.b16 %v1951_v32  ;;  %v1656_v22 = vrot.slane %v1632_v29, 2  ;;  %v1657_v36 = vrot.slane %v1632_v29, 4  ;;  %v1780_v39 = vmax.f32 %v1778_v27, %v1779_v55  ;;  %v1955_v3 = vld.sshfl [vmem:[#allocation1 + $0x10] sm:$0xff pattern:$0x75643120] }
 0x131   : > { %v1774_v34 = vrot.slane %v1773_v47, 1  ;;  %v1787_v42 = vmax.f32 %v1785_v28, %v1786_v11  ;;  %v1794_v43 = vmax.f32 %v1792_v10, %v1793_v12  ;;  %v1349_v53 = vpop.f32.mrf.mxu2  ;;  %v1959_v23 = vld.sshfl [vmem:[#allocation1 + $0x20] sm:$0xff pattern:$0x75643120]  ;;  %v2002_v0 = vunpack.c.l.b16 %v1955_v3  ;;  %v1422_v2 = vpop.f32.mrf.mxu3 }
 0x132   : > { %v1658_v44 = vrot.slane %v1632_v29, 6  ;;  %v1717_v45 = vsel %vm1692_vm14, %v1632_v29, -inf  ;;  %v1720_v46 = vsel %vm1692_vm14, %v1656_v22, -inf  ;;  %v1781_v49 = vrot.slane %v1780_v39, 1 }
 0x133   : > { %v1775_v48 = vmax.f32 %v1773_v47, %v1774_v34  ;;  %v1788_v26 = vrot.slane %v1787_v42, 1  ;;  %v1795_v50 = vrot.slane %v1794_v43, 1  ;;  %v1963_v41 = vld.sshfl [vmem:[#allocation1 + $0x30] sm:$0xff pattern:$0x75643120]  ;;  %v2003_v51 = vunpack.c.l.b16 %v1959_v23 }
 0x134   : > { %v2004_v52 = vunpack.c.l.b16 %v1963_v41  ;;  %v2017_v54 = vrot.slane %v2002_v0, 7  ;;  %v1723_v56 = vsel %vm1692_vm14, %v1657_v36, -inf  ;;  %v1782_v40 = vmax.f32 %v1780_v39, %v1781_v49 }
 0x135   : > { %v1789_v57 = vmax.f32 %v1787_v42, %v1788_v26  ;;  %v1796_v58 = vmax.f32 %v1794_v43, %v1795_v50  ;;  %v1857_v37 = vpack.c.bf16 %v1775_v48, %v1775_v48  ;;  %v2020_v60 = vrot.slane %v2003_v51, 6  ;;  %v1615_v9 = vpop.f32.mrf.mxu0 }
 0x136   : > { %v2019_v59 = vsel %vm2018_vm0, %v2017_v54, %v2001_v33  ;;  %v1726_v63 = vsel %vm1692_vm14, %v1658_v44, -inf  ;;  %v1858_v4 = vpack.c.bf16 %v1782_v40, %v1782_v40  ;;  %v2023_v14 = vrot.slane %v2004_v52, 5 }
 0x137   : > { %v1859_v5 = vpack.c.bf16 %v1789_v57, %v1789_v57  ;;  %v1860_v6 = vpack.c.bf16 %v1796_v58, %v1796_v58  ;;  %v1889_v7 = vrot.slane %v1857_v37, 2  ;;  %v2022_v13 = vsel %vm2021_vm1, %v2020_v60, %v2019_v59 }
 0x138   : > { %v1633_v15 = vmax.f32 %v1625_v1, 0.0  ;;  %v1360_v16 = vadd.f32 %v1349_v53, %v1174_v30  ;;  %v1890_v17 = vrot.slane %v1858_v4, 2  ;;  %v2025_v20 = vsel %vm2024_vm2, %v2023_v14, %v2022_v13 }
 0x139   : > { %v1891_v18 = vrot.slane %v1859_v5, 2  ;;  %v1892_v62 = vrot.slane %v1860_v6, 2  ;;  %v1916_v19 = vsel %vm1901_vm15, %v1857_v37, %v1889_v7  ;;  %v2044_v28 = vpack.c.b16 %v2025_v20, %v2025_v20  ;;  %v1351_v10 = vpop.f32.mrf.mxu2  ;;  %v1424_v0 = vpop.f32.mrf.mxu3 }
 0x13a   : > { %1965 = vst [vmem:[#allocation1] ss:$2 sm:$0xff] %v1916_v19  ;;  %v1659_v61 = vrot.slane %v1633_v15, 2  ;;  %v1660_v21 = vrot.slane %v1633_v15, 4  ;;  %v1661_v24 = vrot.slane %v1633_v15, 6  ;;  %v1919_v8 = vsel %vm1901_vm15, %v1858_v4, %v1890_v17 }
 0x13b   : > { %v1922_v25 = vsel %vm1901_vm15, %v1859_v5, %v1891_v18  ;;  %v1925_v27 = vsel %vm1901_vm15, %v1860_v6, %v1892_v62  ;;  %1968 = vst [vmem:[#allocation1 + $0x10] ss:$2 sm:$0xff] %v1919_v8  ;;  %v1718_v29 = vsel %vm1692_vm14, %v1633_v15, -inf  ;;  %v2048_v11 = vrot.slane %v2044_v28, 2 }
 0x13c   : > { %v1721_v30 = vsel %vm1692_vm14, %v1659_v61, -inf  ;;  %v1724_v47 = vsel %vm1692_vm14, %v1660_v21, -inf  ;;  %v1727_v55 = vsel %vm1692_vm14, %v1661_v24, -inf  ;;  %1971 = vst [vmem:[#allocation1 + $0x20] ss:$2 sm:$0xff] %v1922_v25  ;;  %v1719_v12 = vmax.f32 %v1717_v45, %v1718_v29 }
 0x13d   : > { %v1722_v32 = vmax.f32 %v1720_v46, %v1721_v30  ;;  %v1725_v33 = vmax.f32 %v1723_v56, %v1724_v47  ;;  %1974 = vst [vmem:[#allocation1 + $0x30] ss:$2 sm:$0xff] %v1925_v27  ;;  %v1728_v22 = vmax.f32 %v1726_v63, %v1727_v55  ;;  %v1433_v36 = vadd.f32 %v1422_v2, %v1360_v16  ;;  %v1617_v58 = vpop.f32.mrf.mxu0 }
 0x13e   : > { %v1361_v38 = vadd.f32 %v1351_v10, %v2639_v31  ;;  %v2054_v35 = vsel %vm1901_vm15, %v2044_v28, %v2048_v11  ;;  %v1797_v34 = vsel %vm1692_vm14, %v1719_v12, -inf }
 0x13f   : > { %v1804_v39 = vsel %vm1692_vm14, %v1722_v32, -inf  ;;  %v1811_v42 = vsel %vm1692_vm14, %v1725_v33, -inf  ;;  %2068 = vst.msk [vmem:[%s2660_s15] sm:$0x3] %vm1692_vm14, %v2054_v35  ;;  %v1798_v43 = vrot.slane %v1797_v34, 4  ;;  %v1818_v23 = vsel %vm1692_vm14, %v1728_v22, -inf }
 0x140   : > { %v1805_v3 = vrot.slane %v1804_v39, 4  ;;  %v1812_v53 = vrot.slane %v1811_v42, 4  ;;  %v1819_v44 = vrot.slane %v1818_v23, 4  ;;  %v1626_v45 = vadd.f32 %v1615_v9, %v1433_v36 }
 0x141   : > { %v1434_v46 = vadd.f32 %v1424_v0, %v1361_v38  ;;  %v1799_v31 = vmax.f32 %v1797_v34, %v1798_v43  ;;  %v1966_v26 = vld.sshfl [vmem:[#allocation1] sm:$0xff pattern:$0x75643120] }
 0x142   : > { %v1806_v48 = vmax.f32 %v1804_v39, %v1805_v3  ;;  %v1813_v49 = vmax.f32 %v1811_v42, %v1812_v53  ;;  %v1820_v50 = vmax.f32 %v1818_v23, %v1819_v44  ;;  %v1969_v41 = vld.sshfl [vmem:[#allocation1 + $0x10] sm:$0xff pattern:$0x75643120]  ;;  %v1634_v51 = vmax.f32 %v1626_v45, 0.0 }
 0x143   : > { %v1800_v52 = vrot.slane %v1799_v31, 2  ;;  %v1972_v40 = vld.sshfl [vmem:[#allocation1 + $0x20] sm:$0xff pattern:$0x75643120]  ;;  %v2006_v57 = vunpack.c.l.b16 %v1969_v41  ;;  %v2005_v60 = vunpack.c.l.b16 %v1966_v26  ;;  %v1627_v1 = vadd.f32 %v1617_v58, %v1434_v46 }
 0x144   : > { %v1807_v54 = vrot.slane %v1806_v48, 2  ;;  %v1814_v56 = vrot.slane %v1813_v49, 2  ;;  %v1821_v37 = vrot.slane %v1820_v50, 2  ;;  %v1975_v59 = vld.sshfl [vmem:[#allocation1 + $0x30] sm:$0xff pattern:$0x75643120]  ;;  %v2007_v63 = vunpack.c.l.b16 %v1972_v40 }
 0x145   : > { %v1801_v2 = vmax.f32 %v1799_v31, %v1800_v52  ;;  %v2008_v6 = vunpack.c.l.b16 %v1975_v59  ;;  %v2026_v13 = vrot.slane %v2006_v57, 7  ;;  %v1662_v15 = vrot.slane %v1634_v51, 2 }
 0x146   : > { %v1808_v4 = vmax.f32 %v1806_v48, %v1807_v54  ;;  %v1815_v5 = vmax.f32 %v1813_v49, %v1814_v56  ;;  %v1822_v7 = vmax.f32 %v1820_v50, %v1821_v37  ;;  %v2028_v14 = vrot.slane %v2007_v63, 6 }
 0x147   : > { %v1802_v16 = vrot.slane %v1801_v2, 1  ;;  %v1663_v62 = vrot.slane %v1634_v51, 4  ;;  %v2027_v20 = vsel %vm2018_vm0, %v2026_v13, %v2005_v60  ;;  %v2030_v61 = vrot.slane %v2008_v6, 5 }
 0x148   : > { %v1809_v17 = vrot.slane %v1808_v4, 1  ;;  %v1816_v18 = vrot.slane %v1815_v5, 1  ;;  %v1823_v19 = vrot.slane %v1822_v7, 1  ;;  %v1664_v21 = vrot.slane %v1634_v51, 6 }
 0x149   : > { %v1803_v24 = vmax.f32 %v1801_v2, %v1802_v16  ;;  %v2029_v25 = vsel %vm2021_vm1, %v2028_v14, %v2027_v20  ;;  %v1729_v10 = vsel %vm1692_vm14, %v1634_v51, -inf  ;;  %v1732_v29 = vsel %vm1692_vm14, %v1662_v15, -inf }
 0x14a   : > { %v1810_v9 = vmax.f32 %v1808_v4, %v1809_v17  ;;  %v1817_v8 = vmax.f32 %v1815_v5, %v1816_v18  ;;  %v1824_v27 = vmax.f32 %v1822_v7, %v1823_v19  ;;  %v2031_v28 = vsel %vm2024_vm2, %v2030_v61, %v2029_v25 }
 0x14b   : > { %v1861_v30 = vpack.c.bf16 %v1803_v24, %v1803_v24  ;;  %v2045_v11 = vpack.c.b16 %v2031_v28, %v2031_v28  ;;  %v1735_v32 = vsel %vm1692_vm14, %v1663_v62, -inf  ;;  %v1738_v33 = vsel %vm1692_vm14, %v1664_v21, -inf }
 0x14c   : > { %v1862_v47 = vpack.c.bf16 %v1810_v9, %v1810_v9  ;;  %v1863_v55 = vpack.c.bf16 %v1817_v8, %v1817_v8  ;;  %v1864_v12 = vpack.c.bf16 %v1824_v27, %v1824_v27  ;;  %v1635_v22 = vmax.f32 %v1627_v1, 0.0 }
 0x14d   : > { %v1893_v36 = vrot.slane %v1861_v30, 2  ;;  %v2049_v34 = vrot.slane %v2045_v11, 2 }
 0x14e   : > { %v1894_v38 = vrot.slane %v1862_v47, 2  ;;  %v1895_v35 = vrot.slane %v1863_v55, 2  ;;  %v1896_v39 = vrot.slane %v1864_v12, 2  ;;  %v1665_v42 = vrot.slane %v1635_v22, 2 }
 0x14f   : > { %v1666_v43 = vrot.slane %v1635_v22, 4  ;;  %v1667_v3 = vrot.slane %v1635_v22, 6  ;;  %v1928_v53 = vsel %vm1901_vm15, %v1861_v30, %v1893_v36  ;;  %v2057_v44 = vsel %vm1901_vm15, %v2045_v11, %v2049_v34 }
 0x150   : > { %v1931_v23 = vsel %vm1901_vm15, %v1862_v47, %v1894_v38  ;;  %v1934_v0 = vsel %vm1901_vm15, %v1863_v55, %v1895_v35  ;;  %v1937_v45 = vsel %vm1901_vm15, %v1864_v12, %v1896_v39  ;;  %1977 = vst [vmem:[#allocation1] ss:$2 sm:$0xff] %v1928_v53  ;;  %v1730_v46 = vsel %vm1692_vm14, %v1635_v22, -inf }
 0x151   : > { %v1733_v31 = vsel %vm1692_vm14, %v1665_v42, -inf  ;;  %v1736_v48 = vsel %vm1692_vm14, %v1666_v43, -inf  ;;  %1980 = vst [vmem:[#allocation1 + $0x10] ss:$2 sm:$0xff] %v1931_v23  ;;  %v1731_v49 = vmax.f32 %v1729_v10, %v1730_v46  ;;  %v1739_v41 = vsel %vm1692_vm14, %v1667_v3, -inf }
 0x152   : > { %v1734_v26 = vmax.f32 %v1732_v29, %v1733_v31  ;;  %v1737_v50 = vmax.f32 %v1735_v32, %v1736_v48  ;;  %1983 = vst [vmem:[#allocation1 + $0x20] ss:$2 sm:$0xff] %v1934_v0  ;;  %v1740_v51 = vmax.f32 %v1738_v33, %v1739_v41 }
 0x153   : > { %1986 = vst [vmem:[#allocation1 + $0x30] ss:$2 sm:$0xff] %v1937_v45  ;;  %v1825_v52 = vsel %vm1692_vm14, %v1731_v49, -inf }
 0x154   : > { %v1832_v54 = vsel %vm1692_vm14, %v1734_v26, -inf  ;;  %v1839_v56 = vsel %vm1692_vm14, %v1737_v50, -inf  ;;  %2069 = vst.msk [vmem:[%s2660_s15 + $0x2] sm:$0x3] %vm1692_vm14, %v2057_v44  ;;  %v1826_v40 = vrot.slane %v1825_v52, 4  ;;  %v1846_v37 = vsel %vm1692_vm14, %v1740_v51, -inf }
 0x155   : > { %v1833_v57 = vrot.slane %v1832_v54, 4  ;;  %v1840_v58 = vrot.slane %v1839_v56, 4  ;;  %v1847_v59 = vrot.slane %v1846_v37, 4 }
 0x156   : > { %v1827_v60 = vmax.f32 %v1825_v52, %v1826_v40 }
 0x157   : > { %v1834_v63 = vmax.f32 %v1832_v54, %v1833_v57  ;;  %v1841_v1 = vmax.f32 %v1839_v56, %v1840_v58  ;;  %v1848_v2 = vmax.f32 %v1846_v37, %v1847_v59  ;;  %v1978_v4 = vld.sshfl [vmem:[#allocation1] sm:$0xff pattern:$0x75643120] }
 0x158   : > { %v1828_v5 = vrot.slane %v1827_v60, 2  ;;  %v1981_v13 = vld.sshfl [vmem:[#allocation1 + $0x10] sm:$0xff pattern:$0x75643120]  ;;  %v2009_v21 = vunpack.c.l.b16 %v1978_v4 }
 0x159   : > { %v1835_v6 = vrot.slane %v1834_v63, 2  ;;  %v1842_v7 = vrot.slane %v1841_v1, 2  ;;  %v1849_v14 = vrot.slane %v1848_v2, 2  ;;  %v1984_v15 = vld.sshfl [vmem:[#allocation1 + $0x20] sm:$0xff pattern:$0x75643120]  ;;  %v2010_v16 = vunpack.c.l.b16 %v1981_v13 }
 0x15a   : > { %v1829_v17 = vmax.f32 %v1827_v60, %v1828_v5  ;;  %v1987_v19 = vld.sshfl [vmem:[#allocation1 + $0x30] sm:$0xff pattern:$0x75643120]  ;;  %v2011_v20 = vunpack.c.l.b16 %v1984_v15 }
 0x15b   : > { %v1836_v18 = vmax.f32 %v1834_v63, %v1835_v6  ;;  %v1843_v62 = vmax.f32 %v1841_v1, %v1842_v7  ;;  %v1850_v61 = vmax.f32 %v1848_v2, %v1849_v14  ;;  %v2012_v24 = vunpack.c.l.b16 %v1987_v19 }
 0x15c   : > { %v2032_v9 = vrot.slane %v2010_v16, 7  ;;  %v1830_v8 = vrot.slane %v1829_v17, 1  ;;  %v2034_v28 = vrot.slane %v2011_v20, 6 }
 0x15d   : > { %v1837_v25 = vrot.slane %v1836_v18, 1  ;;  %v1844_v27 = vrot.slane %v1843_v62, 1  ;;  %v1851_v10 = vrot.slane %v1850_v61, 1  ;;  %v2036_v30 = vrot.slane %v2012_v24, 5 }
 0x15e   : > { %v2033_v29 = vsel %vm2018_vm0, %v2032_v9, %v2009_v21  ;;  %v1831_v47 = vmax.f32 %v1829_v17, %v1830_v8 }
 0x15f   : > { %v1838_v55 = vmax.f32 %v1836_v18, %v1837_v25  ;;  %v1845_v11 = vmax.f32 %v1843_v62, %v1844_v27  ;;  %v2035_v12 = vsel %vm2021_vm1, %v2034_v28, %v2033_v29  ;;  %v1852_v32 = vmax.f32 %v1850_v61, %v1851_v10 }
 0x160   : > { %v2037_v33 = vsel %vm2024_vm2, %v2036_v30, %v2035_v12  ;;  %v1865_v22 = vpack.c.bf16 %v1831_v47, %v1831_v47 }
 0x161   : > { %v1866_v36 = vpack.c.bf16 %v1838_v55, %v1838_v55  ;;  %v1867_v38 = vpack.c.bf16 %v1845_v11, %v1845_v11  ;;  %v2046_v35 = vpack.c.b16 %v2037_v33, %v2037_v33  ;;  %v1868_v34 = vpack.c.bf16 %v1852_v32, %v1852_v32 }
 0x162   : > { %v1897_v39 = vrot.slane %v1865_v22, 2 }
 0x163   : > { %v1898_v42 = vrot.slane %v1866_v36, 2  ;;  %v1899_v43 = vrot.slane %v1867_v38, 2  ;;  %v2050_v3 = vrot.slane %v2046_v35, 2  ;;  %v1900_v53 = vrot.slane %v1868_v34, 2 }
 0x164   : > { %v1940_v23 = vsel %vm1901_vm15, %v1865_v22, %v1897_v39 }
 0x165   : > { %v1943_v0 = vsel %vm1901_vm15, %v1866_v36, %v1898_v42  ;;  %v1946_v44 = vsel %vm1901_vm15, %v1867_v38, %v1899_v43  ;;  %v1949_v45 = vsel %vm1901_vm15, %v1868_v34, %v1900_v53  ;;  %1989 = vst [vmem:[#allocation1] ss:$2 sm:$0xff] %v1940_v23  ;;  %v2060_v46 = vsel %vm1901_vm15, %v2046_v35, %v2050_v3 }
 0x166   : > { %1992 = vst [vmem:[#allocation1 + $0x10] ss:$2 sm:$0xff] %v1943_v0 }
 0x167   : > { %1995 = vst [vmem:[#allocation1 + $0x20] ss:$2 sm:$0xff] %v1946_v44 }
 0x168   : > { %1998 = vst [vmem:[#allocation1 + $0x30] ss:$2 sm:$0xff] %v1949_v45 }
 0x169   : > { %2070 = vst.msk [vmem:[%s2660_s15 + $0x4] sm:$0x3] %vm1692_vm14, %v2060_v46 }
 0x16c   : > { %v1990_v31 = vld.sshfl [vmem:[#allocation1] sm:$0xff pattern:$0x75643120] }
 0x16d   : > { %v1993_v48 = vld.sshfl [vmem:[#allocation1 + $0x10] sm:$0xff pattern:$0x75643120]  ;;  %v2013_v51 = vunpack.c.l.b16 %v1990_v31 }
 0x16e   : > { %v1996_v49 = vld.sshfl [vmem:[#allocation1 + $0x20] sm:$0xff pattern:$0x75643120]  ;;  %v2014_v26 = vunpack.c.l.b16 %v1993_v48 }
 0x16f   : > { %v1999_v50 = vld.sshfl [vmem:[#allocation1 + $0x30] sm:$0xff pattern:$0x75643120]  ;;  %v2015_v41 = vunpack.c.l.b16 %v1996_v49 }
 0x170   : > { %v2016_v52 = vunpack.c.l.b16 %v1999_v50  ;;  %v2038_v54 = vrot.slane %v2014_v26, 7 }
 0x171   : > { %v2040_v56 = vrot.slane %v2015_v41, 6 }
 0x172   : > { %v2039_v40 = vsel %vm2018_vm0, %v2038_v54, %v2013_v51  ;;  %v2042_v57 = vrot.slane %v2016_v52, 5 }
 0x173   : > { %v2041_v58 = vsel %vm2021_vm1, %v2040_v56, %v2039_v40 }
 0x174   : > { %v2043_v37 = vsel %vm2024_vm2, %v2042_v57, %v2041_v58 }
 0x175   : > { %v2047_v59 = vpack.c.b16 %v2043_v37, %v2043_v37 }
 0x177   : > { %v2051_v60 = vrot.slane %v2047_v59, 2 }
 0x179   : > { %v2063_v63 = vsel %vm1901_vm15, %v2047_v59, %v2051_v60 }
 0x17a   : > { %2071 = vst.msk [vmem:[%s2660_s15 + $0x6] sm:$0x3] %vm1692_vm14, %v2063_v63 }
 0x17b PF: > { %s13_s12 = sadd.s32 1, %s2279_s12  }
 0x17c   : > { %p10_p4 = scmp.ge.s32.totalorder %s13_s12, 4  }
 0x17e   :  { %12 = sbr.rel (!%p10_p4) target bundleno = 1 (0x1), region = 68 }

// kernel: _lambda_.5
= control target key start
LH: loop header
LB: loop body
LE: loop exit
PB: predicated region body
PF: predicated region fallthrough
CT: control target
= control target key end

     0   :  { %s6751_s12 = smov 0   ;;  %s8789_s0 = inlined_call_operand.vmem [shape: bf16[2,16,16,3], index: 0, kind: input, shape index: {}]   ;;  %s8790_s1 = inlined_call_operand.vmem [shape: bf16[27,8], index: 1, kind: input, shape index: {}]   ;;  %s8791_s2 = inlined_call_operand.vmem [shape: f32[1,8], index: 2, kind: input, shape index: {}]   ;;  %s8792_s3 = inlined_call_operand.vmem [shape: bf16[2,8,8,8], index: 3, kind: output, shape index: {}]  }
   0x1 LB: > { %s6250_s13 = sadd.s32 4294967295, %s6727_s12   ;;  %p6254_p0 = scmp.ge.s32.totalorder %s6727_s12, 1  ;;  %s6727_s12 = sphi %s6751_s12, %s13_s12  }
   0x2   : > { %p137_p1 = scmp.lt.s32.totalorder %s6727_s12, 3 }
   0x4   : > { %p138_p2 = pnand %p6254_p0, %p137_p1 }
   0x6   : > { %141 = sbr.rel (%p138_p2) target bundleno = 875 (0x36b), region = 32 }
   0xb   : > { %v767_v0 = vld [vmem:[%s8790_s1] sm:$0x3]  ;;  %vm865_vm0 = vcmask 1040384   ;;  %vm866_vm1 = vcmask 1041408   ;;  %p161_p3 = scmp.lt.s32.totalorder %s6250_s13, 1  ;;  %v6729_v1 = vmov 65535  }
   0xc   : > { %v867_v2 = vsel %vm865_vm0, 4294967295, %v6729_v1  ;;  %vm182_vm2 = vcmask 19459   ;;  %vm183_vm3 = vsmask.f32 7950  ;;  %v8796_v4 = vmov 0 }
   0xd   : > { %v6762_v3 = vsel %vm866_vm1, %v867_v2, 0  ;;  %s8856_s13 = smov (!%p161_p3, %s6250_s13), 1  ;;  %vm6766_vm4 = vmand %vm182_vm2, %vm183_vm3  ;;  %v197_v5 = vld [vmem:[#allocation2 + $0x40] sm:$0x8]  ;;  %vm172_vm5 = vcmask 19456   ;;  %v6730_v30 = vmov 0  }
   0xe   : > { %v8797_v4 = vsel %vm6766_vm4, 4294967295, %v8796_v4  ;;  %v870_v6 = vand.u32 %v6762_v3, %v767_v0  ;;  %v198_v7 = vsel %vm6766_vm4, 0, %v197_v5  ;;  %v209_v8 = vld [vmem:[#allocation2 + $0x80] sm:$0x8]  ;;  %s6653_s16 = sshll.u32 %s8856_s13, 7  ;;  %vm816_vm8 = vcmask 23552  }
   0xf   : > { %8798 = vst [vmem:[#allocation3_spill] sm:$0xff] %v8797_v4  ;;  %v210_v9 = vsel %vm6766_vm4, 0, %v209_v8  ;;  %s6779_s19 = scalar_lea.vmem %s8789_s0, %s6653_s16  ;;  %v221_v10 = vld [vmem:[#allocation2 + $0xc0] sm:$0x8]  ;;  %v6671_v17 = vld [vmem:[%s8790_s1] sm:$0x10] }
  0x10   : > { %199 = vst [vmem:[#allocation2 + $0x40] sm:$0x8] %v198_v7  ;;  %6705 = vmatpush.bf16.msra.mxu1 %v870_v6  ;;  %6706 = vmatpush.bf16.msra.mxu2 %v870_v6  ;;  %v6373_v11 = vld [vmem:[%s8790_s1] sm:$0x8]  ;;  %v302_v12 = vld [vmem:[%s6779_s19 + $0x18] sm:$0xf] }
  0x11   : > { %211 = vst [vmem:[#allocation2 + $0x80] sm:$0x8] %v210_v9  ;;  %6707 = vmatpush.bf16.msra.mxu3 %v870_v6  ;;  %879 = vmatpush.bf16.msra.mxu0 %v870_v6  ;;  %v303_v13 = vld [vmem:[%s6779_s19 + $0x1c] sm:$0xf]  ;;  %v310_v14 = vld [vmem:[%s6779_s19 + $0x38] sm:$0xf]  ;;  %v6374_v19 = vor.u32 %v6671_v17, %v6373_v11 }
  0x12   : > { %335 = vst.msk [vmem:[#allocation2 + $0x44] sm:$0xf] %vm172_vm5, %v302_v12  ;;  %v311_v15 = vld [vmem:[%s6779_s19 + $0x3c] sm:$0xf]  ;;  %v222_v16 = vsel %vm6766_vm4, 0, %v221_v10  ;;  %vm239_vm10 = vcmask 16384  }
  0x13   : > { %336 = vst.msk [vmem:[#allocation2 + $0x48] sm:$0xf] %vm172_vm5, %v303_v13  ;;  %vm240_vm6 = vsmask.f32 256  ;;  %v318_v18 = vld [vmem:[%s6779_s19 + $0x58] sm:$0xf] }
  0x14   : > { %343 = vst.msk [vmem:[#allocation2 + $0x84] sm:$0xf] %vm172_vm5, %v310_v14  ;;  %v319_v20 = vld [vmem:[%s6779_s19 + $0x5c] sm:$0xf]  ;;  %v6799_v21 = vld [vmem:[#allocation2 + $0x50] sm:$0x8]  ;;  %vm6983_vm11 = vmand %vm239_vm10, %vm240_vm6 }
  0x15   : > { %344 = vst.msk [vmem:[#allocation2 + $0x88] sm:$0xf] %vm172_vm5, %v311_v15  ;;  %v1747_v23 = vrot.slane %v6374_v19, 3  ;;  %v2320_v28 = vld [vmem:[%s8790_s1 + $0x4] sm:$0x3]  ;;  %v201_v36 = vsel %vm6766_vm4, 0, %v6799_v21 }
  0x16   : > { %223 = vst [vmem:[#allocation2 + $0xc0] sm:$0x8] %v222_v16  ;;  %vm413_vm7 = vsmask.f32 4368  ;;  %v2370_v31 = vunpack.c.l.b16 %v2320_v28  ;;  %v993_v17 = vld [vmem:[%s8790_s1] sm:$0x6] }
  0x17   : > { %v377_v22 = vld [vmem:[#allocation2 + $0x40] sm:$0x8]  ;;  %351 = vst.msk [vmem:[#allocation2 + $0xc4] sm:$0xf] %vm172_vm5, %v318_v18  ;;  %v1797_v27 = vand.u32 %v1747_v23, %v6762_v3  ;;  %vm6816_vm9 = vmor %vm240_vm6, %vm413_vm7  ;;  %vm1305_vm12 = vsmask.f32 3328 }
  0x18   : > { %v504_v24 = vshrl.u32 %v377_v22, 16  ;;  %v389_v25 = vld [vmem:[#allocation2 + $0x80] sm:$0x8]  ;;  %352 = vst.msk [vmem:[#allocation2 + $0xc8] sm:$0xf] %vm172_vm5, %v319_v20  ;;  %v6820_v50 = vpack.c.b16 %v2370_v31, %v2370_v31  ;;  %vm5274_vm15 = vcmask 58368  }
  0x19   : > { %v592_v26 = vshrl.u32 %v389_v25, 16  ;;  %v378_v29 = vld [vmem:[#allocation2 + $0x44] sm:$0xf]  ;;  %173 = vst.msk [vmem:[#allocation2] sm:$0xf] %vm172_vm5, %v6730_v30  ;;  %1806 = vmatpush.bf16.msrb.mxu2 %v1797_v27  ;;  %vm6107_vm0 = vcmask 1041409  }
  0x1a   : > { %v379_v32 = vld [vmem:[#allocation2 + $0x48] sm:$0xf]  ;;  %v6263_v33 = vrot.slane %v504_v24, 11  ;;  %v509_v34 = vshrl.u32 %v378_v29, 16  ;;  %v512_v35 = vshll.u32 %v378_v29, 16  ;;  %v2373_v28 = vshrl.u32 %v6820_v50, 16 }
  0x1b   : > { %v518_v37 = vshrl.u32 %v379_v32, 16  ;;  %v521_v38 = vshll.u32 %v379_v32, 16  ;;  %v390_v39 = vld [vmem:[#allocation2 + $0x84] sm:$0xf]  ;;  %174 = vst.msk [vmem:[#allocation2 + $0x4] sm:$0xf] %vm172_vm5, %v6730_v30 }
  0x1c   : > { %v511_v40 = vrot.slane %v509_v34, 7  ;;  %v391_v41 = vld [vmem:[#allocation2 + $0x88] sm:$0xf]  ;;  %v6267_v42 = vrot.slane %v592_v26, 11  ;;  %v597_v43 = vshrl.u32 %v390_v39, 16  ;;  %v600_v44 = vshll.u32 %v390_v39, 16 }
  0x1d   : > { %v520_v46 = vrot.slane %v518_v37, 7  ;;  %v606_v47 = vshrl.u32 %v391_v41, 16  ;;  %v609_v48 = vshll.u32 %v391_v41, 16  ;;  %v401_v49 = vld [vmem:[#allocation2 + $0xc0] sm:$0x8]  ;;  %v2375_v29 = vshll.u32 %v6820_v50, 16 }
  0x1e   : > { %v514_v51 = vor.u32 %v512_v35, %v511_v40  ;;  %v516_v52 = vrot.slane %v511_v40, 4  ;;  %v599_v53 = vrot.slane %v597_v43, 7  ;;  %v402_v54 = vld [vmem:[#allocation2 + $0xc4] sm:$0xf]  ;;  %v680_v55 = vshrl.u32 %v401_v49, 16  ;;  %s6654_s21 = sshll.u32 %s8856_s13, 5 }
  0x1f   : > { %v523_v56 = vor.u32 %v521_v38, %v520_v46  ;;  %v608_v57 = vrot.slane %v606_v47, 7  ;;  %v403_v58 = vld [vmem:[#allocation2 + $0xc8] sm:$0xf]  ;;  %v685_v59 = vshrl.u32 %v402_v54, 16  ;;  %v688_v60 = vshll.u32 %v402_v54, 16  ;;  %s8203_s23 = scalar_lea.vmem %s8792_s3, %s6654_s21 }
  0x20   : > { %v515_v61 = vsel %vm6816_vm9, %v6263_v33, %v514_v51  ;;  %v602_v62 = vor.u32 %v600_v44, %v599_v53  ;;  %v604_v63 = vrot.slane %v599_v53, 4  ;;  %v6271_v0 = vrot.slane %v680_v55, 11  ;;  %175 = vst.msk [vmem:[#allocation2 + $0x8] sm:$0xf] %vm172_vm5, %v6730_v30  ;;  %v185_v7 = vld [vmem:[#allocation2] sm:$0x8] }
  0x21   : > { %v524_v1 = vsel %vm6816_vm9, %v516_v52, %v523_v56  ;;  %v776_v2 = vunpack.c.l.b16 %v515_v61  ;;  %v611_v5 = vor.u32 %v609_v48, %v608_v57  ;;  %v687_v6 = vrot.slane %v685_v59, 7  ;;  %176 = vst.msk [vmem:[#allocation2 + $0xc] sm:$0xf] %vm172_vm5, %v6730_v30  ;;  %v304_v18 = vld [vmem:[%s6779_s19 + $0x20] sm:$0xf] }
  0x22   : > { %v777_v8 = vunpack.c.l.b16 %v524_v1  ;;  %v603_v9 = vsel %vm6816_vm9, %v6267_v42, %v602_v62  ;;  %v694_v10 = vshrl.u32 %v403_v58, 16  ;;  %v697_v11 = vshll.u32 %v403_v58, 16  ;;  %v6832_v12 = vld [vmem:[#allocation2 + $0x4] sm:$0xf]  ;;  %178 = vst.msk [vmem:[#allocation2 + $0x110] sm:$0xf] %vm172_vm5, %v6730_v30 }
  0x23   : > { %v612_v13 = vsel %vm6816_vm9, %v604_v63, %v611_v5  ;;  %v784_v14 = vunpack.c.l.b16 %v603_v9  ;;  %v690_v15 = vor.u32 %v688_v60, %v687_v6  ;;  %v692_v16 = vrot.slane %v687_v6, 4  ;;  %179 = vst.msk [vmem:[#allocation2 + $0x114] sm:$0xf] %vm172_vm5, %v6730_v30  ;;  %v2551_v24 = vld [vmem:[%s8790_s1 + $0x4] sm:$0xc] }
  0x24   : > { %v804_v19 = vpack.c.b16 %v777_v8, %v776_v2  ;;  %v785_v20 = vunpack.c.l.b16 %v612_v13  ;;  %v696_v22 = vrot.slane %v694_v10, 7  ;;  %v186_v23 = vsel %vm6766_vm4, 0, %v185_v7  ;;  %180 = vst.msk [vmem:[#allocation2 + $0x118] sm:$0xf] %vm172_vm5, %v6730_v30  ;;  %v305_v25 = vld [vmem:[%s6779_s19 + $0x24] sm:$0xf] }
  0x25   : > { %v691_v26 = vsel %vm6816_vm9, %v6271_v0, %v690_v15  ;;  %187 = vst [vmem:[#allocation2] sm:$0x8] %v186_v23  ;;  %v421_v27 = vshrl.u32 %v6832_v12, 16  ;;  %v1075_v33 = vunpack.c.l.b16 %v993_v17  ;;  %v212_v34 = vld [vmem:[#allocation2 + $0x90] sm:$0x8]  ;;  %v2377_v41 = vrot.slane %v2375_v29, 1 }
  0x26   : > { %6279 = vmatmul.msk.bf16.vlgmr.msra.gmra.mxu1 %vm816_vm8, %v804_v19  ;;  %v808_v31 = vpack.c.b16 %v785_v20, %v784_v14  ;;  %v699_v32 = vor.u32 %v697_v11, %v696_v22  ;;  %181 = vst.msk [vmem:[#allocation2 + $0x11c] sm:$0xf] %vm172_vm5, %v6730_v30  ;;  %v312_v35 = vld [vmem:[%s6779_s19 + $0x40] sm:$0xf]  ;;  %v313_v37 = vld [vmem:[%s6779_s19 + $0x44] sm:$0xf]  ;;  %v792_v38 = vunpack.c.l.b16 %v691_v26  ;;  %v2633_v42 = vunpack.c.l.b16 %v2551_v24 }
  0x27   : > { %v367_v39 = vld [vmem:[#allocation2 + $0x8] sm:$0xf]  ;;  %v423_v40 = vrot.slane %v421_v27, 7  ;;  %202 = vst [vmem:[#allocation2 + $0x50] sm:$0x8] %v201_v36  ;;  %v1076_v46 = vpack.c.b16 %v1075_v33, %v1075_v33  ;;  %v424_v49 = vshll.u32 %v6832_v12, 16  ;;  %v2378_v51 = vor.u32 %v2377_v41, %v2373_v28 }
  0x28   : > { %6283 = vmatmul.msk.bf16.vlgmr.msra.gmra.mxu2 %vm816_vm8, %v808_v31  ;;  %v700_v43 = vsel %vm6816_vm9, %v692_v16, %v699_v32  ;;  %v430_v30 = vshrl.u32 %v367_v39, 16  ;;  %v433_v44 = vshll.u32 %v367_v39, 16  ;;  %337 = vst.msk [vmem:[#allocation2 + $0x54] sm:$0xf] %vm172_vm5, %v304_v18  ;;  %v224_v47 = vld [vmem:[#allocation2 + $0xd0] sm:$0x8]  ;;  %v2634_v53 = vpack.c.b16 %v2633_v42, %v2633_v42 }
  0x29   : > { %v793_v48 = vunpack.c.l.b16 %v700_v43  ;;  %v428_v50 = vrot.slane %v423_v40, 4  ;;  %338 = vst.msk [vmem:[#allocation2 + $0x58] sm:$0xf] %vm172_vm5, %v305_v25  ;;  %v1078_v36 = vshrl.u32 %v1076_v46, 16  ;;  %v1081_v52 = vshll.u32 %v1076_v46, 16 }
  0x2a   : > { %v432_v21 = vrot.slane %v430_v30, 7  ;;  %345 = vst.msk [vmem:[#allocation2 + $0x94] sm:$0xf] %vm172_vm5, %v312_v35  ;;  %v320_v54 = vld [vmem:[%s6779_s19 + $0x60] sm:$0xf]  ;;  %v2428_v56 = vand.u32 %v2378_v51, %v6762_v3  ;;  %v213_v57 = vsel %vm6766_vm4, 0, %v212_v34  ;;  %v426_v2 = vor.u32 %v424_v49, %v423_v40 }
  0x2b   : > { %v812_v55 = vpack.c.b16 %v793_v48, %v792_v38  ;;  %346 = vst.msk [vmem:[#allocation2 + $0x98] sm:$0xf] %vm172_vm5, %v313_v37  ;;  %v225_v58 = vsel %vm6766_vm4, 0, %v224_v47  ;;  %v321_v59 = vld [vmem:[%s6779_s19 + $0x64] sm:$0xf]  ;;  %v1080_v62 = vrot.slane %v1078_v36, 1 }
  0x2c   : > { %v365_v60 = vld [vmem:[#allocation2] sm:$0x8]  ;;  %v435_v61 = vor.u32 %v433_v44, %v432_v21  ;;  %v1083_v63 = vrot.slane %v1081_v52, 2  ;;  %v2635_v0 = vrot.slane %v2634_v53, 2  ;;  %214 = vst [vmem:[#allocation2 + $0x90] sm:$0x8] %v213_v57  ;;  %2437 = vmatpush.bf16.msrb.mxu3 %v2428_v56 }
  0x2d   : > { %6287 = vmatmul.msk.bf16.vlgmr.msra.gmra.mxu3 %vm816_vm8, %v812_v55  ;;  %v416_v1 = vshrl.u32 %v365_v60, 16  ;;  %v188_v5 = vld [vmem:[#allocation2 + $0x10] sm:$0x8]  ;;  %226 = vst [vmem:[#allocation2 + $0xd0] sm:$0x8] %v225_v58  ;;  %vm6109_vm1 = vcmask 1042434  }
  0x2e   : > { %v436_v6 = vsel %vm6816_vm9, %v428_v50, %v435_v61  ;;  %v1084_v7 = vor.u32 %v1083_v63, %v1080_v62  ;;  %v2685_v8 = vand.u32 %v2635_v0, %v6762_v3  ;;  %v380_v9 = vld [vmem:[#allocation2 + $0x50] sm:$0x8]  ;;  %v189_v10 = vsel %vm6766_vm4, 0, %v188_v5  ;;  %353 = vst.msk [vmem:[#allocation2 + $0xd4] sm:$0xf] %vm172_vm5, %v320_v54 }
  0x2f   : > { %v6259_v11 = vrot.slane %v416_v1, 11  ;;  %v381_v12 = vld [vmem:[#allocation2 + $0x54] sm:$0xf]  ;;  %v526_v13 = vshrl.u32 %v380_v9, 16  ;;  %v769_v14 = vunpack.c.l.b16 %v436_v6  ;;  %354 = vst.msk [vmem:[#allocation2 + $0xd8] sm:$0xf] %vm172_vm5, %v321_v59 }
  0x30   : > { %v1134_v15 = vand.u32 %v1084_v7, %v6762_v3  ;;  %2694 = vmatpush.bf16.msrb.mxu0 %v2685_v8  ;;  %v382_v16 = vld [vmem:[#allocation2 + $0x58] sm:$0xf]  ;;  %v531_v17 = vshrl.u32 %v381_v12, 16  ;;  %v534_v18 = vshll.u32 %v381_v12, 16  ;;  %190 = vst [vmem:[#allocation2 + $0x10] sm:$0x8] %v189_v10 }
  0x31   : > { %v427_v19 = vsel %vm6816_vm9, %v6259_v11, %v426_v2  ;;  %v6264_v20 = vrot.slane %v526_v13, 11  ;;  %v540_v22 = vshrl.u32 %v382_v16, 16  ;;  %v543_v23 = vshll.u32 %v382_v16, 16  ;;  %v393_v24 = vld [vmem:[#allocation2 + $0x94] sm:$0xf] }
  0x32   : > { %v768_v25 = vunpack.c.l.b16 %v427_v19  ;;  %1143 = vmatpush.bf16.msrb.mxu1 %v1134_v15  ;;  %v533_v26 = vrot.slane %v531_v17, 7  ;;  %v394_v27 = vld [vmem:[#allocation2 + $0x98] sm:$0xf]  ;;  %v619_v28 = vshrl.u32 %v393_v24, 16  ;;  %v622_v29 = vshll.u32 %v393_v24, 16 }
  0x33   : > { %v542_v31 = vrot.slane %v540_v22, 7  ;;  %v628_v32 = vshrl.u32 %v394_v27, 16  ;;  %v631_v33 = vshll.u32 %v394_v27, 16  ;;  %v392_v38 = vld [vmem:[#allocation2 + $0x90] sm:$0x8]  ;;  %vm6111_vm2 = vcmask 1043459  }
  0x34   : > { %v800_v34 = vpack.c.b16 %v769_v14, %v768_v25  ;;  %v536_v35 = vor.u32 %v534_v18, %v533_v26  ;;  %v538_v37 = vrot.slane %v533_v26, 4  ;;  %v621_v39 = vrot.slane %v619_v28, 7  ;;  %v296_v40 = vld [vmem:[%s6779_s19] sm:$0xf]  ;;  %v404_v30 = vld [vmem:[#allocation2 + $0xd0] sm:$0x8] }
  0x35   : > { %v545_v41 = vor.u32 %v543_v23, %v542_v31  ;;  %v614_v42 = vshrl.u32 %v392_v38, 16  ;;  %v630_v43 = vrot.slane %v628_v32, 7  ;;  %v297_v44 = vld [vmem:[%s6779_s19 + $0x4] sm:$0xf]  ;;  %v405_v49 = vld [vmem:[#allocation2 + $0xd4] sm:$0xf] }
  0x36   : > { %6275 = vmatmul.msk.bf16.vlgmr.msra.gmra.mxu0 %vm816_vm8, %v800_v34  ;;  %v537_v46 = vsel %vm6816_vm9, %v6264_v20, %v536_v35  ;;  %v624_v47 = vor.u32 %v622_v29, %v621_v39  ;;  %v626_v48 = vrot.slane %v621_v39, 4  ;;  %v702_v50 = vshrl.u32 %v404_v30, 16  ;;  %329 = vst.msk [vmem:[#allocation2 + $0x14] sm:$0xf] %vm172_vm5, %v296_v40  ;;  %v406_v53 = vld [vmem:[#allocation2 + $0xd8] sm:$0xf] }
  0x37   : > { %v546_v51 = vsel %vm6816_vm9, %v538_v37, %v545_v41  ;;  %v778_v21 = vunpack.c.l.b16 %v537_v46  ;;  %v6268_v36 = vrot.slane %v614_v42, 11  ;;  %v633_v52 = vor.u32 %v631_v33, %v630_v43  ;;  %330 = vst.msk [vmem:[#allocation2 + $0x18] sm:$0xf] %vm172_vm5, %v297_v44  ;;  %v203_v58 = vld [vmem:[#allocation2 + $0x60] sm:$0x8] }
  0x38   : > { %v779_v54 = vunpack.c.l.b16 %v546_v51  ;;  %v6272_v55 = vrot.slane %v702_v50, 11  ;;  %v707_v56 = vshrl.u32 %v405_v49, 16  ;;  %v710_v57 = vshll.u32 %v405_v49, 16  ;;  %v306_v63 = vld [vmem:[%s6779_s19 + $0x28] sm:$0xf] }
  0x39   : > { %v625_v59 = vsel %vm6816_vm9, %v6268_v36, %v624_v47  ;;  %v634_v60 = vsel %vm6816_vm9, %v626_v48, %v633_v52  ;;  %v716_v61 = vshrl.u32 %v406_v53, 16  ;;  %v719_v62 = vshll.u32 %v406_v53, 16  ;;  %v307_v0 = vld [vmem:[%s6779_s19 + $0x2c] sm:$0xf]  ;;  %v368_v7 = vld [vmem:[#allocation2 + $0x10] sm:$0x8] }
  0x3a   : > { %v805_v1 = vpack.c.b16 %v779_v54, %v778_v21  ;;  %v786_v2 = vunpack.c.l.b16 %v625_v59  ;;  %v787_v5 = vunpack.c.l.b16 %v634_v60  ;;  %v709_v6 = vrot.slane %v707_v56, 7  ;;  %339 = vst.msk [vmem:[#allocation2 + $0x64] sm:$0xf] %vm172_vm5, %v306_v63  ;;  %v215_v14 = vld [vmem:[#allocation2 + $0xa0] sm:$0x8] }
  0x3b   : > { %v718_v8 = vrot.slane %v716_v61, 7  ;;  %v204_v9 = vsel %vm6766_vm4, 0, %v203_v58  ;;  %340 = vst.msk [vmem:[#allocation2 + $0x68] sm:$0xf] %vm172_vm5, %v307_v0  ;;  %v438_v13 = vshrl.u32 %v368_v7, 16  ;;  %v216_v17 = vsel %vm6766_vm4, 0, %v215_v14 }
  0x3c   : > { %6280 = vmatmul.msk.bf16.gmra.mxu1 %vm816_vm8, %v805_v1  ;;  %v809_v10 = vpack.c.b16 %v787_v5, %v786_v2  ;;  %v712_v11 = vor.u32 %v710_v57, %v709_v6  ;;  %v714_v12 = vrot.slane %v709_v6, 4  ;;  %205 = vst [vmem:[#allocation2 + $0x60] sm:$0x8] %v204_v9  ;;  %v314_v18 = vld [vmem:[%s6779_s19 + $0x48] sm:$0xf]  ;;  %vm6113_vm3 = vcmask 1044484  }
  0x3d   : > { %v721_v15 = vor.u32 %v719_v62, %v718_v8  ;;  %v369_v16 = vld [vmem:[#allocation2 + $0x14] sm:$0xf]  ;;  %217 = vst [vmem:[#allocation2 + $0xa0] sm:$0x8] %v216_v17  ;;  %v315_v28 = vld [vmem:[%s6779_s19 + $0x4c] sm:$0xf] }
  0x3e   : > { %6284 = vmatmul.msk.bf16.gmra.mxu2 %vm816_vm8, %v809_v10  ;;  %v713_v19 = vsel %vm6816_vm9, %v6272_v55, %v712_v11  ;;  %v370_v20 = vld [vmem:[#allocation2 + $0x18] sm:$0xf]  ;;  %v443_v22 = vshrl.u32 %v369_v16, 16  ;;  %v446_v23 = vshll.u32 %v369_v16, 16  ;;  %347 = vst.msk [vmem:[#allocation2 + $0xa4] sm:$0xf] %vm172_vm5, %v314_v18 }
  0x3f   : > { %v722_v24 = vsel %vm6816_vm9, %v714_v12, %v721_v15  ;;  %v794_v25 = vunpack.c.l.b16 %v713_v19  ;;  %v452_v26 = vshrl.u32 %v370_v20, 16  ;;  %v455_v27 = vshll.u32 %v370_v20, 16  ;;  %348 = vst.msk [vmem:[#allocation2 + $0xa8] sm:$0xf] %vm172_vm5, %v315_v28  ;;  %v227_v33 = vld [vmem:[#allocation2 + $0xe0] sm:$0x8] }
  0x40   : > { %v795_v29 = vunpack.c.l.b16 %v722_v24  ;;  %v6260_v31 = vrot.slane %v438_v13, 11  ;;  %v445_v32 = vrot.slane %v443_v22, 7  ;;  %v228_v37 = vsel %vm6766_vm4, 0, %v227_v33  ;;  %v322_v38 = vld [vmem:[%s6779_s19 + $0x68] sm:$0xf] }
  0x41   : > { %v454_v34 = vrot.slane %v452_v26, 7  ;;  %v384_v35 = vld [vmem:[#allocation2 + $0x64] sm:$0xf]  ;;  %229 = vst [vmem:[#allocation2 + $0xe0] sm:$0x8] %v228_v37  ;;  %vm6117_vm6 = vcmask 1046534  }
  0x42   : > { %v813_v39 = vpack.c.b16 %v795_v29, %v794_v25  ;;  %v448_v40 = vor.u32 %v446_v23, %v445_v32  ;;  %v450_v41 = vrot.slane %v445_v32, 4  ;;  %v385_v42 = vld [vmem:[#allocation2 + $0x68] sm:$0xf]  ;;  %v553_v43 = vshrl.u32 %v384_v35, 16  ;;  %v323_v21 = vld [vmem:[%s6779_s19 + $0x6c] sm:$0xf] }
  0x43   : > { %v457_v30 = vor.u32 %v455_v27, %v454_v34  ;;  %v383_v44 = vld [vmem:[#allocation2 + $0x60] sm:$0x8]  ;;  %v556_v46 = vshll.u32 %v384_v35, 16  ;;  %v562_v47 = vshrl.u32 %v385_v42, 16  ;;  %v565_v48 = vshll.u32 %v385_v42, 16 }
  0x44   : > { %6288 = vmatmul.msk.bf16.gmra.mxu3 %vm816_vm8, %v813_v39  ;;  %v449_v49 = vsel %vm6816_vm9, %v6260_v31, %v448_v40  ;;  %v548_v50 = vshrl.u32 %v383_v44, 16  ;;  %v555_v51 = vrot.slane %v553_v43, 7  ;;  %355 = vst.msk [vmem:[#allocation2 + $0xe4] sm:$0xf] %vm172_vm5, %v322_v38  ;;  %v395_v54 = vld [vmem:[#allocation2 + $0xa0] sm:$0x8] }
  0x45   : > { %v458_v36 = vsel %vm6816_vm9, %v450_v41, %v457_v30  ;;  %v770_v52 = vunpack.c.l.b16 %v449_v49  ;;  %v564_v53 = vrot.slane %v562_v47, 7  ;;  %356 = vst.msk [vmem:[#allocation2 + $0xe8] sm:$0xf] %vm172_vm5, %v323_v21  ;;  %v396_v59 = vld [vmem:[#allocation2 + $0xa4] sm:$0xf]  ;;  %v636_v63 = vshrl.u32 %v395_v54, 16 }
  0x46   : > { %v771_v55 = vunpack.c.l.b16 %v458_v36  ;;  %v6265_v56 = vrot.slane %v548_v50, 11  ;;  %v558_v57 = vor.u32 %v556_v46, %v555_v51  ;;  %v560_v58 = vrot.slane %v555_v51, 4  ;;  %v191_v60 = vld [vmem:[#allocation2 + $0x20] sm:$0x8]  ;;  %v397_v62 = vld [vmem:[#allocation2 + $0xa8] sm:$0xf] }
  0x47   : > { %v567_v61 = vor.u32 %v565_v48, %v564_v53  ;;  %v641_v0 = vshrl.u32 %v396_v59, 16  ;;  %v644_v1 = vshll.u32 %v396_v59, 16  ;;  %v650_v6 = vshrl.u32 %v397_v62, 16  ;;  %v298_v8 = vld [vmem:[%s6779_s19 + $0x8] sm:$0xf] }
  0x48   : > { %v801_v2 = vpack.c.b16 %v771_v55, %v770_v52  ;;  %v559_v5 = vsel %vm6816_vm9, %v6265_v56, %v558_v57  ;;  %v653_v7 = vshll.u32 %v397_v62, 16  ;;  %v299_v9 = vld [vmem:[%s6779_s19 + $0xc] sm:$0xf]  ;;  %v6269_v12 = vrot.slane %v636_v63, 11  ;;  %v407_v14 = vld [vmem:[#allocation2 + $0xe0] sm:$0x8] }
  0x49   : > { %v568_v10 = vsel %vm6816_vm9, %v560_v58, %v567_v61  ;;  %v780_v11 = vunpack.c.l.b16 %v559_v5  ;;  %v643_v13 = vrot.slane %v641_v0, 7  ;;  %331 = vst.msk [vmem:[#allocation2 + $0x24] sm:$0xf] %vm172_vm5, %v298_v8  ;;  %v652_v16 = vrot.slane %v650_v6, 7  ;;  %v206_v28 = vld [vmem:[#allocation2 + $0x70] sm:$0x8] }
  0x4a   : > { %6276 = vmatmul.msk.bf16.gmra.mxu0 %vm816_vm8, %v801_v2  ;;  %v781_v15 = vunpack.c.l.b16 %v568_v10  ;;  %v724_v17 = vshrl.u32 %v407_v14, 16  ;;  %v192_v18 = vsel %vm6766_vm4, 0, %v191_v60  ;;  %332 = vst.msk [vmem:[#allocation2 + $0x28] sm:$0xf] %vm172_vm5, %v299_v9  ;;  %v308_v34 = vld [vmem:[%s6779_s19 + $0x30] sm:$0xf] }
  0x4b   : > { %v646_v19 = vor.u32 %v644_v1, %v643_v13  ;;  %v648_v20 = vrot.slane %v643_v13, 4  ;;  %v408_v22 = vld [vmem:[#allocation2 + $0xe4] sm:$0xf]  ;;  %193 = vst [vmem:[#allocation2 + $0x20] sm:$0x8] %v192_v18  ;;  %v655_v24 = vor.u32 %v653_v7, %v652_v16  ;;  %v207_v39 = vsel %vm6766_vm4, 0, %v206_v28 }
  0x4c   : > { %v806_v23 = vpack.c.b16 %v781_v15, %v780_v11  ;;  %v409_v25 = vld [vmem:[#allocation2 + $0xe8] sm:$0xf]  ;;  %v6273_v26 = vrot.slane %v724_v17, 11  ;;  %v729_v27 = vshrl.u32 %v408_v22, 16  ;;  %v732_v31 = vshll.u32 %v408_v22, 16 }
  0x4d   : > { %v647_v29 = vsel %vm6816_vm9, %v6269_v12, %v646_v19  ;;  %v738_v32 = vshrl.u32 %v409_v25, 16  ;;  %v741_v33 = vshll.u32 %v409_v25, 16  ;;  %v656_v35 = vsel %vm6816_vm9, %v648_v20, %v655_v24  ;;  %v309_v40 = vld [vmem:[%s6779_s19 + $0x34] sm:$0xf]  ;;  %341 = vst.msk [vmem:[#allocation2 + $0x74] sm:$0xf] %vm172_vm5, %v308_v34 }
  0x4e   : > { %6281 = vmatmul.msk.bf16.gmra.mxu1 %vm816_vm8, %v806_v23  ;;  %v788_v37 = vunpack.c.l.b16 %v647_v29  ;;  %v731_v38 = vrot.slane %v729_v27, 7  ;;  %v789_v41 = vunpack.c.l.b16 %v656_v35  ;;  %208 = vst [vmem:[#allocation2 + $0x70] sm:$0x8] %v207_v39  ;;  %v218_v43 = vld [vmem:[#allocation2 + $0xb0] sm:$0x8]  ;;  %vm6119_vm7 = vcmask 1047559  }
  0x4f   : > { %v740_v42 = vrot.slane %v738_v32, 7  ;;  %342 = vst.msk [vmem:[#allocation2 + $0x78] sm:$0xf] %vm172_vm5, %v309_v40  ;;  %v219_v47 = vsel %vm6766_vm4, 0, %v218_v43  ;;  %v316_v55 = vld [vmem:[%s6779_s19 + $0x50] sm:$0xf] }
  0x50   : > { %v734_v30 = vor.u32 %v732_v31, %v731_v38  ;;  %v736_v44 = vrot.slane %v731_v38, 4  ;;  %v372_v46 = vld [vmem:[#allocation2 + $0x24] sm:$0xf]  ;;  %v810_v48 = vpack.c.b16 %v789_v41, %v788_v37  ;;  %220 = vst [vmem:[#allocation2 + $0xb0] sm:$0x8] %v219_v47  ;;  %vm6186_vm10 = vcmask 60416  }
  0x51   : > { %v743_v49 = vor.u32 %v741_v33, %v740_v42  ;;  %v373_v50 = vld [vmem:[#allocation2 + $0x28] sm:$0xf]  ;;  %v465_v51 = vshrl.u32 %v372_v46, 16  ;;  %v468_v21 = vshll.u32 %v372_v46, 16  ;;  %v317_v60 = vld [vmem:[%s6779_s19 + $0x54] sm:$0xf] }
  0x52   : > { %v735_v36 = vsel %vm6816_vm9, %v6273_v26, %v734_v30  ;;  %v371_v52 = vld [vmem:[#allocation2 + $0x20] sm:$0x8]  ;;  %v474_v53 = vshrl.u32 %v373_v50, 16  ;;  %v477_v54 = vshll.u32 %v373_v50, 16  ;;  %6285 = vmatmul.msk.bf16.gmra.mxu2 %vm816_vm8, %v810_v48  ;;  %349 = vst.msk [vmem:[#allocation2 + $0xb4] sm:$0xf] %vm172_vm5, %v316_v55 }
  0x53   : > { %v744_v56 = vsel %vm6816_vm9, %v736_v44, %v743_v49  ;;  %v796_v57 = vunpack.c.l.b16 %v735_v36  ;;  %v460_v58 = vshrl.u32 %v371_v52, 16  ;;  %v467_v59 = vrot.slane %v465_v51, 7  ;;  %350 = vst.msk [vmem:[#allocation2 + $0xb8] sm:$0xf] %vm172_vm5, %v317_v60  ;;  %v230_v63 = vld [vmem:[#allocation2 + $0xf0] sm:$0x8] }
  0x54   : > { %v797_v61 = vunpack.c.l.b16 %v744_v56  ;;  %v476_v62 = vrot.slane %v474_v53, 7  ;;  %v387_v5 = vld [vmem:[#allocation2 + $0x74] sm:$0xf]  ;;  %v231_v6 = vsel %vm6766_vm4, 0, %v230_v63  ;;  %v324_v15 = vld [vmem:[%s6779_s19 + $0x70] sm:$0xf] }
  0x55   : > { %v6261_v0 = vrot.slane %v460_v58, 11  ;;  %v470_v1 = vor.u32 %v468_v21, %v467_v59  ;;  %v472_v2 = vrot.slane %v467_v59, 4  ;;  %v386_v9 = vld [vmem:[#allocation2 + $0x70] sm:$0x8]  ;;  %v575_v10 = vshrl.u32 %v387_v5, 16 }
  0x56   : > { %v814_v7 = vpack.c.b16 %v797_v61, %v796_v57  ;;  %v479_v8 = vor.u32 %v477_v54, %v476_v62  ;;  %v578_v11 = vshll.u32 %v387_v5, 16  ;;  %232 = vst [vmem:[#allocation2 + $0xf0] sm:$0x8] %v231_v6  ;;  %v388_v13 = vld [vmem:[#allocation2 + $0x78] sm:$0xf]  ;;  %v570_v14 = vshrl.u32 %v386_v9, 16 }
  0x57   : > { %v471_v12 = vsel %vm6816_vm9, %v6261_v0, %v470_v1  ;;  %v577_v18 = vrot.slane %v575_v10, 7  ;;  %v584_v19 = vshrl.u32 %v388_v13, 16  ;;  %v398_v20 = vld [vmem:[#allocation2 + $0xb0] sm:$0x8]  ;;  %v325_v22 = vld [vmem:[%s6779_s19 + $0x74] sm:$0xf] }
  0x58   : > { %6289 = vmatmul.msk.bf16.gmra.mxu3 %vm816_vm8, %v814_v7  ;;  %v480_v16 = vsel %vm6816_vm9, %v472_v2, %v479_v8  ;;  %v772_v17 = vunpack.c.l.b16 %v471_v12  ;;  %v6266_v24 = vrot.slane %v570_v14, 11  ;;  %v587_v25 = vshll.u32 %v388_v13, 16  ;;  %357 = vst.msk [vmem:[#allocation2 + $0xf4] sm:$0xf] %vm172_vm5, %v324_v15  ;;  %v194_v42 = vld [vmem:[#allocation2 + $0x30] sm:$0x8] }
  0x59   : > { %v773_v23 = vunpack.c.l.b16 %v480_v16  ;;  %v658_v26 = vshrl.u32 %v398_v20, 16  ;;  %v580_v27 = vor.u32 %v578_v11, %v577_v18  ;;  %v582_v28 = vrot.slane %v577_v18, 4  ;;  %v399_v31 = vld [vmem:[#allocation2 + $0xb4] sm:$0xf]  ;;  %358 = vst.msk [vmem:[#allocation2 + $0xf8] sm:$0xf] %vm172_vm5, %v325_v22 }
  0x5a   : > { %v586_v29 = vrot.slane %v584_v19, 7  ;;  %v400_v33 = vld [vmem:[#allocation2 + $0xb8] sm:$0xf]  ;;  %v663_v35 = vshrl.u32 %v399_v31, 16  ;;  %v666_v37 = vshll.u32 %v399_v31, 16  ;;  %v8801_v30 = vmov 0 }
  0x5b   : > { %v802_v32 = vpack.c.b16 %v773_v23, %v772_v17  ;;  %v6270_v34 = vrot.slane %v658_v26, 11  ;;  %v581_v38 = vsel %vm6816_vm9, %v6266_v24, %v580_v27  ;;  %v672_v40 = vshrl.u32 %v400_v33, 16  ;;  %v300_v43 = vld [vmem:[%s6779_s19 + $0x10] sm:$0xf]  ;;  %v301_v49 = vld [vmem:[%s6779_s19 + $0x14] sm:$0xf] }
  0x5c   : > { %v589_v39 = vor.u32 %v587_v25, %v586_v29  ;;  %v675_v41 = vshll.u32 %v400_v33, 16  ;;  %v8802_v30 = vsel %vm6983_vm11, 4294967295, %v8801_v30  ;;  %v782_v44 = vunpack.c.l.b16 %v581_v38  ;;  %v242_v36 = vld [vmem:[#allocation2 + $0xc] sm:$0x1]  ;;  %333 = vst.msk [vmem:[#allocation2 + $0x34] sm:$0xf] %vm172_vm5, %v300_v43 }
  0x5d   : > { %8803 = vst [vmem:[#allocation4_spill] sm:$0xff] %v8802_v30  ;;  %6277 = vmatmul.msk.bf16.gmra.mxu0 %vm816_vm8, %v802_v32  ;;  %v665_v46 = vrot.slane %v663_v35, 7  ;;  %v410_v47 = vld [vmem:[#allocation2 + $0xf0] sm:$0x8]  ;;  %v195_v48 = vsel %vm6766_vm4, 0, %v194_v42  ;;  %v674_v51 = vrot.slane %v672_v40, 7 }
  0x5e   : > { %v590_v50 = vsel %vm6816_vm9, %v582_v28, %v589_v39  ;;  %v746_v21 = vshrl.u32 %v410_v47, 16  ;;  %196 = vst [vmem:[#allocation2 + $0x30] sm:$0x8] %v195_v48  ;;  %v243_v55 = vsel %vm6983_vm11, 0, %v242_v36  ;;  %v1257_v56 = vld [vmem:[#allocation2 + $0x4] sm:$0xf] }
  0x5f   : > { %v783_v52 = vunpack.c.l.b16 %v590_v50  ;;  %v668_v53 = vor.u32 %v666_v37, %v665_v46  ;;  %v670_v54 = vrot.slane %v665_v46, 4  ;;  %v677_v57 = vor.u32 %v675_v41, %v674_v51  ;;  %v411_v58 = vld [vmem:[#allocation2 + $0xf4] sm:$0xf]  ;;  %334 = vst.msk [vmem:[#allocation2 + $0x38] sm:$0xf] %vm172_vm5, %v301_v49 }
  0x60   : > { %v6274_v59 = vrot.slane %v746_v21, 11  ;;  %v1309_v60 = vshrl.u32 %v1257_v56, 16  ;;  %v412_v63 = vld [vmem:[#allocation2 + $0xf8] sm:$0xf]  ;;  %v751_v0 = vshrl.u32 %v411_v58, 16  ;;  %v754_v1 = vshll.u32 %v411_v58, 16 }
  0x61   : > { %v807_v61 = vpack.c.b16 %v783_v52, %v782_v44  ;;  %v669_v62 = vsel %vm6816_vm9, %v6270_v34, %v668_v53  ;;  %244 = vst [vmem:[#allocation2 + $0xc] sm:$0x1] %v243_v55  ;;  %v678_v2 = vsel %vm6816_vm9, %v670_v54, %v677_v57  ;;  %v760_v6 = vshrl.u32 %v412_v63, 16  ;;  %v1258_v8 = vld [vmem:[#allocation2 + $0x8] sm:$0xf] }
  0x62   : > { %v790_v5 = vunpack.c.l.b16 %v669_v62  ;;  %v763_v7 = vshll.u32 %v412_v63, 16  ;;  %v791_v9 = vunpack.c.l.b16 %v678_v2  ;;  %v753_v10 = vrot.slane %v751_v0, 7  ;;  %v1920_v20 = vld [vmem:[#allocation2 + $0x10] sm:$0x8]  ;;  %v1921_v48 = vld [vmem:[#allocation2 + $0x14] sm:$0xf] }
  0x63   : > { %6282 = vmatmul.msk.bf16.gmra.mxu1 %vm816_vm8, %v807_v61  ;;  %vm1306_vm13 = vsmask.f32 7440  ;;  %v762_v11 = vrot.slane %v760_v6, 7  ;;  %v1311_v12 = vrot.slane %v1309_v60, 4  ;;  %v1312_v13 = vshll.u32 %v1257_v56, 16 }
  0x64   : > { %v1318_v14 = vshll.u32 %v1258_v8, 16  ;;  %v811_v15 = vpack.c.b16 %v791_v9, %v790_v5  ;;  %v756_v16 = vor.u32 %v754_v1, %v753_v10  ;;  %v758_v17 = vrot.slane %v753_v10, 4  ;;  %v375_v23 = vld [vmem:[#allocation2 + $0x34] sm:$0xf]  ;;  %vm7009_vm14 = vmor %vm1305_vm12, %vm1306_vm13  ;;  %v1922_v52 = vld [vmem:[#allocation2 + $0x18] sm:$0xf] }
  0x65   : > { %v374_v18 = vld [vmem:[#allocation2 + $0x30] sm:$0x8]  ;;  %v1322_v19 = vshrl.u32 %v1258_v8, 16  ;;  %v765_v22 = vor.u32 %v763_v7, %v762_v11  ;;  %v1314_v25 = vrot.slane %v1312_v13, 5  ;;  %v487_v29 = vshrl.u32 %v375_v23, 16  ;;  %v6655_v8 = vld [vmem:[#allocation2 + $0x4] sm:$0xff] }
  0x66   : > { %v482_v24 = vshrl.u32 %v374_v18, 16  ;;  %v1320_v26 = vrot.slane %v1318_v14, 5  ;;  %6286 = vmatmul.msk.bf16.gmra.mxu2 %vm816_vm8, %v811_v15  ;;  %v757_v27 = vsel %vm6816_vm9, %v6274_v59, %v756_v16  ;;  %v376_v28 = vld [vmem:[#allocation2 + $0x38] sm:$0xf]  ;;  %v490_v31 = vshll.u32 %v375_v23, 16 }
  0x67   : > { %v1324_v32 = vrot.slane %v1322_v19, 4  ;;  %v766_v33 = vsel %vm6816_vm9, %v758_v17, %v765_v22  ;;  %v798_v34 = vunpack.c.l.b16 %v757_v27  ;;  %v496_v37 = vshrl.u32 %v376_v28, 16  ;;  %v3876_v53 = vld [vmem:[%s8790_s1 + $0x8] sm:$0x6]  ;;  %v6505_v63 = vld [vmem:[%s8790_s1 + $0x4] sm:$0x8] }
  0x68   : > { %v6262_v35 = vrot.slane %v482_v24, 11  ;;  %v1259_v38 = vld [vmem:[#allocation2 + $0xc] sm:$0x1]  ;;  %v799_v39 = vunpack.c.l.b16 %v766_v33  ;;  %v489_v40 = vrot.slane %v487_v29, 7  ;;  %v499_v41 = vshll.u32 %v376_v28, 16 }
  0x69   : > { %v1315_v42 = vor.u32 %v1314_v25, %v1311_v12  ;;  %v498_v43 = vrot.slane %v496_v37, 7  ;;  %v1325_v46 = vor.u32 %v1324_v32, %v1320_v26  ;;  %v1328_v47 = vshll.u32 %v1259_v38, 16  ;;  %v4101_v58 = vld [vmem:[%s8790_s1 + $0x8] sm:$0xc]  ;;  %v6688_v0 = vld [vmem:[%s8790_s1 + $0x4] sm:$0x10] }
  0x6a   : > { %v1969_v49 = vshrl.u32 %v1920_v20, 16  ;;  %v815_v50 = vpack.c.b16 %v799_v39, %v798_v34  ;;  %v492_v51 = vor.u32 %v490_v31, %v489_v40  ;;  %v494_v21 = vrot.slane %v489_v40, 4  ;;  %v4797_v16 = vld [vmem:[%s8790_s1 + $0xc] sm:$0x3]  ;;  %v245_v17 = vld [vmem:[#allocation2 + $0x1c] sm:$0x1] }
  0x6b   : > { %v1316_v36 = vrot.slane %v1315_v42, 4  ;;  %v501_v54 = vor.u32 %v499_v41, %v498_v43  ;;  %v1326_v55 = vrot.slane %v1325_v46, 4  ;;  %v1330_v56 = vrot.slane %v1328_v47, 5  ;;  %v1260_v27 = vld [vmem:[#allocation2 + $0x14] sm:$0xf] }
  0x6c   : > { %v6391_v57 = vrot.slane %v1969_v49, 11  ;;  %6290 = vmatmul.msk.bf16.gmra.mxu3 %vm816_vm8, %v815_v50  ;;  %v493_v59 = vsel %vm6816_vm9, %v6262_v35, %v492_v51  ;;  %v1974_v61 = vshrl.u32 %v1921_v48, 16  ;;  %v1977_v62 = vshll.u32 %v1921_v48, 16  ;;  %v1261_v38 = vld [vmem:[#allocation2 + $0x18] sm:$0xf] }
  0x6d   : > { %v1321_v60 = vsel %vm7009_vm14, %v1316_v36, %v1320_v26  ;;  %v502_v1 = vsel %vm6816_vm9, %v494_v21, %v501_v54  ;;  %v774_v2 = vunpack.c.l.b16 %v493_v59  ;;  %v1331_v5 = vsel %vm7009_vm14, %v1326_v55, %v1330_v56  ;;  %v1923_v43 = vld [vmem:[#allocation2 + $0x20] sm:$0x8]  ;;  %v1924_v50 = vld [vmem:[#allocation2 + $0x24] sm:$0xf]  ;;  %v1925_v56 = vld [vmem:[#allocation2 + $0x28] sm:$0xf] }
  0x6e   : > { %v1694_v6 = vunpack.c.l.b16 %v1321_v60  ;;  %v775_v7 = vunpack.c.l.b16 %v502_v1  ;;  %v1695_v9 = vunpack.c.l.b16 %v1331_v5  ;;  %v1976_v10 = vrot.slane %v1974_v61, 7  ;;  %v1263_v5 = vld [vmem:[#allocation2 + $0x24] sm:$0xf] }
  0x6f   : > { %v1983_v11 = vshrl.u32 %v1922_v52, 16  ;;  %v1986_v12 = vshll.u32 %v1922_v52, 16  ;;  %v3926_v13 = vunpack.c.l.b16 %v3876_v53  ;;  %v4183_v14 = vunpack.c.l.b16 %v4101_v58 }
  0x70   : > { %v6506_v15 = vor.u32 %v6688_v0, %v6505_v63  ;;  %v803_v18 = vpack.c.b16 %v775_v7, %v774_v2  ;;  %v1726_v19 = vpack.c.b16 %v1695_v9, %v1694_v6  ;;  %v1979_v20 = vor.u32 %v1977_v62, %v1976_v10  ;;  %v248_v62 = vld [vmem:[#allocation2 + $0x2c] sm:$0x1] }
  0x71   : > { %v1981_v22 = vrot.slane %v1976_v10, 4  ;;  %v1985_v23 = vrot.slane %v1983_v11, 7  ;;  %v3927_v24 = vpack.c.b16 %v3926_v13, %v3926_v13  ;;  %v4184_v25 = vpack.c.b16 %v4183_v14, %v4183_v14 }
  0x72   : > { %v3296_v26 = vshrl.u32 %v6506_v15, 16  ;;  %6278 = vmatmul.msk.bf16.gmra.mxu0 %vm816_vm8, %v803_v18  ;;  %v1980_v28 = vsel %vm6816_vm9, %v6391_v57, %v1979_v20  ;;  %v3299_v29 = vshll.u32 %v6506_v15, 16  ;;  %v4895_v31 = vand.u32 %v4797_v16, %v6762_v3 }
  0x73   : > { %6355 = vmatmul.msk.bf16.vlgmr.msrb.gmra.mxu1 %vm816_vm8, %v6655_v8  ;;  %v246_v32 = vsel %vm6983_vm11, 0, %v245_v17  ;;  %v1988_v33 = vor.u32 %v1986_v12, %v1985_v23  ;;  %v2321_v34 = vunpack.c.l.b16 %v1980_v28  ;;  %v3928_v35 = vrot.slane %v3927_v24, 1  ;;  %v6672_v24 = vld [vmem:[#allocation2 + $0x14] sm:$0xff] }
  0x74   : > { %v4186_v37 = vshrl.u32 %v4184_v25, 16  ;;  %247 = vst [vmem:[#allocation2 + $0x1c] sm:$0x1] %v246_v32  ;;  %v4189_v39 = vshll.u32 %v4184_v25, 16  ;;  %v3298_v40 = vrot.slane %v3296_v26, 3  ;;  %v3301_v41 = vrot.slane %v3299_v29, 4  ;;  %4904 = vmatpush.bf16.msra.mxu0 %v4895_v31 }
  0x75   : > { %v1333_v42 = vshrl.u32 %v1260_v27, 16  ;;  %v1989_v46 = vsel %vm6816_vm9, %v1981_v22, %v1988_v33  ;;  %v3978_v47 = vand.u32 %v3928_v35, %v6762_v3  ;;  %v1336_v49 = vshll.u32 %v1260_v27, 16  ;;  %v6656_v25 = vld [vmem:[#allocation2 + $0x14] sm:$0xff] }
  0x76   : > { %v4188_v48 = vrot.slane %v4186_v37, 2  ;;  %6375 = vmatmul.msk.bf16.vlgmr.msrb.gmra.mxu2 %vm816_vm8, %v1726_v19  ;;  %v2322_v51 = vunpack.c.l.b16 %v1989_v46  ;;  %v4191_v21 = vrot.slane %v4189_v39, 3  ;;  %v3302_v36 = vor.u32 %v3301_v41, %v3298_v40  ;;  %v1264_v19 = vld [vmem:[#allocation2 + $0x28] sm:$0xf]  ;;  %v251_v40 = vld [vmem:[#allocation2 + $0x3c] sm:$0x1] }
  0x77   : > { %v1335_v52 = vrot.slane %v1333_v42, 4  ;;  %3987 = vmatpush.bf16.msra.mxu2 %v3978_v47  ;;  %v1338_v53 = vrot.slane %v1336_v49, 5  ;;  %v1342_v54 = vshll.u32 %v1261_v38, 16  ;;  %v1346_v55 = vshrl.u32 %v1261_v38, 16  ;;  %v1927_v46 = vld [vmem:[#allocation2 + $0x34] sm:$0xf] }
  0x78   : > { %v1991_v57 = vshrl.u32 %v1923_v43, 16  ;;  %v2353_v58 = vpack.c.b16 %v2322_v51, %v2321_v34  ;;  %v4192_v59 = vor.u32 %v4191_v21, %v4188_v48  ;;  %v3352_v60 = vand.u32 %v3302_v36, %v6762_v3  ;;  %v1928_v47 = vld [vmem:[#allocation2 + $0x38] sm:$0xf]  ;;  %v1926_v21 = vld [vmem:[#allocation2 + $0x30] sm:$0x8] }
  0x79   : > { %v1996_v61 = vshrl.u32 %v1924_v50, 16  ;;  %v1339_v63 = vor.u32 %v1338_v53, %v1335_v52  ;;  %v1344_v0 = vrot.slane %v1342_v54, 5  ;;  %v1348_v1 = vrot.slane %v1346_v55, 4 }
  0x7a   : > { %v6392_v2 = vrot.slane %v1991_v57, 11  ;;  %v4242_v6 = vand.u32 %v4192_v59, %v6762_v3  ;;  %3361 = vmatpush.bf16.msra.mxu1 %v3352_v60  ;;  %v1999_v9 = vshll.u32 %v1924_v50, 16  ;;  %v2005_v10 = vshrl.u32 %v1925_v56, 16 }
  0x7b   : > { %v1262_v7 = vld [vmem:[#allocation2 + $0x1c] sm:$0x1]  ;;  %v1998_v8 = vrot.slane %v1996_v61, 7  ;;  %v1340_v11 = vrot.slane %v1339_v63, 4  ;;  %v1349_v12 = vor.u32 %v1348_v1, %v1344_v0  ;;  %v2008_v14 = vshll.u32 %v1925_v56, 16 }
  0x7c   : > { %v1352_v13 = vshll.u32 %v1262_v7, 16  ;;  %6407 = vmatmul.msk.bf16.vlgmr.msrb.gmra.mxu3 %vm816_vm8, %v2353_v58  ;;  %v2007_v17 = vrot.slane %v2005_v10, 7  ;;  %v249_v18 = vsel %vm6983_vm11, 0, %v248_v62  ;;  %v1357_v23 = vshrl.u32 %v1263_v5, 16  ;;  %v1266_v58 = vld [vmem:[#allocation2 + $0x34] sm:$0xf] }
  0x7d   : > { %v2001_v15 = vor.u32 %v1999_v9, %v1998_v8  ;;  %v2003_v16 = vrot.slane %v1998_v8, 4  ;;  %4251 = vmatpush.bf16.msra.mxu3 %v4242_v6  ;;  %v1345_v3 = vsel %vm7009_vm14, %v1340_v11, %v1344_v0  ;;  %v1350_v20 = vrot.slane %v1349_v12, 4  ;;  %250 = vst [vmem:[#allocation2 + $0x2c] sm:$0x1] %v249_v18  ;;  %v1267_v61 = vld [vmem:[#allocation2 + $0x38] sm:$0xf] }
  0x7e   : > { %v1354_v22 = vrot.slane %v1352_v13, 5  ;;  %v1696_v26 = vunpack.c.l.b16 %v1345_v3  ;;  %v2010_v27 = vor.u32 %v2008_v14, %v2007_v17  ;;  %v1360_v28 = vshll.u32 %v1263_v5, 16  ;;  %v6657_v17 = vld [vmem:[#allocation2 + $0x24] sm:$0xff] }
  0x7f   : > { %v1359_v31 = vrot.slane %v1357_v23, 4  ;;  %v1366_v32 = vshll.u32 %v1264_v19, 16  ;;  %v1370_v35 = vshrl.u32 %v1264_v19, 16  ;;  %v2002_v37 = vsel %vm6816_vm9, %v6392_v2, %v2001_v15  ;;  %v254_v15 = vld [vmem:[#allocation2 + $0x4c] sm:$0x1] }
  0x80   : > { %v1355_v29 = vsel %vm7009_vm14, %v1350_v20, %v1354_v22  ;;  %v1362_v34 = vrot.slane %v1360_v28, 5  ;;  %v2011_v38 = vsel %vm6816_vm9, %v2003_v16, %v2010_v27  ;;  %v2323_v48 = vunpack.c.l.b16 %v2002_v37  ;;  %v6673_v16 = vld [vmem:[#allocation2 + $0x24] sm:$0xff]  ;;  %v1929_v37 = vld [vmem:[#allocation2 + $0x40] sm:$0x8] }
  0x81   : > { %v1697_v33 = vunpack.c.l.b16 %v1355_v29  ;;  %v1368_v39 = vrot.slane %v1366_v32, 5  ;;  %v1372_v43 = vrot.slane %v1370_v35, 4  ;;  %v2324_v49 = vunpack.c.l.b16 %v2011_v38  ;;  %v1930_v29 = vld [vmem:[#allocation2 + $0x44] sm:$0xf] }
  0x82   : > { %6487 = vmatmul.msk.bf16.vlgmr.msrb.gmra.mxu0 %vm816_vm8, %v6672_v24  ;;  %v1363_v42 = vor.u32 %v1362_v34, %v1359_v31  ;;  %v252_v36 = vsel %vm6983_vm11, 0, %v251_v40  ;;  %v2018_v53 = vshrl.u32 %v1927_v46, 16  ;;  %v2027_v54 = vshrl.u32 %v1928_v47, 16  ;;  %v1931_v31 = vld [vmem:[#allocation2 + $0x48] sm:$0xf] }
  0x83   : > { %6356 = vmatmul.msk.bf16.gmra.mxu1 %vm816_vm8, %v6656_v25  ;;  %v1727_v41 = vpack.c.b16 %v1697_v33, %v1696_v26  ;;  %v1373_v51 = vor.u32 %v1372_v43, %v1368_v39  ;;  %253 = vst [vmem:[#allocation2 + $0x3c] sm:$0x1] %v252_v36  ;;  %v2354_v59 = vpack.c.b16 %v2324_v49, %v2323_v48  ;;  %v2013_v60 = vshrl.u32 %v1926_v21, 16  ;;  %v1269_v43 = vld [vmem:[#allocation2 + $0x44] sm:$0xf] }
  0x84   : > { %v1265_v50 = vld [vmem:[#allocation2 + $0x2c] sm:$0x1]  ;;  %v1364_v55 = vrot.slane %v1363_v42, 4  ;;  %v2020_v62 = vrot.slane %v2018_v53, 7  ;;  %v2021_v63 = vshll.u32 %v1927_v46, 16  ;;  %v2029_v0 = vrot.slane %v2027_v54, 7 }
  0x85   : > { %v1376_v52 = vshll.u32 %v1265_v50, 16  ;;  %v1374_v56 = vrot.slane %v1373_v51, 4  ;;  %v2030_v1 = vshll.u32 %v1928_v47, 16  ;;  %v1381_v5 = vshrl.u32 %v1266_v58, 16  ;;  %v1270_v48 = vld [vmem:[#allocation2 + $0x48] sm:$0xf] }
  0x86   : > { %6376 = vmatmul.msk.bf16.gmra.mxu2 %vm816_vm8, %v1727_v41  ;;  %v1369_v2 = vsel %vm7009_vm14, %v1364_v55, %v1368_v39  ;;  %v1384_v6 = vshll.u32 %v1266_v58, 16  ;;  %v1390_v8 = vshll.u32 %v1267_v61, 16  ;;  %v1394_v9 = vshrl.u32 %v1267_v61, 16 }
  0x87   : > { %v1378_v57 = vrot.slane %v1376_v52, 5  ;;  %v6393_v10 = vrot.slane %v2013_v60, 11  ;;  %v1698_v11 = vunpack.c.l.b16 %v1369_v2  ;;  %v2023_v12 = vor.u32 %v2021_v63, %v2020_v62  ;;  %v6674_v63 = vld [vmem:[#allocation2 + $0x34] sm:$0xff] }
  0x88   : > { %v2025_v13 = vrot.slane %v2020_v62, 4  ;;  %v2032_v14 = vor.u32 %v2030_v1, %v2029_v0  ;;  %v1383_v19 = vrot.slane %v1381_v5, 4  ;;  %v1386_v3 = vrot.slane %v1384_v6, 5  ;;  %v257_v62 = vld [vmem:[#allocation2 + $0x5c] sm:$0x1]  ;;  %v6658_v0 = vld [vmem:[#allocation2 + $0x34] sm:$0xff] }
  0x89   : > { %v1379_v7 = vsel %vm7009_vm14, %v1374_v56, %v1378_v57  ;;  %v255_v20 = vsel %vm6983_vm11, 0, %v254_v15  ;;  %v1392_v22 = vrot.slane %v1390_v8, 5  ;;  %v1396_v23 = vrot.slane %v1394_v9, 4  ;;  %v1934_v15 = vld [vmem:[#allocation2 + $0x58] sm:$0xf] }
  0x8a   : > { %v1699_v18 = vunpack.c.l.b16 %v1379_v7  ;;  %256 = vst [vmem:[#allocation2 + $0x4c] sm:$0x1] %v255_v20  ;;  %v1268_v24 = vld [vmem:[#allocation2 + $0x3c] sm:$0x1]  ;;  %v2024_v25 = vsel %vm6816_vm9, %v6393_v10, %v2023_v12  ;;  %v2033_v26 = vsel %vm6816_vm9, %v2025_v13, %v2032_v14  ;;  %v1387_v28 = vor.u32 %v1386_v3, %v1383_v19  ;;  %v1933_v14 = vld [vmem:[#allocation2 + $0x54] sm:$0xf] }
  0x8b   : > { %v1397_v32 = vor.u32 %v1396_v23, %v1392_v22  ;;  %v1400_v33 = vshll.u32 %v1268_v24, 16  ;;  %v2325_v34 = vunpack.c.l.b16 %v2024_v25  ;;  %v2326_v35 = vunpack.c.l.b16 %v2033_v26  ;;  %v1932_v20 = vld [vmem:[#allocation2 + $0x50] sm:$0x8] }
  0x8c   : > { %6408 = vmatmul.msk.bf16.gmra.mxu3 %vm816_vm8, %v2354_v59  ;;  %v1728_v27 = vpack.c.b16 %v1699_v18, %v1698_v11  ;;  %v2040_v38 = vshrl.u32 %v1930_v29, 16  ;;  %v2049_v39 = vshrl.u32 %v1931_v31, 16  ;;  %v1388_v40 = vrot.slane %v1387_v28, 4 }
  0x8d   : > { %v1398_v41 = vrot.slane %v1397_v32, 4  ;;  %v1402_v42 = vrot.slane %v1400_v33, 5  ;;  %v2355_v46 = vpack.c.b16 %v2326_v35, %v2325_v34  ;;  %v2035_v47 = vshrl.u32 %v1929_v37, 16 }
  0x8e   : > { %v2042_v49 = vrot.slane %v2040_v38, 7  ;;  %v2043_v50 = vshll.u32 %v1930_v29, 16  ;;  %v2051_v51 = vrot.slane %v2049_v39, 7  ;;  %v2052_v21 = vshll.u32 %v1931_v31, 16  ;;  %v1273_v31 = vld [vmem:[#allocation2 + $0x58] sm:$0xf] }
  0x8f   : > { %v1393_v36 = vsel %vm7009_vm14, %v1388_v40, %v1392_v22  ;;  %v1405_v52 = vshrl.u32 %v1269_v43, 16  ;;  %v1408_v53 = vshll.u32 %v1269_v43, 16  ;;  %v1403_v54 = vsel %vm7009_vm14, %v1398_v41, %v1402_v42 }
  0x90   : > { %v1414_v55 = vshll.u32 %v1270_v48, 16  ;;  %v1418_v56 = vshrl.u32 %v1270_v48, 16  ;;  %v6394_v57 = vrot.slane %v2035_v47, 11  ;;  %v1700_v58 = vunpack.c.l.b16 %v1393_v36  ;;  %v6659_v36 = vld [vmem:[#allocation2 + $0x44] sm:$0xff] }
  0x91   : > { %v2045_v59 = vor.u32 %v2043_v50, %v2042_v49  ;;  %v2047_v60 = vrot.slane %v2042_v49, 4  ;;  %v2054_v61 = vor.u32 %v2052_v21, %v2051_v51  ;;  %v1701_v1 = vunpack.c.l.b16 %v1403_v54  ;;  %v1271_v9 = vld [vmem:[#allocation2 + $0x4c] sm:$0x1]  ;;  %v6675_v21 = vld [vmem:[#allocation2 + $0x44] sm:$0xff] }
  0x92   : > { %6488 = vmatmul.msk.bf16.gmra.mxu0 %vm816_vm8, %v6673_v16  ;;  %v1407_v2 = vrot.slane %v1405_v52, 4  ;;  %v1410_v5 = vrot.slane %v1408_v53, 5  ;;  %v258_v6 = vsel %vm6983_vm11, 0, %v257_v62  ;;  %v1416_v7 = vrot.slane %v1414_v55, 5  ;;  %v260_v51 = vld [vmem:[#allocation2 + $0x6c] sm:$0x1] }
  0x93   : > { %6357 = vmatmul.msk.bf16.gmra.mxu1 %vm816_vm8, %v6657_v17  ;;  %v1420_v8 = vrot.slane %v1418_v56, 4  ;;  %259 = vst [vmem:[#allocation2 + $0x5c] sm:$0x1] %v258_v6  ;;  %v2046_v10 = vsel %vm6816_vm9, %v6394_v57, %v2045_v59  ;;  %v2055_v11 = vsel %vm6816_vm9, %v2047_v60, %v2054_v61  ;;  %v1729_v12 = vpack.c.b16 %v1701_v1, %v1700_v58  ;;  %v1937_v1 = vld [vmem:[#allocation2 + $0x68] sm:$0xf] }
  0x94   : > { %v1411_v13 = vor.u32 %v1410_v5, %v1407_v2  ;;  %v1424_v17 = vshll.u32 %v1271_v9, 16  ;;  %v2327_v18 = vunpack.c.l.b16 %v2046_v10  ;;  %v2328_v19 = vunpack.c.l.b16 %v2055_v11  ;;  %v1935_v10 = vld [vmem:[#allocation2 + $0x60] sm:$0x8] }
  0x95   : > { %v1421_v16 = vor.u32 %v1420_v8, %v1416_v7  ;;  %v2062_v22 = vshrl.u32 %v1933_v14, 16  ;;  %v2071_v23 = vshrl.u32 %v1934_v15, 16  ;;  %v2057_v29 = vshrl.u32 %v1932_v20, 16 }
  0x96   : > { %6377 = vmatmul.msk.bf16.gmra.mxu2 %vm816_vm8, %v1728_v27  ;;  %v1412_v24 = vrot.slane %v1411_v13, 4  ;;  %v1426_v26 = vrot.slane %v1424_v17, 5  ;;  %v1272_v27 = vld [vmem:[#allocation2 + $0x54] sm:$0xf]  ;;  %v2356_v28 = vpack.c.b16 %v2328_v19, %v2327_v18  ;;  %v2065_v33 = vshll.u32 %v1933_v14, 16 }
  0x97   : > { %v1422_v25 = vrot.slane %v1421_v16, 4  ;;  %v2064_v32 = vrot.slane %v2062_v22, 7  ;;  %v2073_v34 = vrot.slane %v2071_v23, 7  ;;  %v2074_v35 = vshll.u32 %v1934_v15, 16  ;;  %v1275_v17 = vld [vmem:[#allocation2 + $0x64] sm:$0xf] }
  0x98   : > { %v1417_v37 = vsel %vm7009_vm14, %v1412_v24, %v1416_v7  ;;  %v1429_v38 = vshrl.u32 %v1272_v27, 16  ;;  %v1432_v39 = vshll.u32 %v1272_v27, 16  ;;  %v1438_v41 = vshll.u32 %v1273_v31, 16  ;;  %v1276_v22 = vld [vmem:[#allocation2 + $0x68] sm:$0xf] }
  0x99   : > { %v1427_v40 = vsel %vm7009_vm14, %v1422_v25, %v1426_v26  ;;  %v1442_v42 = vshrl.u32 %v1273_v31, 16  ;;  %v6395_v43 = vrot.slane %v2057_v29, 11  ;;  %v2067_v47 = vor.u32 %v2065_v33, %v2064_v32 }
  0x9a   : > { %v2069_v48 = vrot.slane %v2064_v32, 4  ;;  %v2076_v49 = vor.u32 %v2074_v35, %v2073_v34  ;;  %v1703_v52 = vunpack.c.l.b16 %v1427_v40  ;;  %v1431_v54 = vrot.slane %v1429_v38, 4  ;;  %v1274_v59 = vld [vmem:[#allocation2 + $0x5c] sm:$0x1] }
  0x9b   : > { %v1434_v55 = vrot.slane %v1432_v39, 5  ;;  %v261_v56 = vsel %vm6983_vm11, 0, %v260_v51  ;;  %v1440_v57 = vrot.slane %v1438_v41, 5  ;;  %v1444_v58 = vrot.slane %v1442_v42, 4  ;;  %v263_v42 = vld [vmem:[#allocation2 + $0x7c] sm:$0x1] }
  0x9c   : > { %6409 = vmatmul.msk.bf16.gmra.mxu3 %vm816_vm8, %v2355_v46  ;;  %v1702_v46 = vunpack.c.l.b16 %v1417_v37  ;;  %262 = vst [vmem:[#allocation2 + $0x6c] sm:$0x1] %v261_v56  ;;  %v2068_v60 = vsel %vm6816_vm9, %v6395_v43, %v2067_v47  ;;  %v2077_v61 = vsel %vm6816_vm9, %v2069_v48, %v2076_v49  ;;  %v1448_v7 = vshll.u32 %v1274_v59, 16  ;;  %v6676_v43 = vld [vmem:[#allocation2 + $0x54] sm:$0xff] }
  0x9d   : > { %v1445_v6 = vor.u32 %v1444_v58, %v1440_v57  ;;  %v2329_v8 = vunpack.c.l.b16 %v2068_v60  ;;  %v2330_v9 = vunpack.c.l.b16 %v2077_v61  ;;  %v2079_v20 = vshrl.u32 %v1935_v10, 16  ;;  %v1939_v58 = vld [vmem:[#allocation2 + $0x74] sm:$0xf]  ;;  %v1940_v61 = vld [vmem:[#allocation2 + $0x78] sm:$0xf] }
  0x9e   : > { %v1730_v62 = vpack.c.b16 %v1703_v52, %v1702_v46  ;;  %v1450_v16 = vrot.slane %v1448_v7, 5  ;;  %v2096_v26 = vshll.u32 %v1937_v1, 16  ;;  %v1456_v29 = vshll.u32 %v1275_v17, 16  ;;  %v6660_v46 = vld [vmem:[#allocation2 + $0x54] sm:$0xff]  ;;  %v1938_v7 = vld [vmem:[#allocation2 + $0x70] sm:$0x8] }
  0x9f   : > { %v1446_v15 = vrot.slane %v1445_v6, 4  ;;  %v2357_v18 = vpack.c.b16 %v2330_v9, %v2329_v8  ;;  %v1462_v32 = vshll.u32 %v1276_v22, 16  ;;  %v1466_v33 = vshrl.u32 %v1276_v22, 16  ;;  %v1278_v10 = vld [vmem:[#allocation2 + $0x74] sm:$0xf] }
  0xa0   : > { %v6396_v34 = vrot.slane %v2079_v20, 11  ;;  %v1458_v49 = vrot.slane %v1456_v29, 5  ;;  %v264_v51 = vsel %vm6983_vm11, 0, %v263_v42  ;;  %v2106_v6 = vshrl.u32 %v1939_v58, 16 }
  0xa1   : > { %v1451_v31 = vsel %vm7009_vm14, %v1446_v15, %v1450_v16  ;;  %265 = vst [vmem:[#allocation2 + $0x7c] sm:$0x1] %v264_v51  ;;  %v2115_v8 = vshrl.u32 %v1940_v61, 16  ;;  %v1279_v16 = vld [vmem:[#allocation2 + $0x78] sm:$0xf]  ;;  %v2109_v22 = vshll.u32 %v1939_v58, 16 }
  0xa2   : > { %6489 = vmatmul.msk.bf16.gmra.mxu0 %vm816_vm8, %v6674_v63  ;;  %v1435_v63 = vor.u32 %v1434_v55, %v1431_v54  ;;  %v1705_v47 = vunpack.c.l.b16 %v1451_v31  ;;  %v2108_v20 = vrot.slane %v2106_v6, 7  ;;  %v1490_v29 = vshrl.u32 %v1279_v16, 16 }
  0xa3   : > { %6358 = vmatmul.msk.bf16.gmra.mxu1 %vm816_vm8, %v6658_v0  ;;  %v7093_v3 = vpop.f32.mrf.mxu1  ;;  %v1936_v0 = vld [vmem:[#allocation2 + $0x64] sm:$0xf]  ;;  %v1277_v52 = vld [vmem:[#allocation2 + $0x6c] sm:$0x1] }
  0xa4   : > { %v2084_v11 = vshrl.u32 %v1936_v0, 16  ;;  %v1436_v13 = vrot.slane %v1435_v63, 4  ;;  %v2087_v24 = vshll.u32 %v1936_v0, 16  ;;  %v1472_v63 = vshll.u32 %v1277_v52, 16 }
  0xa6   : > { %6378 = vmatmul.msk.bf16.gmra.mxu2 %vm816_vm8, %v1729_v12  ;;  %v2093_v12 = vshrl.u32 %v1937_v1, 16  ;;  %v2086_v23 = vrot.slane %v2084_v11, 7  ;;  %v1441_v27 = vsel %vm7009_vm14, %v1436_v13, %v1440_v57  ;;  %v1474_v15 = vrot.slane %v1472_v63, 5 }
  0xa7   : > { %v1704_v38 = vunpack.c.l.b16 %v1441_v27 }
  0xa8   : > { %v2095_v25 = vrot.slane %v2093_v12, 7  ;;  %v2089_v39 = vor.u32 %v2087_v24, %v2086_v23  ;;  %v2091_v40 = vrot.slane %v2086_v23, 4  ;;  %v2117_v23 = vrot.slane %v2115_v8, 7 }
  0xa9   : > { %v1731_v59 = vpack.c.b16 %v1705_v47, %v1704_v38  ;;  %v2118_v24 = vshll.u32 %v1940_v61, 16  ;;  %v2111_v38 = vor.u32 %v2109_v22, %v2108_v20  ;;  %v266_v47 = vld [vmem:[#allocation2 + $0x8c] sm:$0x1] }
  0xaa   : > { %v2098_v41 = vor.u32 %v2096_v26, %v2095_v25  ;;  %v2090_v54 = vsel %vm6816_vm9, %v6396_v34, %v2089_v39  ;;  %v1477_v25 = vshrl.u32 %v1278_v10, 16  ;;  %v1480_v26 = vshll.u32 %v1278_v10, 16 }
  0xab   : > { %v7101_v50 = vpop.f32.mrf.mxu2  ;;  %v7103_v53 = vpop.f32.mrf.mxu1  ;;  %v2331_v0 = vunpack.c.l.b16 %v2090_v54  ;;  %v2113_v39 = vrot.slane %v2108_v20, 4  ;;  %v2120_v42 = vor.u32 %v2118_v24, %v2117_v23  ;;  %v267_v52 = vsel %vm6983_vm11, 0, %v266_v47  ;;  %v1280_v54 = vld [vmem:[#allocation2 + $0x7c] sm:$0x1] }
  0xac   : > { %6410 = vmatmul.msk.bf16.gmra.mxu3 %vm816_vm8, %v2356_v28  ;;  %v1453_v28 = vshrl.u32 %v1275_v17, 16  ;;  %v2099_v55 = vsel %vm6816_vm9, %v2091_v40, %v2098_v41  ;;  %v6677_v40 = vld [vmem:[#allocation2 + $0x64] sm:$0xff]  ;;  %268 = vst [vmem:[#allocation2 + $0x8c] sm:$0x1] %v267_v52  ;;  %v1496_v6 = vshll.u32 %v1280_v54, 16  ;;  %v6662_v52 = vld [vmem:[#allocation2 + $0x74] sm:$0xff] }
  0xad   : > { %v2332_v1 = vunpack.c.l.b16 %v2099_v55  ;;  %v1943_v55 = vld [vmem:[#allocation2 + $0x88] sm:$0xf]  ;;  %v2121_v61 = vsel %vm6816_vm9, %v2113_v39, %v2120_v42 }
  0xae   : > { %v1455_v48 = vrot.slane %v1453_v28, 4  ;;  %v1486_v28 = vshll.u32 %v1279_v16, 16  ;;  %v2137_v8 = vshrl.u32 %v1943_v55, 16  ;;  %v2334_v10 = vunpack.c.l.b16 %v2121_v61 }
  0xaf   : > { %v2358_v17 = vpack.c.b16 %v2332_v1, %v2331_v0  ;;  %v1498_v23 = vrot.slane %v1496_v6, 5 }
  0xb0   : > { %v7115_v5 = vpop.f32.mrf.mxu3  ;;  %v1459_v60 = vor.u32 %v1458_v49, %v1455_v48  ;;  %v6661_v48 = vld [vmem:[#allocation2 + $0x64] sm:$0xff]  ;;  %v1488_v51 = vrot.slane %v1486_v28, 5  ;;  %v2139_v24 = vrot.slane %v2137_v8, 7  ;;  %v1945_v8 = vld [vmem:[#allocation2 + $0x94] sm:$0xf] }
  0xb1   : > { %v1282_v28 = vld [vmem:[#allocation2 + $0x88] sm:$0xf] }
  0xb2   : > { %6490 = vmatmul.msk.bf16.gmra.mxu0 %vm816_vm8, %v6675_v21  ;;  %v1464_v21 = vrot.slane %v1462_v32, 5  ;;  %v1460_v9 = vrot.slane %v1459_v60, 4  ;;  %v1510_v47 = vshll.u32 %v1282_v28, 16 }
  0xb3   : > { %6359 = vmatmul.msk.bf16.gmra.mxu1 %vm816_vm8, %v6659_v36  ;;  %v7113_v2 = vpop.f32.mrf.mxu0  ;;  %v7118_v14 = vpop.f32.mrf.mxu2  ;;  %v1468_v36 = vrot.slane %v1466_v33, 4 }
  0xb4   : > { %v1465_v27 = vsel %vm7009_vm14, %v1460_v9, %v1464_v21 }
  0xb5   : > { %v1706_v41 = vunpack.c.l.b16 %v1465_v27  ;;  %v1281_v27 = vld [vmem:[#allocation2 + $0x84] sm:$0xf] }
  0xb6   : > { %6379 = vmatmul.msk.bf16.gmra.mxu2 %vm816_vm8, %v1730_v62  ;;  %v1469_v62 = vor.u32 %v1468_v36, %v1464_v21  ;;  %v1492_v21 = vrot.slane %v1490_v29, 4  ;;  %v1942_v36 = vld [vmem:[#allocation2 + $0x84] sm:$0xf] }
  0xb7   : > { %v2128_v63 = vshrl.u32 %v1942_v36, 16  ;;  %v2131_v20 = vshll.u32 %v1942_v36, 16  ;;  %v6678_v36 = vld [vmem:[#allocation2 + $0x74] sm:$0xff] }
  0xb8   : > { %v7129_v37 = vpop.f32.mrf.mxu3  ;;  %v1470_v13 = vrot.slane %v1469_v62, 4  ;;  %v1493_v1 = vor.u32 %v1492_v21, %v1488_v51  ;;  %v269_v21 = vld [vmem:[#allocation2 + $0x9c] sm:$0x1] }
  0xb9   : > { %v7120_v19 = vpop.f32.mrf.mxu1 }
  0xba   : > { %v1475_v33 = vsel %vm7009_vm14, %v1470_v13, %v1474_v15  ;;  %v1494_v22 = vrot.slane %v1493_v1, 4  ;;  %v1512_v1 = vrot.slane %v1510_v47, 5  ;;  %v2153_v47 = vshll.u32 %v1945_v8, 16 }
  0xbb   : > { %v7127_v35 = vpop.f32.mrf.mxu0  ;;  %v1707_v49 = vunpack.c.l.b16 %v1475_v33 }
  0xbc   : > { %6411 = vmatmul.msk.bf16.gmra.mxu3 %vm816_vm8, %v2357_v18  ;;  %v2101_v18 = vshrl.u32 %v1938_v7, 16  ;;  %v1941_v7 = vld [vmem:[#allocation2 + $0x80] sm:$0x8] }
  0xbd   : > { %v1732_v0 = vpack.c.b16 %v1707_v49, %v1706_v41 }
  0xbe   : > { %v6397_v34 = vrot.slane %v2101_v18, 11  ;;  %v2130_v18 = vrot.slane %v2128_v63, 7 }
  0xc0   : > { %v2112_v60 = vsel %vm6816_vm9, %v6397_v34, %v2111_v38  ;;  %v2133_v33 = vor.u32 %v2131_v20, %v2130_v18  ;;  %v1499_v38 = vsel %vm7009_vm14, %v1494_v22, %v1498_v23  ;;  %v2135_v39 = vrot.slane %v2130_v18, 4  ;;  %v1944_v23 = vld [vmem:[#allocation2 + $0x90] sm:$0x8] }
  0xc1   : > { %v7137_v56 = vpop.f32.mrf.mxu2  ;;  %v7139_v57 = vpop.f32.mrf.mxu1  ;;  %v2333_v9 = vunpack.c.l.b16 %v2112_v60  ;;  %v270_v60 = vsel %vm6983_vm11, 0, %v269_v21 }
  0xc2   : > { %6491 = vmatmul.msk.bf16.gmra.mxu0 %vm816_vm8, %v6676_v43  ;;  %v1479_v43 = vrot.slane %v1477_v25, 4  ;;  %v2140_v25 = vshll.u32 %v1943_v55, 16  ;;  %271 = vst [vmem:[#allocation2 + $0x9c] sm:$0x1] %v270_v60 }
  0xc3   : > { %6360 = vmatmul.msk.bf16.gmra.mxu1 %vm816_vm8, %v6660_v46  ;;  %v1482_v46 = vrot.slane %v1480_v26, 5  ;;  %v2359_v26 = vpack.c.b16 %v2334_v10, %v2333_v9  ;;  %v1946_v9 = vld [vmem:[#allocation2 + $0x98] sm:$0xf] }
  0xc5   : > { %v1483_v62 = vor.u32 %v1482_v46, %v1479_v43  ;;  %v1501_v43 = vshrl.u32 %v1281_v27, 16  ;;  %v1504_v46 = vshll.u32 %v1281_v27, 16 }
  0xc6   : > { %6380 = vmatmul.msk.bf16.gmra.mxu2 %vm816_vm8, %v1731_v59 }
  0xc7   : > { %v7144_v11 = vpop.f32.mrf.mxu0  ;;  %v7146_v12 = vpop.f32.mrf.mxu3  ;;  %v1484_v16 = vrot.slane %v1483_v62, 4  ;;  %v1503_v63 = vrot.slane %v1501_v43, 4  ;;  %v2145_v43 = vshrl.u32 %v1944_v23, 16 }
  0xc9   : > { %v7150_v31 = vpop.f32.mrf.mxu2  ;;  %v1489_v34 = vsel %vm7009_vm14, %v1484_v16, %v1488_v51  ;;  %v1709_v51 = vunpack.c.l.b16 %v1499_v38 }
  0xca   : > { %v1708_v49 = vunpack.c.l.b16 %v1489_v34 }
  0xcb   : > { %v7152_v32 = vpop.f32.mrf.mxu1 }
  0xcc   : > { %6412 = vmatmul.msk.bf16.gmra.mxu3 %vm816_vm8, %v2358_v17  ;;  %v2123_v17 = vshrl.u32 %v1941_v7, 16  ;;  %v1283_v7 = vld [vmem:[#allocation2 + $0x8c] sm:$0x1]  ;;  %v1733_v10 = vpack.c.b16 %v1709_v51, %v1708_v49  ;;  %v2162_v49 = vshll.u32 %v1946_v9, 16 }
  0xcd   : > { %v1520_v22 = vshll.u32 %v1283_v7, 16 }
  0xce   : > { %v6398_v29 = vrot.slane %v2123_v17, 11 }
  0xcf   : > { %v7159_v58 = vpop.f32.mrf.mxu0  ;;  %v7161_v59 = vpop.f32.mrf.mxu3 }
  0xd0   : > { %v2134_v54 = vsel %vm6816_vm9, %v6398_v29, %v2133_v33  ;;  %v1284_v29 = vld [vmem:[#allocation2 + $0x94] sm:$0xf]  ;;  %v1285_v33 = vld [vmem:[#allocation2 + $0x98] sm:$0xf] }
  0xd1   : > { %v2335_v16 = vunpack.c.l.b16 %v2134_v54  ;;  %v1534_v51 = vshll.u32 %v1285_v33, 16  ;;  %v1538_v54 = vshrl.u32 %v1285_v33, 16 }
  0xd2   : > { %6492 = vmatmul.msk.bf16.gmra.mxu0 %vm816_vm8, %v6677_v40  ;;  %v2142_v40 = vor.u32 %v2140_v25, %v2139_v24  ;;  %v2150_v24 = vshrl.u32 %v1945_v8, 16  ;;  %v2159_v25 = vshrl.u32 %v1946_v9, 16 }
  0xd3   : > { %6361 = vmatmul.msk.bf16.gmra.mxu1 %vm816_vm8, %v6661_v48  ;;  %v7171_v15 = vpop.f32.mrf.mxu1  ;;  %v1514_v48 = vshrl.u32 %v1282_v28, 16 }
  0xd4   : > { %v2143_v55 = vsel %vm6816_vm9, %v2135_v39, %v2142_v40  ;;  %v1522_v40 = vrot.slane %v1520_v22, 5 }
  0xd5   : > { %v7169_v13 = vpop.f32.mrf.mxu2  ;;  %v1516_v6 = vrot.slane %v1514_v48, 4  ;;  %v2336_v17 = vunpack.c.l.b16 %v2143_v55  ;;  %v2161_v48 = vrot.slane %v2159_v25, 7 }
  0xd6   : > { %6381 = vmatmul.msk.bf16.gmra.mxu2 %vm816_vm8, %v1732_v0  ;;  %v1506_v0 = vrot.slane %v1504_v46, 5  ;;  %v2152_v46 = vrot.slane %v2150_v24, 7  ;;  %v1286_v24 = vld [vmem:[#allocation2 + $0x9c] sm:$0x1] }
  0xd7   : > { %v1517_v20 = vor.u32 %v1516_v6, %v1512_v1  ;;  %v2360_v28 = vpack.c.b16 %v2336_v17, %v2335_v16  ;;  %v2164_v8 = vor.u32 %v2162_v49, %v2161_v48  ;;  %v1536_v16 = vrot.slane %v1534_v51, 5 }
  0xd8   : > { %v1507_v18 = vor.u32 %v1506_v0, %v1503_v63  ;;  %v7211_v63 = vld [vmem:[%s8791_s2] ss:$0 sm:$0xff]  ;;  %v6399_v0 = vrot.slane %v2145_v43, 11  ;;  %v2155_v6 = vor.u32 %v2153_v47, %v2152_v46  ;;  %v2157_v7 = vrot.slane %v2152_v46, 4  ;;  %v1948_v43 = vld [vmem:[#allocation2 + $0xa4] sm:$0xf] }
  0xd9   : > { %v1518_v39 = vrot.slane %v1517_v20, 4  ;;  %v1540_v17 = vrot.slane %v1538_v54, 4  ;;  %v6663_v20 = vld [vmem:[#allocation2 + $0x84] sm:$0xff]  ;;  %v2172_v51 = vshrl.u32 %v1948_v43, 16 }
  0xda   : > { %v7178_v41 = vpop.f32.mrf.mxu0  ;;  %v1508_v38 = vrot.slane %v1507_v18, 4  ;;  %v272_v18 = vld [vmem:[#allocation2 + $0xac] sm:$0x1] }
  0xdb   : > { %v7180_v42 = vpop.f32.mrf.mxu3  ;;  %v1523_v60 = vsel %vm7009_vm14, %v1518_v39, %v1522_v40  ;;  %v273_v25 = vsel %vm6983_vm11, 0, %v272_v18  ;;  %v2156_v39 = vsel %vm6816_vm9, %v6399_v0, %v2155_v6  ;;  %v2165_v40 = vsel %vm6816_vm9, %v2157_v7, %v2164_v8  ;;  %v1287_v18 = vld [vmem:[#allocation2 + $0xa4] sm:$0xf] }
  0xdc   : > { %8806 = vst [vmem:[#allocation5_spill] sm:$0xff] %v7180_v42  ;;  %6413 = vmatmul.msk.bf16.gmra.mxu3 %vm816_vm8, %v2359_v26  ;;  %v1513_v55 = vsel %vm7009_vm14, %v1508_v38, %v1512_v1  ;;  %v6679_v1 = vld [vmem:[#allocation2 + $0x84] sm:$0xff]  ;;  %v1711_v23 = vunpack.c.l.b16 %v1523_v60  ;;  %v1541_v49 = vor.u32 %v1540_v17, %v1536_v16  ;;  %v2337_v54 = vunpack.c.l.b16 %v2156_v39  ;;  %v1947_v60 = vld [vmem:[#allocation2 + $0xa0] sm:$0x8] }
  0xdd   : > { %v7189_v61 = vpop.f32.mrf.mxu2  ;;  %v1710_v22 = vunpack.c.l.b16 %v1513_v55  ;;  %274 = vst [vmem:[#allocation2 + $0xac] sm:$0x1] %v273_v25  ;;  %v2338_v55 = vunpack.c.l.b16 %v2165_v40  ;;  %v2167_v17 = vshrl.u32 %v1947_v60, 16 }
  0xde   : > { %v1542_v7 = vrot.slane %v1541_v49, 4  ;;  %v1552_v49 = vshll.u32 %v1287_v18, 16 }
  0xdf   : > { %v6400_v60 = vrot.slane %v2167_v17, 11 }
  0xe0   : > { %v7191_v62 = vpop.f32.mrf.mxu1 }
  0xe2   : > { %6493 = vmatmul.msk.bf16.gmra.mxu0 %vm816_vm8, %v6678_v36  ;;  %v7195_v26 = vpop.f32.mrf.mxu0  ;;  %v1525_v36 = vshrl.u32 %v1284_v29, 16 }
  0xe3   : > { %6362 = vmatmul.msk.bf16.gmra.mxu1 %vm816_vm8, %v6662_v52  ;;  %v7197_v27 = vpop.f32.mrf.mxu3  ;;  %v1528_v52 = vshll.u32 %v1284_v29, 16 }
  0xe4   : > { %8807 = vst [vmem:[#allocation6_spill] sm:$0xff] %v7197_v27  ;;  %v1527_v9 = vrot.slane %v1525_v36, 4  ;;  %v1544_v36 = vshll.u32 %v1286_v24, 16  ;;  %v2175_v24 = vshll.u32 %v1948_v43, 16  ;;  %v6680_v43 = vld [vmem:[#allocation2 + $0x94] sm:$0xff]  ;;  %v1554_v27 = vrot.slane %v1552_v49, 5 }
  0xe6   : > { %6382 = vmatmul.msk.bf16.gmra.mxu2 %vm816_vm8, %v1733_v10  ;;  %v1530_v10 = vrot.slane %v1528_v52, 5  ;;  %v1734_v52 = vpack.c.b16 %v1711_v23, %v1710_v22  ;;  %v1546_v8 = vrot.slane %v1544_v36, 5  ;;  %v2361_v22 = vpack.c.b16 %v2338_v55, %v2337_v54 }
  0xe8   : > { %v7200_v34 = vpop.f32.mrf.mxu1  ;;  %v1531_v48 = vor.u32 %v1530_v10, %v1527_v9  ;;  %v1547_v40 = vsel %vm7009_vm14, %v1542_v7, %v1546_v8  ;;  %v962_v7 = vadd.f32 %v7211_v63, %v7127_v35  ;;  %v6664_v8 = vld [vmem:[#allocation2 + $0x94] sm:$0xff] }
  0xe9   : > { %v7202_v21 = vpop.f32.mrf.mxu2  ;;  %v1713_v55 = vunpack.c.l.b16 %v1547_v40 }
  0xea   : > { %v1532_v6 = vrot.slane %v1531_v48, 4  ;;  %v1549_v48 = vshrl.u32 %v1287_v18, 16 }
  0xec   : > { %6414 = vmatmul.msk.bf16.gmra.mxu3 %vm816_vm8, %v2360_v28  ;;  %v961_v28 = vadd.f32 %v7211_v63, %v7113_v2  ;;  %v1949_v2 = vld [vmem:[#allocation2 + $0xa8] sm:$0xf]  ;;  %v1537_v39 = vsel %vm7009_vm14, %v1532_v6, %v1536_v16  ;;  %v1951_v16 = vld [vmem:[#allocation2 + $0xb4] sm:$0xf]  ;;  %v275_v6 = vld [vmem:[#allocation2 + $0xbc] sm:$0x1] }
  0xed   : > { %v2181_v0 = vshrl.u32 %v1949_v2, 16  ;;  %v1712_v54 = vunpack.c.l.b16 %v1537_v39  ;;  %v276_v17 = vsel %vm6983_vm11, 0, %v275_v6  ;;  %v2194_v6 = vshrl.u32 %v1951_v16, 16 }
  0xee   : > { %277 = vst [vmem:[#allocation2 + $0xbc] sm:$0x1] %v276_v17  ;;  %v1950_v17 = vld [vmem:[#allocation2 + $0xb0] sm:$0x8] }
  0xef   : > { %v7218_v29 = vpop.f32.mrf.mxu0  ;;  %v7220_v33 = vpop.f32.mrf.mxu3  ;;  %v2183_v25 = vrot.slane %v2181_v0, 7  ;;  %v1735_v40 = vpack.c.b16 %v1713_v55, %v1712_v54 }
  0xf0   : > { %8808 = vst [vmem:[#allocation7_spill] sm:$0xff] %v7220_v33  ;;  %v1145_v38 = vpop.f32.mrf.mxu1  ;;  %v1551_v33 = vrot.slane %v1549_v48, 4 }
  0xf1   : > { %v7226_v46 = vpop.f32.mrf.mxu2  ;;  %v1225_v47 = vadd.f32 %v1145_v38, %v961_v28  ;;  %v2184_v28 = vshll.u32 %v1949_v2, 16 }
  0xf2   : > { %6494 = vmatmul.msk.bf16.gmra.mxu0 %vm816_vm8, %v6679_v1  ;;  %v2174_v1 = vrot.slane %v2172_v51, 7 }
  0xf3   : > { %6363 = vmatmul.msk.bf16.gmra.mxu1 %vm816_vm8, %v6663_v20  ;;  %v1288_v20 = vld [vmem:[#allocation2 + $0xa8] sm:$0xf]  ;;  %v2186_v0 = vor.u32 %v2184_v28, %v2183_v25  ;;  %v1289_v28 = vld [vmem:[#allocation2 + $0xac] sm:$0x1] }
  0xf4   : > { %v2177_v51 = vor.u32 %v2175_v24, %v2174_v1  ;;  %v2179_v2 = vrot.slane %v2174_v1, 4  ;;  %v963_v24 = vadd.f32 %v7211_v63, %v7144_v11 }
  0xf6   : > { %6383 = vmatmul.msk.bf16.gmra.mxu2 %vm816_vm8, %v1734_v52  ;;  %v1558_v52 = vshll.u32 %v1288_v20, 16  ;;  %v2178_v25 = vsel %vm6816_vm9, %v6400_v60, %v2177_v51  ;;  %v1568_v51 = vshll.u32 %v1289_v28, 16 }
  0xf7   : > { %v7231_v9 = vpop.f32.mrf.mxu0  ;;  %v7233_v10 = vpop.f32.mrf.mxu3 }
  0xf8   : > { %8809 = vst [vmem:[#allocation8_spill] sm:$0xff] %v7233_v10  ;;  %v1147_v23 = vpop.f32.mrf.mxu1  ;;  %v1562_v10 = vshrl.u32 %v1288_v20, 16  ;;  %v1952_v20 = vld [vmem:[#allocation2 + $0xb8] sm:$0xf] }
  0xf9   : > { %v1808_v38 = vpop.f32.mrf.mxu2  ;;  %v1226_v39 = vadd.f32 %v1147_v23, %v962_v7  ;;  %v2203_v42 = vshrl.u32 %v1952_v20, 16  ;;  %v2339_v23 = vunpack.c.l.b16 %v2178_v25  ;;  %v2189_v7 = vshrl.u32 %v1950_v17, 16 }
  0xfa   : > { %v1888_v36 = vadd.f32 %v1808_v38, %v1225_v47  ;;  %v1560_v47 = vrot.slane %v1558_v52, 5  ;;  %v1564_v18 = vrot.slane %v1562_v10, 4  ;;  %v2187_v10 = vsel %vm6816_vm9, %v2179_v2, %v2186_v0 }
  0xfb   : > { %v1555_v52 = vor.u32 %v1554_v27, %v1551_v33  ;;  %v2340_v54 = vunpack.c.l.b16 %v2187_v10  ;;  %v2196_v2 = vrot.slane %v2194_v6, 7  ;;  %v2197_v0 = vshll.u32 %v1951_v16, 16 }
  0xfc   : > { %6415 = vmatmul.msk.bf16.gmra.mxu3 %vm816_vm8, %v2361_v22  ;;  %v1565_v60 = vor.u32 %v1564_v18, %v1560_v47  ;;  %v1570_v33 = vrot.slane %v1568_v51, 5  ;;  %v6401_v10 = vrot.slane %v2189_v7, 11  ;;  %v964_v17 = vadd.f32 %v7211_v63, %v7159_v58  ;;  %v6665_v7 = vld [vmem:[#allocation2 + $0xa4] sm:$0xff] }
  0xfd   : > { %v1556_v55 = vrot.slane %v1555_v52, 4  ;;  %v2362_v28 = vpack.c.b16 %v2340_v54, %v2339_v23  ;;  %v2201_v16 = vrot.slane %v2196_v2, 4  ;;  %v278_v54 = vld [vmem:[#allocation2 + $0xcc] sm:$0x1] }
  0xfe   : > { %v1566_v27 = vrot.slane %v1565_v60, 4 }
  0xff   : > { %v2696_v22 = vpop.f32.mrf.mxu0  ;;  %v2439_v1 = vpop.f32.mrf.mxu3  ;;  %v1561_v25 = vsel %vm7009_vm14, %v1556_v55, %v1560_v47  ;;  %v6681_v55 = vld [vmem:[#allocation2 + $0xa4] sm:$0xff] }
 0x100   : > { %v2519_v38 = vadd.f32 %v2439_v1, %v1888_v36  ;;  %v1150_v35 = vpop.f32.mrf.mxu1  ;;  %v1714_v47 = vunpack.c.l.b16 %v1561_v25 }
 0x101   : > { %v1810_v48 = vpop.f32.mrf.mxu2  ;;  %v1227_v49 = vadd.f32 %v1150_v35, %v963_v24  ;;  %v2205_v24 = vrot.slane %v2203_v42, 7 }
 0x102   : > { %6495 = vmatmul.msk.bf16.gmra.mxu0 %vm816_vm8, %v6680_v43  ;;  %v1889_v11 = vadd.f32 %v1810_v48, %v1226_v39  ;;  %v7252_v36 = vadd.f32 %v2696_v22, %v2519_v38  ;;  %v2206_v43 = vshll.u32 %v1952_v20, 16  ;;  %v1291_v22 = vld [vmem:[#allocation2 + $0xb8] sm:$0xf]  ;;  %v2199_v48 = vor.u32 %v2197_v0, %v2196_v2 }
 0x103   : > { %6364 = vmatmul.msk.bf16.gmra.mxu1 %vm816_vm8, %v6664_v8  ;;  %v1290_v8 = vld [vmem:[#allocation2 + $0xb4] sm:$0xf]  ;;  %v1582_v60 = vshll.u32 %v1291_v22, 16  ;;  %v1586_v51 = vshrl.u32 %v1291_v22, 16  ;;  %v1292_v22 = vld [vmem:[#allocation2 + $0xbc] sm:$0x1] }
 0x104   : > { %v2208_v42 = vor.u32 %v2206_v43, %v2205_v24  ;;  %v1573_v20 = vshrl.u32 %v1290_v8, 16  ;;  %v1576_v6 = vshll.u32 %v1290_v8, 16  ;;  %v2200_v2 = vsel %vm6816_vm9, %v6401_v10, %v2199_v48 }
 0x105   : > { %v1588_v8 = vrot.slane %v1586_v51, 4 }
 0x106   : > { %6384 = vmatmul.msk.bf16.gmra.mxu2 %vm816_vm8, %v1735_v40  ;;  %v1571_v40 = vsel %vm7009_vm14, %v1566_v27, %v1570_v33  ;;  %v2209_v0 = vsel %vm6816_vm9, %v2201_v16, %v2208_v42  ;;  %v1954_v27 = vld [vmem:[#allocation2 + $0xc4] sm:$0xf]  ;;  %v279_v33 = vsel %vm6983_vm11, 0, %v278_v54  ;;  %v1575_v43 = vrot.slane %v1573_v20, 4 }
 0x107   : > { %v2698_v1 = vpop.f32.mrf.mxu0  ;;  %v2441_v39 = vpop.f32.mrf.mxu3  ;;  %v1715_v23 = vunpack.c.l.b16 %v1571_v40  ;;  %280 = vst [vmem:[#allocation2 + $0xcc] sm:$0x1] %v279_v33  ;;  %v2341_v16 = vunpack.c.l.b16 %v2200_v2  ;;  %v2342_v42 = vunpack.c.l.b16 %v2209_v0  ;;  %v2216_v20 = vshrl.u32 %v1954_v27, 16 }
 0x108   : > { %v2520_v18 = vadd.f32 %v2441_v39, %v1889_v11  ;;  %v1152_v35 = vpop.f32.mrf.mxu1  ;;  %v1584_v39 = vrot.slane %v1582_v60, 5  ;;  %v966_v54 = vadd.f32 %v7211_v63, %v7195_v26  ;;  %v2219_v2 = vshll.u32 %v1954_v27, 16 }
 0x109   : > { %v1813_v38 = vpop.f32.mrf.mxu2  ;;  %v1736_v48 = vpack.c.b16 %v1715_v23, %v1714_v47  ;;  %v2363_v47 = vpack.c.b16 %v2342_v42, %v2341_v16 }
 0x10a   : > { %v1890_v52 = vadd.f32 %v1813_v38, %v1227_v49  ;;  %v7259_v11 = vadd.f32 %v2698_v1, %v2520_v18  ;;  %v965_v49 = vadd.f32 %v7211_v63, %v7178_v41  ;;  %v1578_v1 = vrot.slane %v1576_v6, 5  ;;  %v1955_v38 = vld [vmem:[#allocation2 + $0xc8] sm:$0xf] }
 0x10b   : > { %v1228_v18 = vadd.f32 %v1152_v35, %v964_v17  ;;  %v1589_v51 = vor.u32 %v1588_v8, %v1584_v39  ;;  %v1953_v35 = vld [vmem:[#allocation2 + $0xc0] sm:$0x8]  ;;  %v2225_v17 = vshrl.u32 %v1955_v38, 16 }
 0x10c   : > { %6416 = vmatmul.msk.bf16.gmra.mxu3 %vm816_vm8, %v2362_v28  ;;  %v1579_v60 = vor.u32 %v1578_v1, %v1575_v43  ;;  %v2211_v23 = vshrl.u32 %v1953_v35, 16 }
 0x10d   : > { %v2227_v1 = vrot.slane %v2225_v17, 7 }
 0x10e   : > { %v6402_v42 = vrot.slane %v2211_v23, 11  ;;  %v6666_v23 = vld [vmem:[#allocation2 + $0xb4] sm:$0xff] }
 0x10f   : > { %v2701_v24 = vpop.f32.mrf.mxu0  ;;  %v2444_v58 = vpop.f32.mrf.mxu3 }
 0x110   : > { %v2521_v41 = vadd.f32 %v2444_v58, %v1890_v52  ;;  %v1155_v28 = vpop.f32.mrf.mxu1  ;;  %v1592_v52 = vshll.u32 %v1292_v22, 16  ;;  %v1590_v58 = vrot.slane %v1589_v51, 4 }
 0x111   : > { %v1815_v25 = vpop.f32.mrf.mxu2  ;;  %v1229_v10 = vadd.f32 %v1155_v28, %v965_v49  ;;  %v1293_v49 = vld [vmem:[#allocation2 + $0xc4] sm:$0xf] }
 0x112   : > { %6496 = vmatmul.msk.bf16.gmra.mxu0 %vm816_vm8, %v6681_v55  ;;  %v1891_v40 = vadd.f32 %v1815_v25, %v1228_v18  ;;  %v7274_v6 = vadd.f32 %v2701_v24, %v2521_v41  ;;  %v2218_v55 = vrot.slane %v2216_v20, 7  ;;  %v1580_v24 = vrot.slane %v1579_v60, 4 }
 0x113   : > { %6365 = vmatmul.msk.bf16.gmra.mxu1 %vm816_vm8, %v6665_v7  ;;  %v1294_v7 = vld [vmem:[#allocation2 + $0xc8] sm:$0xf]  ;;  %v1594_v43 = vrot.slane %v1592_v52, 5  ;;  %v2228_v18 = vshll.u32 %v1955_v38, 16  ;;  %v1597_v28 = vshrl.u32 %v1293_v49, 16  ;;  %v1600_v22 = vshll.u32 %v1293_v49, 16 }
 0x114   : > { %8810 = vst [vmem:[#allocation9_spill] sm:$0xff] %v7274_v6  ;;  %v1606_v6 = vshll.u32 %v1294_v7, 16  ;;  %v1585_v27 = vsel %vm7009_vm14, %v1580_v24, %v1584_v39  ;;  %v2221_v60 = vor.u32 %v2219_v2, %v2218_v55  ;;  %v2223_v38 = vrot.slane %v2218_v55, 4  ;;  %v6682_v49 = vld [vmem:[#allocation2 + $0xb4] sm:$0xff] }
 0x115   : > { %v1595_v20 = vsel %vm7009_vm14, %v1590_v58, %v1594_v43  ;;  %v1599_v52 = vrot.slane %v1597_v28, 4  ;;  %v1602_v35 = vrot.slane %v1600_v22, 5 }
 0x116   : > { %6385 = vmatmul.msk.bf16.gmra.mxu2 %vm816_vm8, %v1736_v48  ;;  %v1610_v48 = vshrl.u32 %v1294_v7, 16  ;;  %v7286_v17 = vrot.slane %v1606_v6, 5  ;;  %v1716_v7 = vunpack.c.l.b16 %v1585_v27  ;;  %v1717_v39 = vunpack.c.l.b16 %v1595_v20 }
 0x117   : > { %v2703_v0 = vpop.f32.mrf.mxu0  ;;  %v2446_v33 = vpop.f32.mrf.mxu3  ;;  %v2222_v6 = vsel %vm6816_vm9, %v6402_v42, %v2221_v60 }
 0x118   : > { %v2522_v8 = vadd.f32 %v2446_v33, %v1891_v40  ;;  %v1157_v41 = vpop.f32.mrf.mxu1  ;;  %v2230_v40 = vor.u32 %v2228_v18, %v2227_v1  ;;  %v1295_v33 = vld [vmem:[#allocation2 + $0xcc] sm:$0x1]  ;;  %v1603_v1 = vor.u32 %v1602_v35, %v1599_v52  ;;  %v2343_v42 = vunpack.c.l.b16 %v2222_v6 }
 0x119   : > { %v1818_v26 = vpop.f32.mrf.mxu2  ;;  %v1230_v25 = vadd.f32 %v1157_v41, %v966_v54  ;;  %v1612_v54 = vrot.slane %v1610_v48, 4  ;;  %v1616_v22 = vshll.u32 %v1295_v33, 16  ;;  %v1737_v48 = vpack.c.b16 %v1717_v39, %v1716_v7 }
 0x11a   : > { %v1892_v16 = vadd.f32 %v1818_v26, %v1229_v10  ;;  %v7283_v51 = vadd.f32 %v2703_v0, %v2522_v8  ;;  %v281_v10 = vld [vmem:[#allocation2 + $0xdc] sm:$0x1]  ;;  %v967_v0 = vadd.f32 %v7211_v63, %v7218_v29  ;;  %v2231_v43 = vsel %vm6816_vm9, %v2223_v38, %v2230_v40  ;;  %v1957_v8 = vld [vmem:[#allocation2 + $0xd4] sm:$0xf]  ;;  %v1958_v26 = vld [vmem:[#allocation2 + $0xd8] sm:$0xf] }
 0x11b   : > { %v282_v2 = vsel %vm6983_vm11, 0, %v281_v10  ;;  %v1613_v28 = vor.u32 %v1612_v54, %v7286_v17  ;;  %v2344_v27 = vunpack.c.l.b16 %v2231_v43  ;;  %v2238_v20 = vshrl.u32 %v1957_v8, 16  ;;  %v1956_v38 = vld [vmem:[#allocation2 + $0xd0] sm:$0x8]  ;;  %v1296_v10 = vld [vmem:[#allocation2 + $0xd4] sm:$0xf] }
 0x11c   : > { %6417 = vmatmul.msk.bf16.gmra.mxu3 %vm816_vm8, %v2363_v47  ;;  %283 = vst [vmem:[#allocation2 + $0xdc] sm:$0x1] %v282_v2  ;;  %v1604_v60 = vrot.slane %v1603_v1, 4  ;;  %v2247_v40 = vshrl.u32 %v1958_v26, 16  ;;  %v1618_v35 = vrot.slane %v1616_v22, 5  ;;  %v968_v54 = vadd.f32 %v7211_v63, %v7231_v9 }
 0x11d   : > { %v1614_v52 = vrot.slane %v1613_v28, 4  ;;  %v2233_v7 = vshrl.u32 %v1956_v38, 16  ;;  %v2240_v39 = vrot.slane %v2238_v20, 7  ;;  %v2241_v33 = vshll.u32 %v1957_v8, 16  ;;  %v1297_v2 = vld [vmem:[#allocation2 + $0xd8] sm:$0xf] }
 0x11e   : > { %v1621_v1 = vshrl.u32 %v1296_v10, 16  ;;  %v1630_v22 = vshll.u32 %v1297_v2, 16 }
 0x11f   : > { %v2706_v47 = vpop.f32.mrf.mxu0  ;;  %v2449_v55 = vpop.f32.mrf.mxu3  ;;  %v1619_v43 = vsel %vm7009_vm14, %v1614_v52, %v1618_v35  ;;  %v6403_v8 = vrot.slane %v2233_v7, 11  ;;  %v284_v52 = vld [vmem:[#allocation2 + $0xec] sm:$0x1]  ;;  %v6667_v35 = vld [vmem:[#allocation2 + $0xc4] sm:$0xff] }
 0x120   : > { %v2523_v24 = vadd.f32 %v2449_v55, %v1892_v16  ;;  %v1160_v58 = vpop.f32.mrf.mxu1  ;;  %v1609_v55 = vsel %vm7009_vm14, %v1604_v60, %v7286_v17  ;;  %v1719_v20 = vunpack.c.l.b16 %v1619_v43  ;;  %v1623_v38 = vrot.slane %v1621_v1, 4  ;;  %v1959_v1 = vld [vmem:[#allocation2 + $0xe0] sm:$0x8] }
 0x121   : > { %v1820_v41 = vpop.f32.mrf.mxu2  ;;  %v1231_v18 = vadd.f32 %v1160_v58, %v967_v0  ;;  %v2250_v58 = vshll.u32 %v1958_v26, 16  ;;  %v1718_v17 = vunpack.c.l.b16 %v1609_v55  ;;  %v2245_v26 = vrot.slane %v2240_v39, 4 }
 0x122   : > { %6497 = vmatmul.msk.bf16.gmra.mxu0 %vm816_vm8, %v6682_v49  ;;  %v1893_v29 = vadd.f32 %v1820_v41, %v1230_v25  ;;  %v7299_v16 = vadd.f32 %v2706_v47, %v2523_v24  ;;  %v2249_v24 = vrot.slane %v2247_v40, 7  ;;  %v1624_v41 = vshll.u32 %v1296_v10, 16 }
 0x123   : > { %6366 = vmatmul.msk.bf16.gmra.mxu1 %vm816_vm8, %v6666_v23  ;;  %v2364_v23 = vpack.c.b16 %v2344_v27, %v2343_v42  ;;  %v2243_v42 = vor.u32 %v2241_v33, %v2240_v39  ;;  %v6683_v27 = vld [vmem:[#allocation2 + $0xc4] sm:$0xff]  ;;  %v7312_v10 = vrot.slane %v1630_v22, 5 }
 0x124   : > { %8811 = vst [vmem:[#allocation10_spill] sm:$0xff] %v7299_v16  ;;  %v2252_v60 = vor.u32 %v2250_v58, %v2249_v24  ;;  %v1626_v40 = vrot.slane %v1624_v41, 5 }
 0x125   : > { %v2244_v55 = vsel %vm6816_vm9, %v6403_v8, %v2243_v42  ;;  %v1299_v8 = vld [vmem:[#allocation2 + $0xe4] sm:$0xf] }
 0x126   : > { %6386 = vmatmul.msk.bf16.gmra.mxu2 %vm816_vm8, %v1737_v48  ;;  %v1634_v48 = vshrl.u32 %v1297_v2, 16  ;;  %v1298_v2 = vld [vmem:[#allocation2 + $0xdc] sm:$0x1]  ;;  %v2253_v24 = vsel %vm6816_vm9, %v2245_v26, %v2252_v60  ;;  %v1627_v43 = vor.u32 %v1626_v40, %v1623_v38  ;;  %v2345_v42 = vunpack.c.l.b16 %v2244_v55  ;;  %v1300_v60 = vld [vmem:[#allocation2 + $0xe8] sm:$0xf] }
 0x127   : > { %v2708_v25 = vpop.f32.mrf.mxu0  ;;  %v2451_v49 = vpop.f32.mrf.mxu3  ;;  %v2255_v26 = vshrl.u32 %v1959_v1, 16 }
 0x128   : > { %v2524_v0 = vadd.f32 %v2451_v49, %v1893_v29  ;;  %v1162_v47 = vpop.f32.mrf.mxu1  ;;  %v1961_v49 = vld [vmem:[#allocation2 + $0xe8] sm:$0xf] }
 0x129   : > { %v1823_v6 = vpop.f32.mrf.mxu2  ;;  %v1232_v9 = vadd.f32 %v1162_v47, %v968_v54  ;;  %v1960_v54 = vld [vmem:[#allocation2 + $0xe4] sm:$0xf]  ;;  %v1738_v47 = vpack.c.b16 %v1719_v20, %v1718_v17  ;;  %v2269_v22 = vshrl.u32 %v1961_v49, 16  ;;  %v2346_v20 = vunpack.c.l.b16 %v2253_v24 }
 0x12a   : > { %v1894_v28 = vadd.f32 %v1823_v6, %v1231_v18  ;;  %v7309_v29 = vadd.f32 %v2708_v25, %v2524_v0  ;;  %v1636_v18 = vrot.slane %v1634_v48, 4  ;;  %v285_v25 = vsel %vm6983_vm11, 0, %v284_v52 }
 0x12b   : > { %286 = vst [vmem:[#allocation2 + $0xec] sm:$0x1] %v285_v25  ;;  %v2260_v41 = vshrl.u32 %v1960_v54, 16  ;;  %v1640_v48 = vshll.u32 %v1298_v2, 16  ;;  %v1628_v52 = vrot.slane %v1627_v43, 4  ;;  %v2263_v40 = vshll.u32 %v1960_v54, 16 }
 0x12c   : > { %8812 = vst [vmem:[#allocation11_spill] sm:$0xff] %v7309_v29  ;;  %6418 = vmatmul.msk.bf16.gmra.mxu3 %vm816_vm8, %v2364_v23  ;;  %v969_v23 = vadd.f32 %v7211_v63, %v7093_v3  ;;  %v2271_v25 = vrot.slane %v2269_v22, 7  ;;  %v1648_v2 = vshll.u32 %v1299_v8, 16  ;;  %v2365_v55 = vpack.c.b16 %v2346_v20, %v2345_v42 }
 0x12d   : > { %v2262_v38 = vrot.slane %v2260_v41, 7  ;;  %v1633_v54 = vsel %vm7009_vm14, %v1628_v52, %v7312_v10 }
 0x12f   : > { %v2711_v7 = vpop.f32.mrf.mxu0  ;;  %v2454_v33 = vpop.f32.mrf.mxu3  ;;  %v2265_v43 = vor.u32 %v2263_v40, %v2262_v38  ;;  %v2267_v1 = vrot.slane %v2262_v38, 4  ;;  %v287_v38 = vld [vmem:[#allocation2 + $0xfc] sm:$0x1]  ;;  %v233_v40 = vld [vmem:[#allocation2 + $0x100] sm:$0x8] }
 0x130   : > { %v2525_v39 = vadd.f32 %v2454_v33, %v1894_v28  ;;  %v1165_v0 = vpop.f32.mrf.mxu1  ;;  %v1637_v28 = vor.u32 %v1636_v18, %v7312_v10  ;;  %v327_v10 = vld [vmem:[%s6779_s19 + $0x7c] sm:$0xf] }
 0x131   : > { %v1825_v58 = vpop.f32.mrf.mxu2  ;;  %v1233_v6 = vadd.f32 %v1165_v0, %v969_v23  ;;  %v2272_v23 = vshll.u32 %v1961_v49, 16  ;;  %360 = vst.msk [vmem:[#allocation2 + $0x108] sm:$0xf] %vm172_vm5, %v327_v10 }
 0x132   : > { %6498 = vmatmul.msk.bf16.gmra.mxu0 %vm816_vm8, %v6683_v27  ;;  %v1895_v3 = vadd.f32 %v1825_v58, %v1232_v9  ;;  %v7325_v17 = vadd.f32 %v2711_v7, %v2525_v39  ;;  %v1638_v27 = vrot.slane %v1637_v28, 4  ;;  %v1642_v9 = vrot.slane %v1640_v48, 5  ;;  %v1301_v20 = vld [vmem:[#allocation2 + $0xec] sm:$0x1] }
 0x133   : > { %6367 = vmatmul.msk.bf16.gmra.mxu1 %vm816_vm8, %v6667_v35  ;;  %v1645_v35 = vshrl.u32 %v1299_v8, 16  ;;  %v1654_v7 = vshll.u32 %v1300_v60, 16  ;;  %v1658_v39 = vshrl.u32 %v1300_v60, 16  ;;  %v2274_v22 = vor.u32 %v2272_v23, %v2271_v25  ;;  %v326_v60 = vld [vmem:[%s6779_s19 + $0x78] sm:$0xf] }
 0x134   : > { %8813 = vst [vmem:[#allocation12_spill] sm:$0xff] %v7325_v17  ;;  %v1643_v41 = vsel %vm7009_vm14, %v1638_v27, %v1642_v9  ;;  %v1650_v48 = vrot.slane %v1648_v2, 5  ;;  %v971_v25 = vadd.f32 %v7211_v63, %v7120_v19  ;;  %v6684_v27 = vld [vmem:[#allocation2 + $0xd4] sm:$0xff]  ;;  %v4371_v17 = vld [vmem:[#allocation2 + $0x44] sm:$0xf] }
 0x135   : > { %v1647_v28 = vrot.slane %v1645_v35, 4  ;;  %v1660_v8 = vrot.slane %v1658_v39, 4  ;;  %v1721_v52 = vunpack.c.l.b16 %v1643_v41  ;;  %359 = vst.msk [vmem:[#allocation2 + $0x104] sm:$0xf] %vm172_vm5, %v326_v60  ;;  %v6668_v9 = vld [vmem:[#allocation2 + $0xd4] sm:$0xff]  ;;  %v288_v35 = vsel %vm6983_vm11, 0, %v287_v38 }
 0x136   : > { %6387 = vmatmul.msk.bf16.gmra.mxu2 %vm816_vm8, %v1738_v47  ;;  %v6404_v47 = vrot.slane %v2255_v26, 11  ;;  %v970_v26 = vadd.f32 %v7211_v63, %v7103_v53  ;;  %v234_v53 = vsel %vm6766_vm4, 0, %v233_v40  ;;  %v2275_v2 = vsel %vm6816_vm9, %v2267_v1, %v2274_v22  ;;  %289 = vst [vmem:[#allocation2 + $0xfc] sm:$0x1] %v288_v35 }
 0x137   : > { %v2713_v33 = vpop.f32.mrf.mxu0  ;;  %v2456_v18 = vpop.f32.mrf.mxu3  ;;  %v1664_v39 = vshll.u32 %v1301_v20, 16  ;;  %235 = vst [vmem:[#allocation2 + $0x100] sm:$0x8] %v234_v53  ;;  %v2348_v1 = vunpack.c.l.b16 %v2275_v2  ;;  %vm6115_vm5 = vcmask 1045509  }
 0x138   : > { %v2526_v0 = vadd.f32 %v2456_v18, %v1895_v3  ;;  %v1167_v24 = vpop.f32.mrf.mxu1  ;;  %v7333_v3 = vrot.slane %v1654_v7, 5  ;;  %v2266_v23 = vsel %vm6816_vm9, %v6404_v47, %v2265_v43  ;;  %v1651_v7 = vor.u32 %v1650_v48, %v1647_v28  ;;  %v1964_v47 = vld [vmem:[#allocation2 + $0xf8] sm:$0xf] }
 0x139   : > { %v1828_v58 = vpop.f32.mrf.mxu2  ;;  %v2347_v10 = vunpack.c.l.b16 %v2266_v23  ;;  %v2291_v20 = vshrl.u32 %v1964_v47, 16 }
 0x13a   : > { %v1896_v49 = vadd.f32 %v1828_v58, %v1233_v6  ;;  %v7335_v42 = vadd.f32 %v2713_v33, %v2526_v0  ;;  %v1720_v6 = vunpack.c.l.b16 %v1633_v54  ;;  %v1661_v19 = vor.u32 %v1660_v8, %v7333_v3  ;;  %v1963_v0 = vld [vmem:[#allocation2 + $0xf4] sm:$0xf] }
 0x13b   : > { %v1234_v58 = vadd.f32 %v1167_v24, %v970_v26  ;;  %v2282_v22 = vshrl.u32 %v1963_v0, 16  ;;  %v1652_v48 = vrot.slane %v1651_v7, 4  ;;  %v1962_v24 = vld [vmem:[#allocation2 + $0xf0] sm:$0x8]  ;;  %v1302_v26 = vld [vmem:[#allocation2 + $0xf4] sm:$0xf]  ;;  %v2366_v40 = vpack.c.b16 %v2348_v1, %v2347_v10 }
 0x13c   : > { %8814 = vst [vmem:[#allocation13_spill] sm:$0xff] %v7335_v42  ;;  %6419 = vmatmul.msk.bf16.gmra.mxu3 %vm816_vm8, %v2365_v55  ;;  %v1739_v60 = vpack.c.b16 %v1721_v52, %v1720_v6  ;;  %v1662_v8 = vrot.slane %v1661_v19, 4  ;;  %v2277_v6 = vshrl.u32 %v1962_v24, 16  ;;  %v2285_v53 = vshll.u32 %v1963_v0, 16 }
 0x13d   : > { %v2284_v52 = vrot.slane %v2282_v22, 7  ;;  %v2294_v7 = vshll.u32 %v1964_v47, 16  ;;  %v1669_v19 = vshrl.u32 %v1302_v26, 16  ;;  %v6669_v47 = vld [vmem:[#allocation2 + $0xe4] sm:$0xff] }
 0x13e   : > { %v6405_v1 = vrot.slane %v2277_v6, 11 }
 0x13f   : > { %v2716_v33 = vpop.f32.mrf.mxu0  ;;  %v2459_v18 = vpop.f32.mrf.mxu3  ;;  %v2287_v22 = vor.u32 %v2285_v53, %v2284_v52  ;;  %v2289_v0 = vrot.slane %v2284_v52, 4  ;;  %v7385_v52 = vadd.f32 %v7211_v63, %v7115_v5  ;;  %v1965_v53 = vld [vmem:[#allocation2 + $0x100] sm:$0x8] }
 0x140   : > { %v2527_v55 = vadd.f32 %v2459_v18, %v1896_v49  ;;  %v1170_v54 = vpop.f32.mrf.mxu1  ;;  %v1666_v49 = vrot.slane %v1664_v39, 5  ;;  %v1672_v39 = vshll.u32 %v1302_v26, 16  ;;  %v1304_v26 = vld [vmem:[#allocation2 + $0xfc] sm:$0x1] }
 0x141   : > { %v1830_v43 = vpop.f32.mrf.mxu2  ;;  %v1235_v41 = vadd.f32 %v1170_v54, %v971_v25  ;;  %v1303_v25 = vld [vmem:[#allocation2 + $0xf8] sm:$0xf] }
 0x142   : > { %6499 = vmatmul.msk.bf16.gmra.mxu0 %vm816_vm8, %v6684_v27  ;;  %v1897_v38 = vadd.f32 %v1830_v43, %v1234_v58  ;;  %v7357_v28 = vadd.f32 %v2716_v33, %v2527_v55  ;;  %v1667_v35 = vsel %vm7009_vm14, %v1662_v8, %v1666_v49  ;;  %v2293_v33 = vrot.slane %v2291_v20, 7  ;;  %v6685_v49 = vld [vmem:[#allocation2 + $0xe4] sm:$0xff] }
 0x143   : > { %6368 = vmatmul.msk.bf16.gmra.mxu1 %vm816_vm8, %v6668_v9  ;;  %v1657_v9 = vsel %vm7009_vm14, %v1652_v48, %v7333_v3  ;;  %v1678_v58 = vshll.u32 %v1303_v25, 16  ;;  %v1682_v43 = vshrl.u32 %v1303_v25, 16  ;;  %v1723_v10 = vunpack.c.l.b16 %v1667_v35  ;;  %v7369_v3 = vld [vmem:[#allocation2 + $0x104] sm:$0xf]  ;;  %v7380_v25 = vld [vmem:[#allocation2 + $0x108] sm:$0xf] }
 0x144   : > { %8815 = vst [vmem:[#allocation14_spill] sm:$0xff] %v7357_v28  ;;  %v2296_v48 = vor.u32 %v2294_v7, %v2293_v33  ;;  %v1674_v8 = vrot.slane %v1672_v39, 5  ;;  %v972_v20 = vadd.f32 %v7211_v63, %v7139_v57  ;;  %v2288_v57 = vsel %vm6816_vm9, %v6405_v1, %v2287_v22  ;;  %v2808_v1 = vld [vmem:[#allocation2 + $0x14] sm:$0xf]  ;;  %v2809_v22 = vld [vmem:[#allocation2 + $0x18] sm:$0xf] }
 0x145   : > { %v7372_v24 = vrot.slane %v1678_v58, 5  ;;  %v1684_v6 = vrot.slane %v1682_v43, 4  ;;  %v1688_v43 = vshll.u32 %v1304_v26, 16  ;;  %v2313_v4 = vshrl.u32 %v7380_v25, 16 }
 0x146   : > { %6388 = vmatmul.msk.bf16.gmra.mxu2 %vm816_vm8, %v1739_v60  ;;  %v1722_v60 = vunpack.c.l.b16 %v1657_v9  ;;  %v2297_v39 = vsel %vm6816_vm9, %v2289_v0, %v2296_v48  ;;  %v2857_v0 = vshrl.u32 %v2808_v1, 16  ;;  %v2860_v48 = vshll.u32 %v2808_v1, 16 }
 0x147   : > { %v7360_v27 = vpop.f32.mrf.mxu0  ;;  %v2461_v23 = vpop.f32.mrf.mxu3  ;;  %v2350_v26 = vunpack.c.l.b16 %v2297_v39  ;;  %v2316_v1 = vshll.u32 %v7380_v25, 16 }
 0x148   : > { %v7367_v18 = vadd.f32 %v2461_v23, %v1897_v38  ;;  %v1172_v2 = vpop.f32.mrf.mxu1  ;;  %v1671_v38 = vrot.slane %v1669_v19, 4  ;;  %v973_v23 = vadd.f32 %v7211_v63, %v7152_v32  ;;  %v1740_v35 = vpack.c.b16 %v1723_v10, %v1722_v60 }
 0x149   : > { %v1833_v55 = vpop.f32.mrf.mxu2  ;;  %v1236_v7 = vadd.f32 %v1172_v2, %v972_v20  ;;  %v2307_v32 = vshll.u32 %v7369_v3, 16  ;;  %v2299_v2 = vshrl.u32 %v1965_v53, 16  ;;  %v2349_v20 = vunpack.c.l.b16 %v2288_v57 }
 0x14a   : > { %v1898_v54 = vadd.f32 %v1833_v55, %v1235_v41  ;;  %v7376_v41 = vadd.f32 %v7211_v63, %v7101_v50  ;;  %v1675_v5 = vor.u32 %v1674_v8, %v1671_v38  ;;  %v2866_v38 = vshll.u32 %v2809_v22, 16 }
 0x14b   : > { %v2870_v8 = vshrl.u32 %v2809_v22, 16  ;;  %v2810_v22 = vld [vmem:[#allocation2 + $0x1c] sm:$0x1]  ;;  %v6406_v57 = vrot.slane %v2299_v2, 11 }
 0x14c   : > { %6420 = vmatmul.msk.bf16.gmra.mxu3 %vm816_vm8, %v2366_v40  ;;  %v2304_v40 = vshrl.u32 %v7369_v3, 16  ;;  %v974_v3 = vadd.f32 %v7211_v63, %v7171_v15  ;;  %v2876_v42 = vshll.u32 %v2810_v22, 16 }
 0x14e   : > { %v7402_v10 = vrot.slane %v2304_v40, 7  ;;  %v3478_v40 = vld [vmem:[#allocation2 + $0x28] sm:$0xf] }
 0x14f   : > { %v7389_v9 = vpop.f32.mrf.mxu0  ;;  %v2464_v50 = vpop.f32.mrf.mxu3 }
 0x150   : > { %v7393_v33 = vadd.f32 %v2464_v50, %v1898_v54  ;;  %v1175_v19 = vpop.f32.mrf.mxu1  ;;  %v1685_v54 = vor.u32 %v1684_v6, %v7372_v24  ;;  %v2859_v50 = vrot.slane %v2857_v0, 4  ;;  %v2872_v6 = vrot.slane %v2870_v8, 4  ;;  %v3476_v0 = vld [vmem:[#allocation2 + $0x20] sm:$0x8] }
 0x151   : > { %v1835_v55 = vpop.f32.mrf.mxu2  ;;  %v1237_v58 = vadd.f32 %v1175_v19, %v973_v23  ;;  %v3477_v23 = vld [vmem:[#allocation2 + $0x24] sm:$0xf]  ;;  %v1690_v19 = vrot.slane %v1688_v43, 5  ;;  %v2309_v39 = vor.u32 %v2307_v32, %v7402_v10  ;;  %v2367_v8 = vpack.c.b16 %v2350_v26, %v2349_v20 }
 0x152   : > { %6500 = vmatmul.msk.bf16.gmra.mxu0 %vm816_vm8, %v6685_v49  ;;  %v1899_v60 = vadd.f32 %v1835_v55, %v1236_v7  ;;  %v1676_v49 = vrot.slane %v1675_v5, 4  ;;  %v7406_v7 = vrot.slane %v2866_v38, 5  ;;  %v1686_v53 = vrot.slane %v1685_v54, 4  ;;  %v4365_v32 = vld [vmem:[#allocation2 + $0x24] sm:$0xf] }
 0x153   : > { %6369 = vmatmul.msk.bf16.gmra.mxu1 %vm816_vm8, %v6669_v47  ;;  %v2862_v47 = vrot.slane %v2860_v48, 5  ;;  %v2315_v55 = vrot.slane %v2313_v4, 7  ;;  %v3530_v48 = vshrl.u32 %v3477_v23, 16  ;;  %v3539_v43 = vshrl.u32 %v3478_v40, 16 }
 0x154   : > { %v1681_v25 = vsel %vm7009_vm14, %v1676_v49, %v7372_v24  ;;  %v2873_v2 = vor.u32 %v2872_v6, %v7406_v7  ;;  %v3525_v20 = vshrl.u32 %v3476_v0, 16  ;;  %v3542_v24 = vshll.u32 %v3478_v40, 16 }
 0x155   : > { %v2863_v5 = vor.u32 %v2862_v47, %v2859_v50  ;;  %v2318_v47 = vor.u32 %v2316_v1, %v2315_v55  ;;  %v4414_v49 = vshrl.u32 %v4365_v32, 16  ;;  %v4417_v6 = vshll.u32 %v4365_v32, 16  ;;  %v6670_v55 = vld [vmem:[#allocation2 + $0xf4] sm:$0xff] }
 0x156   : > { %6389 = vmatmul.msk.bf16.gmra.mxu2 %vm816_vm8, %v1740_v35  ;;  %v2311_v35 = vrot.slane %v7402_v10, 4  ;;  %v2310_v10 = vsel %vm6816_vm9, %v6406_v57, %v2309_v39  ;;  %v1724_v22 = vunpack.c.l.b16 %v1681_v25 }
 0x157   : > { %v7410_v30 = vpop.f32.mrf.mxu0  ;;  %v2466_v15 = vpop.f32.mrf.mxu3  ;;  %v2864_v26 = vrot.slane %v2863_v5, 4  ;;  %v2351_v39 = vunpack.c.l.b16 %v2310_v10  ;;  %v4366_v5 = vld [vmem:[#allocation2 + $0x28] sm:$0xf]  ;;  %v4416_v25 = vrot.slane %v4414_v49, 4 }
 0x158   : > { %v7413_v38 = vadd.f32 %v2466_v15, %v1899_v60  ;;  %v1177_v28 = vpop.f32.mrf.mxu1  ;;  %v1691_v60 = vsel %vm7009_vm14, %v1686_v53, %v1690_v19  ;;  %v3532_v15 = vrot.slane %v3530_v48, 7  ;;  %v2878_v53 = vrot.slane %v2876_v42, 5  ;;  %v6686_v19 = vld [vmem:[#allocation2 + $0xf4] sm:$0xff] }
 0x159   : > { %v1838_v4 = vpop.f32.mrf.mxu2  ;;  %v1238_v54 = vadd.f32 %v1177_v28, %v974_v3  ;;  %v3533_v28 = vshll.u32 %v3477_v23, 16  ;;  %v3541_v3 = vrot.slane %v3539_v43, 7  ;;  %v1725_v1 = vunpack.c.l.b16 %v1691_v60 }
 0x15a   : > { %v1900_v50 = vadd.f32 %v1838_v4, %v1237_v58  ;;  %v975_v58 = vadd.f32 %v7211_v63, %v7191_v62  ;;  %v2874_v4 = vrot.slane %v2873_v2, 4  ;;  %v2319_v57 = vsel %vm6816_vm9, %v2311_v35, %v2318_v47 }
 0x15b   : > { %v6523_v23 = vrot.slane %v3525_v20, 11  ;;  %v2869_v48 = vsel %vm7009_vm14, %v2864_v26, %v7406_v7  ;;  %v3535_v62 = vor.u32 %v3533_v28, %v3532_v15  ;;  %v3537_v63 = vrot.slane %v3532_v15, 4  ;;  %v2811_v26 = vld [vmem:[#allocation2 + $0x24] sm:$0xf]  ;;  %v2812_v15 = vld [vmem:[#allocation2 + $0x28] sm:$0xf] }
 0x15c   : > { %6421 = vmatmul.msk.bf16.gmra.mxu3 %vm816_vm8, %v2367_v8  ;;  %v7436_v42 = vadd.f32 %v7360_v27, %v7367_v18  ;;  %v3544_v35 = vor.u32 %v3542_v24, %v3541_v3  ;;  %v4419_v2 = vrot.slane %v4417_v6, 5  ;;  %v2879_v47 = vsel %vm7009_vm14, %v2874_v4, %v2878_v53  ;;  %v4367_v28 = vld [vmem:[#allocation2 + $0x2c] sm:$0x1] }
 0x15d   : > { %v4423_v20 = vshll.u32 %v4366_v5, 16  ;;  %v4427_v10 = vshrl.u32 %v4366_v5, 16  ;;  %v1741_v27 = vpack.c.b16 %v1725_v1, %v1724_v22  ;;  %v2352_v18 = vunpack.c.l.b16 %v2319_v57  ;;  %v3480_v22 = vld [vmem:[#allocation2 + $0x34] sm:$0xf] }
 0x15e   : > { %8816 = vst [vmem:[#allocation15_spill] sm:$0xff] %v7436_v42  ;;  %v2881_v3 = vshrl.u32 %v2811_v26, 16  ;;  %v2884_v24 = vshll.u32 %v2811_v26, 16  ;;  %v2890_v49 = vshll.u32 %v2812_v15, 16  ;;  %v2894_v6 = vshrl.u32 %v2812_v15, 16 }
 0x15f   : > { %v7429_v0 = vpop.f32.mrf.mxu0  ;;  %v2469_v40 = vpop.f32.mrf.mxu3  ;;  %v3536_v4 = vsel %vm6816_vm9, %v6523_v23, %v3535_v62  ;;  %v4420_v53 = vor.u32 %v4419_v2, %v4416_v25  ;;  %v4433_v5 = vshll.u32 %v4367_v28, 16  ;;  %v7464_v23 = vld [vmem:[%s8791_s2] ss:$0 sm:$0xff]  ;;  %v2368_v2 = vpack.c.b16 %v2352_v18, %v2351_v39  ;;  %v3479_v26 = vld [vmem:[#allocation2 + $0x30] sm:$0x8] }
 0x160   : > { %v7438_v8 = vadd.f32 %v2469_v40, %v1900_v50  ;;  %v1180_v43 = vpop.f32.mrf.mxu1  ;;  %v7444_v50 = vunpack.c.l.b16 %v2869_v48  ;;  %v2883_v1 = vrot.slane %v2881_v3, 4  ;;  %v2886_v57 = vrot.slane %v2884_v24, 5  ;;  %v3481_v15 = vld [vmem:[#allocation2 + $0x38] sm:$0xf]  ;;  %v4368_v39 = vld [vmem:[#allocation2 + $0x34] sm:$0xf] }
 0x161   : > { %v1840_v32 = vpop.f32.mrf.mxu2  ;;  %v1239_v60 = vadd.f32 %v1180_v43, %v975_v58  ;;  %v7446_v58 = vunpack.c.l.b16 %v2879_v47  ;;  %v7455_v40 = vrot.slane %v2890_v49, 5  ;;  %v2896_v48 = vrot.slane %v2894_v6, 4 }
 0x162   : > { %6501 = vmatmul.msk.bf16.gmra.mxu0 %vm816_vm8, %v6686_v19  ;;  %v1901_v7 = vadd.f32 %v1840_v32, %v1238_v54  ;;  %v3545_v54 = vsel %vm6816_vm9, %v3537_v63, %v3544_v35  ;;  %v7452_v19 = vrot.slane %v4423_v20, 5  ;;  %v7459_v43 = vadd.f32 %v7389_v9, %v7393_v33  ;;  %v2813_v32 = vld [vmem:[#allocation2 + $0x2c] sm:$0x1] }
 0x163   : > { %6370 = vmatmul.msk.bf16.gmra.mxu1 %vm816_vm8, %v6670_v55  ;;  %v4429_v55 = vrot.slane %v4427_v10, 4  ;;  %v7468_v62 = vadd.f32 %v7464_v23, %v7118_v14  ;;  %v976_v63 = vadd.f32 %v7464_v23, %v7200_v34  ;;  %v3552_v47 = vshrl.u32 %v3480_v22, 16 }
 0x164   : > { %8817 = vst [vmem:[#allocation16_spill] sm:$0xff] %v7459_v43  ;;  %v3877_v20 = vunpack.c.l.b16 %v3536_v4  ;;  %v3878_v10 = vunpack.c.l.b16 %v3545_v54  ;;  %v3274_v34 = vpack.c.b16 %v7446_v58, %v7444_v50  ;;  %v2887_v24 = vor.u32 %v2886_v57, %v2883_v1  ;;  %v4369_v43 = vld [vmem:[#allocation2 + $0x38] sm:$0xf] }
 0x165   : > { %v4430_v3 = vor.u32 %v4429_v55, %v7452_v19  ;;  %v7481_v49 = vrot.slane %v4433_v5, 5  ;;  %v2900_v6 = vshll.u32 %v2813_v32, 16  ;;  %v3547_v4 = vshrl.u32 %v3479_v26, 16 }
 0x166   : > { %6390 = vmatmul.msk.bf16.gmra.mxu2 %vm816_vm8, %v1741_v27  ;;  %v7476_v27 = vrot.slane %v4420_v53, 4  ;;  %v3554_v54 = vrot.slane %v3552_v47, 7  ;;  %v3555_v53 = vshll.u32 %v3480_v22, 16  ;;  %v3564_v58 = vshll.u32 %v3481_v15, 16 }
 0x167   : > { %v7472_v35 = vpop.f32.mrf.mxu0  ;;  %v2471_v25 = vpop.f32.mrf.mxu3  ;;  %v4431_v55 = vrot.slane %v4430_v3, 4  ;;  %v2888_v1 = vrot.slane %v2887_v24, 4  ;;  %v4441_v5 = vshll.u32 %v4368_v39, 16  ;;  %v2902_v47 = vrot.slane %v2900_v6, 5 }
 0x168   : > { %v7474_v9 = vadd.f32 %v2471_v25, %v1901_v7  ;;  %v1182_v33 = vpop.f32.mrf.mxu1  ;;  %v2897_v7 = vor.u32 %v2896_v48, %v7455_v40  ;;  %v3561_v25 = vshrl.u32 %v3481_v15, 16  ;;  %v4426_v50 = vsel %vm7009_vm14, %v7476_v27, %v7452_v19  ;;  %v6687_v48 = vld [vmem:[#allocation2 + $0x104] sm:$0xff] }
 0x169   : > { %v1843_v14 = vpop.f32.mrf.mxu2  ;;  %v1240_v28 = vadd.f32 %v1182_v33, %v976_v63  ;;  %v3909_v63 = vpack.c.b16 %v3878_v10, %v3877_v20  ;;  %v4447_v22 = vshll.u32 %v4369_v43, 16  ;;  %v4451_v33 = vshrl.u32 %v4369_v43, 16 }
 0x16a   : > { %v1902_v18 = vadd.f32 %v1843_v14, %v1239_v60  ;;  %v4438_v60 = vshrl.u32 %v4368_v39, 16  ;;  %v3563_v57 = vrot.slane %v3561_v25, 7  ;;  %v2898_v32 = vrot.slane %v2897_v7, 4  ;;  %v2815_v25 = vld [vmem:[#allocation2 + $0x38] sm:$0xf] }
 0x16b   : > { %v6524_v20 = vrot.slane %v3547_v4, 11  ;;  %v3557_v10 = vor.u32 %v3555_v53, %v3554_v54  ;;  %v3559_v14 = vrot.slane %v3554_v54, 4  ;;  %v7493_v19 = vadd.f32 %v7410_v30, %v7413_v38  ;;  %v4370_v4 = vld [vmem:[#allocation2 + $0x3c] sm:$0x1] }
 0x16c   : > { %6422 = vmatmul.msk.bf16.gmra.mxu3 %vm816_vm8, %v2368_v2  ;;  %v3566_v3 = vor.u32 %v3564_v58, %v3563_v57  ;;  %v4440_v24 = vrot.slane %v4438_v60, 4  ;;  %v4443_v39 = vrot.slane %v4441_v5, 5  ;;  %v4436_v43 = vsel %vm7009_vm14, %v4431_v55, %v7481_v49 }
 0x16d   : > { %8818 = vst [vmem:[#allocation17_spill] sm:$0xff] %v7493_v19  ;;  %v7501_v53 = vrot.slane %v4447_v22, 5  ;;  %v4453_v54 = vrot.slane %v4451_v33, 4  ;;  %v2893_v38 = vsel %vm7009_vm14, %v2888_v1, %v7455_v40  ;;  %v3558_v49 = vsel %vm6816_vm9, %v6524_v20, %v3557_v10  ;;  %v3482_v10 = vld [vmem:[#allocation2 + $0x40] sm:$0x8] }
 0x16e   : > { %v2914_v55 = vshll.u32 %v2815_v25, 16  ;;  %v4444_v57 = vor.u32 %v4443_v39, %v4440_v24  ;;  %v2918_v5 = vshrl.u32 %v2815_v25, 16  ;;  %v7520_v33 = vunpack.c.l.b16 %v4426_v50  ;;  %v3484_v50 = vld [vmem:[#allocation2 + $0x48] sm:$0xf] }
 0x16f   : > { %v7489_v26 = vpop.f32.mrf.mxu0  ;;  %v2474_v2 = vpop.f32.mrf.mxu3  ;;  %v4454_v40 = vor.u32 %v4453_v54, %v7501_v53  ;;  %v4799_v24 = vunpack.c.l.b16 %v4436_v43  ;;  %v3244_v39 = vunpack.c.l.b16 %v2893_v38  ;;  %v3569_v42 = vshrl.u32 %v3482_v10, 16 }
 0x170   : > { %v7495_v27 = vadd.f32 %v2474_v2, %v1902_v18  ;;  %v1185_v15 = vpop.f32.mrf.mxu1  ;;  %v2814_v18 = vld [vmem:[#allocation2 + $0x34] sm:$0xf]  ;;  %v2816_v2 = vld [vmem:[#allocation2 + $0x3c] sm:$0x1]  ;;  %v2920_v20 = vrot.slane %v2918_v5, 4 }
 0x171   : > { %v1845_v7 = vpop.f32.mrf.mxu2  ;;  %v1241_v6 = vadd.f32 %v1185_v15, %v7376_v41  ;;  %v2903_v41 = vsel %vm7009_vm14, %v2898_v32, %v2902_v47  ;;  %v2905_v58 = vshrl.u32 %v2814_v18, 16  ;;  %v2908_v60 = vshll.u32 %v2814_v18, 16  ;;  %v6689_v18 = vld [vmem:[#allocation2 + $0x24] sm:$0xff] }
 0x172   : > { %6502 = vmatmul.msk.bf16.gmra.mxu0 %vm816_vm8, %v6687_v48  ;;  %v1903_v30 = vadd.f32 %v1845_v7, %v1240_v28  ;;  %v3567_v28 = vsel %vm6816_vm9, %v3559_v14, %v3566_v3  ;;  %v3483_v48 = vld [vmem:[#allocation2 + $0x44] sm:$0xf]  ;;  %v7515_v32 = vrot.slane %v2914_v55, 5  ;;  %v979_v47 = vadd.f32 %v7464_v23, %v7137_v56 }
 0x173   : > { %6507 = vmatmul.msk.bf16.vlgmr.msra.gmra.mxu1 %vm816_vm8, %v3274_v34  ;;  %v4457_v34 = vshll.u32 %v4370_v4, 16  ;;  %v2907_v1 = vrot.slane %v2905_v58, 4  ;;  %v2910_v22 = vrot.slane %v2908_v60, 5  ;;  %v3574_v14 = vshrl.u32 %v3483_v48, 16 }
 0x174   : > { %v3245_v7 = vunpack.c.l.b16 %v2903_v41  ;;  %v3879_v4 = vunpack.c.l.b16 %v3558_v49  ;;  %v3880_v56 = vunpack.c.l.b16 %v3567_v28  ;;  %v4445_v58 = vrot.slane %v4444_v57, 4 }
 0x175   : > { %v4455_v55 = vrot.slane %v4454_v40, 4  ;;  %v2911_v5 = vor.u32 %v2910_v22, %v2907_v1  ;;  %v2924_v19 = vshll.u32 %v2816_v2, 16  ;;  %v2921_v43 = vor.u32 %v2920_v20, %v7515_v32 }
 0x176   : > { %6539 = vmatmul.msk.bf16.vlgmr.msra.gmra.mxu2 %vm816_vm8, %v3909_v63  ;;  %v4459_v63 = vrot.slane %v4457_v34, 5  ;;  %v7527_v38 = vrot.slane %v3574_v14, 7  ;;  %v3577_v41 = vshll.u32 %v3483_v48, 16  ;;  %v7535_v49 = vadd.f32 %v7464_v23, %v7169_v13  ;;  %v4372_v13 = vld [vmem:[#allocation2 + $0x48] sm:$0xf] }
 0x177   : > { %v7522_v15 = vpop.f32.mrf.mxu0  ;;  %v2476_v3 = vpop.f32.mrf.mxu3  ;;  %v4830_v28 = vpack.c.b16 %v4799_v24, %v7520_v33  ;;  %v3583_v57 = vshrl.u32 %v3484_v50, 16  ;;  %v3275_v34 = vpack.c.b16 %v3245_v7, %v3244_v39  ;;  %v4450_v40 = vsel %vm7009_vm14, %v4445_v58, %v7501_v53 }
 0x178   : > { %v7524_v54 = vadd.f32 %v2476_v3, %v1903_v30  ;;  %v1187_v25 = vpop.f32.mrf.mxu1  ;;  %v7531_v30 = vadd.f32 %v7464_v23, %v7150_v31  ;;  %v4462_v48 = vshrl.u32 %v4371_v17, 16  ;;  %v4460_v31 = vsel %vm7009_vm14, %v4455_v55, %v4459_v63  ;;  %v2818_v55 = vld [vmem:[#allocation2 + $0x48] sm:$0xf] }
 0x179   : > { %v1848_v60 = vpop.f32.mrf.mxu2  ;;  %v1242_v1 = vadd.f32 %v1187_v25, %v7468_v62  ;;  %v2912_v22 = vrot.slane %v2911_v5, 4  ;;  %v4465_v2 = vshll.u32 %v4371_v17, 16  ;;  %v2922_v20 = vrot.slane %v2921_v43, 4  ;;  %v4373_v43 = vld [vmem:[#allocation2 + $0x4c] sm:$0x1] }
 0x17a   : > { %v1904_v29 = vadd.f32 %v1848_v60, %v1241_v6  ;;  %v3910_v6 = vpack.c.b16 %v3880_v56, %v3879_v4  ;;  %v2926_v33 = vrot.slane %v2924_v19, 5  ;;  %v6525_v10 = vrot.slane %v3569_v42, 11  ;;  %v2817_v60 = vld [vmem:[#allocation2 + $0x44] sm:$0xf] }
 0x17b   : > { %v3579_v14 = vor.u32 %v3577_v41, %v7527_v38  ;;  %v3585_v39 = vrot.slane %v3583_v57, 7  ;;  %v3586_v7 = vshll.u32 %v3484_v50, 16  ;;  %v4464_v53 = vrot.slane %v4462_v48, 4 }
 0x17c   : > { %6619 = vmatmul.msk.bf16.vlgmr.msra.gmra.mxu3 %vm816_vm8, %v6689_v18  ;;  %v7550_v62 = vadd.f32 %v7429_v0, %v7438_v8  ;;  %v4467_v25 = vrot.slane %v4465_v2, 5  ;;  %v4471_v17 = vshll.u32 %v4372_v13, 16  ;;  %v4475_v56 = vshrl.u32 %v4372_v13, 16 }
 0x17d   : > { %v7554_v58 = vunpack.c.l.b16 %v4450_v40  ;;  %v7556_v63 = vunpack.c.l.b16 %v4460_v31  ;;  %v2917_v50 = vsel %vm7009_vm14, %v2912_v22, %v7515_v32  ;;  %v3580_v8 = vsel %vm6816_vm9, %v6525_v10, %v3579_v14 }
 0x17e   : > { %8819 = vst [vmem:[#allocation18_spill] sm:$0xff] %v7550_v62  ;;  %v3588_v5 = vor.u32 %v3586_v7, %v3585_v39  ;;  %v2929_v41 = vshrl.u32 %v2817_v60, 16  ;;  %v2932_v57 = vshll.u32 %v2817_v60, 16  ;;  %v2938_v32 = vshll.u32 %v2818_v55, 16 }
 0x17f   : > { %v7546_v3 = vpop.f32.mrf.mxu0  ;;  %v2479_v24 = vpop.f32.mrf.mxu3  ;;  %v4468_v40 = vor.u32 %v4467_v25, %v4464_v53  ;;  %v4477_v48 = vrot.slane %v4475_v56, 4  ;;  %v7570_v31 = vunpack.c.l.b16 %v2917_v50  ;;  %v4831_v53 = vpack.c.b16 %v7556_v63, %v7554_v58 }
 0x180   : > { %v7552_v4 = vadd.f32 %v2479_v24, %v1904_v29  ;;  %v1190_v18 = vpop.f32.mrf.mxu1  ;;  %v2927_v29 = vsel %vm7009_vm14, %v2922_v20, %v2926_v33  ;;  %v2931_v13 = vrot.slane %v2929_v41, 4  ;;  %v2934_v2 = vrot.slane %v2932_v57, 5  ;;  %v2819_v33 = vld [vmem:[#allocation2 + $0x4c] sm:$0x1] }
 0x181   : > { %v1850_v19 = vpop.f32.mrf.mxu2  ;;  %v1243_v42 = vadd.f32 %v1190_v18, %v979_v47  ;;  %v3581_v47 = vrot.slane %v7527_v38, 4  ;;  %v7572_v22 = vunpack.c.l.b16 %v2927_v29  ;;  %v7576_v38 = vadd.f32 %v7464_v23, %v7189_v61  ;;  %v3485_v61 = vld [vmem:[#allocation2 + $0x50] sm:$0x8]  ;;  %v3487_v29 = vld [vmem:[#allocation2 + $0x58] sm:$0xf] }
 0x182   : > { %6635 = vmatmul.msk.bf16.vlgmr.msra.gmra.mxu0 %vm816_vm8, %v4830_v28  ;;  %v1905_v0 = vadd.f32 %v1850_v19, %v1242_v1  ;;  %v7568_v28 = vrot.slane %v4471_v17, 5  ;;  %v3486_v1 = vld [vmem:[#allocation2 + $0x54] sm:$0xf]  ;;  %v4481_v20 = vshll.u32 %v4373_v43, 16  ;;  %v7579_v10 = vrot.slane %v2938_v32, 5 }
 0x183   : > { %6508 = vmatmul.msk.bf16.gmra.mxu1 %vm816_vm8, %v3275_v34  ;;  %v2942_v34 = vshrl.u32 %v2818_v55, 16  ;;  %v7583_v24 = vadd.f32 %v7464_v23, %v7202_v21  ;;  %v3881_v18 = vunpack.c.l.b16 %v3580_v8  ;;  %v3596_v25 = vshrl.u32 %v3486_v1, 16  ;;  %v4374_v43 = vld [vmem:[#allocation2 + $0x54] sm:$0xf] }
 0x184   : > { %v3589_v19 = vsel %vm6816_vm9, %v3581_v47, %v3588_v5  ;;  %v4469_v50 = vrot.slane %v4468_v40, 4  ;;  %v4478_v21 = vor.u32 %v4477_v48, %v7568_v28  ;;  %v3276_v58 = vpack.c.b16 %v7572_v22, %v7570_v31  ;;  %v4375_v48 = vld [vmem:[#allocation2 + $0x58] sm:$0xf] }
 0x185   : > { %v2944_v14 = vrot.slane %v2942_v34, 4  ;;  %v2935_v63 = vor.u32 %v2934_v2, %v2931_v13  ;;  %v2948_v8 = vshll.u32 %v2819_v33, 16  ;;  %v4483_v41 = vrot.slane %v4481_v20, 5 }
 0x186   : > { %6540 = vmatmul.msk.bf16.gmra.mxu2 %vm816_vm8, %v3910_v6  ;;  %v6690_v6 = vld [vmem:[#allocation2 + $0x34] sm:$0xff]  ;;  %v3591_v32 = vshrl.u32 %v3485_v61, 16  ;;  %v3882_v34 = vunpack.c.l.b16 %v3589_v19  ;;  %v3598_v47 = vrot.slane %v3596_v25, 7  ;;  %v3599_v5 = vshll.u32 %v3486_v1, 16 }
 0x187   : > { %v7585_v39 = vpop.f32.mrf.mxu0  ;;  %v2481_v7 = vpop.f32.mrf.mxu3  ;;  %v2945_v57 = vor.u32 %v2944_v14, %v7579_v10  ;;  %v3605_v40 = vshrl.u32 %v3487_v29, 16  ;;  %v4479_v31 = vrot.slane %v4478_v21, 4  ;;  %v3608_v22 = vshll.u32 %v3487_v29, 16 }
 0x188   : > { %v7589_v17 = vadd.f32 %v2481_v7, %v1905_v0  ;;  %v1192_v56 = vpop.f32.mrf.mxu1  ;;  %v4486_v13 = vshrl.u32 %v4374_v43, 16  ;;  %v2936_v2 = vrot.slane %v2935_v63, 4  ;;  %v4489_v33 = vshll.u32 %v4374_v43, 16 }
 0x189   : > { %v1853_v60 = vpop.f32.mrf.mxu2  ;;  %v1244_v55 = vadd.f32 %v1192_v56, %v7531_v30  ;;  %v4474_v30 = vsel %vm7009_vm14, %v4469_v50, %v7568_v28  ;;  %v3607_v20 = vrot.slane %v3605_v40, 7  ;;  %v2946_v14 = vrot.slane %v2945_v57, 4 }
 0x18a   : > { %v1906_v0 = vadd.f32 %v1853_v60, %v1243_v42  ;;  %v2950_v42 = vrot.slane %v2948_v8, 5  ;;  %v6526_v7 = vrot.slane %v3591_v32, 11  ;;  %v4495_v61 = vshll.u32 %v4375_v48, 16  ;;  %v4376_v60 = vld [vmem:[#allocation2 + $0x5c] sm:$0x1] }
 0x18b   : > { %v4499_v25 = vshrl.u32 %v4375_v48, 16  ;;  %v3601_v19 = vor.u32 %v3599_v5, %v3598_v47  ;;  %v4488_v62 = vrot.slane %v4486_v13, 4  ;;  %v4491_v16 = vrot.slane %v4489_v33, 5  ;;  %v2822_v33 = vld [vmem:[#allocation2 + $0x5c] sm:$0x1] }
 0x18c   : > { %6620 = vmatmul.msk.bf16.gmra.mxu3 %vm816_vm8, %v6690_v6  ;;  %v3603_v6 = vrot.slane %v3598_v47, 4  ;;  %v3610_v21 = vor.u32 %v3608_v22, %v3607_v20  ;;  %v7606_v29 = vrot.slane %v4495_v61, 5  ;;  %v3911_v57 = vpack.c.b16 %v3882_v34, %v3881_v18  ;;  %v2821_v18 = vld [vmem:[#allocation2 + $0x58] sm:$0xf] }
 0x18d   : > { %v4501_v63 = vrot.slane %v4499_v25, 4  ;;  %v4484_v32 = vsel %vm7009_vm14, %v4479_v31, %v4483_v41  ;;  %v7611_v40 = vunpack.c.l.b16 %v4474_v30  ;;  %v2951_v5 = vsel %vm7009_vm14, %v2946_v14, %v2950_v42 }
 0x18e   : > { %v4505_v48 = vshll.u32 %v4376_v60, 16  ;;  %v4492_v34 = vor.u32 %v4491_v16, %v4488_v62  ;;  %v2962_v30 = vshll.u32 %v2821_v18, 16  ;;  %v2966_v31 = vshrl.u32 %v2821_v18, 16 }
 0x18f   : > { %v7602_v1 = vpop.f32.mrf.mxu0  ;;  %v2484_v56 = vpop.f32.mrf.mxu3  ;;  %v7625_v13 = vunpack.c.l.b16 %v4484_v32  ;;  %v7632_v62 = vunpack.c.l.b16 %v2951_v5  ;;  %v3490_v5 = vld [vmem:[#allocation2 + $0x68] sm:$0xf] }
 0x190   : > { %v7604_v28 = vadd.f32 %v2484_v56, %v1906_v0  ;;  %v1195_v50 = vpop.f32.mrf.mxu1  ;;  %v2941_v0 = vsel %vm7009_vm14, %v2936_v2, %v7579_v10  ;;  %v3489_v10 = vld [vmem:[#allocation2 + $0x64] sm:$0xf]  ;;  %v7627_v20 = vrot.slane %v2962_v30, 5  ;;  %v2968_v14 = vrot.slane %v2966_v31, 4 }
 0x191   : > { %v1855_v8 = vpop.f32.mrf.mxu2  ;;  %v1245_v43 = vadd.f32 %v1195_v50, %v7535_v49  ;;  %v2820_v49 = vld [vmem:[#allocation2 + $0x54] sm:$0xf]  ;;  %v7630_v16 = vunpack.c.l.b16 %v2941_v0  ;;  %v3618_v61 = vshrl.u32 %v3489_v10, 16  ;;  %v4493_v60 = vrot.slane %v4492_v34, 4 }
 0x192   : > { %6636 = vmatmul.msk.bf16.gmra.mxu0 %vm816_vm8, %v4831_v53  ;;  %v1907_v47 = vadd.f32 %v1855_v8, %v1244_v55  ;;  %v2953_v22 = vshrl.u32 %v2820_v49, 16  ;;  %v2956_v41 = vshll.u32 %v2820_v49, 16  ;;  %v3602_v53 = vsel %vm6816_vm9, %v6526_v7, %v3601_v19  ;;  %v3488_v7 = vld [vmem:[#allocation2 + $0x60] sm:$0x8] }
 0x193   : > { %6509 = vmatmul.msk.bf16.gmra.mxu1 %vm816_vm8, %v3276_v58  ;;  %v3611_v55 = vsel %vm6816_vm9, %v3603_v6, %v3610_v21  ;;  %v4502_v58 = vor.u32 %v4501_v63, %v7606_v29  ;;  %v3883_v19 = vunpack.c.l.b16 %v3602_v53  ;;  %v4507_v50 = vrot.slane %v4505_v48, 5  ;;  %v6691_v63 = vld [vmem:[#allocation2 + $0x44] sm:$0xff] }
 0x194   : > { %v2955_v2 = vrot.slane %v2953_v22, 4  ;;  %v2958_v42 = vrot.slane %v2956_v41, 5  ;;  %v3884_v6 = vunpack.c.l.b16 %v3611_v55  ;;  %v2972_v0 = vshll.u32 %v2822_v33, 16  ;;  %v4377_v53 = vld [vmem:[#allocation2 + $0x64] sm:$0xf] }
 0x195   : > { %v4832_v49 = vpack.c.b16 %v7625_v13, %v7611_v40  ;;  %v2969_v41 = vor.u32 %v2968_v14, %v7627_v20  ;;  %v3613_v30 = vshrl.u32 %v3488_v7, 16  ;;  %v3620_v48 = vrot.slane %v3618_v61, 7  ;;  %v4378_v13 = vld [vmem:[#allocation2 + $0x68] sm:$0xf] }
 0x196   : > { %6541 = vmatmul.msk.bf16.gmra.mxu2 %vm816_vm8, %v3911_v57  ;;  %v4503_v57 = vrot.slane %v4502_v58, 4  ;;  %v2959_v32 = vor.u32 %v2958_v42, %v2955_v2  ;;  %v3621_v55 = vshll.u32 %v3489_v10, 16  ;;  %v3912_v58 = vpack.c.b16 %v3884_v6, %v3883_v19 }
 0x197   : > { %v7634_v25 = vpop.f32.mrf.mxu0  ;;  %v2486_v56 = vpop.f32.mrf.mxu3  ;;  %v4498_v31 = vsel %vm7009_vm14, %v4493_v60, %v7606_v29  ;;  %v3627_v2 = vshrl.u32 %v3490_v5, 16  ;;  %v3630_v40 = vshll.u32 %v3490_v5, 16  ;;  %v4510_v33 = vshrl.u32 %v4377_v53, 16 }
 0x198   : > { %v7636_v21 = vadd.f32 %v2486_v56, %v1907_v47  ;;  %v1197_v8 = vpop.f32.mrf.mxu1  ;;  %v3277_v47 = vpack.c.b16 %v7632_v62, %v7630_v16  ;;  %v2960_v42 = vrot.slane %v2959_v32, 4  ;;  %v2970_v14 = vrot.slane %v2969_v41, 4 }
 0x199   : > { %v1858_v18 = vpop.f32.mrf.mxu2  ;;  %v1246_v22 = vadd.f32 %v1197_v8, %v7576_v38  ;;  %v4508_v38 = vsel %vm7009_vm14, %v4503_v57, %v4507_v50  ;;  %v6527_v16 = vrot.slane %v3613_v30, 11  ;;  %v3629_v62 = vrot.slane %v3627_v2, 7  ;;  %v4379_v8 = vld [vmem:[#allocation2 + $0x6c] sm:$0x1]  ;;  %v2823_v2 = vld [vmem:[#allocation2 + $0x64] sm:$0xf] }
 0x19a   : > { %v1908_v34 = vadd.f32 %v1858_v18, %v1245_v43  ;;  %v2974_v43 = vrot.slane %v2972_v0, 5  ;;  %v4513_v10 = vshll.u32 %v4377_v53, 16  ;;  %v3623_v7 = vor.u32 %v3621_v55, %v3620_v48 }
 0x19b   : > { %v3625_v61 = vrot.slane %v3620_v48, 4  ;;  %v4519_v56 = vshll.u32 %v4378_v13, 16  ;;  %v4523_v19 = vshrl.u32 %v4378_v13, 16  ;;  %v3632_v60 = vor.u32 %v3630_v40, %v3629_v62  ;;  %v2824_v40 = vld [vmem:[#allocation2 + $0x68] sm:$0xf] }
 0x19c   : > { %6621 = vmatmul.msk.bf16.gmra.mxu3 %vm816_vm8, %v6691_v63  ;;  %v4512_v63 = vrot.slane %v4510_v33, 4  ;;  %v4515_v5 = vrot.slane %v4513_v10, 5  ;;  %v7654_v50 = vadd.f32 %v7472_v35, %v7474_v9  ;;  %v7658_v0 = vunpack.c.l.b16 %v4498_v31 }
 0x19d   : > { %v7660_v18 = vrot.slane %v4519_v56, 5  ;;  %v4525_v41 = vrot.slane %v4523_v19, 4  ;;  %v7663_v48 = vunpack.c.l.b16 %v4508_v38  ;;  %v2965_v55 = vsel %vm7009_vm14, %v2960_v42, %v7627_v20  ;;  %v2825_v56 = vld [vmem:[#allocation2 + $0x6c] sm:$0x1] }
 0x19e   : > { %v2975_v35 = vsel %vm7009_vm14, %v2970_v14, %v2974_v43  ;;  %v4529_v31 = vshll.u32 %v4379_v8, 16  ;;  %v4516_v13 = vor.u32 %v4515_v5, %v4512_v63  ;;  %v2977_v38 = vshrl.u32 %v2823_v2, 16  ;;  %v3492_v43 = vld [vmem:[#allocation2 + $0x74] sm:$0xf] }
 0x19f   : > { %v7650_v29 = vpop.f32.mrf.mxu0  ;;  %v2489_v6 = vpop.f32.mrf.mxu3  ;;  %v2980_v20 = vshll.u32 %v2823_v2, 16  ;;  %v2986_v42 = vshll.u32 %v2824_v40, 16  ;;  %v7676_v33 = vunpack.c.l.b16 %v2965_v55  ;;  %v7683_v14 = vunpack.c.l.b16 %v2975_v35 }
 0x1a0   : > { %v7656_v57 = vadd.f32 %v2489_v6, %v1908_v34  ;;  %v1200_v32 = vpop.f32.mrf.mxu1  ;;  %v3624_v34 = vsel %vm6816_vm9, %v6527_v16, %v3623_v7  ;;  %v2979_v16 = vrot.slane %v2977_v38, 4  ;;  %v3491_v6 = vld [vmem:[#allocation2 + $0x70] sm:$0x8]  ;;  %v984_v8 = vadd.f32 %v7464_v23, %v7226_v46 }
 0x1a1   : > { %v1860_v30 = vpop.f32.mrf.mxu2  ;;  %v1247_v53 = vadd.f32 %v1200_v32, %v7583_v24  ;;  %v3633_v24 = vsel %vm6816_vm9, %v3625_v61, %v3632_v60  ;;  %v2982_v62 = vrot.slane %v2980_v20, 5  ;;  %v7685_v10 = vrot.slane %v2986_v42, 5  ;;  %v4380_v42 = vld [vmem:[#allocation2 + $0x74] sm:$0xf] }
 0x1a2   : > { %6637 = vmatmul.msk.bf16.gmra.mxu0 %vm816_vm8, %v4832_v49  ;;  %v1909_v9 = vadd.f32 %v1860_v30, %v1246_v22  ;;  %v4526_v49 = vor.u32 %v4525_v41, %v7660_v18  ;;  %v2990_v22 = vshrl.u32 %v2824_v40, 16  ;;  %v3885_v7 = vunpack.c.l.b16 %v3624_v34  ;;  %v6692_v30 = vld [vmem:[#allocation2 + $0x54] sm:$0xff] }
 0x1a3   : > { %6510 = vmatmul.msk.bf16.gmra.mxu1 %vm816_vm8, %v3277_v47  ;;  %v7681_v47 = vadd.f32 %v7489_v26, %v7495_v27  ;;  %v3886_v61 = vunpack.c.l.b16 %v3633_v24  ;;  %v3640_v60 = vshrl.u32 %v3492_v43, 16  ;;  %v4517_v27 = vrot.slane %v4516_v13, 4  ;;  %v3493_v24 = vld [vmem:[#allocation2 + $0x78] sm:$0xf] }
 0x1a4   : > { %v2992_v19 = vrot.slane %v2990_v22, 4  ;;  %v7692_v5 = vrot.slane %v4529_v31, 5  ;;  %v2983_v32 = vor.u32 %v2982_v62, %v2979_v16  ;;  %v4527_v55 = vrot.slane %v4526_v49, 4 }
 0x1a5   : > { %v2996_v34 = vshll.u32 %v2825_v56, 16  ;;  %v3635_v38 = vshrl.u32 %v3491_v6, 16  ;;  %v3642_v46 = vrot.slane %v3640_v60, 7  ;;  %v3643_v20 = vshll.u32 %v3492_v43, 16 }
 0x1a6   : > { %6542 = vmatmul.msk.bf16.gmra.mxu2 %vm816_vm8, %v3912_v58  ;;  %v2993_v35 = vor.u32 %v2992_v19, %v7685_v10  ;;  %v4833_v31 = vpack.c.b16 %v7663_v48, %v7658_v0  ;;  %v3913_v22 = vpack.c.b16 %v3886_v61, %v3885_v7  ;;  %v4522_v49 = vsel %vm7009_vm14, %v4517_v27, %v7660_v18  ;;  %v4381_v19 = vld [vmem:[#allocation2 + $0x78] sm:$0xf]  ;;  %v4382_v7 = vld [vmem:[#allocation2 + $0x7c] sm:$0x1] }
 0x1a7   : > { %v7690_v63 = vpop.f32.mrf.mxu0  ;;  %v2491_v26 = vpop.f32.mrf.mxu3  ;;  %v2984_v16 = vrot.slane %v2983_v32, 4  ;;  %v3649_v62 = vshrl.u32 %v3493_v24, 16  ;;  %v3652_v56 = vshll.u32 %v3493_v24, 16  ;;  %v4532_v43 = vsel %vm7009_vm14, %v4527_v55, %v7692_v5 }
 0x1a8   : > { %v7694_v41 = vadd.f32 %v2491_v26, %v1909_v9  ;;  %v1202_v58 = vpop.f32.mrf.mxu1  ;;  %v3278_v9 = vpack.c.b16 %v7683_v14, %v7676_v33  ;;  %v2994_v0 = vrot.slane %v2993_v35, 4  ;;  %v4534_v48 = vshrl.u32 %v4380_v42, 16 }
 0x1a9   : > { %v1863_v2 = vpop.f32.mrf.mxu2  ;;  %v1248_v40 = vadd.f32 %v1202_v58, %v984_v8  ;;  %v6528_v6 = vrot.slane %v3635_v38, 11  ;;  %v3645_v33 = vor.u32 %v3643_v20, %v3642_v46  ;;  %v3651_v14 = vrot.slane %v3649_v62, 7 }
 0x1aa   : > { %v1910_v13 = vadd.f32 %v1863_v2, %v1247_v53  ;;  %v2998_v53 = vrot.slane %v2996_v34, 5  ;;  %v4537_v61 = vshll.u32 %v4380_v42, 16  ;;  %v3647_v60 = vrot.slane %v3642_v46, 4 }
 0x1ab   : > { %v4536_v18 = vrot.slane %v4534_v48, 4  ;;  %v4543_v8 = vshll.u32 %v4381_v19, 16  ;;  %v4547_v26 = vshrl.u32 %v4381_v19, 16  ;;  %v3654_v5 = vor.u32 %v3652_v56, %v3651_v14  ;;  %v2826_v56 = vld [vmem:[#allocation2 + $0x74] sm:$0xf] }
 0x1ac   : > { %6622 = vmatmul.msk.bf16.gmra.mxu3 %vm816_vm8, %v6692_v30  ;;  %v2989_v30 = vsel %vm7009_vm14, %v2984_v16, %v7685_v10  ;;  %v4539_v58 = vrot.slane %v4537_v61, 5  ;;  %v7715_v55 = vadd.f32 %v7522_v15, %v7524_v54  ;;  %v4553_v38 = vshll.u32 %v4382_v7, 16 }
 0x1ad   : > { %v4545_v24 = vrot.slane %v4543_v8, 5  ;;  %v4549_v2 = vrot.slane %v4547_v26, 4  ;;  %v2999_v42 = vsel %vm7009_vm14, %v2994_v0, %v2998_v53  ;;  %v3646_v10 = vsel %vm6816_vm9, %v6528_v6, %v3645_v33  ;;  %v3495_v33 = vld [vmem:[#allocation2 + $0x84] sm:$0xf]  ;;  %v2828_v26 = vld [vmem:[#allocation2 + $0x7c] sm:$0x1] }
 0x1ae   : > { %8820 = vst [vmem:[#allocation19_spill] sm:$0xff] %v7715_v55  ;;  %v4540_v16 = vor.u32 %v4539_v58, %v4536_v18  ;;  %v7726_v54 = vunpack.c.l.b16 %v4522_v49  ;;  %v3001_v48 = vshrl.u32 %v2826_v56, 16  ;;  %v3004_v0 = vshll.u32 %v2826_v56, 16 }
 0x1af   : > { %v7708_v27 = vpop.f32.mrf.mxu0  ;;  %v2494_v32 = vpop.f32.mrf.mxu3  ;;  %v4550_v62 = vor.u32 %v4549_v2, %v4545_v24  ;;  %v7730_v14 = vunpack.c.l.b16 %v4532_v43  ;;  %v7732_v6 = vunpack.c.l.b16 %v2989_v30  ;;  %v3887_v18 = vunpack.c.l.b16 %v3646_v10  ;;  %v3494_v10 = vld [vmem:[#allocation2 + $0x80] sm:$0x8] }
 0x1b0   : > { %v7717_v35 = vadd.f32 %v2494_v32, %v1910_v13  ;;  %v1205_v34 = vpop.f32.mrf.mxu1  ;;  %v3655_v13 = vsel %vm6816_vm9, %v3647_v60, %v3654_v5  ;;  %v4541_v19 = vrot.slane %v4540_v16, 4  ;;  %v3003_v49 = vrot.slane %v3001_v48, 4  ;;  %v3496_v16 = vld [vmem:[#allocation2 + $0x88] sm:$0xf] }
 0x1b1   : > { %v1865_v46 = vpop.f32.mrf.mxu2  ;;  %v1249_v20 = vadd.f32 %v1205_v34, %v7385_v52  ;;  %v2827_v52 = vld [vmem:[#allocation2 + $0x78] sm:$0xf]  ;;  %v3006_v7 = vrot.slane %v3004_v0, 5  ;;  %v7737_v60 = vunpack.c.l.b16 %v2999_v42  ;;  %v3888_v8 = vunpack.c.l.b16 %v3655_v13 }
 0x1b2   : > { %6638 = vmatmul.msk.bf16.gmra.mxu0 %vm816_vm8, %v4833_v31  ;;  %v1911_v15 = vadd.f32 %v1865_v46, %v1248_v40  ;;  %v3010_v53 = vshll.u32 %v2827_v52, 16  ;;  %v4555_v31 = vrot.slane %v4553_v38, 5  ;;  %v3014_v40 = vshrl.u32 %v2827_v52, 16  ;;  %v6693_v38 = vld [vmem:[#allocation2 + $0x64] sm:$0xff] }
 0x1b3   : > { %6511 = vmatmul.msk.bf16.gmra.mxu1 %vm816_vm8, %v3278_v9  ;;  %v4551_v9 = vrot.slane %v4550_v62, 4  ;;  %v4546_v5 = vsel %vm7009_vm14, %v4541_v19, %v4545_v24  ;;  %v3662_v58 = vshrl.u32 %v3495_v33, 16  ;;  %v986_v34 = vadd.f32 %v7464_v23, %v7129_v37  ;;  %v4383_v52 = vld [vmem:[#allocation2 + $0x84] sm:$0xf] }
 0x1b4   : > { %v7734_v61 = vrot.slane %v3010_v53, 5  ;;  %v3016_v32 = vrot.slane %v3014_v40, 4  ;;  %v987_v2 = vadd.f32 %v7464_v23, %v7146_v12  ;;  %v3007_v42 = vor.u32 %v3006_v7, %v3003_v49 }
 0x1b5   : > { %v4834_v13 = vpack.c.b16 %v7730_v14, %v7726_v54  ;;  %v4556_v24 = vsel %vm7009_vm14, %v4551_v9, %v4555_v31  ;;  %v3020_v37 = vshll.u32 %v2828_v26, 16  ;;  %v3279_v12 = vpack.c.b16 %v7737_v60, %v7732_v6  ;;  %v4384_v14 = vld [vmem:[#allocation2 + $0x88] sm:$0xf] }
 0x1b6   : > { %6543 = vmatmul.msk.bf16.gmra.mxu2 %vm816_vm8, %v3913_v22  ;;  %v3017_v56 = vor.u32 %v3016_v32, %v7734_v61  ;;  %v7756_v48 = vunpack.c.l.b16 %v4546_v5  ;;  %v3657_v0 = vshrl.u32 %v3494_v10, 16  ;;  %v7758_v53 = vrot.slane %v3662_v58, 7 }
 0x1b7   : > { %v7739_v43 = vpop.f32.mrf.mxu0  ;;  %v2496_v30 = vpop.f32.mrf.mxu3  ;;  %v3665_v40 = vshll.u32 %v3495_v33, 16  ;;  %v3671_v54 = vshrl.u32 %v3496_v16, 16  ;;  %v7761_v9 = vunpack.c.l.b16 %v4556_v24  ;;  %v3008_v49 = vrot.slane %v3007_v42, 4 }
 0x1b8   : > { %v7747_v22 = vadd.f32 %v2496_v30, %v1911_v15  ;;  %v1207_v46 = vpop.f32.mrf.mxu1  ;;  %v3914_v15 = vpack.c.b16 %v3888_v8, %v3887_v18  ;;  %v4558_v7 = vshrl.u32 %v4383_v52, 16  ;;  %v3022_v26 = vrot.slane %v3020_v37, 5 }
 0x1b9   : > { %v1868_v62 = vpop.f32.mrf.mxu2  ;;  %v1250_v31 = vadd.f32 %v1207_v46, %v986_v34  ;;  %v3674_v32 = vshll.u32 %v3496_v16, 16  ;;  %v4561_v6 = vshll.u32 %v4383_v52, 16  ;;  %v3673_v60 = vrot.slane %v3671_v54, 7  ;;  %v4385_v34 = vld [vmem:[#allocation2 + $0x8c] sm:$0x1] }
 0x1ba   : > { %v1912_v19 = vadd.f32 %v1868_v62, %v1249_v20  ;;  %v3018_v20 = vrot.slane %v3017_v56, 4  ;;  %v4560_v18 = vrot.slane %v4558_v7, 4  ;;  %v4567_v8 = vshll.u32 %v4384_v14, 16 }
 0x1bb   : > { %v4571_v30 = vshrl.u32 %v4384_v14, 16  ;;  %v7765_v58 = vrot.slane %v3657_v0, 11  ;;  %v4563_v46 = vrot.slane %v4561_v6, 5  ;;  %v7772_v42 = vadd.f32 %v7546_v3, %v7552_v4  ;;  %v2829_v14 = vld [vmem:[#allocation2 + $0x84] sm:$0xf] }
 0x1bc   : > { %6623 = vmatmul.msk.bf16.gmra.mxu3 %vm816_vm8, %v6693_v38  ;;  %v7768_v38 = vor.u32 %v3665_v40, %v7758_v53  ;;  %v3013_v62 = vsel %vm7009_vm14, %v3008_v49, %v7734_v61  ;;  %v7779_v24 = vrot.slane %v4567_v8, 5  ;;  %v3023_v0 = vsel %vm7009_vm14, %v3018_v20, %v3022_v26  ;;  %v2830_v49 = vld [vmem:[#allocation2 + $0x88] sm:$0xf] }
 0x1bd   : > { %8821 = vst [vmem:[#allocation20_spill] sm:$0xff] %v7772_v42  ;;  %v4573_v56 = vrot.slane %v4571_v30, 4  ;;  %v3669_v40 = vrot.slane %v7758_v53, 4  ;;  %v7786_v3 = vadd.f32 %v7585_v39, %v7589_v17  ;;  %v3676_v61 = vor.u32 %v3674_v32, %v3673_v60  ;;  %v8823_v39 = vld [vmem:[#allocation5_spill] sm:$0xff] }
 0x1be   : > { %v4577_v54 = vshll.u32 %v4385_v34, 16  ;;  %v3025_v7 = vshrl.u32 %v2829_v14, 16  ;;  %v3028_v20 = vshll.u32 %v2829_v14, 16  ;;  %v3034_v26 = vshll.u32 %v2830_v49, 16  ;;  %v6694_v14 = vld [vmem:[#allocation2 + $0x74] sm:$0xff] }
 0x1bf   : > { %v7763_v5 = vpop.f32.mrf.mxu0  ;;  %v2499_v33 = vpop.f32.mrf.mxu3  ;;  %8822 = vst [vmem:[#allocation21_spill] sm:$0xff] %v7786_v3  ;;  %v988_v53 = vadd.f32 %v7464_v23, %v7161_v59  ;;  %v7795_v17 = vadd.f32 %v7464_v23, %v8823_v39  ;;  %v7799_v32 = vunpack.c.l.b16 %v3013_v62  ;;  %v7804_v8 = vunpack.c.l.b16 %v3023_v0  ;;  %v2831_v23 = vld [vmem:[#allocation2 + $0x8c] sm:$0x1]  ;;  %v4386_v42 = vld [vmem:[#allocation2 + $0x94] sm:$0xf] }
 0x1c0   : > { %v7774_v10 = vadd.f32 %v2499_v33, %v1912_v19  ;;  %v1210_v16 = vpop.f32.mrf.mxu1  ;;  %v4564_v19 = vor.u32 %v4563_v46, %v4560_v18  ;;  %v3027_v6 = vrot.slane %v3025_v7, 4  ;;  %v3030_v60 = vrot.slane %v3028_v20, 5  ;;  %v3497_v33 = vld [vmem:[#allocation2 + $0x90] sm:$0x8]  ;;  %v3499_v20 = vld [vmem:[#allocation2 + $0x98] sm:$0xf] }
 0x1c1   : > { %v1870_v37 = vpop.f32.mrf.mxu2  ;;  %v1251_v52 = vadd.f32 %v1210_v16, %v987_v2  ;;  %v4574_v2 = vor.u32 %v4573_v56, %v7779_v24  ;;  %v7801_v18 = vrot.slane %v3034_v26, 5  ;;  %v3668_v59 = vsel %vm6816_vm9, %v7765_v58, %v7768_v38 }
 0x1c2   : > { %6639 = vmatmul.msk.bf16.gmra.mxu0 %vm816_vm8, %v4834_v13  ;;  %v1913_v4 = vadd.f32 %v1870_v37, %v1250_v31  ;;  %v3498_v31 = vld [vmem:[#allocation2 + $0x94] sm:$0xf]  ;;  %v3677_v62 = vsel %vm6816_vm9, %v3669_v40, %v3676_v61  ;;  %v4565_v56 = vrot.slane %v4564_v19, 4  ;;  %v3031_v7 = vor.u32 %v3030_v60, %v3027_v6 }
 0x1c3   : > { %6512 = vmatmul.msk.bf16.gmra.mxu1 %vm816_vm8, %v3279_v12  ;;  %v3038_v12 = vshrl.u32 %v2830_v49, 16  ;;  %v3684_v34 = vshrl.u32 %v3498_v31, 16  ;;  %v4575_v37 = vrot.slane %v4574_v2, 4  ;;  %v3044_v38 = vshll.u32 %v2831_v23, 16 }
 0x1c4   : > { %v3687_v3 = vshll.u32 %v3498_v31, 16  ;;  %v3280_v40 = vpack.c.b16 %v7804_v8, %v7799_v32  ;;  %v3889_v61 = vunpack.c.l.b16 %v3668_v59  ;;  %v4570_v19 = vsel %vm7009_vm14, %v4565_v56, %v7779_v24 }
 0x1c5   : > { %v3040_v30 = vrot.slane %v3038_v12, 4  ;;  %v3679_v12 = vshrl.u32 %v3497_v33, 16  ;;  %v3686_v13 = vrot.slane %v3684_v34, 7  ;;  %v3693_v2 = vshrl.u32 %v3499_v20, 16 }
 0x1c6   : > { %6544 = vmatmul.msk.bf16.gmra.mxu2 %vm816_vm8, %v3914_v15  ;;  %v4579_v15 = vrot.slane %v4577_v54, 5  ;;  %v3696_v6 = vshll.u32 %v3499_v20, 16  ;;  %v3032_v31 = vrot.slane %v3031_v7, 4  ;;  %v4582_v23 = vshrl.u32 %v4386_v42, 16 }
 0x1c7   : > { %v7810_v46 = vpop.f32.mrf.mxu0  ;;  %v2501_v16 = vpop.f32.mrf.mxu3  ;;  %v3041_v58 = vor.u32 %v3040_v30, %v7801_v18  ;;  %v6530_v30 = vrot.slane %v3679_v12, 11  ;;  %v3689_v32 = vor.u32 %v3687_v3, %v3686_v13  ;;  %v3695_v8 = vrot.slane %v3693_v2, 7 }
 0x1c8   : > { %v7814_v0 = vadd.f32 %v2501_v16, %v1913_v4  ;;  %v1212_v49 = vpop.f32.mrf.mxu1  ;;  %v3890_v4 = vunpack.c.l.b16 %v3677_v62  ;;  %v4580_v54 = vsel %vm7009_vm14, %v4575_v37, %v4579_v15  ;;  %v4585_v59 = vshll.u32 %v4386_v42, 16 }
 0x1c9   : > { %v1873_v26 = vpop.f32.mrf.mxu2  ;;  %v1252_v39 = vadd.f32 %v1212_v49, %v988_v53  ;;  %v4387_v53 = vld [vmem:[#allocation2 + $0x98] sm:$0xf]  ;;  %v3042_v60 = vrot.slane %v3041_v58, 4  ;;  %v3691_v34 = vrot.slane %v3686_v13, 4  ;;  %v3698_v37 = vor.u32 %v3696_v6, %v3695_v8 }
 0x1ca   : > { %v1914_v55 = vadd.f32 %v1873_v26, %v1251_v52  ;;  %v3046_v52 = vrot.slane %v3044_v38, 5  ;;  %v3915_v33 = vpack.c.b16 %v3890_v4, %v3889_v61  ;;  %v4591_v16 = vshll.u32 %v4387_v53, 16 }
 0x1cb   : > { %v4595_v24 = vshrl.u32 %v4387_v53, 16  ;;  %v4584_v15 = vrot.slane %v4582_v23, 4  ;;  %v4587_v49 = vrot.slane %v4585_v59, 5  ;;  %v7833_v3 = vunpack.c.l.b16 %v4570_v19  ;;  %v2832_v19 = vld [vmem:[#allocation2 + $0x94] sm:$0xf] }
 0x1cc   : > { %6624 = vmatmul.msk.bf16.gmra.mxu3 %vm816_vm8, %v6694_v14  ;;  %v7829_v14 = vadd.f32 %v7602_v1, %v7604_v28  ;;  %v7835_v42 = vunpack.c.l.b16 %v4580_v54  ;;  %v3037_v13 = vsel %vm7009_vm14, %v3032_v31, %v7801_v18  ;;  %v3047_v26 = vsel %vm7009_vm14, %v3042_v60, %v3046_v52  ;;  %v4388_v28 = vld [vmem:[#allocation2 + $0x9c] sm:$0x1]  ;;  %v2833_v54 = vld [vmem:[#allocation2 + $0x98] sm:$0xf]  ;;  %v3501_v60 = vld [vmem:[#allocation2 + $0xa4] sm:$0xf] }
 0x1cd   : > { %v3690_v1 = vsel %vm6816_vm9, %v6530_v30, %v3689_v32  ;;  %v8824_v12 = vpack.c.b16 %v7761_v9, %v7756_v48  ;;  %v7856_v61 = vrot.slane %v4591_v16, 5  ;;  %v4597_v4 = vrot.slane %v4595_v24, 4  ;;  %v7861_v48 = vld [vmem:[%s8791_s2] ss:$0 sm:$0xff]  ;;  %v8825_v9 = vld [vmem:[#allocation6_spill] sm:$0xff] }
 0x1ce   : > { %v4588_v2 = vor.u32 %v4587_v49, %v4584_v15  ;;  %v3049_v6 = vshrl.u32 %v2832_v19, 16  ;;  %v7867_v53 = vunpack.c.l.b16 %v3047_v26  ;;  %v3062_v31 = vshrl.u32 %v2833_v54, 16  ;;  %v3500_v24 = vld [vmem:[#allocation2 + $0xa0] sm:$0x8] }
 0x1cf   : > { %v7825_v62 = vpop.f32.mrf.mxu0  ;;  %v2504_v56 = vpop.f32.mrf.mxu3  ;;  %v4601_v52 = vshll.u32 %v4388_v28, 16  ;;  %v3891_v8 = vunpack.c.l.b16 %v3690_v1  ;;  %v4598_v26 = vor.u32 %v4597_v4, %v7856_v61  ;;  %v6695_v1 = vld [vmem:[#allocation2 + $0x84] sm:$0xff] }
 0x1d0   : > { %v7831_v7 = vadd.f32 %v2504_v56, %v1914_v55  ;;  %v1215_v58 = vpop.f32.mrf.mxu1  ;;  %v7847_v55 = vadd.f32 %v7634_v25, %v7636_v21  ;;  %v3052_v25 = vshll.u32 %v2832_v19, 16  ;;  %v3058_v21 = vshll.u32 %v2833_v54, 16  ;;  %v3502_v54 = vld [vmem:[#allocation2 + $0xa8] sm:$0xf] }
 0x1d1   : > { %v1875_v38 = vpop.f32.mrf.mxu2  ;;  %v1253_v20 = vadd.f32 %v1215_v58, %v7795_v17  ;;  %v3699_v17 = vsel %vm6816_vm9, %v3691_v34, %v3698_v37  ;;  %v3051_v23 = vrot.slane %v3049_v6, 4  ;;  %v2834_v34 = vld [vmem:[#allocation2 + $0x9c] sm:$0x1]  ;;  %v3064_v16 = vrot.slane %v3062_v31, 4  ;;  %v8826_v37 = vld [vmem:[#allocation7_spill] sm:$0xff] }
 0x1d2   : > { %6640 = vmatmul.msk.bf16.gmra.mxu0 %vm816_vm8, %v8824_v12  ;;  %v1915_v18 = vadd.f32 %v1875_v38, %v1252_v39  ;;  %v990_v39 = vadd.f32 %v7861_v48, %v8825_v9  ;;  %v3054_v30 = vrot.slane %v3052_v25, 5  ;;  %v7869_v32 = vrot.slane %v3058_v21, 5 }
 0x1d3   : > { %6513 = vmatmul.msk.bf16.gmra.mxu1 %vm816_vm8, %v3280_v40  ;;  %v7865_v40 = vunpack.c.l.b16 %v3037_v13  ;;  %v3892_v59 = vunpack.c.l.b16 %v3699_v17  ;;  %v3706_v56 = vshrl.u32 %v3501_v60, 16  ;;  %v991_v15 = vadd.f32 %v7861_v48, %v8826_v37  ;;  %v4389_v37 = vld [vmem:[#allocation2 + $0xa4] sm:$0xf] }
 0x1d4   : > { %v4836_v13 = vpack.c.b16 %v7835_v42, %v7833_v3  ;;  %v7878_v38 = vrot.slane %v4588_v2, 4  ;;  %v3055_v12 = vor.u32 %v3054_v30, %v3051_v23  ;;  %v3065_v17 = vor.u32 %v3064_v16, %v7869_v32  ;;  %v4390_v16 = vld [vmem:[#allocation2 + $0xa8] sm:$0xf] }
 0x1d5   : > { %v3068_v19 = vshll.u32 %v2834_v34, 16  ;;  %v3701_v21 = vshrl.u32 %v3500_v24, 16  ;;  %v3708_v9 = vrot.slane %v3706_v56, 7  ;;  %v3709_v31 = vshll.u32 %v3501_v60, 16 }
 0x1d6   : > { %6545 = vmatmul.msk.bf16.gmra.mxu2 %vm816_vm8, %v3915_v33  ;;  %v3281_v42 = vpack.c.b16 %v7867_v53, %v7865_v40  ;;  %v3916_v4 = vpack.c.b16 %v3892_v59, %v3891_v8  ;;  %v4594_v2 = vsel %vm7009_vm14, %v7878_v38, %v7856_v61  ;;  %v4599_v23 = vrot.slane %v4598_v26, 4 }
 0x1d7   : > { %v7874_v49 = vpop.f32.mrf.mxu0  ;;  %v2506_v58 = vpop.f32.mrf.mxu3  ;;  %v3715_v30 = vshrl.u32 %v3502_v54, 16  ;;  %v3718_v34 = vshll.u32 %v3502_v54, 16  ;;  %v3066_v60 = vrot.slane %v3065_v17, 4  ;;  %v3070_v24 = vrot.slane %v3068_v19, 5 }
 0x1d8   : > { %v7881_v33 = vadd.f32 %v2506_v58, %v1915_v18  ;;  %v1217_v28 = vpop.f32.mrf.mxu1  ;;  %v4603_v18 = vrot.slane %v4601_v52, 5  ;;  %v6531_v56 = vrot.slane %v3701_v21, 11  ;;  %v3711_v58 = vor.u32 %v3709_v31, %v3708_v9 }
 0x1d9   : > { %v1878_v6 = vpop.f32.mrf.mxu2  ;;  %v1254_v25 = vadd.f32 %v1217_v28, %v990_v39  ;;  %v3056_v39 = vrot.slane %v3055_v12, 4  ;;  %v3717_v40 = vrot.slane %v3715_v30, 7  ;;  %v4609_v53 = vshll.u32 %v4389_v37, 16 }
 0x1da   : > { %v1916_v3 = vadd.f32 %v1878_v6, %v1253_v20  ;;  %v4606_v20 = vshrl.u32 %v4389_v37, 16  ;;  %v3713_v52 = vrot.slane %v3708_v9, 4  ;;  %v4615_v59 = vshll.u32 %v4390_v16, 16 }
 0x1db   : > { %v4619_v28 = vshrl.u32 %v4390_v16, 16  ;;  %v4604_v38 = vsel %vm7009_vm14, %v4599_v23, %v4603_v18  ;;  %v3720_v26 = vor.u32 %v3718_v34, %v3717_v40  ;;  %v4611_v12 = vrot.slane %v4609_v53, 5  ;;  %v2835_v34 = vld [vmem:[#allocation2 + $0xa4] sm:$0xf]  ;;  %v2836_v16 = vld [vmem:[#allocation2 + $0xa8] sm:$0xf] }
 0x1dc   : > { %6625 = vmatmul.msk.bf16.gmra.mxu3 %vm816_vm8, %v6695_v1  ;;  %v4608_v8 = vrot.slane %v4606_v20, 4  ;;  %v4391_v1 = vld [vmem:[#allocation2 + $0xac] sm:$0x1]  ;;  %v7897_v17 = vadd.f32 %v7650_v29, %v7656_v57  ;;  %v3061_v21 = vsel %vm7009_vm14, %v3056_v39, %v7869_v32  ;;  %v7904_v9 = vrot.slane %v4615_v59, 5  ;;  %v3504_v53 = vld [vmem:[#allocation2 + $0xb4] sm:$0xf] }
 0x1dd   : > { %v4621_v31 = vrot.slane %v4619_v28, 4  ;;  %v3071_v18 = vsel %vm7009_vm14, %v3066_v60, %v3070_v24  ;;  %v3712_v23 = vsel %vm6816_vm9, %v6531_v56, %v3711_v58  ;;  %v7912_v29 = vadd.f32 %v7690_v63, %v7694_v41  ;;  %v2837_v28 = vld [vmem:[#allocation2 + $0xac] sm:$0x1] }
 0x1de   : > { %v3721_v32 = vsel %vm6816_vm9, %v3713_v52, %v3720_v26  ;;  %v3073_v60 = vshrl.u32 %v2835_v34, 16  ;;  %v3076_v24 = vshll.u32 %v2835_v34, 16  ;;  %v3082_v20 = vshll.u32 %v2836_v16, 16  ;;  %v8827_v52 = vld [vmem:[#allocation8_spill] sm:$0xff] }
 0x1df   : > { %v7891_v6 = vpop.f32.mrf.mxu0  ;;  %v2509_v61 = vpop.f32.mrf.mxu3  ;;  %v4622_v39 = vor.u32 %v4621_v31, %v7904_v9  ;;  %v7919_v56 = vunpack.c.l.b16 %v4594_v2  ;;  %v7921_v63 = vunpack.c.l.b16 %v4604_v38  ;;  %v7923_v41 = vunpack.c.l.b16 %v3061_v21  ;;  %v3503_v38 = vld [vmem:[#allocation2 + $0xb0] sm:$0x8] }
 0x1e0   : > { %v7899_v19 = vadd.f32 %v2509_v61, %v1916_v3  ;;  %v1220_v54 = vpop.f32.mrf.mxu1  ;;  %v4612_v3 = vor.u32 %v4611_v12, %v4608_v8  ;;  %v3078_v58 = vrot.slane %v3076_v24, 5  ;;  %v7927_v40 = vrot.slane %v3082_v20, 5  ;;  %v6696_v12 = vld [vmem:[#allocation2 + $0x94] sm:$0xff] }
 0x1e1   : > { %v1880_v37 = vpop.f32.mrf.mxu2  ;;  %v1255_v30 = vadd.f32 %v1220_v54, %v991_v15  ;;  %v4625_v15 = vshll.u32 %v4391_v1, 16  ;;  %v992_v8 = vadd.f32 %v7861_v48, %v8827_v52  ;;  %v3893_v59 = vunpack.c.l.b16 %v3712_v23 }
 0x1e2   : > { %6641 = vmatmul.msk.bf16.gmra.mxu0 %vm816_vm8, %v4836_v13  ;;  %v1917_v57 = vadd.f32 %v1880_v37, %v1254_v25  ;;  %v3086_v13 = vshrl.u32 %v2836_v16, 16  ;;  %v7925_v25 = vunpack.c.l.b16 %v3071_v18  ;;  %v3894_v2 = vunpack.c.l.b16 %v3721_v32  ;;  %v4392_v32 = vld [vmem:[#allocation2 + $0xb4] sm:$0xf] }
 0x1e3   : > { %6514 = vmatmul.msk.bf16.gmra.mxu1 %vm816_vm8, %v3281_v42  ;;  %v3075_v42 = vrot.slane %v3073_v60, 4  ;;  %v4613_v54 = vrot.slane %v4612_v3, 4  ;;  %v4623_v21 = vrot.slane %v4622_v39, 4  ;;  %v4627_v31 = vrot.slane %v4625_v15, 5 }
 0x1e4   : > { %v3088_v61 = vrot.slane %v3086_v13, 4  ;;  %v3092_v16 = vshll.u32 %v2837_v28, 16  ;;  %v3728_v23 = vshrl.u32 %v3504_v53, 16  ;;  %v4837_v60 = vpack.c.b16 %v7921_v63, %v7919_v56  ;;  %v4393_v28 = vld [vmem:[#allocation2 + $0xb8] sm:$0xf] }
 0x1e5   : > { %v3079_v37 = vor.u32 %v3078_v58, %v3075_v42  ;;  %v3282_v3 = vpack.c.b16 %v7925_v25, %v7923_v41  ;;  %v3723_v39 = vshrl.u32 %v3503_v38, 16  ;;  %v3917_v13 = vpack.c.b16 %v3894_v2, %v3893_v59  ;;  %v4394_v59 = vld [vmem:[#allocation2 + $0xbc] sm:$0x1] }
 0x1e6   : > { %6546 = vmatmul.msk.bf16.gmra.mxu2 %vm816_vm8, %v3916_v4  ;;  %v3089_v48 = vor.u32 %v3088_v61, %v7927_v40  ;;  %v3505_v4 = vld [vmem:[#allocation2 + $0xb8] sm:$0xf]  ;;  %v3731_v42 = vshll.u32 %v3504_v53, 16  ;;  %v4618_v56 = vsel %vm7009_vm14, %v4613_v54, %v7904_v9  ;;  %v4628_v63 = vsel %vm7009_vm14, %v4623_v21, %v4627_v31 }
 0x1e7   : > { %v7932_v26 = vpop.f32.mrf.mxu0  ;;  %v2511_v1 = vpop.f32.mrf.mxu3  ;;  %v3080_v58 = vrot.slane %v3079_v37, 4  ;;  %v3737_v52 = vshrl.u32 %v3505_v4, 16  ;;  %v3740_v61 = vshll.u32 %v3505_v4, 16  ;;  %v3094_v25 = vrot.slane %v3092_v16, 5 }
 0x1e8   : > { %v7934_v18 = vadd.f32 %v2511_v1, %v1917_v57  ;;  %v1222_v34 = vpop.f32.mrf.mxu1  ;;  %v3730_v57 = vrot.slane %v3728_v23, 7  ;;  %v4630_v1 = vshrl.u32 %v4392_v32, 16  ;;  %v3090_v41 = vrot.slane %v3089_v48, 4 }
 0x1e9   : > { %v1883_v24 = vpop.f32.mrf.mxu2  ;;  %v1256_v20 = vadd.f32 %v1222_v34, %v992_v8  ;;  %v3739_v8 = vrot.slane %v3737_v52, 7  ;;  %v4633_v2 = vshll.u32 %v4392_v32, 16  ;;  %v4639_v34 = vshll.u32 %v4393_v28, 16 }
 0x1ea   : > { %v1918_v15 = vadd.f32 %v1883_v24, %v1255_v30  ;;  %v6532_v30 = vrot.slane %v3723_v39, 11  ;;  %v4632_v53 = vrot.slane %v4630_v1, 4  ;;  %v3733_v38 = vor.u32 %v3731_v42, %v3730_v57 }
 0x1eb   : > { %v3735_v37 = vrot.slane %v3730_v57, 4  ;;  %v4643_v4 = vshrl.u32 %v4393_v28, 16  ;;  %v7949_v24 = vunpack.c.l.b16 %v4618_v56  ;;  %v3085_v9 = vsel %vm7009_vm14, %v3080_v58, %v7927_v40  ;;  %v2839_v56 = vld [vmem:[#allocation2 + $0xb8] sm:$0xf] }
 0x1ec   : > { %6626 = vmatmul.msk.bf16.gmra.mxu3 %vm816_vm8, %v6696_v12  ;;  %v3742_v54 = vor.u32 %v3740_v61, %v3739_v8  ;;  %v4635_v21 = vrot.slane %v4633_v2, 5  ;;  %v7956_v16 = vrot.slane %v4639_v34, 5  ;;  %v4649_v39 = vshll.u32 %v4394_v59, 16  ;;  %v2838_v61 = vld [vmem:[#allocation2 + $0xb4] sm:$0xf] }
 0x1ed   : > { %v4645_v32 = vrot.slane %v4643_v4, 4  ;;  %v7958_v42 = vunpack.c.l.b16 %v4628_v63  ;;  %v3095_v52 = vsel %vm7009_vm14, %v3090_v41, %v3094_v25  ;;  %v7964_v1 = vadd.f32 %v7708_v27, %v7717_v35  ;;  %v3507_v59 = vld [vmem:[#allocation2 + $0xc4] sm:$0xf]  ;;  %v2840_v34 = vld [vmem:[#allocation2 + $0xbc] sm:$0x1] }
 0x1ee   : > { %v4636_v28 = vor.u32 %v4635_v21, %v4632_v53  ;;  %v7968_v40 = vunpack.c.l.b16 %v3085_v9  ;;  %v3743_v58 = vsel %vm6816_vm9, %v3735_v37, %v3742_v54  ;;  %v7976_v63 = vadd.f32 %v7739_v43, %v7747_v22 }
 0x1ef   : > { %v7947_v23 = vpop.f32.mrf.mxu0  ;;  %v2514_v12 = vpop.f32.mrf.mxu3  ;;  %v4646_v27 = vor.u32 %v4645_v32, %v7956_v16  ;;  %v3097_v35 = vshrl.u32 %v2838_v61, 16  ;;  %v3106_v41 = vshll.u32 %v2839_v56, 16  ;;  %v7979_v25 = vunpack.c.l.b16 %v3095_v52 }
 0x1f0   : > { %8828 = vst [vmem:[#allocation5_spill] sm:$0xff] %v7947_v23  ;;  %v7954_v31 = vadd.f32 %v2514_v12, %v1918_v15  ;;  %v3363_v48 = vpop.f32.mrf.mxu1  ;;  %v3734_v15 = vsel %vm6816_vm9, %v6532_v30, %v3733_v38  ;;  %v7981_v8 = vrot.slane %v4649_v39, 5  ;;  %v3110_v30 = vshrl.u32 %v2839_v56, 16  ;;  %v3506_v12 = vld [vmem:[#allocation2 + $0xc0] sm:$0x8] }
 0x1f1   : > { %v1885_v57 = vpop.f32.mrf.mxu2  ;;  %v7983_v53 = vrot.slane %v4636_v28, 4  ;;  %v3099_v2 = vrot.slane %v3097_v35, 4  ;;  %v7985_v37 = vrot.slane %v3106_v41, 5  ;;  %v3895_v43 = vunpack.c.l.b16 %v3734_v15  ;;  %v6697_v28 = vld [vmem:[#allocation2 + $0xa4] sm:$0xff] }
 0x1f2   : > { %6642 = vmatmul.msk.bf16.gmra.mxu0 %vm816_vm8, %v4837_v60  ;;  %v3100_v60 = vshll.u32 %v2838_v61, 16  ;;  %v3896_v22 = vunpack.c.l.b16 %v3743_v58  ;;  %v3112_v4 = vrot.slane %v3110_v30, 4  ;;  %v4647_v21 = vrot.slane %v4646_v27, 4  ;;  %v4395_v30 = vld [vmem:[#allocation2 + $0xc4] sm:$0xf] }
 0x1f3   : > { %6515 = vmatmul.msk.bf16.gmra.mxu1 %vm816_vm8, %v3282_v3  ;;  %v1919_v3 = vadd.f32 %v1885_v57, %v1256_v20  ;;  %v3750_v20 = vshrl.u32 %v3507_v59, 16  ;;  %v3116_v39 = vshll.u32 %v2840_v34, 16  ;;  %v3745_v57 = vshrl.u32 %v3506_v12, 16 }
 0x1f4   : > { %v3102_v38 = vrot.slane %v3100_v60, 5  ;;  %v3113_v56 = vor.u32 %v3112_v4, %v7985_v37  ;;  %v3753_v58 = vshll.u32 %v3507_v59, 16  ;;  %v4838_v35 = vpack.c.b16 %v7958_v42, %v7949_v24 }
 0x1f5   : > { %v3752_v15 = vrot.slane %v3750_v20, 7  ;;  %v3283_v41 = vpack.c.b16 %v7979_v25, %v7968_v40  ;;  %v3118_v34 = vrot.slane %v3116_v39, 5  ;;  %v6533_v12 = vrot.slane %v3745_v57, 11  ;;  %v4396_v20 = vld [vmem:[#allocation2 + $0xc8] sm:$0xf] }
 0x1f6   : > { %6547 = vmatmul.msk.bf16.gmra.mxu2 %vm816_vm8, %v3917_v13  ;;  %v3103_v32 = vor.u32 %v3102_v38, %v3099_v2  ;;  %v3508_v13 = vld [vmem:[#allocation2 + $0xc8] sm:$0xf]  ;;  %v3443_v2 = vadd.f32 %v3363_v48, %v7252_v36  ;;  %v3114_v38 = vrot.slane %v3113_v56, 4  ;;  %v4642_v24 = vsel %vm7009_vm14, %v7983_v53, %v7956_v16 }
 0x1f7   : > { %v7988_v9 = vpop.f32.mrf.mxu0  ;;  %v2516_v54 = vpop.f32.mrf.mxu3  ;;  %v3759_v4 = vshrl.u32 %v3508_v13, 16  ;;  %v4652_v36 = vsel %vm7009_vm14, %v4647_v21, %v7981_v8  ;;  %v4654_v48 = vshrl.u32 %v4395_v30, 16  ;;  %v3757_v40 = vrot.slane %v3752_v15, 4 }
 0x1f8   : > { %8829 = vst [vmem:[#allocation6_spill] sm:$0xff] %v7988_v9  ;;  %v7990_v52 = vadd.f32 %v2516_v54, %v1919_v3  ;;  %v3365_v61 = vpop.f32.mrf.mxu1  ;;  %v3104_v27 = vrot.slane %v3103_v32, 4  ;;  %v3918_v3 = vpack.c.b16 %v3896_v22, %v3895_v43  ;;  %v3755_v54 = vor.u32 %v3753_v58, %v3752_v15  ;;  %v4397_v43 = vld [vmem:[#allocation2 + $0xcc] sm:$0x1] }
 0x1f9   : > { %v3989_v60 = vpop.f32.mrf.mxu2  ;;  %v3762_v9 = vshll.u32 %v3508_v13, 16  ;;  %v3761_v25 = vrot.slane %v3759_v4, 7  ;;  %v4657_v22 = vshll.u32 %v4395_v30, 16  ;;  %v3119_v32 = vsel %vm7009_vm14, %v3114_v38, %v3118_v34 }
 0x1fa   : > { %8830 = vst [vmem:[#allocation7_spill] sm:$0xff] %v7990_v52  ;;  %v4069_v59 = vadd.f32 %v3989_v60, %v3443_v2  ;;  %v3109_v42 = vsel %vm7009_vm14, %v3104_v27, %v7985_v37  ;;  %v4656_v39 = vrot.slane %v4654_v48, 4  ;;  %v4663_v57 = vshll.u32 %v4396_v20, 16 }
 0x1fb   : > { %v3756_v8 = vsel %vm6816_vm9, %v6533_v12, %v3755_v54  ;;  %v3764_v21 = vor.u32 %v3762_v9, %v3761_v25  ;;  %v4659_v56 = vrot.slane %v4657_v22, 5  ;;  %v8015_v37 = vadd.f32 %v7763_v5, %v7774_v10 }
 0x1fc   : > { %6627 = vmatmul.msk.bf16.gmra.mxu3 %vm816_vm8, %v6697_v28  ;;  %v4667_v28 = vshrl.u32 %v4396_v20, 16  ;;  %v4665_v58 = vrot.slane %v4663_v57, 5  ;;  %v4673_v27 = vshll.u32 %v4397_v43, 16  ;;  %v8017_v2 = vunpack.c.l.b16 %v4642_v24  ;;  %v2842_v43 = vld [vmem:[#allocation2 + $0xc8] sm:$0xf]  ;;  %v6698_v57 = vld [vmem:[#allocation2 + $0xb4] sm:$0xff] }
 0x1fd   : > { %v3765_v38 = vsel %vm6816_vm9, %v3757_v40, %v3764_v21  ;;  %v4660_v34 = vor.u32 %v4659_v56, %v4656_v39  ;;  %v8023_v9 = vadd.f32 %v7810_v46, %v7814_v0  ;;  %v3444_v10 = vadd.f32 %v3365_v61, %v7259_v11  ;;  %v8831_v39 = vld [vmem:[#allocation9_spill] sm:$0xff] }
 0x1fe   : > { %v4669_v60 = vrot.slane %v4667_v28, 4  ;;  %v8028_v12 = vunpack.c.l.b16 %v4652_v36  ;;  %v8030_v4 = vunpack.c.l.b16 %v3109_v42  ;;  %v8032_v20 = vunpack.c.l.b16 %v3119_v32  ;;  %v2841_v42 = vld [vmem:[#allocation2 + $0xc4] sm:$0xf] }
 0x1ff   : > { %v4906_v16 = vpop.f32.mrf.mxu0  ;;  %v4253_v53 = vpop.f32.mrf.mxu3  ;;  %v4661_v24 = vrot.slane %v4660_v34, 4  ;;  %v3898_v40 = vunpack.c.l.b16 %v3765_v38  ;;  %v4675_v0 = vrot.slane %v4673_v27, 5  ;;  %v8043_v22 = vadd.f32 %v7825_v62, %v7831_v7 }
 0x200   : > { %v4333_v13 = vadd.f32 %v4253_v53, %v4069_v59  ;;  %v3368_v15 = vpop.f32.mrf.mxu1  ;;  %v4670_v54 = vor.u32 %v4669_v60, %v4665_v58  ;;  %v3897_v59 = vunpack.c.l.b16 %v3756_v8  ;;  %v3130_v62 = vshll.u32 %v2842_v43, 16 }
 0x201   : > { %v3991_v30 = vpop.f32.mrf.mxu2  ;;  %v4666_v36 = vsel %vm7009_vm14, %v4661_v24, %v4665_v58  ;;  %v3124_v58 = vshll.u32 %v2841_v42, 16  ;;  %v3134_v34 = vshrl.u32 %v2842_v43, 16 }
 0x202   : > { %6643 = vmatmul.msk.bf16.gmra.mxu0 %vm816_vm8, %v4838_v35  ;;  %v4986_v5 = vadd.f32 %v4906_v16, %v4333_v13  ;;  %v4070_v48 = vadd.f32 %v3991_v30, %v3444_v10  ;;  %v4671_v46 = vrot.slane %v4670_v54, 4  ;;  %v4839_v35 = vpack.c.b16 %v8028_v12, %v8017_v2 }
 0x203   : > { %6516 = vmatmul.msk.bf16.gmra.mxu1 %vm816_vm8, %v3283_v41  ;;  %v3284_v41 = vpack.c.b16 %v8032_v20, %v8030_v4  ;;  %v8046_v16 = vpack.c.b16 %v3898_v40, %v3897_v59  ;;  %v3121_v13 = vshrl.u32 %v2841_v42, 16  ;;  %v8050_v30 = vunpack.c.l.b16 %v4666_v36  ;;  %v3509_v4 = vld [vmem:[#allocation2 + $0xd0] sm:$0x8] }
 0x204   : > { %v5018_v25 = vmax.f32 %v4986_v5, 0.0  ;;  %v4676_v53 = vsel %vm7009_vm14, %v4671_v46, %v4675_v0  ;;  %v3126_v38 = vrot.slane %v3124_v58, 5  ;;  %v3132_v12 = vrot.slane %v3130_v62, 5  ;;  %v8073_v62 = vld [vmem:[#allocation2 + $0xd8] sm:$0xf] }
 0x205   : > { %v8052_v7 = vunpack.c.l.b16 %v4676_v53  ;;  %v3123_v2 = vrot.slane %v3121_v13, 4 }
 0x206   : > { %6548 = vmatmul.msk.bf16.gmra.mxu2 %vm816_vm8, %v3918_v3  ;;  %v3445_v3 = vadd.f32 %v3368_v15, %v8831_v39  ;;  %v5082_v8 = vrot.slane %v5018_v25, 2  ;;  %v5083_v21 = vrot.slane %v5018_v25, 4  ;;  %v5084_v60 = vrot.slane %v5018_v25, 6  ;;  %v2843_v15 = vld [vmem:[#allocation2 + $0xcc] sm:$0x1] }
 0x207   : > { %v4908_v11 = vpop.f32.mrf.mxu0  ;;  %v4255_v61 = vpop.f32.mrf.mxu3  ;;  %v3140_v54 = vshll.u32 %v2843_v15, 16  ;;  %v8056_v20 = vsel %vm5274_vm15, %v5018_v25, -inf  ;;  %v3127_v24 = vor.u32 %v3126_v38, %v3123_v2  ;;  %v8085_v38 = vld [vmem:[#allocation2 + $0xd4] sm:$0xf] }
 0x208   : > { %v4334_v32 = vadd.f32 %v4255_v61, %v4070_v48  ;;  %v3370_v28 = vpop.f32.mrf.mxu1  ;;  %v8059_v59 = vsel %vm5274_vm15, %v5082_v8, -inf  ;;  %v3136_v48 = vrot.slane %v3134_v34, 4  ;;  %v8062_v40 = vsel %vm5274_vm15, %v5083_v21, -inf }
 0x209   : > { %v3994_v56 = vpop.f32.mrf.mxu2  ;;  %v3767_v61 = vshrl.u32 %v3509_v4, 16  ;;  %v5284_v25 = vsel %vm5274_vm15, %v5084_v60, -inf  ;;  %v3446_v53 = vadd.f32 %v3370_v28, %v7283_v51  ;;  %v4840_v21 = vpack.c.b16 %v8052_v7, %v8050_v30 }
 0x20a   : > { %v4987_v27 = vadd.f32 %v4908_v11, %v4334_v32  ;;  %v4071_v10 = vadd.f32 %v3994_v56, %v3445_v3  ;;  %v3510_v11 = vld [vmem:[#allocation2 + $0xd4] sm:$0xf]  ;;  %v3128_v32 = vrot.slane %v3127_v24, 4  ;;  %v3137_v39 = vor.u32 %v3136_v48, %v3132_v12  ;;  %v8832_v24 = vld [vmem:[#allocation10_spill] sm:$0xff] }
 0x20b   : > { %v3142_v3 = vrot.slane %v3140_v54, 5  ;;  %v3772_v15 = vshrl.u32 %v3510_v11, 16  ;;  %v8083_v2 = vrot.slane %v3767_v61, 11 }
 0x20c   : > { %v5019_v5 = vmax.f32 %v4987_v27, 0.0  ;;  %6628 = vmatmul.msk.bf16.gmra.mxu3 %vm816_vm8, %v6698_v57  ;;  %v3133_v58 = vsel %vm7009_vm14, %v3128_v32, %v3132_v12  ;;  %v3138_v27 = vrot.slane %v3137_v39, 4  ;;  %v3775_v12 = vshll.u32 %v3510_v11, 16 }
 0x20d   : > { %v8095_v48 = vunpack.c.l.b16 %v3133_v58 }
 0x20e   : > { %v5085_v46 = vrot.slane %v5019_v5, 2  ;;  %v5086_v0 = vrot.slane %v5019_v5, 4  ;;  %v5087_v36 = vrot.slane %v5019_v5, 6  ;;  %v8069_v56 = vsel %vm5274_vm15, %v5019_v5, -inf }
 0x20f   : > { %v4911_v42 = vpop.f32.mrf.mxu0  ;;  %v4258_v43 = vpop.f32.mrf.mxu3  ;;  %v3143_v5 = vsel %vm7009_vm14, %v3138_v27, %v3142_v3 }
 0x210   : > { %v4335_v57 = vadd.f32 %v4258_v43, %v4071_v10  ;;  %v3373_v8 = vpop.f32.mrf.mxu1  ;;  %v8076_v60 = vsel %vm5274_vm15, %v5085_v46, -inf  ;;  %v8079_v51 = vsel %vm5274_vm15, %v5086_v0, -inf  ;;  %v8088_v34 = vsel %vm5274_vm15, %v5087_v36, -inf }
 0x211   : > { %v3996_v13 = vpop.f32.mrf.mxu2  ;;  %v8092_v10 = vrot.slane %v3772_v15, 7  ;;  %v3781_v46 = vshrl.u32 %v8073_v62, 16 }
 0x212   : > { %6644 = vmatmul.msk.bf16.gmra.mxu0 %vm816_vm8, %v4839_v35  ;;  %v4988_v28 = vadd.f32 %v4911_v42, %v4335_v57  ;;  %v4072_v4 = vadd.f32 %v3996_v13, %v3446_v53  ;;  %v3447_v35 = vadd.f32 %v3373_v8, %v8832_v24  ;;  %v8110_v53 = vld [vmem:[#allocation2 + $0xd8] sm:$0xf] }
 0x213   : > { %6517 = vmatmul.msk.bf16.gmra.mxu1 %vm816_vm8, %v3284_v41  ;;  %v8097_v41 = vunpack.c.l.b16 %v3143_v5  ;;  %v8107_v3 = vor.u32 %v3775_v12, %v8092_v10  ;;  %v8119_v57 = vrot.slane %v3781_v46, 7 }
 0x214   : > { %v5020_v54 = vmax.f32 %v4988_v28, 0.0  ;;  %v6699_v28 = vld [vmem:[#allocation2 + $0xc4] sm:$0xff] }
 0x216   : > { %v5088_v36 = vrot.slane %v5020_v54, 2  ;;  %v5089_v42 = vrot.slane %v5020_v54, 4  ;;  %v5090_v43 = vrot.slane %v5020_v54, 6  ;;  %v5276_v32 = vsel %vm5274_vm15, %v5020_v54, -inf  ;;  %6549 = vmatmul.msk.bf16.gmra.mxu2 %vm816_vm8, %v8046_v16 }
 0x217   : > { %v5277_v11 = vmax.f32 %v8056_v20, %v5276_v32  ;;  %v4260_v39 = vpop.f32.mrf.mxu3  ;;  %v4913_v15 = vpop.f32.mrf.mxu0 }
 0x218   : > { %v5279_v13 = vsel %vm5274_vm15, %v5088_v36, -inf  ;;  %v5282_v58 = vsel %vm5274_vm15, %v5089_v42, -inf  ;;  %v5285_v27 = vsel %vm5274_vm15, %v5090_v43, -inf  ;;  %v4336_v16 = vadd.f32 %v4260_v39, %v4072_v4  ;;  %v3375_v8 = vpop.f32.mrf.mxu1 }
 0x219   : > { %v5280_v20 = vmax.f32 %v8059_v59, %v5279_v13  ;;  %v5283_v5 = vmax.f32 %v8062_v40, %v5282_v58  ;;  %v5286_v12 = vmax.f32 %v5284_v25, %v5285_v27  ;;  %v5467_v54 = vsel %vm5274_vm15, %v5277_v11, -inf  ;;  %v3999_v24 = vpop.f32.mrf.mxu2  ;;  %v8833_v58 = vld [vmem:[#allocation11_spill] sm:$0xff] }
 0x21a   : > { %v5468_v32 = vrot.slane %v5467_v54, 4  ;;  %v4989_v61 = vadd.f32 %v4913_v15, %v4336_v16  ;;  %v8125_v59 = vadd.f32 %v3999_v24, %v3447_v35  ;;  %v8129_v46 = vadd.f32 %v3375_v8, %v8833_v58 }
 0x21b   : > { %v5474_v42 = vsel %vm5274_vm15, %v5280_v20, -inf  ;;  %v5481_v4 = vsel %vm5274_vm15, %v5283_v5, -inf  ;;  %v5488_v43 = vsel %vm5274_vm15, %v5286_v12, -inf  ;;  %v3285_v27 = vpack.c.b16 %v8097_v41, %v8095_v48 }
 0x21c   : > { %v5469_v40 = vmax.f32 %v5467_v54, %v5468_v32  ;;  %v5475_v25 = vrot.slane %v5474_v42, 4  ;;  %v5482_v39 = vrot.slane %v5481_v4, 4  ;;  %v5489_v11 = vrot.slane %v5488_v43, 4  ;;  %6629 = vmatmul.msk.bf16.gmra.mxu3 %vm816_vm8, %v6699_v28 }
 0x21d   : > { %v5021_v13 = vmax.f32 %v4989_v61, 0.0 }
 0x21e   : > { %v5470_v35 = vrot.slane %v5469_v40, 2  ;;  %v5476_v16 = vmax.f32 %v5474_v42, %v5475_v25  ;;  %v5483_v20 = vmax.f32 %v5481_v4, %v5482_v39  ;;  %v5490_v5 = vmax.f32 %v5488_v43, %v5489_v11 }
 0x21f   : > { %v5091_v12 = vrot.slane %v5021_v13, 2  ;;  %v5092_v54 = vrot.slane %v5021_v13, 4  ;;  %v5093_v24 = vrot.slane %v5021_v13, 6  ;;  %v5288_v61 = vsel %vm5274_vm15, %v5021_v13, -inf  ;;  %v4263_v36 = vpop.f32.mrf.mxu3  ;;  %v4916_v11 = vpop.f32.mrf.mxu0 }
 0x220   : > { %v5471_v28 = vmax.f32 %v5469_v40, %v5470_v35  ;;  %v5477_v8 = vrot.slane %v5476_v16, 2  ;;  %v5484_v32 = vrot.slane %v5483_v20, 2  ;;  %v5491_v58 = vrot.slane %v5490_v5, 2 }
 0x221   : > { %v5289_v48 = vmax.f32 %v8069_v56, %v5288_v61  ;;  %v5291_v41 = vsel %vm5274_vm15, %v5091_v12, -inf  ;;  %v5294_v15 = vsel %vm5274_vm15, %v5092_v54, -inf  ;;  %v5297_v42 = vsel %vm5274_vm15, %v5093_v24, -inf  ;;  %v3378_v54 = vpop.f32.mrf.mxu1 }
 0x222   : > { %v5472_v4 = vrot.slane %v5471_v28, 1  ;;  %v5478_v43 = vmax.f32 %v5476_v16, %v5477_v8  ;;  %v5485_v25 = vmax.f32 %v5483_v20, %v5484_v32  ;;  %v5492_v39 = vmax.f32 %v5490_v5, %v5491_v58  ;;  %6645 = vmatmul.msk.bf16.gmra.mxu0 %vm816_vm8, %v4840_v21 }
 0x223   : > { %6518 = vmatmul.msk.bf16.gmra.mxu1 %vm816_vm8, %v3285_v27  ;;  %v5292_v56 = vmax.f32 %v8076_v60, %v5291_v41  ;;  %v5295_v40 = vmax.f32 %v8079_v51, %v5294_v15  ;;  %v5298_v13 = vmax.f32 %v8088_v34, %v5297_v42  ;;  %v5495_v35 = vsel %vm5274_vm15, %v5289_v48, -inf  ;;  %v4001_v15 = vpop.f32.mrf.mxu2 }
 0x224   : > { %v5473_v16 = vmax.f32 %v5471_v28, %v5472_v4  ;;  %v5479_v20 = vrot.slane %v5478_v43, 1  ;;  %v5486_v5 = vrot.slane %v5485_v25, 1  ;;  %v5493_v12 = vrot.slane %v5492_v39, 1  ;;  %v6700_v4 = vld [vmem:[#allocation2 + $0xd4] sm:$0xff] }
 0x225   : > { %v5496_v24 = vrot.slane %v5495_v35, 4  ;;  %v5502_v30 = vsel %vm5274_vm15, %v5292_v56, -inf  ;;  %v5509_v7 = vsel %vm5274_vm15, %v5295_v40, -inf  ;;  %v5516_v21 = vsel %vm5274_vm15, %v5298_v13, -inf }
 0x226   : > { %v5480_v27 = vmax.f32 %v5478_v43, %v5479_v20  ;;  %v5487_v60 = vmax.f32 %v5485_v25, %v5486_v5  ;;  %v5494_v61 = vmax.f32 %v5492_v39, %v5493_v12  ;;  %v5915_v51 = vpack.c.bf16 %v5473_v16, %v5473_v16 }
 0x227   : > { %v5497_v34 = vmax.f32 %v5495_v35, %v5496_v24  ;;  %v5503_v8 = vrot.slane %v5502_v30, 4  ;;  %v5510_v32 = vrot.slane %v5509_v7, 4  ;;  %v5517_v28 = vrot.slane %v5516_v21, 4  ;;  %v4265_v39 = vpop.f32.mrf.mxu3 }
 0x228   : > { %v5916_v58 = vpack.c.bf16 %v5480_v27, %v5480_v27  ;;  %v5917_v48 = vpack.c.bf16 %v5487_v60, %v5487_v60  ;;  %v5918_v41 = vpack.c.bf16 %v5494_v61, %v5494_v61  ;;  %v6043_v42 = vunpack.c.l.b16 %v5915_v51  ;;  %v4918_v27 = vpop.f32.mrf.mxu0 }
 0x229   : > { %v5498_v0 = vrot.slane %v5497_v34, 2  ;;  %v5504_v56 = vmax.f32 %v5502_v30, %v5503_v8  ;;  %v5511_v52 = vmax.f32 %v5509_v7, %v5510_v32  ;;  %v5518_v40 = vmax.f32 %v5516_v21, %v5517_v28  ;;  %v8834_v7 = vld [vmem:[#allocation12_spill] sm:$0xff] }
 0x22a   : > { %v6044_v23 = vunpack.c.l.b16 %v5916_v58  ;;  %v6045_v13 = vunpack.c.l.b16 %v5917_v48  ;;  %v6046_v43 = vunpack.c.l.b16 %v5918_v41  ;;  %v4337_v25 = vadd.f32 %v4263_v36, %v8125_v59 }
 0x22b   : > { %v5499_v35 = vmax.f32 %v5497_v34, %v5498_v0  ;;  %v5505_v16 = vrot.slane %v5504_v56, 2  ;;  %v5512_v20 = vrot.slane %v5511_v52, 2  ;;  %v5519_v5 = vrot.slane %v5518_v40, 2  ;;  %v3380_v34 = vpop.f32.mrf.mxu1 }
 0x22c   : > { %v6108_v12 = vsel %vm6107_vm0, %v6044_v23, %v6043_v42  ;;  %v4990_v24 = vadd.f32 %v4916_v11, %v4337_v25  ;;  %v4074_v30 = vadd.f32 %v4001_v15, %v8129_v46  ;;  %v8158_v21 = vadd.f32 %v3378_v54, %v8834_v7  ;;  %6630 = vmatmul.msk.bf16.gmra.mxu3 %vm816_vm8, %v6700_v4 }
 0x22d   : > { %v6110_v60 = vsel %vm6109_vm1, %v6045_v13, %v6108_v12  ;;  %v5500_v36 = vrot.slane %v5499_v35, 1  ;;  %v5506_v59 = vmax.f32 %v5504_v56, %v5505_v16  ;;  %v5513_v0 = vmax.f32 %v5511_v52, %v5512_v20  ;;  %v4004_v52 = vpop.f32.mrf.mxu2 }
 0x22e   : > { %v6112_v61 = vsel %vm6111_vm2, %v6046_v43, %v6110_v60  ;;  %v5520_v51 = vmax.f32 %v5518_v40, %v5519_v5  ;;  %v5022_v23 = vmax.f32 %v4990_v24, 0.0  ;;  %v4338_v11 = vadd.f32 %v4265_v39, %v4074_v30 }
 0x22f   : > { %v5501_v8 = vmax.f32 %v5499_v35, %v5500_v36  ;;  %v5507_v46 = vrot.slane %v5506_v59, 1  ;;  %v5514_v15 = vrot.slane %v5513_v0, 1  ;;  %v8835_v54 = vshll.u32 %v8073_v62, 16  ;;  %v4268_v36 = vpop.f32.mrf.mxu3 }
 0x230   : > { %v5521_v28 = vrot.slane %v5520_v51, 1  ;;  %v5094_v58 = vrot.slane %v5022_v23, 2  ;;  %v5095_v48 = vrot.slane %v5022_v23, 4  ;;  %v5096_v41 = vrot.slane %v5022_v23, 6 }
 0x231   : > { %v3786_v32 = vor.u32 %v8835_v54, %v8119_v57  ;;  %v5508_v42 = vmax.f32 %v5506_v59, %v5507_v46  ;;  %v5515_v4 = vmax.f32 %v5513_v0, %v5514_v15  ;;  %v5919_v56 = vpack.c.bf16 %v5501_v8, %v5501_v8 }
 0x232   : > { %v8167_v40 = vsel %vm5274_vm15, %v5022_v23, -inf  ;;  %v5522_v13 = vmax.f32 %v5520_v51, %v5521_v28  ;;  %v8170_v43 = vsel %vm5274_vm15, %v5094_v58, -inf  ;;  %v8173_v62 = vsel %vm5274_vm15, %v5095_v48, -inf  ;;  %v4921_v23 = vpop.f32.mrf.mxu0  ;;  %v4400_v58 = vld [vmem:[#allocation2 + $0xdc] sm:$0x1] }
 0x233   : > { %v8176_v57 = vsel %vm5274_vm15, %v5096_v41, -inf  ;;  %v5920_v25 = vpack.c.bf16 %v5508_v42, %v5508_v42  ;;  %v5921_v39 = vpack.c.bf16 %v5515_v4, %v5515_v4  ;;  %v6047_v35 = vunpack.c.l.b16 %v5919_v56  ;;  %v3383_v4 = vpop.f32.mrf.mxu1  ;;  %v2844_v56 = vld [vmem:[#allocation2 + $0xd4] sm:$0xf] }
 0x234   : > { %v4991_v16 = vadd.f32 %v4918_v27, %v4338_v11  ;;  %v5922_v20 = vpack.c.bf16 %v5522_v13, %v5522_v13  ;;  %v8836_v5 = vrot.slane %v8092_v10, 4  ;;  %v8837_v24 = vsel %vm6816_vm9, %v8083_v2, %v8107_v3 }
 0x235   : > { %v3899_v30 = vunpack.c.l.b16 %v8837_v24  ;;  %v8838_v7 = vshrl.u32 %v8085_v38, 16  ;;  %v6048_v59 = vunpack.c.l.b16 %v5920_v25  ;;  %v6049_v0 = vunpack.c.l.b16 %v5921_v39  ;;  %v2845_v24 = vld [vmem:[#allocation2 + $0xd8] sm:$0xf] }
 0x236   : > { %v3787_v12 = vsel %vm6816_vm9, %v8836_v5, %v3786_v32  ;;  %v6114_v27 = vsel %vm6113_vm3, %v6047_v35, %v6112_v61  ;;  %v5023_v51 = vmax.f32 %v4991_v16, 0.0  ;;  %v6050_v10 = vunpack.c.l.b16 %v5922_v20 }
 0x237   : > { %v4680_v60 = vrot.slane %v8838_v7, 4  ;;  %v3900_v11 = vunpack.c.l.b16 %v3787_v12  ;;  %v8839_v8 = vshll.u32 %v8085_v38, 16  ;;  %v8840_v15 = vshll.u32 %v8110_v53, 16  ;;  %v4006_v12 = vpop.f32.mrf.mxu2  ;;  %v8841_v7 = vld [vmem:[#allocation13_spill] sm:$0xff] }
 0x238   : > { %v6116_v3 = vsel %vm6115_vm5, %v6048_v59, %v6114_v27  ;;  %v5097_v54 = vrot.slane %v5023_v51, 2  ;;  %v5098_v32 = vrot.slane %v5023_v51, 4  ;;  %v5099_v28 = vrot.slane %v5023_v51, 6  ;;  %v8842_v59 = vld [vmem:[#allocation14_spill] sm:$0xff] }
 0x239   : > { %v4683_v46 = vrot.slane %v8839_v8, 5  ;;  %v4689_v2 = vrot.slane %v8840_v15, 5  ;;  %v6118_v48 = vsel %vm6117_vm6, %v6049_v0, %v6116_v3  ;;  %v8198_v61 = vsel %vm5274_vm15, %v5023_v51, -inf  ;;  %v2846_v27 = vld [vmem:[#allocation2 + $0xdc] sm:$0x1] }
 0x23a   : > { %v3920_v41 = vpack.c.b16 %v3900_v11, %v3899_v30  ;;  %v6120_v38 = vsel %vm6119_vm7, %v6050_v10, %v6118_v48  ;;  %v8207_v13 = vsel %vm5274_vm15, %v5097_v54, -inf  ;;  %v8210_v25 = vsel %vm5274_vm15, %v5098_v32, -inf  ;;  %v3512_v10 = vld [vmem:[#allocation2 + $0xe0] sm:$0x8] }
 0x23b   : > { %v4684_v42 = vor.u32 %v4683_v46, %v4680_v60  ;;  %v8213_v39 = vsel %vm5274_vm15, %v5099_v28, -inf  ;;  %v6170_v35 = vpack.c.b16 %v6120_v38, %v6120_v38  ;;  %v4691_v20 = vshrl.u32 %v8110_v53, 16 }
 0x23c   : > { %6550 = vmatmul.msk.bf16.gmra.mxu2 %vm816_vm8, %v3920_v41  ;;  %v4697_v5 = vshll.u32 %v4400_v58, 16  ;;  %v4075_v30 = vadd.f32 %v4004_v52, %v8158_v21  ;;  %v3450_v60 = vadd.f32 %v3380_v34, %v8841_v7  ;;  %v8220_v0 = vadd.f32 %v3383_v4, %v8842_v59  ;;  %v4270_v34 = vpop.f32.mrf.mxu3  ;;  %v8226_v4 = vld [vmem:[#allocation2 + $0xe4] sm:$0xf] }
 0x23d   : > { %v4685_v16 = vrot.slane %v4684_v42, 4  ;;  %v3145_v51 = vshrl.u32 %v2844_v56, 16  ;;  %6187 = vst.msk [vmem:[%s8203_s23] sm:$0xf] %vm6186_vm10, %v6170_v35  ;;  %v4693_v8 = vrot.slane %v4691_v20, 4  ;;  %v3148_v46 = vshll.u32 %v2844_v56, 16 }
 0x23e   : > { %v4699_v53 = vrot.slane %v4697_v5, 5  ;;  %v4339_v3 = vadd.f32 %v4268_v36, %v4075_v30  ;;  %v4076_v54 = vadd.f32 %v4006_v12, %v3450_v60  ;;  %v3154_v28 = vshll.u32 %v2845_v24, 16 }
 0x23f   : > { %v4690_v11 = vsel %vm7009_vm14, %v4685_v16, %v4689_v2  ;;  %v3147_v21 = vrot.slane %v3145_v51, 4  ;;  %v4694_v52 = vor.u32 %v4693_v8, %v4689_v2  ;;  %v3150_v32 = vrot.slane %v3148_v46, 5  ;;  %v4923_v16 = vpop.f32.mrf.mxu0 }
 0x240   : > { %v4820_v15 = vunpack.c.l.b16 %v4690_v11  ;;  %v3158_v58 = vshrl.u32 %v2845_v24, 16  ;;  %v4992_v48 = vadd.f32 %v4921_v23, %v4339_v3  ;;  %v4340_v41 = vadd.f32 %v4270_v34, %v4076_v54 }
 0x241   : > { %v3164_v42 = vshll.u32 %v2846_v27, 16  ;;  %v3789_v38 = vshrl.u32 %v3512_v10, 16  ;;  %v4695_v35 = vrot.slane %v4694_v52, 4  ;;  %v3151_v20 = vor.u32 %v3150_v32, %v3147_v21 }
 0x242   : > { %v8228_v5 = vrot.slane %v3154_v28, 5  ;;  %v3160_v56 = vrot.slane %v3158_v58, 4  ;;  %v5024_v36 = vmax.f32 %v4992_v48, 0.0  ;;  %v4993_v12 = vadd.f32 %v4923_v16, %v4340_v41  ;;  %v6701_v48 = vld [vmem:[#allocation2 + $0xe4] sm:$0xff] }
 0x243   : > { %v8230_v30 = vrot.slane %v3164_v42, 5  ;;  %v8232_v2 = vrot.slane %v3789_v38, 11  ;;  %v4700_v23 = vsel %vm7009_vm14, %v4695_v35, %v4699_v53  ;;  %v8236_v24 = vrot.slane %v3151_v20, 4  ;;  %6631 = vmatmul.msk.bf16.gmra.mxu3 %vm816_vm8, %v6701_v48 }
 0x244   : > { %v3161_v7 = vor.u32 %v3160_v56, %v8228_v5  ;;  %v3794_v60 = vshrl.u32 %v8226_v4, 16  ;;  %v4821_v59 = vunpack.c.l.b16 %v4700_v23  ;;  %v5100_v27 = vrot.slane %v5024_v36, 2 }
 0x245   : > { %v5101_v51 = vrot.slane %v5024_v36, 4  ;;  %v5102_v10 = vrot.slane %v5024_v36, 6  ;;  %v5300_v11 = vsel %vm5274_vm15, %v5024_v36, -inf  ;;  %v5025_v8 = vmax.f32 %v4993_v12, 0.0 }
 0x246   : > { %v3157_v46 = vsel %vm7009_vm14, %v8236_v24, %v8228_v5  ;;  %v8245_v3 = vrot.slane %v3161_v7, 4  ;;  %v4841_v53 = vpack.c.b16 %v4821_v59, %v4820_v15  ;;  %v5301_v54 = vmax.f32 %v8167_v40, %v5300_v11  ;;  %v4401_v24 = vld [vmem:[#allocation2 + $0xe4] sm:$0xf] }
 0x247   : > { %v5303_v21 = vsel %vm5274_vm15, %v5100_v27, -inf  ;;  %v5306_v52 = vsel %vm5274_vm15, %v5101_v51, -inf  ;;  %v5309_v28 = vsel %vm5274_vm15, %v5102_v10, -inf  ;;  %v5103_v58 = vrot.slane %v5025_v8, 2 }
 0x248   : > { %v5304_v34 = vmax.f32 %v8170_v43, %v5303_v21  ;;  %v5307_v32 = vmax.f32 %v8173_v62, %v5306_v52  ;;  %6646 = vmatmul.msk.bf16.gmra.mxu0 %vm816_vm8, %v4841_v53  ;;  %v5310_v41 = vmax.f32 %v8176_v57, %v5309_v28  ;;  %v5523_v15 = vsel %vm5274_vm15, %v5301_v54, -inf }
 0x249   : > { %v5104_v42 = vrot.slane %v5025_v8, 4  ;;  %v5105_v40 = vrot.slane %v5025_v8, 6  ;;  %v5524_v38 = vrot.slane %v5523_v15, 4  ;;  %v5312_v43 = vsel %vm5274_vm15, %v5025_v8, -inf }
 0x24a   : > { %v5530_v35 = vsel %vm5274_vm15, %v5304_v34, -inf  ;;  %v5537_v16 = vsel %vm5274_vm15, %v5307_v32, -inf  ;;  %v5544_v56 = vsel %vm5274_vm15, %v5310_v41, -inf  ;;  %v5313_v36 = vmax.f32 %v8198_v61, %v5312_v43 }
 0x24b   : > { %v5531_v62 = vrot.slane %v5530_v35, 4  ;;  %v5538_v20 = vrot.slane %v5537_v16, 4  ;;  %v5525_v57 = vmax.f32 %v5523_v15, %v5524_v38  ;;  %v5545_v12 = vrot.slane %v5544_v56, 4 }
 0x24c   : > { %v5315_v23 = vsel %vm5274_vm15, %v5103_v58, -inf  ;;  %v5318_v7 = vsel %vm5274_vm15, %v5104_v42, -inf  ;;  %v5321_v53 = vsel %vm5274_vm15, %v5105_v40, -inf  ;;  %v5551_v54 = vsel %vm5274_vm15, %v5313_v36, -inf }
 0x24d   : > { %v5532_v59 = vmax.f32 %v5530_v35, %v5531_v62  ;;  %v5539_v27 = vmax.f32 %v5537_v16, %v5538_v20  ;;  %v5316_v51 = vmax.f32 %v8207_v13, %v5315_v23  ;;  %v5319_v10 = vmax.f32 %v8210_v25, %v5318_v7 }
 0x24e   : > { %v5526_v11 = vrot.slane %v5525_v57, 2  ;;  %v5546_v8 = vmax.f32 %v5544_v56, %v5545_v12  ;;  %v5322_v52 = vmax.f32 %v8213_v39, %v5321_v53  ;;  %v5552_v34 = vrot.slane %v5551_v54, 4 }
 0x24f   : > { %v5533_v21 = vrot.slane %v5532_v59, 2  ;;  %v5540_v61 = vrot.slane %v5539_v27, 2  ;;  %v5558_v58 = vsel %vm5274_vm15, %v5316_v51, -inf  ;;  %v5565_v48 = vsel %vm5274_vm15, %v5319_v10, -inf }
 0x250   : > { %v5527_v32 = vmax.f32 %v5525_v57, %v5526_v11  ;;  %v5547_v28 = vrot.slane %v5546_v8, 2  ;;  %v5553_v25 = vmax.f32 %v5551_v54, %v5552_v34  ;;  %v5559_v15 = vrot.slane %v5558_v58, 4 }
 0x251   : > { %v5534_v13 = vmax.f32 %v5532_v59, %v5533_v21  ;;  %v5541_v41 = vmax.f32 %v5539_v27, %v5540_v61  ;;  %v5566_v40 = vrot.slane %v5565_v48, 4  ;;  %v5572_v35 = vsel %vm5274_vm15, %v5322_v52, -inf }
 0x252   : > { %v5528_v42 = vrot.slane %v5527_v32, 1  ;;  %v5548_v38 = vmax.f32 %v5546_v8, %v5547_v28  ;;  %v5554_v62 = vrot.slane %v5553_v25, 2  ;;  %v5560_v39 = vmax.f32 %v5558_v58, %v5559_v15 }
 0x253   : > { %v5535_v16 = vrot.slane %v5534_v13, 1  ;;  %v5542_v43 = vrot.slane %v5541_v41, 1  ;;  %v5567_v36 = vmax.f32 %v5565_v48, %v5566_v40  ;;  %v5573_v57 = vrot.slane %v5572_v35, 4  ;;  %v3385_v40 = vpop.f32.mrf.mxu1 }
 0x254   : > { %v5529_v20 = vmax.f32 %v5527_v32, %v5528_v42  ;;  %v5549_v56 = vrot.slane %v5548_v38, 1  ;;  %v5555_v7 = vmax.f32 %v5553_v25, %v5554_v62  ;;  %v5561_v59 = vrot.slane %v5560_v39, 2 }
 0x255   : > { %v5536_v12 = vmax.f32 %v5534_v13, %v5535_v16  ;;  %v5543_v23 = vmax.f32 %v5541_v41, %v5542_v43  ;;  %v5568_v10 = vrot.slane %v5567_v36, 2  ;;  %v5574_v11 = vmax.f32 %v5572_v35, %v5573_v57  ;;  %v3514_v57 = vld [vmem:[#allocation2 + $0xe8] sm:$0xf] }
 0x256   : > { %v5550_v27 = vmax.f32 %v5548_v38, %v5549_v56  ;;  %v5923_v51 = vpack.c.bf16 %v5529_v20, %v5529_v20  ;;  %v5556_v54 = vrot.slane %v5555_v7, 1  ;;  %v5562_v21 = vmax.f32 %v5560_v39, %v5561_v59  ;;  %v4009_v38 = vpop.f32.mrf.mxu2 }
 0x257   : > { %v5924_v8 = vpack.c.bf16 %v5536_v12, %v5536_v12  ;;  %v5925_v53 = vpack.c.bf16 %v5543_v23, %v5543_v23  ;;  %v5569_v34 = vmax.f32 %v5567_v36, %v5568_v10  ;;  %v5575_v28 = vrot.slane %v5574_v11, 2 }
 0x258   : > { %v5926_v61 = vpack.c.bf16 %v5550_v27, %v5550_v27  ;;  %v6051_v52 = vunpack.c.l.b16 %v5923_v51  ;;  %v5557_v48 = vmax.f32 %v5555_v7, %v5556_v54  ;;  %v5563_v15 = vrot.slane %v5562_v21, 1  ;;  %v6702_v7 = vld [vmem:[#allocation2 + $0xf4] sm:$0xff]  ;;  %v4402_v54 = vld [vmem:[#allocation2 + $0xe8] sm:$0xf] }
 0x259   : > { %v6052_v32 = vunpack.c.l.b16 %v5924_v8  ;;  %v6053_v58 = vunpack.c.l.b16 %v5925_v53  ;;  %v5570_v41 = vrot.slane %v5569_v34, 1  ;;  %v5576_v25 = vmax.f32 %v5574_v11, %v5575_v28  ;;  %6632 = vmatmul.msk.bf16.gmra.mxu3 %vm816_vm8, %v6702_v7 }
 0x25a   : > { %v6054_v13 = vunpack.c.l.b16 %v5926_v61  ;;  %v3167_v42 = vsel %vm7009_vm14, %v8245_v3, %v8230_v30  ;;  %v5564_v16 = vmax.f32 %v5562_v21, %v5563_v15  ;;  %v5927_v43 = vpack.c.bf16 %v5557_v48, %v5557_v48 }
 0x25b   : > { %v6121_v35 = vsel %vm6107_vm0, %v6052_v32, %v6051_v52  ;;  %v3266_v62 = vunpack.c.l.b16 %v3157_v46  ;;  %v5571_v20 = vmax.f32 %v5569_v34, %v5570_v41  ;;  %v5577_v56 = vrot.slane %v5576_v25, 1  ;;  %v4273_v46 = vpop.f32.mrf.mxu3  ;;  %v4926_v52 = vpop.f32.mrf.mxu0  ;;  %v4403_v32 = vld [vmem:[#allocation2 + $0xec] sm:$0x1] }
 0x25c   : > { %v6122_v39 = vsel %vm6109_vm1, %v6053_v58, %v6121_v35  ;;  %v3267_v36 = vunpack.c.l.b16 %v3167_v42  ;;  %v5928_v3 = vpack.c.bf16 %v5564_v16, %v5564_v16  ;;  %v6055_v12 = vunpack.c.l.b16 %v5927_v43 }
 0x25d   : > { %v6123_v30 = vsel %vm6111_vm2, %v6054_v13, %v6122_v39  ;;  %v3796_v23 = vrot.slane %v3794_v60, 7  ;;  %v5578_v59 = vmax.f32 %v5576_v25, %v5577_v56  ;;  %v5929_v27 = vpack.c.bf16 %v5571_v20, %v5571_v20 }
 0x25e   : > { %v3286_v51 = vpack.c.b16 %v3267_v36, %v3266_v62  ;;  %v3797_v5 = vshll.u32 %v8226_v4, 16  ;;  %v6056_v10 = vunpack.c.l.b16 %v5928_v3  ;;  %v6124_v11 = vsel %vm6113_vm3, %v6055_v12, %v6123_v30  ;;  %v4011_v36 = vpop.f32.mrf.mxu2  ;;  %v2847_v30 = vld [vmem:[#allocation2 + $0xe4] sm:$0xf] }
 0x25f   : > { %v3801_v8 = vrot.slane %v3796_v23, 4  ;;  %v3803_v53 = vshrl.u32 %v3514_v57, 16  ;;  %v5930_v21 = vpack.c.bf16 %v5578_v59, %v5578_v59  ;;  %v6057_v61 = vunpack.c.l.b16 %v5929_v27 }
 0x260   : > { %6519 = vmatmul.msk.bf16.gmra.mxu1 %vm816_vm8, %v3286_v51  ;;  %v3799_v60 = vor.u32 %v3797_v5, %v3796_v23  ;;  %v3806_v34 = vshll.u32 %v3514_v57, 16  ;;  %v6125_v28 = vsel %vm6115_vm5, %v6056_v10, %v6124_v11  ;;  %v4702_v58 = vshrl.u32 %v4401_v24, 16  ;;  %v3388_v57 = vpop.f32.mrf.mxu1  ;;  %v8843_v51 = vld [vmem:[#allocation15_spill] sm:$0xff] }
 0x261   : > { %v3805_v4 = vrot.slane %v3803_v53, 7  ;;  %v4705_v48 = vshll.u32 %v4401_v24, 16  ;;  %v6058_v15 = vunpack.c.l.b16 %v5930_v21  ;;  %v6126_v13 = vsel %vm6117_vm6, %v6057_v61, %v6125_v28  ;;  %v2848_v24 = vld [vmem:[#allocation2 + $0xe8] sm:$0xf]  ;;  %v2849_v28 = vld [vmem:[#allocation2 + $0xec] sm:$0x1] }
 0x262   : > { %v3800_v41 = vsel %vm6816_vm9, %v8232_v2, %v3799_v60  ;;  %v4711_v25 = vshll.u32 %v4402_v54, 16  ;;  %v4704_v16 = vrot.slane %v4702_v58, 4  ;;  %v4715_v20 = vshrl.u32 %v4402_v54, 16  ;;  %v8844_v53 = vld [vmem:[#allocation16_spill] sm:$0xff]  ;;  %v3515_v58 = vld [vmem:[#allocation2 + $0xf0] sm:$0x8] }
 0x263   : > { %v3808_v42 = vor.u32 %v3806_v34, %v3805_v4  ;;  %v3901_v35 = vunpack.c.l.b16 %v3800_v41  ;;  %v4707_v43 = vrot.slane %v4705_v48, 5  ;;  %v6127_v62 = vsel %vm6119_vm7, %v6058_v15, %v6126_v13  ;;  %v4275_v34 = vpop.f32.mrf.mxu3  ;;  %v4928_v15 = vpop.f32.mrf.mxu0 }
 0x264   : > { %v4713_v39 = vrot.slane %v4711_v25, 5  ;;  %v4721_v56 = vshll.u32 %v4403_v32, 16  ;;  %v6171_v3 = vpack.c.b16 %v6127_v62, %v6127_v62  ;;  %v4077_v2 = vadd.f32 %v4009_v38, %v8220_v0 }
 0x265   : > { %v3809_v12 = vsel %vm6816_vm9, %v3801_v8, %v3808_v42  ;;  %v4708_v23 = vor.u32 %v4707_v43, %v4704_v16  ;;  %v4717_v59 = vrot.slane %v4715_v20, 4  ;;  %v3452_v5 = vadd.f32 %v3385_v40, %v8843_v51 }
 0x266   : > { %v3902_v7 = vunpack.c.l.b16 %v3809_v12  ;;  %v4723_v27 = vrot.slane %v4721_v56, 5  ;;  %6188 = vst.msk [vmem:[%s8203_s23 + $0x4] sm:$0xf] %vm6186_vm10, %v6171_v3  ;;  %v4341_v11 = vadd.f32 %v4273_v46, %v4077_v2  ;;  %v8303_v54 = vadd.f32 %v3388_v57, %v8844_v53  ;;  %v4014_v2 = vpop.f32.mrf.mxu2 }
 0x267   : > { %v4709_v10 = vrot.slane %v4708_v23, 4  ;;  %v3169_v21 = vshrl.u32 %v2847_v30, 16  ;;  %v4718_v60 = vor.u32 %v4717_v59, %v4713_v39  ;;  %v4078_v8 = vadd.f32 %v4011_v36, %v3452_v5 }
 0x268   : > { %v3921_v61 = vpack.c.b16 %v3902_v7, %v3901_v35  ;;  %v3172_v0 = vshll.u32 %v2847_v30, 16  ;;  %v4994_v4 = vadd.f32 %v4926_v52, %v4341_v11  ;;  %v3178_v32 = vshll.u32 %v2848_v24, 16  ;;  %v3390_v7 = vpop.f32.mrf.mxu1 }
 0x269   : > { %v4714_v38 = vsel %vm7009_vm14, %v4709_v10, %v4713_v39  ;;  %v3171_v40 = vrot.slane %v3169_v21, 4  ;;  %v4719_v46 = vrot.slane %v4718_v60, 4  ;;  %v4342_v13 = vadd.f32 %v4275_v34, %v4078_v8 }
 0x26a   : > { %6551 = vmatmul.msk.bf16.gmra.mxu2 %vm816_vm8, %v3921_v61  ;;  %v4822_v48 = vunpack.c.l.b16 %v4714_v38  ;;  %v3174_v41 = vrot.slane %v3172_v0, 5  ;;  %v5026_v25 = vmax.f32 %v4994_v4, 0.0  ;;  %v3180_v42 = vrot.slane %v3178_v32, 5  ;;  %v3517_v61 = vld [vmem:[#allocation2 + $0xf8] sm:$0xf] }
 0x26b   : > { %v3182_v35 = vshrl.u32 %v2848_v24, 16  ;;  %v3188_v16 = vshll.u32 %v2849_v28, 16  ;;  %v4724_v43 = vsel %vm7009_vm14, %v4719_v46, %v4723_v27  ;;  %v4995_v62 = vadd.f32 %v4928_v15, %v4342_v13  ;;  %v3516_v24 = vld [vmem:[#allocation2 + $0xf4] sm:$0xf]  ;;  %v4405_v38 = vld [vmem:[#allocation2 + $0xf8] sm:$0xf]  ;;  %v4278_v46 = vpop.f32.mrf.mxu3 }
 0x26c   : > { %v3175_v39 = vor.u32 %v3174_v41, %v3171_v40  ;;  %v3811_v52 = vshrl.u32 %v3515_v58, 16  ;;  %v4823_v20 = vunpack.c.l.b16 %v4724_v43  ;;  %v5106_v56 = vrot.slane %v5026_v25, 2  ;;  %v4404_v0 = vld [vmem:[#allocation2 + $0xf4] sm:$0xf] }
 0x26d   : > { %v5107_v36 = vrot.slane %v5026_v25, 4  ;;  %v5108_v57 = vrot.slane %v5026_v25, 6  ;;  %v8311_v30 = vsel %vm5274_vm15, %v5026_v25, -inf  ;;  %v5027_v3 = vmax.f32 %v4995_v62, 0.0  ;;  %v4931_v25 = vpop.f32.mrf.mxu0 }
 0x26e   : > { %v3176_v12 = vrot.slane %v3175_v39, 4  ;;  %v3184_v23 = vrot.slane %v3182_v35, 4  ;;  %v4842_v59 = vpack.c.b16 %v4823_v20, %v4822_v48  ;;  %v8314_v51 = vsel %vm5274_vm15, %v5106_v56, -inf  ;;  %v4406_v20 = vld [vmem:[#allocation2 + $0xfc] sm:$0x1] }
 0x26f   : > { %v8317_v27 = vsel %vm5274_vm15, %v5107_v36, -inf  ;;  %v8320_v5 = vsel %vm5274_vm15, %v5108_v57, -inf  ;;  %v5109_v10 = vrot.slane %v5027_v3, 2  ;;  %v5110_v11 = vrot.slane %v5027_v3, 4 }
 0x270   : > { %v5111_v53 = vrot.slane %v5027_v3, 6  ;;  %v8323_v21 = vsel %vm5274_vm15, %v5027_v3, -inf  ;;  %6647 = vmatmul.msk.bf16.gmra.mxu0 %vm816_vm8, %v4842_v59  ;;  %v3181_v60 = vsel %vm7009_vm14, %v3176_v12, %v3180_v42  ;;  %v3185_v8 = vor.u32 %v3184_v23, %v3180_v42 }
 0x271   : > { %v3190_v34 = vrot.slane %v3188_v16, 5  ;;  %v6536_v28 = vrot.slane %v3811_v52, 11  ;;  %v8329_v4 = vsel %vm5274_vm15, %v5109_v10, -inf  ;;  %v8332_v40 = vsel %vm5274_vm15, %v5110_v11, -inf }
 0x272   : > { %v8335_v32 = vsel %vm5274_vm15, %v5111_v53, -inf  ;;  %v3268_v58 = vunpack.c.l.b16 %v3181_v60  ;;  %v3186_v48 = vrot.slane %v3185_v8, 4  ;;  %v3816_v15 = vshrl.u32 %v3516_v24, 16  ;;  %v4016_v8 = vpop.f32.mrf.mxu2 }
 0x273   : > { %v3819_v13 = vshll.u32 %v3516_v24, 16  ;;  %v3825_v41 = vshrl.u32 %v3517_v61, 16  ;;  %v3828_v42 = vshll.u32 %v3517_v61, 16  ;;  %v4726_v35 = vshrl.u32 %v4404_v0, 16 }
 0x274   : > { %v4729_v16 = vshll.u32 %v4404_v0, 16  ;;  %v4735_v43 = vshll.u32 %v4405_v38, 16  ;;  %v3191_v62 = vsel %vm7009_vm14, %v3186_v48, %v3190_v34  ;;  %v3818_v39 = vrot.slane %v3816_v15, 7  ;;  %v3393_v0 = vpop.f32.mrf.mxu1  ;;  %v8845_v15 = vld [vmem:[#allocation17_spill] sm:$0xff] }
 0x275   : > { %v3827_v52 = vrot.slane %v3825_v41, 7  ;;  %v4739_v56 = vshrl.u32 %v4405_v38, 16  ;;  %v3269_v36 = vunpack.c.l.b16 %v3191_v62  ;;  %v4728_v57 = vrot.slane %v4726_v35, 4  ;;  %v8846_v62 = vld [vmem:[#allocation18_spill] sm:$0xff] }
 0x276   : > { %v4731_v3 = vrot.slane %v4729_v16, 5  ;;  %v4737_v12 = vrot.slane %v4735_v43, 5  ;;  %v3821_v23 = vor.u32 %v3819_v13, %v3818_v39  ;;  %v3823_v59 = vrot.slane %v3818_v39, 4  ;;  %v2850_v13 = vld [vmem:[#allocation2 + $0xf4] sm:$0xf] }
 0x277   : > { %v3830_v24 = vor.u32 %v3828_v42, %v3827_v52  ;;  %v4741_v10 = vrot.slane %v4739_v56, 4  ;;  %v3287_v11 = vpack.c.b16 %v3269_v36, %v3268_v58  ;;  %v4745_v61 = vshll.u32 %v4406_v20, 16  ;;  %v4280_v56 = vpop.f32.mrf.mxu3 }
 0x278   : > { %v4732_v53 = vor.u32 %v4731_v3, %v4728_v57  ;;  %v4079_v60 = vadd.f32 %v4014_v2, %v8303_v54  ;;  %v3822_v34 = vsel %vm6816_vm9, %v6536_v28, %v3821_v23  ;;  %v3454_v41 = vadd.f32 %v3390_v7, %v8845_v15  ;;  %v2851_v28 = vld [vmem:[#allocation2 + $0xf8] sm:$0xf]  ;;  %v2852_v7 = vld [vmem:[#allocation2 + $0xfc] sm:$0x1] }
 0x279   : > { %v3831_v38 = vsel %vm6816_vm9, %v3823_v59, %v3830_v24  ;;  %v4742_v48 = vor.u32 %v4741_v10, %v4737_v12  ;;  %6520 = vmatmul.msk.bf16.gmra.mxu1 %vm816_vm8, %v3287_v11  ;;  %v3903_v42 = vunpack.c.l.b16 %v3822_v34  ;;  %v4747_v16 = vrot.slane %v4745_v61, 5  ;;  %v4933_v11 = vpop.f32.mrf.mxu0 }
 0x27a   : > { %v3904_v58 = vunpack.c.l.b16 %v3831_v38  ;;  %v4733_v35 = vrot.slane %v4732_v53, 4  ;;  %v4343_v54 = vadd.f32 %v4278_v46, %v4079_v60  ;;  %v4080_v2 = vadd.f32 %v4016_v8, %v3454_v41  ;;  %v8353_v46 = vld [vmem:[#allocation2 + $0x100] sm:$0x8] }
 0x27b   : > { %v4743_v43 = vrot.slane %v4742_v48, 4  ;;  %v8347_v39 = vadd.f32 %v3393_v0, %v8846_v62  ;;  %v3193_v36 = vshrl.u32 %v2850_v13, 16  ;;  %v3196_v57 = vshll.u32 %v2850_v13, 16 }
 0x27c   : > { %v3922_v52 = vpack.c.b16 %v3904_v58, %v3903_v42  ;;  %v4738_v20 = vsel %vm7009_vm14, %v4733_v35, %v4737_v12  ;;  %v4996_v59 = vadd.f32 %v4931_v25, %v4343_v54  ;;  %v4344_v24 = vadd.f32 %v4280_v56, %v4080_v2 }
 0x27d   : > { %v4748_v3 = vsel %vm7009_vm14, %v4743_v43, %v4747_v16  ;;  %v4824_v23 = vunpack.c.l.b16 %v4738_v20  ;;  %v3195_v53 = vrot.slane %v3193_v36, 4  ;;  %v3198_v61 = vrot.slane %v3196_v57, 5 }
 0x27e   : > { %6552 = vmatmul.msk.bf16.gmra.mxu2 %vm816_vm8, %v3922_v52  ;;  %v4825_v10 = vunpack.c.l.b16 %v4748_v3  ;;  %v3202_v60 = vshll.u32 %v2851_v28, 16  ;;  %v5028_v12 = vmax.f32 %v4996_v59, 0.0  ;;  %v4997_v8 = vadd.f32 %v4933_v11, %v4344_v24  ;;  %v6703_v59 = vld [vmem:[#allocation2 + $0x104] sm:$0xff] }
 0x27f   : > { %v3206_v0 = vshrl.u32 %v2851_v28, 16  ;;  %v3212_v34 = vshll.u32 %v2852_v7, 16  ;;  %v3199_v48 = vor.u32 %v3198_v61, %v3195_v53  ;;  %v3833_v25 = vshrl.u32 %v8353_v46, 16  ;;  %6633 = vmatmul.msk.bf16.gmra.mxu3 %vm816_vm8, %v6703_v59 }
 0x280   : > { %v4843_v38 = vpack.c.b16 %v4825_v10, %v4824_v23  ;;  %v8356_v15 = vrot.slane %v3202_v60, 5  ;;  %v5112_v41 = vrot.slane %v5028_v12, 2  ;;  %v5113_v13 = vrot.slane %v5028_v12, 4 }
 0x281   : > { %v5114_v42 = vrot.slane %v5028_v12, 6  ;;  %v5324_v58 = vsel %vm5274_vm15, %v5028_v12, -inf  ;;  %v5029_v16 = vmax.f32 %v4997_v8, 0.0  ;;  %v8362_v43 = vrot.slane %v3199_v48, 4 }
 0x282   : > { %6648 = vmatmul.msk.bf16.gmra.mxu0 %vm816_vm8, %v4843_v38  ;;  %v5325_v35 = vmax.f32 %v8311_v30, %v5324_v58  ;;  %v8364_v54 = vrot.slane %v3206_v0, 4  ;;  %v5327_v2 = vsel %vm5274_vm15, %v5112_v41, -inf  ;;  %v5330_v62 = vsel %vm5274_vm15, %v5113_v13, -inf }
 0x283   : > { %v5333_v28 = vsel %vm5274_vm15, %v5114_v42, -inf  ;;  %v8369_v52 = vrot.slane %v3212_v34, 5  ;;  %v5328_v20 = vmax.f32 %v8314_v51, %v5327_v2  ;;  %v5331_v56 = vmax.f32 %v8317_v27, %v5330_v62 }
 0x284   : > { %v5334_v7 = vmax.f32 %v8320_v5, %v5333_v28  ;;  %v5579_v30 = vsel %vm5274_vm15, %v5325_v35, -inf  ;;  %v5115_v57 = vrot.slane %v5029_v16, 2  ;;  %v5116_v3 = vrot.slane %v5029_v16, 4 }
 0x285   : > { %v5580_v36 = vrot.slane %v5579_v30, 4  ;;  %v5117_v23 = vrot.slane %v5029_v16, 6  ;;  %v5586_v24 = vsel %vm5274_vm15, %v5328_v20, -inf  ;;  %v5593_v10 = vsel %vm5274_vm15, %v5331_v56, -inf }
 0x286   : > { %v5600_v11 = vsel %vm5274_vm15, %v5334_v7, -inf  ;;  %v5336_v53 = vsel %vm5274_vm15, %v5029_v16, -inf  ;;  %v5587_v61 = vrot.slane %v5586_v24, 4  ;;  %v5594_v27 = vrot.slane %v5593_v10, 4 }
 0x287   : > { %v5581_v51 = vmax.f32 %v5579_v30, %v5580_v36  ;;  %v5601_v60 = vrot.slane %v5600_v11, 4  ;;  %v5337_v5 = vmax.f32 %v8323_v21, %v5336_v53  ;;  %v5339_v12 = vsel %vm5274_vm15, %v5115_v57, -inf }
 0x288   : > { %v5342_v8 = vsel %vm5274_vm15, %v5116_v3, -inf  ;;  %v5345_v0 = vsel %vm5274_vm15, %v5117_v23, -inf  ;;  %v5588_v38 = vmax.f32 %v5586_v24, %v5587_v61  ;;  %v5595_v48 = vmax.f32 %v5593_v10, %v5594_v27 }
 0x289   : > { %v5582_v34 = vrot.slane %v5581_v51, 2  ;;  %v5602_v41 = vmax.f32 %v5600_v11, %v5601_v60  ;;  %v5340_v13 = vmax.f32 %v8329_v4, %v5339_v12  ;;  %v5343_v42 = vmax.f32 %v8332_v40, %v5342_v8  ;;  %v8391_v40 = vpop.f32.mrf.mxu0  ;;  %v8395_v12 = vpop.f32.mrf.mxu3 }
 0x28a   : > { %v5346_v58 = vmax.f32 %v8335_v32, %v5345_v0  ;;  %v5607_v35 = vsel %vm5274_vm15, %v5337_v5, -inf  ;;  %v5589_v21 = vrot.slane %v5588_v38, 2  ;;  %v5596_v2 = vrot.slane %v5595_v48, 2  ;;  %v8393_v5 = vpop.f32.mrf.mxu2 }
 0x28b   : > { %v5583_v16 = vmax.f32 %v5581_v51, %v5582_v34  ;;  %v5603_v62 = vrot.slane %v5602_v41, 2  ;;  %v5608_v28 = vrot.slane %v5607_v35, 4  ;;  %v5614_v20 = vsel %vm5274_vm15, %v5340_v13, -inf }
 0x28c   : > { %v5621_v56 = vsel %vm5274_vm15, %v5343_v42, -inf  ;;  %v5628_v7 = vsel %vm5274_vm15, %v5346_v58, -inf  ;;  %v5590_v36 = vmax.f32 %v5588_v38, %v5589_v21  ;;  %v5597_v4 = vmax.f32 %v5595_v48, %v5596_v2  ;;  %v8397_v58 = vpop.f32.mrf.mxu1 }
 0x28d   : > { %v5584_v30 = vrot.slane %v5583_v16, 1  ;;  %v5604_v57 = vmax.f32 %v5602_v41, %v5603_v62  ;;  %v5609_v32 = vmax.f32 %v5607_v35, %v5608_v28  ;;  %v5615_v3 = vrot.slane %v5614_v20, 4 }
 0x28e   : > { %v5622_v23 = vrot.slane %v5621_v56, 4  ;;  %v5629_v59 = vrot.slane %v5628_v7, 4  ;;  %v5591_v10 = vrot.slane %v5590_v36, 1  ;;  %v5598_v11 = vrot.slane %v5597_v4, 1 }
 0x28f   : > { %v5585_v24 = vmax.f32 %v5583_v16, %v5584_v30  ;;  %v5605_v53 = vrot.slane %v5604_v57, 1  ;;  %v5610_v51 = vrot.slane %v5609_v32, 2  ;;  %v5616_v61 = vmax.f32 %v5614_v20, %v5615_v3 }
 0x290   : > { %v5623_v27 = vmax.f32 %v5621_v56, %v5622_v23  ;;  %v5630_v60 = vmax.f32 %v5628_v7, %v5629_v59  ;;  %v5592_v8 = vmax.f32 %v5590_v36, %v5591_v10  ;;  %v5599_v0 = vmax.f32 %v5597_v4, %v5598_v11  ;;  %v3519_v59 = vld [vmem:[#allocation2 + $0x104] sm:$0xf] }
 0x291   : > { %v5606_v34 = vmax.f32 %v5604_v57, %v5605_v53  ;;  %v5931_v38 = vpack.c.bf16 %v5585_v24, %v5585_v24  ;;  %v5611_v48 = vmax.f32 %v5609_v32, %v5610_v51  ;;  %v5617_v41 = vrot.slane %v5616_v61, 2  ;;  %v8408_v51 = vpop.f32.mrf.mxu0 }
 0x292   : > { %v5624_v13 = vrot.slane %v5623_v27, 2  ;;  %v5631_v42 = vrot.slane %v5630_v60, 2  ;;  %v5932_v35 = vpack.c.bf16 %v5592_v8, %v5592_v8  ;;  %v5933_v16 = vpack.c.bf16 %v5599_v0, %v5599_v0  ;;  %v3520_v8 = vld [vmem:[#allocation2 + $0x108] sm:$0xf] }
 0x293   : > { %v5934_v21 = vpack.c.bf16 %v5606_v34, %v5606_v34  ;;  %v6059_v2 = vunpack.c.l.b16 %v5931_v38  ;;  %v5612_v62 = vrot.slane %v5611_v48, 1  ;;  %v5618_v28 = vmax.f32 %v5616_v61, %v5617_v41  ;;  %v4021_v41 = vpop.f32.mrf.mxu2 }
 0x294   : > { %v5625_v20 = vmax.f32 %v5623_v27, %v5624_v13  ;;  %v5632_v56 = vmax.f32 %v5630_v60, %v5631_v42  ;;  %v6060_v7 = vunpack.c.l.b16 %v5932_v35  ;;  %v6061_v30 = vunpack.c.l.b16 %v5933_v16  ;;  %v8412_v13 = vpop.f32.mrf.mxu3 }
 0x295   : > { %v6062_v36 = vunpack.c.l.b16 %v5934_v21  ;;  %v3205_v4 = vsel %vm7009_vm14, %v8362_v43, %v8356_v15  ;;  %v5613_v57 = vmax.f32 %v5611_v48, %v5612_v62  ;;  %v5619_v32 = vrot.slane %v5618_v28, 1  ;;  %v6704_v62 = vld [vmem:[#allocation2 + $0x114] sm:$0xff] }
 0x296   : > { %v5626_v3 = vrot.slane %v5625_v20, 1  ;;  %v5633_v23 = vrot.slane %v5632_v56, 1  ;;  %v6128_v24 = vsel %vm6107_vm0, %v6060_v7, %v6059_v2  ;;  %v3209_v10 = vor.u32 %v8364_v54, %v8356_v15  ;;  %v290_v2 = vld [vmem:[#allocation2 + $0x10c] sm:$0x1]  ;;  %6634 = vmatmul.msk.bf16.gmra.mxu3 %vm816_vm8, %v6704_v62 }
 0x297   : > { %v3270_v11 = vunpack.c.l.b16 %v3205_v4  ;;  %v6537_v53 = vrot.slane %v3833_v25, 11  ;;  %v6129_v61 = vsel %vm6109_vm1, %v6061_v30, %v6128_v24  ;;  %v5620_v27 = vmax.f32 %v5618_v28, %v5619_v32  ;;  %v4407_v30 = vld [vmem:[#allocation2 + $0x104] sm:$0xf] }
 0x298   : > { %v5627_v43 = vmax.f32 %v5625_v20, %v5626_v3  ;;  %v5634_v60 = vmax.f32 %v5632_v56, %v5633_v23  ;;  %v6130_v0 = vsel %vm6111_vm2, %v6062_v36, %v6129_v61  ;;  %v5935_v34 = vpack.c.bf16 %v5613_v57, %v5613_v57  ;;  %v8417_v36 = vpop.f32.mrf.mxu1  ;;  %v4408_v23 = vld [vmem:[#allocation2 + $0x108] sm:$0xf] }
 0x299   : > { %v3210_v38 = vrot.slane %v3209_v10, 4  ;;  %v3838_v48 = vshrl.u32 %v3519_v59, 16  ;;  %v5936_v15 = vpack.c.bf16 %v5620_v27, %v5620_v27  ;;  %v3841_v25 = vshll.u32 %v3519_v59, 16 }
 0x29a   : > { %v5937_v54 = vpack.c.bf16 %v5627_v43, %v5627_v43  ;;  %v5938_v46 = vpack.c.bf16 %v5634_v60, %v5634_v60  ;;  %v6063_v42 = vunpack.c.l.b16 %v5935_v34  ;;  %v3847_v21 = vshrl.u32 %v3520_v8, 16 }
 0x29b   : > { %v3215_v35 = vsel %vm7009_vm14, %v3210_v38, %v8369_v52  ;;  %v3840_v16 = vrot.slane %v3838_v48, 7  ;;  %v6064_v28 = vunpack.c.l.b16 %v5936_v15  ;;  %v3850_v24 = vshll.u32 %v3520_v8, 16 }
 0x29c   : > { %v6065_v20 = vunpack.c.l.b16 %v5937_v54  ;;  %v6066_v56 = vunpack.c.l.b16 %v5938_v46  ;;  %v3271_v7 = vunpack.c.l.b16 %v3215_v35  ;;  %v6131_v4 = vsel %vm6113_vm3, %v6063_v42, %v6130_v0  ;;  %v2853_v42 = vld [vmem:[#allocation2 + $0x104] sm:$0xf] }
 0x29d   : > { %v3843_v57 = vor.u32 %v3841_v25, %v3840_v16  ;;  %v3845_v32 = vrot.slane %v3840_v16, 4  ;;  %v3849_v3 = vrot.slane %v3847_v21, 7  ;;  %v6132_v52 = vsel %vm6115_vm5, %v6064_v28, %v6131_v4  ;;  %v8429_v25 = vpop.f32.mrf.mxu0 }
 0x29e   : > { %v3288_v59 = vpack.c.b16 %v3271_v7, %v3270_v11  ;;  %v291_v61 = vsel %vm6983_vm11, 0, %v290_v2  ;;  %v6133_v27 = vsel %vm6117_vm6, %v6065_v20, %v6132_v52  ;;  %v4750_v60 = vshrl.u32 %v4407_v30, 16  ;;  %v2854_v2 = vld [vmem:[#allocation2 + $0x108] sm:$0xf]  ;;  %v8441_v7 = vpop.f32.mrf.mxu3 }
 0x29f   : > { %v3844_v43 = vsel %vm6816_vm9, %v6537_v53, %v3843_v57  ;;  %292 = vst [vmem:[#allocation2 + $0x10c] sm:$0x1] %v291_v61  ;;  %v4753_v0 = vshll.u32 %v4407_v30, 16  ;;  %v6134_v34 = vsel %vm6119_vm7, %v6066_v56, %v6133_v27  ;;  %v3852_v38 = vor.u32 %v3850_v24, %v3849_v3  ;;  %v8439_v56 = vpop.f32.mrf.mxu2  ;;  %v236_v61 = vld [vmem:[#allocation2 + $0x110] sm:$0x8] }
 0x2a0   : > { %6521 = vmatmul.msk.bf16.gmra.mxu1 %vm816_vm8, %v3288_v59  ;;  %v3905_v48 = vunpack.c.l.b16 %v3844_v43  ;;  %v4759_v11 = vshll.u32 %v4408_v23, 16  ;;  %v6172_v8 = vpack.c.b16 %v6134_v34, %v6134_v34  ;;  %v4752_v15 = vrot.slane %v4750_v60, 4  ;;  %v8446_v27 = vpop.f32.mrf.mxu1 }
 0x2a1   : > { %v4755_v54 = vrot.slane %v4753_v0, 5  ;;  %v4763_v46 = vshrl.u32 %v4408_v23, 16  ;;  %v3853_v53 = vsel %vm6816_vm9, %v3845_v32, %v3852_v38  ;;  %v4081_v16 = vadd.f32 %v8393_v5, %v8347_v39 }
 0x2a2   : > { %v4761_v35 = vrot.slane %v4759_v11, 5  ;;  %v3456_v21 = vadd.f32 %v8397_v58, %v7654_v50  ;;  %6189 = vst.msk [vmem:[%s8203_s23 + $0x8] sm:$0xf] %vm6186_vm10, %v6172_v8  ;;  %v3906_v62 = vunpack.c.l.b16 %v3853_v53  ;;  %v3217_v57 = vshrl.u32 %v2853_v42, 16 }
 0x2a3   : > { %v4756_v28 = vor.u32 %v4755_v54, %v4752_v15  ;;  %v4765_v20 = vrot.slane %v4763_v46, 4  ;;  %v4345_v30 = vadd.f32 %v8395_v12, %v4081_v16  ;;  %v3220_v32 = vshll.u32 %v2853_v42, 16 }
 0x2a4   : > { %v4082_v4 = vadd.f32 %v4021_v41, %v3456_v21  ;;  %v3923_v3 = vpack.c.b16 %v3906_v62, %v3905_v48  ;;  %v3226_v23 = vshll.u32 %v2854_v2, 16  ;;  %v3219_v59 = vrot.slane %v3217_v57, 4  ;;  %v3523_v57 = vld [vmem:[#allocation2 + $0x118] sm:$0xf] }
 0x2a5   : > { %v4757_v39 = vrot.slane %v4756_v28, 4  ;;  %v4766_v5 = vor.u32 %v4765_v20, %v4761_v35  ;;  %v4998_v58 = vadd.f32 %v8391_v40, %v4345_v30  ;;  %v3222_v24 = vrot.slane %v3220_v32, 5  ;;  %v8460_v21 = vpop.f32.mrf.mxu0 }
 0x2a6   : > { %v4409_v50 = vld [vmem:[#allocation2 + $0x10c] sm:$0x1]  ;;  %v4346_v52 = vadd.f32 %v8412_v13, %v4082_v4  ;;  %6553 = vmatmul.msk.bf16.gmra.mxu2 %vm816_vm8, %v3923_v3  ;;  %v3228_v40 = vrot.slane %v3226_v23, 5  ;;  %v3230_v48 = vshrl.u32 %v2854_v2, 16  ;;  %v237_v11 = vsel %vm6766_vm4, 0, %v236_v61  ;;  %v8462_v28 = vpop.f32.mrf.mxu3 }
 0x2a7   : > { %v4762_v12 = vsel %vm7009_vm14, %v4757_v39, %v4761_v35  ;;  %v4767_v41 = vrot.slane %v4766_v5, 4  ;;  %v4769_v43 = vshll.u32 %v4409_v50, 16  ;;  %v2855_v60 = vld [vmem:[#allocation2 + $0x10c] sm:$0x1]  ;;  %v8451_v0 = vmax.f32 %v4998_v58, 0.0  ;;  %v4026_v62 = vpop.f32.mrf.mxu2 }
 0x2a8   : > { %v3223_v34 = vor.u32 %v3222_v24, %v3219_v59  ;;  %v4826_v8 = vunpack.c.l.b16 %v4762_v12  ;;  %v4999_v54 = vadd.f32 %v8408_v51, %v4346_v52  ;;  %v3236_v46 = vshll.u32 %v2855_v60, 16  ;;  %238 = vst [vmem:[#allocation2 + $0x110] sm:$0x8] %v237_v11  ;;  %v3522_v4 = vld [vmem:[#allocation2 + $0x114] sm:$0xf]  ;;  %v3403_v58 = vpop.f32.mrf.mxu1 }
 0x2a9   : > { %v4771_v38 = vrot.slane %v4769_v43, 5  ;;  %v5118_v15 = vrot.slane %v8451_v0, 2  ;;  %v5119_v53 = vrot.slane %v8451_v0, 4  ;;  %v3232_v16 = vrot.slane %v3230_v48, 4  ;;  %v293_v23 = vld [vmem:[#allocation2 + $0x11c] sm:$0x1] }
 0x2aa   : > { %v3224_v35 = vrot.slane %v3223_v34, 4  ;;  %v5120_v20 = vrot.slane %v8451_v0, 6  ;;  %v8467_v51 = vsel %vm5274_vm15, %v8451_v0, -inf  ;;  %v3457_v30 = vadd.f32 %v8417_v36, %v7681_v47  ;;  %v4410_v50 = vld [vmem:[#allocation2 + $0x114] sm:$0xf] }
 0x2ab   : > { %v4772_v42 = vsel %vm7009_vm14, %v4767_v41, %v4771_v38  ;;  %v3233_v39 = vor.u32 %v3232_v16, %v3228_v40  ;;  %v3238_v5 = vrot.slane %v3236_v46, 5  ;;  %v8474_v52 = vsel %vm5274_vm15, %v5118_v15, -inf  ;;  %v4411_v43 = vld [vmem:[#allocation2 + $0x118] sm:$0xf] }
 0x2ac   : > { %v4827_v2 = vunpack.c.l.b16 %v4772_v42  ;;  %v3229_v3 = vsel %vm7009_vm14, %v3224_v35, %v3228_v40  ;;  %v8477_v59 = vsel %vm5274_vm15, %v5119_v53, -inf  ;;  %v8479_v24 = vmax.f32 %v4999_v54, 0.0 }
 0x2ad   : > { %v3272_v47 = vunpack.c.l.b16 %v3229_v3  ;;  %v3234_v36 = vrot.slane %v3233_v39, 4  ;;  %v3860_v61 = vshrl.u32 %v3522_v4, 16  ;;  %v3863_v12 = vshll.u32 %v3522_v4, 16 }
 0x2ae   : > { %v4844_v32 = vpack.c.b16 %v4827_v2, %v4826_v8  ;;  %v3869_v41 = vshrl.u32 %v3523_v57, 16  ;;  %v3872_v34 = vshll.u32 %v3523_v57, 16  ;;  %v294_v38 = vsel %vm6983_vm11, 0, %v293_v23  ;;  %v4293_v10 = vpop.f32.mrf.mxu3 }
 0x2af   : > { %v3521_v60 = vld [vmem:[#allocation2 + $0x110] sm:$0x8]  ;;  %v4774_v40 = vshrl.u32 %v4410_v50, 16  ;;  %v4777_v48 = vshll.u32 %v4410_v50, 16  ;;  %v3239_v13 = vsel %vm7009_vm14, %v3234_v36, %v3238_v5  ;;  %v3862_v8 = vrot.slane %v3860_v61, 7  ;;  %v4029_v57 = vpop.f32.mrf.mxu2  ;;  %v8486_v50 = vpop.f32.mrf.mxu0 }
 0x2b0   : > { %6649 = vmatmul.msk.bf16.gmra.mxu0 %vm816_vm8, %v4844_v32  ;;  %v3855_v11 = vshrl.u32 %v3521_v60, 16  ;;  %v3871_v15 = vrot.slane %v3869_v41, 7  ;;  %295 = vst [vmem:[#allocation2 + $0x11c] sm:$0x1] %v294_v38  ;;  %v3273_v54 = vunpack.c.l.b16 %v3239_v13  ;;  %v4783_v53 = vshll.u32 %v4411_v43, 16  ;;  %v8849_v41 = vld [vmem:[#allocation19_spill] sm:$0xff]  ;;  %v3405_v60 = vpop.f32.mrf.mxu1 }
 0x2b1   : > { %v4776_v46 = vrot.slane %v4774_v40, 4  ;;  %v4779_v42 = vrot.slane %v4777_v48, 5  ;;  %v3865_v16 = vor.u32 %v3863_v12, %v3862_v8  ;;  %v3867_v2 = vrot.slane %v3862_v8, 4 }
 0x2b2   : > { %v6538_v35 = vrot.slane %v3855_v11, 11  ;;  %v3874_v4 = vor.u32 %v3872_v34, %v3871_v15  ;;  %v3289_v32 = vpack.c.b16 %v3273_v54, %v3272_v47  ;;  %v4785_v39 = vrot.slane %v4783_v53, 5 }
 0x2b3   : > { %v4780_v3 = vor.u32 %v4779_v42, %v4776_v46  ;;  %v4787_v23 = vshrl.u32 %v4411_v43, 16  ;;  %v4083_v61 = vadd.f32 %v8439_v56, %v3457_v30  ;;  %v3458_v12 = vadd.f32 %v8446_v27, %v8849_v41  ;;  %v8850_v27 = vld [vmem:[#allocation20_spill] sm:$0xff] }
 0x2b4   : > { %v3866_v5 = vsel %vm6816_vm9, %v6538_v35, %v3865_v16  ;;  %v3875_v36 = vsel %vm6816_vm9, %v3867_v2, %v3874_v4  ;;  %6522 = vmatmul.msk.bf16.gmra.mxu1 %vm816_vm8, %v3289_v32  ;;  %v5121_v40 = vrot.slane %v8479_v24, 2  ;;  %v5122_v48 = vrot.slane %v8479_v24, 4 }
 0x2b5   : > { %v3907_v47 = vunpack.c.l.b16 %v3866_v5  ;;  %v3908_v34 = vunpack.c.l.b16 %v3875_v36  ;;  %v4781_v38 = vrot.slane %v4780_v3, 4  ;;  %v4789_v43 = vrot.slane %v4787_v23, 4  ;;  %v8851_v3 = vld [vmem:[#allocation21_spill] sm:$0xff] }
 0x2b6   : > { %v4347_v13 = vadd.f32 %v8441_v7, %v4083_v61  ;;  %v4084_v45 = vadd.f32 %v4026_v62, %v3458_v12  ;;  %v5123_v11 = vrot.slane %v8479_v24, 6  ;;  %v3459_v15 = vadd.f32 %v3403_v58, %v8850_v27 }
 0x2b7   : > { %v3924_v56 = vpack.c.b16 %v3908_v34, %v3907_v47  ;;  %v4412_v30 = vld [vmem:[#allocation2 + $0x11c] sm:$0x1]  ;;  %v4790_v8 = vor.u32 %v4789_v43, %v4785_v39  ;;  %v4786_v54 = vsel %vm7009_vm14, %v4781_v38, %v4785_v39  ;;  %v5356_v7 = vsel %vm5274_vm15, %v5120_v20, -inf  ;;  %v8515_v32 = vpop.f32.mrf.mxu2  ;;  %v8533_v34 = vpop.f32.mrf.mxu0 }
 0x2b8   : > { %v4793_v46 = vshll.u32 %v4412_v30, 16  ;;  %v5000_v42 = vadd.f32 %v8429_v25, %v4347_v13  ;;  %v4348_v53 = vadd.f32 %v8462_v28, %v4084_v45  ;;  %v5359_v62 = vsel %vm5274_vm15, %v8479_v24, -inf  ;;  %v8517_v28 = vpop.f32.mrf.mxu3 }
 0x2b9   : > { %6554 = vmatmul.msk.bf16.gmra.mxu2 %vm816_vm8, %v3924_v56  ;;  %v4791_v35 = vrot.slane %v4790_v8, 4  ;;  %v4085_v16 = vadd.f32 %v4029_v57, %v3459_v15  ;;  %v8512_v58 = vsel %vm5274_vm15, %v5121_v40, -inf  ;;  %v5365_v0 = vsel %vm5274_vm15, %v5122_v48, -inf }
 0x2ba   : > { %v4795_v2 = vrot.slane %v4793_v46, 5  ;;  %v5032_v4 = vmax.f32 %v5000_v42, 0.0  ;;  %v5001_v25 = vadd.f32 %v8460_v21, %v4348_v53  ;;  %v8521_v20 = vsel %vm5274_vm15, %v5123_v11, -inf  ;;  %v8528_v21 = vpop.f32.mrf.mxu1 }
 0x2bb   : > { %v4828_v24 = vunpack.c.l.b16 %v4786_v54  ;;  %v8524_v39 = vadd.f32 %v3405_v60, %v8851_v3  ;;  %v8531_v47 = vadd.f32 %v4293_v10, %v4085_v16 }
 0x2bc   : > { %v4796_v57 = vsel %vm7009_vm14, %v4791_v35, %v4795_v2  ;;  %v5124_v23 = vrot.slane %v5032_v4, 2  ;;  %v5125_v5 = vrot.slane %v5032_v4, 4  ;;  %v5126_v36 = vrot.slane %v5032_v4, 6 }
 0x2bd   : > { %v4829_v61 = vunpack.c.l.b16 %v4796_v57  ;;  %v5348_v41 = vsel %vm5274_vm15, %v5032_v4, -inf  ;;  %v5033_v12 = vmax.f32 %v5001_v25, 0.0 }
 0x2be   : > { %v5349_v38 = vmax.f32 %v8467_v51, %v5348_v41  ;;  %v5351_v60 = vsel %vm5274_vm15, %v5124_v23, -inf  ;;  %v5354_v44 = vsel %vm5274_vm15, %v5125_v5, -inf  ;;  %v5357_v43 = vsel %vm5274_vm15, %v5126_v36, -inf }
 0x2bf   : > { %v4845_v40 = vpack.c.b16 %v4829_v61, %v4828_v24  ;;  %v5352_v48 = vmax.f32 %v8474_v52, %v5351_v60  ;;  %v5355_v13 = vmax.f32 %v8477_v59, %v5354_v44  ;;  %v5358_v45 = vmax.f32 %v5356_v7, %v5357_v43  ;;  %v8547_v42 = vpop.f32.mrf.mxu2 }
 0x2c0   : > { %v5635_v11 = vsel %vm5274_vm15, %v5349_v38, -inf  ;;  %v5127_v10 = vrot.slane %v5033_v12, 2  ;;  %v5128_v56 = vrot.slane %v5033_v12, 4  ;;  %v5129_v30 = vrot.slane %v5033_v12, 6  ;;  %v8549_v53 = vpop.f32.mrf.mxu3 }
 0x2c1   : > { %6650 = vmatmul.msk.bf16.gmra.mxu0 %vm816_vm8, %v4845_v40  ;;  %v5636_v51 = vrot.slane %v5635_v11, 4  ;;  %v5642_v8 = vsel %vm5274_vm15, %v5352_v48, -inf  ;;  %v5649_v27 = vsel %vm5274_vm15, %v5355_v13, -inf  ;;  %v5656_v15 = vsel %vm5274_vm15, %v5358_v45, -inf }
 0x2c2   : > { %v5643_v54 = vrot.slane %v5642_v8, 4  ;;  %v5650_v46 = vrot.slane %v5649_v27, 4  ;;  %v5657_v52 = vrot.slane %v5656_v15, 4  ;;  %v5360_v59 = vsel %vm5274_vm15, %v5033_v12, -inf  ;;  %v8554_v57 = vpop.f32.mrf.mxu1 }
 0x2c3   : > { %v5637_v7 = vmax.f32 %v5635_v11, %v5636_v51  ;;  %v5361_v35 = vmax.f32 %v5359_v62, %v5360_v59  ;;  %v5363_v16 = vsel %vm5274_vm15, %v5127_v10, -inf  ;;  %v5366_v2 = vsel %vm5274_vm15, %v5128_v56, -inf }
 0x2c4   : > { %v5644_v4 = vmax.f32 %v5642_v8, %v5643_v54  ;;  %v5651_v25 = vmax.f32 %v5649_v27, %v5650_v46  ;;  %v5658_v24 = vmax.f32 %v5656_v15, %v5657_v52  ;;  %v5364_v3 = vmax.f32 %v8512_v58, %v5363_v16  ;;  %v8561_v58 = vpop.f32.mrf.mxu0 }
 0x2c5   : > { %v5638_v23 = vrot.slane %v5637_v7, 2  ;;  %v5367_v5 = vmax.f32 %v5365_v0, %v5366_v2  ;;  %v5369_v36 = vsel %vm5274_vm15, %v5129_v30, -inf  ;;  %v5663_v61 = vsel %vm5274_vm15, %v5361_v35, -inf }
 0x2c6   : > { %v5645_v41 = vrot.slane %v5644_v4, 2  ;;  %v5652_v12 = vrot.slane %v5651_v25, 2  ;;  %v5659_v62 = vrot.slane %v5658_v24, 2  ;;  %v5370_v38 = vmax.f32 %v8521_v20, %v5369_v36 }
 0x2c7   : > { %v5639_v60 = vmax.f32 %v5637_v7, %v5638_v23  ;;  %v5664_v44 = vrot.slane %v5663_v61, 4  ;;  %v5670_v43 = vsel %vm5274_vm15, %v5364_v3, -inf  ;;  %v5677_v40 = vsel %vm5274_vm15, %v5367_v5, -inf  ;;  %v8564_v15 = vpop.f32.mrf.mxu2 }
 0x2c8   : > { %v5646_v48 = vmax.f32 %v5644_v4, %v5645_v41  ;;  %v5653_v13 = vmax.f32 %v5651_v25, %v5652_v12  ;;  %v5660_v0 = vmax.f32 %v5658_v24, %v5659_v62  ;;  %v5671_v45 = vrot.slane %v5670_v43, 4  ;;  %v8566_v7 = vpop.f32.mrf.mxu3 }
 0x2c9   : > { %v5640_v11 = vrot.slane %v5639_v60, 1  ;;  %v5665_v10 = vmax.f32 %v5663_v61, %v5664_v44  ;;  %v5678_v56 = vrot.slane %v5677_v40, 4  ;;  %v5684_v30 = vsel %vm5274_vm15, %v5370_v38, -inf }
 0x2ca   : > { %v5647_v51 = vrot.slane %v5646_v48, 1  ;;  %v5654_v8 = vrot.slane %v5653_v13, 1  ;;  %v5661_v20 = vrot.slane %v5660_v0, 1  ;;  %v5672_v27 = vmax.f32 %v5670_v43, %v5671_v45  ;;  %v3413_v25 = vpop.f32.mrf.mxu1 }
 0x2cb   : > { %v5641_v54 = vmax.f32 %v5639_v60, %v5640_v11  ;;  %v5666_v46 = vrot.slane %v5665_v10, 2  ;;  %v5679_v52 = vmax.f32 %v5677_v40, %v5678_v56  ;;  %v5685_v59 = vrot.slane %v5684_v30, 4 }
 0x2cc   : > { %v5648_v35 = vmax.f32 %v5646_v48, %v5647_v51  ;;  %v5655_v16 = vmax.f32 %v5653_v13, %v5654_v8  ;;  %v5662_v2 = vmax.f32 %v5660_v0, %v5661_v20  ;;  %v5673_v4 = vrot.slane %v5672_v27, 2  ;;  %v4953_v56 = vpop.f32.mrf.mxu0 }
 0x2cd   : > { %v5939_v24 = vpack.c.bf16 %v5641_v54, %v5641_v54  ;;  %v5667_v3 = vmax.f32 %v5665_v10, %v5666_v46  ;;  %v5680_v23 = vrot.slane %v5679_v52, 2  ;;  %v5686_v5 = vmax.f32 %v5684_v30, %v5685_v59 }
 0x2ce   : > { %v5940_v36 = vpack.c.bf16 %v5648_v35, %v5648_v35  ;;  %v5941_v61 = vpack.c.bf16 %v5655_v16, %v5655_v16  ;;  %v5942_v41 = vpack.c.bf16 %v5662_v2, %v5662_v2  ;;  %v5674_v12 = vmax.f32 %v5672_v27, %v5673_v4 }
 0x2cf   : > { %v5668_v62 = vrot.slane %v5667_v3, 1  ;;  %v5681_v38 = vmax.f32 %v5679_v52, %v5680_v23  ;;  %v5687_v60 = vrot.slane %v5686_v5, 2  ;;  %v4086_v44 = vadd.f32 %v8515_v32, %v8524_v39  ;;  %v4039_v20 = vpop.f32.mrf.mxu2 }
 0x2d0   : > { %v6067_v43 = vunpack.c.l.b16 %v5939_v24  ;;  %v6068_v40 = vunpack.c.l.b16 %v5940_v36  ;;  %v6069_v48 = vunpack.c.l.b16 %v5941_v61  ;;  %v5675_v13 = vrot.slane %v5674_v12, 1  ;;  %v4303_v4 = vpop.f32.mrf.mxu3 }
 0x2d1   : > { %v5669_v0 = vmax.f32 %v5667_v3, %v5668_v62  ;;  %v5682_v45 = vrot.slane %v5681_v38, 1  ;;  %v5688_v11 = vmax.f32 %v5686_v5, %v5687_v60  ;;  %v5002_v10 = vadd.f32 %v8486_v50, %v8531_v47 }
 0x2d2   : > { %v6070_v30 = vunpack.c.l.b16 %v5942_v41  ;;  %v6135_v51 = vsel %vm6107_vm0, %v6068_v40, %v6067_v43  ;;  %v5676_v8 = vmax.f32 %v5674_v12, %v5675_v13  ;;  %v4350_v59 = vadd.f32 %v8517_v28, %v4086_v44  ;;  %v3415_v35 = vpop.f32.mrf.mxu1 }
 0x2d3   : > { %v6136_v27 = vsel %vm6109_vm1, %v6069_v48, %v6135_v51  ;;  %v5683_v54 = vmax.f32 %v5681_v38, %v5682_v45  ;;  %v5689_v32 = vrot.slane %v5688_v11, 1  ;;  %v5943_v39 = vpack.c.bf16 %v5669_v0, %v5669_v0 }
 0x2d4   : > { %v6137_v46 = vsel %vm6111_vm2, %v6070_v30, %v6136_v27  ;;  %v5944_v52 = vpack.c.bf16 %v5676_v8, %v5676_v8  ;;  %v5034_v47 = vmax.f32 %v5002_v10, 0.0  ;;  %v3461_v3 = vadd.f32 %v8528_v21, %v7829_v14 }
 0x2d5   : > { %v5690_v16 = vmax.f32 %v5688_v11, %v5689_v32  ;;  %v5945_v2 = vpack.c.bf16 %v5683_v54, %v5683_v54  ;;  %v6071_v50 = vunpack.c.l.b16 %v5943_v39  ;;  %v5003_v41 = vadd.f32 %v8533_v34, %v4350_v59 }
 0x2d6   : > { %v6072_v24 = vunpack.c.l.b16 %v5944_v52  ;;  %v4087_v28 = vadd.f32 %v8547_v42, %v3461_v3  ;;  %v3462_v12 = vadd.f32 %v8554_v57, %v7847_v55  ;;  %v5130_v60 = vrot.slane %v5034_v47, 2  ;;  %v8589_v42 = vpop.f32.mrf.mxu0 }
 0x2d7   : > { %v5946_v23 = vpack.c.bf16 %v5690_v16, %v5690_v16  ;;  %v6073_v5 = vunpack.c.l.b16 %v5945_v2  ;;  %v6138_v36 = vsel %vm6113_vm3, %v6071_v50, %v6137_v46  ;;  %v5035_v44 = vmax.f32 %v5003_v41, 0.0  ;;  %v4041_v40 = vpop.f32.mrf.mxu2 }
 0x2d8   : > { %v6139_v61 = vsel %vm6115_vm5, %v6072_v24, %v6138_v36  ;;  %v4351_v14 = vadd.f32 %v8549_v53, %v4087_v28  ;;  %v4088_v21 = vadd.f32 %v8564_v15, %v3462_v12  ;;  %v3463_v43 = vadd.f32 %v3413_v25, %v7897_v17  ;;  %v4305_v54 = vpop.f32.mrf.mxu3 }
 0x2d9   : > { %v6074_v62 = vunpack.c.l.b16 %v5946_v23  ;;  %v6140_v38 = vsel %vm6117_vm6, %v6073_v5, %v6139_v61  ;;  %v5131_v48 = vrot.slane %v5034_v47, 4  ;;  %v5132_v55 = vrot.slane %v5034_v47, 6 }
 0x2da   : > { %v5133_v57 = vrot.slane %v5035_v44, 2  ;;  %v4089_v0 = vadd.f32 %v4039_v20, %v3463_v43  ;;  %v8591_v45 = vpop.f32.mrf.mxu1  ;;  %v5004_v11 = vadd.f32 %v8561_v58, %v4351_v14  ;;  %v4352_v53 = vadd.f32 %v8566_v7, %v4088_v21 }
 0x2db   : > { %v6141_v34 = vsel %vm6119_vm7, %v6074_v62, %v6140_v38  ;;  %v3464_v15 = vadd.f32 %v3415_v35, %v7912_v29  ;;  %v5371_v17 = vsel %vm5274_vm15, %v5034_v47, -inf  ;;  %v5374_v25 = vsel %vm5274_vm15, %v5130_v60, -inf }
 0x2dc   : > { %v6173_v13 = vpack.c.b16 %v6141_v34, %v6141_v34  ;;  %v5134_v10 = vrot.slane %v5035_v44, 4  ;;  %v5135_v30 = vrot.slane %v5035_v44, 6  ;;  %v5377_v51 = vsel %vm5274_vm15, %v5131_v48, -inf }
 0x2dd   : > { %v5036_v8 = vmax.f32 %v5004_v11, 0.0  ;;  %v5005_v20 = vadd.f32 %v4953_v56, %v4352_v53  ;;  %v4090_v27 = vadd.f32 %v4041_v40, %v3464_v15  ;;  %v5380_v58 = vsel %vm5274_vm15, %v5132_v55, -inf }
 0x2de   : > { %6190 = vst.msk [vmem:[%s8203_s23 + $0xc] sm:$0xf] %vm6186_vm10, %v6173_v13  ;;  %v5383_v7 = vsel %vm5274_vm15, %v5035_v44, -inf  ;;  %v5386_v29 = vsel %vm5274_vm15, %v5133_v57, -inf  ;;  %v8604_v32 = vadd.f32 %v4303_v4, %v4089_v0  ;;  %v5389_v35 = vsel %vm5274_vm15, %v5134_v10, -inf  ;;  %v8617_v38 = vpop.f32.mrf.mxu0 }
 0x2df   : > { %v5136_v39 = vrot.slane %v5036_v8, 2  ;;  %v5137_v46 = vrot.slane %v5036_v8, 4  ;;  %v5138_v52 = vrot.slane %v5036_v8, 6  ;;  %v5372_v59 = vsel %vm5274_vm15, %v5036_v8, -inf  ;;  %v8609_v50 = vpop.f32.mrf.mxu2 }
 0x2e0   : > { %v5392_v16 = vsel %vm5274_vm15, %v5135_v30, -inf  ;;  %v5373_v56 = vmax.f32 %v5371_v17, %v5372_v59  ;;  %v5037_v2 = vmax.f32 %v5005_v20, 0.0  ;;  %v8614_v3 = vadd.f32 %v4305_v54, %v4090_v27  ;;  %v8628_v10 = vpop.f32.mrf.mxu3 }
 0x2e1   : > { %v5375_v47 = vsel %vm5274_vm15, %v5136_v39, -inf  ;;  %v5378_v24 = vsel %vm5274_vm15, %v5137_v46, -inf  ;;  %v5381_v4 = vsel %vm5274_vm15, %v5138_v52, -inf }
 0x2e2   : > { %v5376_v23 = vmax.f32 %v5374_v25, %v5375_v47  ;;  %v5379_v5 = vmax.f32 %v5377_v51, %v5378_v24  ;;  %v5382_v36 = vmax.f32 %v5380_v58, %v5381_v4  ;;  %v5691_v61 = vsel %vm5274_vm15, %v5373_v56, -inf  ;;  %v8619_v60 = vpop.f32.mrf.mxu1 }
 0x2e3   : > { %v5692_v41 = vrot.slane %v5691_v61, 4  ;;  %v5139_v28 = vrot.slane %v5037_v2, 2  ;;  %v5140_v12 = vrot.slane %v5037_v2, 4  ;;  %v5141_v62 = vrot.slane %v5037_v2, 6 }
 0x2e4   : > { %v5698_v44 = vsel %vm5274_vm15, %v5376_v23, -inf  ;;  %v5705_v14 = vsel %vm5274_vm15, %v5379_v5, -inf  ;;  %v5712_v21 = vsel %vm5274_vm15, %v5382_v36, -inf  ;;  %v5384_v43 = vsel %vm5274_vm15, %v5037_v2, -inf }
 0x2e5   : > { %v5693_v40 = vmax.f32 %v5691_v61, %v5692_v41  ;;  %v5699_v34 = vrot.slane %v5698_v44, 4  ;;  %v5706_v48 = vrot.slane %v5705_v14, 4  ;;  %v5713_v13 = vrot.slane %v5712_v21, 4 }
 0x2e6   : > { %v5385_v55 = vmax.f32 %v5383_v7, %v5384_v43  ;;  %v5387_v57 = vsel %vm5274_vm15, %v5139_v28, -inf  ;;  %v5390_v0 = vsel %vm5274_vm15, %v5140_v12, -inf  ;;  %v5393_v11 = vsel %vm5274_vm15, %v5141_v62, -inf  ;;  %v8636_v28 = vpop.f32.mrf.mxu0 }
 0x2e7   : > { %v5694_v53 = vrot.slane %v5693_v40, 2  ;;  %v5700_v15 = vmax.f32 %v5698_v44, %v5699_v34  ;;  %v5707_v17 = vmax.f32 %v5705_v14, %v5706_v48  ;;  %v5714_v25 = vmax.f32 %v5712_v21, %v5713_v13  ;;  %v8631_v27 = vpop.f32.mrf.mxu2 }
 0x2e8   : > { %v5388_v30 = vmax.f32 %v5386_v29, %v5387_v57  ;;  %v5391_v51 = vmax.f32 %v5389_v35, %v5390_v0  ;;  %v5394_v8 = vmax.f32 %v5392_v16, %v5393_v11  ;;  %v5719_v20 = vsel %vm5274_vm15, %v5385_v55, -inf }
 0x2e9   : > { %v5695_v54 = vmax.f32 %v5693_v40, %v5694_v53  ;;  %v5701_v58 = vrot.slane %v5700_v15, 2  ;;  %v5708_v7 = vrot.slane %v5707_v17, 2  ;;  %v5715_v39 = vrot.slane %v5714_v25, 2 }
 0x2ea   : > { %v5720_v46 = vrot.slane %v5719_v20, 4  ;;  %v5726_v52 = vsel %vm5274_vm15, %v5388_v30, -inf  ;;  %v5733_v59 = vsel %vm5274_vm15, %v5391_v51, -inf  ;;  %v5740_v56 = vsel %vm5274_vm15, %v5394_v8, -inf  ;;  %v8638_v12 = vpop.f32.mrf.mxu1  ;;  %v4310_v30 = vpop.f32.mrf.mxu3 }
 0x2eb   : > { %v5696_v2 = vrot.slane %v5695_v54, 1  ;;  %v5702_v47 = vmax.f32 %v5700_v15, %v5701_v58  ;;  %v5709_v29 = vmax.f32 %v5707_v17, %v5708_v7  ;;  %v5716_v35 = vmax.f32 %v5714_v25, %v5715_v39 }
 0x2ec   : > { %v5721_v16 = vmax.f32 %v5719_v20, %v5720_v46  ;;  %v5727_v24 = vrot.slane %v5726_v52, 4  ;;  %v5734_v4 = vrot.slane %v5733_v59, 4  ;;  %v5741_v23 = vrot.slane %v5740_v56, 4 }
 0x2ed   : > { %v5697_v5 = vmax.f32 %v5695_v54, %v5696_v2  ;;  %v5703_v36 = vrot.slane %v5702_v47, 1  ;;  %v5710_v61 = vrot.slane %v5709_v29, 1  ;;  %v5717_v41 = vrot.slane %v5716_v35, 1 }
 0x2ee   : > { %v5722_v62 = vrot.slane %v5721_v16, 2  ;;  %v5728_v44 = vmax.f32 %v5726_v52, %v5727_v24  ;;  %v5735_v14 = vmax.f32 %v5733_v59, %v5734_v4  ;;  %v5742_v21 = vmax.f32 %v5740_v56, %v5741_v23 }
 0x2ef   : > { %v5704_v43 = vmax.f32 %v5702_v47, %v5703_v36  ;;  %v5711_v40 = vmax.f32 %v5709_v29, %v5710_v61  ;;  %v5718_v34 = vmax.f32 %v5716_v35, %v5717_v41  ;;  %v5947_v48 = vpack.c.bf16 %v5697_v5, %v5697_v5  ;;  %v4049_v11 = vpop.f32.mrf.mxu2 }
 0x2f0   : > { %v5723_v13 = vmax.f32 %v5721_v16, %v5722_v62  ;;  %v5729_v55 = vrot.slane %v5728_v44, 2  ;;  %v5736_v57 = vrot.slane %v5735_v14, 2  ;;  %v5743_v0 = vrot.slane %v5742_v21, 2 }
 0x2f1   : > { %v5948_v53 = vpack.c.bf16 %v5704_v43, %v5704_v43  ;;  %v5949_v15 = vpack.c.bf16 %v5711_v40, %v5711_v40  ;;  %v5950_v17 = vpack.c.bf16 %v5718_v34, %v5718_v34  ;;  %v5006_v25 = vadd.f32 %v8589_v42, %v8604_v32 }
 0x2f2   : > { %v5724_v51 = vrot.slane %v5723_v13, 1  ;;  %v5730_v8 = vmax.f32 %v5728_v44, %v5729_v55  ;;  %v5737_v20 = vmax.f32 %v5735_v14, %v5736_v57  ;;  %v5744_v54 = vmax.f32 %v5742_v21, %v5743_v0  ;;  %v4313_v55 = vpop.f32.mrf.mxu3 }
 0x2f3   : > { %v6075_v58 = vunpack.c.l.b16 %v5947_v48  ;;  %v6076_v7 = vunpack.c.l.b16 %v5948_v53  ;;  %v6077_v39 = vunpack.c.l.b16 %v5949_v15  ;;  %v3465_v46 = vadd.f32 %v8591_v45, %v7964_v1  ;;  %v4963_v1 = vpop.f32.mrf.mxu0  ;;  %v3425_v45 = vpop.f32.mrf.mxu1 }
 0x2f4   : > { %v5725_v52 = vmax.f32 %v5723_v13, %v5724_v51  ;;  %v5731_v59 = vrot.slane %v5730_v8, 1  ;;  %v5738_v56 = vrot.slane %v5737_v20, 1  ;;  %v5745_v2 = vrot.slane %v5744_v54, 1 }
 0x2f5   : > { %v6078_v47 = vunpack.c.l.b16 %v5950_v17  ;;  %v6142_v29 = vsel %vm6107_vm0, %v6076_v7, %v6075_v58  ;;  %v5038_v35 = vmax.f32 %v5006_v25, 0.0  ;;  %v5007_v42 = vadd.f32 %v8617_v38, %v8614_v3 }
 0x2f6   : > { %v6143_v32 = vsel %vm6109_vm1, %v6077_v39, %v6142_v29  ;;  %v5732_v16 = vmax.f32 %v5730_v8, %v5731_v59  ;;  %v5739_v24 = vmax.f32 %v5737_v20, %v5738_v56  ;;  %v5746_v4 = vmax.f32 %v5744_v54, %v5745_v2 }
 0x2f7   : > { %v6144_v23 = vsel %vm6111_vm2, %v6078_v47, %v6143_v32  ;;  %v5951_v5 = vpack.c.bf16 %v5725_v52, %v5725_v52  ;;  %v4091_v62 = vadd.f32 %v8609_v50, %v3465_v46  ;;  %v5039_v14 = vmax.f32 %v5007_v42, 0.0  ;;  %v4051_v21 = vpop.f32.mrf.mxu2 }
 0x2f8   : > { %v5952_v36 = vpack.c.bf16 %v5732_v16, %v5732_v16  ;;  %v5953_v61 = vpack.c.bf16 %v5739_v24, %v5739_v24  ;;  %v5954_v41 = vpack.c.bf16 %v5746_v4, %v5746_v4  ;;  %v5142_v38 = vrot.slane %v5038_v35, 2 }
 0x2f9   : > { %v6079_v44 = vunpack.c.l.b16 %v5951_v5  ;;  %v5143_v34 = vrot.slane %v5038_v35, 4  ;;  %v5144_v48 = vrot.slane %v5038_v35, 6  ;;  %v5395_v13 = vsel %vm5274_vm15, %v5038_v35, -inf }
 0x2fa   : > { %v6080_v43 = vunpack.c.l.b16 %v5952_v36  ;;  %v6081_v3 = vunpack.c.l.b16 %v5953_v61  ;;  %v6082_v57 = vunpack.c.l.b16 %v5954_v41  ;;  %v4355_v53 = vadd.f32 %v8628_v10, %v4091_v62  ;;  %v4315_v62 = vpop.f32.mrf.mxu3 }
 0x2fb   : > { %v6145_v40 = vsel %vm6113_vm3, %v6079_v44, %v6144_v23  ;;  %v3466_v50 = vadd.f32 %v8619_v60, %v7976_v63  ;;  %v5145_v17 = vrot.slane %v5039_v14, 2  ;;  %v5146_v25 = vrot.slane %v5039_v14, 4  ;;  %v3428_v2 = vpop.f32.mrf.mxu1 }
 0x2fc   : > { %v6146_v0 = vsel %vm6115_vm5, %v6080_v43, %v6145_v40  ;;  %v3467_v51 = vadd.f32 %v8638_v12, %v8015_v37  ;;  %v5398_v20 = vsel %vm5274_vm15, %v5142_v38, -inf  ;;  %v5008_v54 = vadd.f32 %v8636_v28, %v4355_v53 }
 0x2fd   : > { %v6147_v15 = vsel %vm6117_vm6, %v6081_v3, %v6146_v0  ;;  %v4092_v58 = vadd.f32 %v8631_v27, %v3466_v50  ;;  %v5147_v7 = vrot.slane %v5039_v14, 6  ;;  %v3468_v63 = vadd.f32 %v3425_v45, %v8023_v9  ;;  %v4966_v27 = vpop.f32.mrf.mxu0 }
 0x2fe   : > { %v6148_v8 = vsel %vm6119_vm7, %v6082_v57, %v6147_v15  ;;  %v4093_v39 = vadd.f32 %v4049_v11, %v3467_v51  ;;  %v5401_v60 = vsel %vm5274_vm15, %v5143_v34, -inf  ;;  %v5404_v46 = vsel %vm5274_vm15, %v5144_v48, -inf }
 0x2ff   : > { %v6174_v10 = vpack.c.b16 %v6148_v8, %v6148_v8  ;;  %v5040_v52 = vmax.f32 %v5008_v54, 0.0  ;;  %v4356_v59 = vadd.f32 %v4310_v30, %v4092_v58  ;;  %v5407_v37 = vsel %vm5274_vm15, %v5039_v14, -inf }
 0x300   : > { %v5410_v12 = vsel %vm5274_vm15, %v5145_v17, -inf  ;;  %v5413_v28 = vsel %vm5274_vm15, %v5146_v25, -inf  ;;  %v4094_v56 = vadd.f32 %v4051_v21, %v3468_v63  ;;  %v5416_v35 = vsel %vm5274_vm15, %v5147_v7, -inf }
 0x301   : > { %6191 = vst.msk [vmem:[%s8203_s23 + $0x10] sm:$0xf] %vm6186_vm10, %v6174_v10  ;;  %v5148_v11 = vrot.slane %v5040_v52, 2  ;;  %v5149_v47 = vrot.slane %v5040_v52, 4  ;;  %v5150_v9 = vrot.slane %v5040_v52, 6  ;;  %v5396_v29 = vsel %vm5274_vm15, %v5040_v52, -inf  ;;  %v4054_v16 = vpop.f32.mrf.mxu2 }
 0x302   : > { %v5397_v42 = vmax.f32 %v5395_v13, %v5396_v29  ;;  %v5009_v30 = vadd.f32 %v4963_v1, %v4356_v59  ;;  %v4357_v32 = vadd.f32 %v4313_v55, %v4093_v39  ;;  %v3469_v5 = vadd.f32 %v3428_v2, %v8043_v22 }
 0x303   : > { %v5399_v24 = vsel %vm5274_vm15, %v5148_v11, -inf  ;;  %v5402_v4 = vsel %vm5274_vm15, %v5149_v47, -inf  ;;  %v5405_v23 = vsel %vm5274_vm15, %v5150_v9, -inf  ;;  %v8678_v21 = vadd.f32 %v4315_v62, %v4094_v56 }
 0x304   : > { %v5400_v45 = vmax.f32 %v5398_v20, %v5399_v24  ;;  %v5403_v36 = vmax.f32 %v5401_v60, %v5402_v4  ;;  %v5406_v61 = vmax.f32 %v5404_v46, %v5405_v23  ;;  %v5747_v41 = vsel %vm5274_vm15, %v5397_v42, -inf }
 0x305   : > { %v5748_v44 = vrot.slane %v5747_v41, 4  ;;  %v5041_v14 = vmax.f32 %v5009_v30, 0.0  ;;  %v4095_v1 = vadd.f32 %v4054_v16, %v3469_v5  ;;  %v5010_v40 = vadd.f32 %v4966_v27, %v4357_v32  ;;  %v4968_v58 = vpop.f32.mrf.mxu0 }
 0x306   : > { %v5754_v43 = vsel %vm5274_vm15, %v5400_v45, -inf  ;;  %v5761_v3 = vsel %vm5274_vm15, %v5403_v36, -inf  ;;  %v5768_v38 = vsel %vm5274_vm15, %v5406_v61, -inf }
 0x307   : > { %v5749_v34 = vmax.f32 %v5747_v41, %v5748_v44  ;;  %v5755_v22 = vrot.slane %v5754_v43, 4  ;;  %v5762_v48 = vrot.slane %v5761_v3, 4  ;;  %v5769_v13 = vrot.slane %v5768_v38, 4  ;;  %v4318_v44 = vpop.f32.mrf.mxu3 }
 0x308   : > { %v5151_v55 = vrot.slane %v5041_v14, 2  ;;  %v5152_v57 = vrot.slane %v5041_v14, 4  ;;  %v5153_v0 = vrot.slane %v5041_v14, 6  ;;  %v5408_v53 = vsel %vm5274_vm15, %v5041_v14, -inf }
 0x309   : > { %v5750_v50 = vrot.slane %v5749_v34, 2  ;;  %v5756_v15 = vmax.f32 %v5754_v43, %v5755_v22  ;;  %v5763_v17 = vmax.f32 %v5761_v3, %v5762_v48  ;;  %v5770_v25 = vmax.f32 %v5768_v38, %v5769_v13 }
 0x30a   : > { %v5409_v51 = vmax.f32 %v5407_v37, %v5408_v53  ;;  %v5411_v8 = vsel %vm5274_vm15, %v5151_v55, -inf  ;;  %v5414_v20 = vsel %vm5274_vm15, %v5152_v57, -inf  ;;  %v5417_v54 = vsel %vm5274_vm15, %v5153_v0, -inf }
 0x30b   : > { %v5751_v10 = vmax.f32 %v5749_v34, %v5750_v50  ;;  %v5757_v7 = vrot.slane %v5756_v15, 2  ;;  %v5764_v39 = vrot.slane %v5763_v17, 2  ;;  %v5771_v63 = vrot.slane %v5770_v25, 2 }
 0x30c   : > { %v5412_v60 = vmax.f32 %v5410_v12, %v5411_v8  ;;  %v5415_v46 = vmax.f32 %v5413_v28, %v5414_v20  ;;  %v5418_v52 = vmax.f32 %v5416_v35, %v5417_v54  ;;  %v5775_v59 = vsel %vm5274_vm15, %v5409_v51, -inf }
 0x30d   : > { %v5752_v27 = vrot.slane %v5751_v10, 1  ;;  %v5758_v56 = vmax.f32 %v5756_v15, %v5757_v7  ;;  %v5765_v2 = vmax.f32 %v5763_v17, %v5764_v39  ;;  %v5772_v37 = vmax.f32 %v5770_v25, %v5771_v63  ;;  %v4971_v55 = vpop.f32.mrf.mxu0 }
 0x30e   : > { %v5776_v11 = vrot.slane %v5775_v59, 4  ;;  %v5782_v47 = vsel %vm5274_vm15, %v5412_v60, -inf  ;;  %v5789_v9 = vsel %vm5274_vm15, %v5415_v46, -inf  ;;  %v5796_v29 = vsel %vm5274_vm15, %v5418_v52, -inf }
 0x30f   : > { %v5753_v42 = vmax.f32 %v5751_v10, %v5752_v27  ;;  %v5759_v30 = vrot.slane %v5758_v56, 1  ;;  %v5766_v32 = vrot.slane %v5765_v2, 1  ;;  %v5773_v16 = vrot.slane %v5772_v37, 1 }
 0x310   : > { %v5777_v12 = vmax.f32 %v5775_v59, %v5776_v11  ;;  %v5783_v28 = vrot.slane %v5782_v47, 4  ;;  %v5790_v35 = vrot.slane %v5789_v9, 4  ;;  %v5797_v24 = vrot.slane %v5796_v29, 4 }
 0x311   : > { %v5760_v4 = vmax.f32 %v5758_v56, %v5759_v30  ;;  %v5767_v23 = vmax.f32 %v5765_v2, %v5766_v32  ;;  %v5774_v5 = vmax.f32 %v5772_v37, %v5773_v16  ;;  %v5955_v45 = vpack.c.bf16 %v5753_v42, %v5753_v42 }
 0x312   : > { %v5778_v36 = vrot.slane %v5777_v12, 2  ;;  %v5784_v61 = vmax.f32 %v5782_v47, %v5783_v28  ;;  %v5791_v41 = vmax.f32 %v5789_v9, %v5790_v35  ;;  %v5798_v62 = vmax.f32 %v5796_v29, %v5797_v24  ;;  %v3430_v29 = vpop.f32.mrf.mxu1  ;;  %v4056_v35 = vpop.f32.mrf.mxu2 }
 0x313   : > { %v5956_v14 = vpack.c.bf16 %v5760_v4, %v5760_v4  ;;  %v5957_v43 = vpack.c.bf16 %v5767_v23, %v5767_v23  ;;  %v5958_v3 = vpack.c.bf16 %v5774_v5, %v5774_v5  ;;  %v4359_v38 = vadd.f32 %v4318_v44, %v4095_v1 }
 0x314   : > { %v5779_v34 = vmax.f32 %v5777_v12, %v5778_v36  ;;  %v5785_v22 = vrot.slane %v5784_v61, 2  ;;  %v5792_v48 = vrot.slane %v5791_v41, 2  ;;  %v5799_v13 = vrot.slane %v5798_v62, 2 }
 0x315   : > { %v6083_v57 = vunpack.c.l.b16 %v5955_v45  ;;  %v6084_v0 = vunpack.c.l.b16 %v5956_v14  ;;  %v6085_v53 = vunpack.c.l.b16 %v5957_v43  ;;  %v5042_v50 = vmax.f32 %v5010_v40, 0.0 }
 0x316   : > { %v5780_v15 = vrot.slane %v5779_v34, 1  ;;  %v5786_v17 = vmax.f32 %v5784_v61, %v5785_v22  ;;  %v5793_v25 = vmax.f32 %v5791_v41, %v5792_v48  ;;  %v5800_v51 = vmax.f32 %v5798_v62, %v5799_v13 }
 0x317   : > { %v6086_v8 = vunpack.c.l.b16 %v5958_v3  ;;  %v6149_v20 = vsel %vm6107_vm0, %v6084_v0, %v6083_v57  ;;  %v2803_v54 = vadd.f32 %v7874_v49, %v7881_v33  ;;  %v5154_v46 = vrot.slane %v5042_v50, 2 }
 0x318   : > { %v6150_v1 = vsel %vm6109_vm1, %v6085_v53, %v6149_v20  ;;  %v5781_v10 = vmax.f32 %v5779_v34, %v5780_v15  ;;  %v5787_v7 = vrot.slane %v5786_v17, 1  ;;  %v5794_v39 = vrot.slane %v5793_v25, 1 }
 0x319   : > { %v6151_v63 = vsel %vm6111_vm2, %v6086_v8, %v6150_v1  ;;  %v5801_v60 = vrot.slane %v5800_v51, 1  ;;  %v5011_v40 = vadd.f32 %v4968_v58, %v8678_v21  ;;  %v5012_v56 = vadd.f32 %v4971_v55, %v4359_v38 }
 0x31a   : > { %v5788_v52 = vmax.f32 %v5786_v17, %v5787_v7  ;;  %v5795_v59 = vmax.f32 %v5793_v25, %v5794_v39  ;;  %v5959_v27 = vpack.c.bf16 %v5781_v10, %v5781_v10  ;;  %v5155_v37 = vrot.slane %v5042_v50, 4 }
 0x31b   : > { %v5802_v2 = vmax.f32 %v5800_v51, %v5801_v60  ;;  %v5156_v11 = vrot.slane %v5042_v50, 6  ;;  %v8699_v49 = vadd.f32 %v7891_v6, %v7899_v19  ;;  %v8703_v42 = vadd.f32 %v7932_v26, %v7934_v18  ;;  %v4973_v19 = vpop.f32.mrf.mxu0  ;;  %v4320_v18 = vpop.f32.mrf.mxu3 }
 0x31c   : > { %v5960_v33 = vpack.c.bf16 %v5788_v52, %v5788_v52  ;;  %v5961_v47 = vpack.c.bf16 %v5795_v59, %v5795_v59  ;;  %v6087_v9 = vunpack.c.l.b16 %v5959_v27  ;;  %v5419_v58 = vsel %vm5274_vm15, %v5042_v50, -inf }
 0x31d   : > { %v5962_v21 = vpack.c.bf16 %v5802_v2, %v5802_v2  ;;  %v5422_v30 = vsel %vm5274_vm15, %v5154_v46, -inf  ;;  %v5043_v32 = vmax.f32 %v5011_v40, 0.0  ;;  %v5044_v6 = vmax.f32 %v5012_v56, 0.0  ;;  %v3433_v59 = vpop.f32.mrf.mxu1 }
 0x31e   : > { %v6088_v16 = vunpack.c.l.b16 %v5960_v33  ;;  %v6089_v12 = vunpack.c.l.b16 %v5961_v47  ;;  %v6152_v28 = vsel %vm6113_vm3, %v6087_v9, %v6151_v63  ;;  %v5425_v4 = vsel %vm5274_vm15, %v5155_v37, -inf }
 0x31f   : > { %v6090_v24 = vunpack.c.l.b16 %v5962_v21  ;;  %v5428_v23 = vsel %vm5274_vm15, %v5156_v11, -inf  ;;  %v3470_v26 = vadd.f32 %v3430_v29, %v2803_v54  ;;  %v5160_v45 = vrot.slane %v5044_v6, 2 }
 0x320   : > { %v6153_v5 = vsel %vm6115_vm5, %v6088_v16, %v6152_v28  ;;  %v5161_v36 = vrot.slane %v5044_v6, 4  ;;  %v5162_v61 = vrot.slane %v5044_v6, 6  ;;  %v5157_v62 = vrot.slane %v5043_v32, 2 }
 0x321   : > { %v6154_v41 = vsel %vm6117_vm6, %v6089_v12, %v6153_v5  ;;  %v5420_v44 = vsel %vm5274_vm15, %v5044_v6, -inf  ;;  %v4096_v14 = vadd.f32 %v4056_v35, %v3470_v26  ;;  %v5423_v38 = vsel %vm5274_vm15, %v5160_v45, -inf }
 0x322   : > { %v6155_v43 = vsel %vm6119_vm7, %v6090_v24, %v6154_v41  ;;  %v5421_v3 = vmax.f32 %v5419_v58, %v5420_v44  ;;  %v5426_v34 = vsel %vm5274_vm15, %v5161_v36, -inf  ;;  %v5424_v48 = vmax.f32 %v5422_v30, %v5423_v38 }
 0x323   : > { %v6175_v22 = vpack.c.b16 %v6155_v43, %v6155_v43  ;;  %v5427_v13 = vmax.f32 %v5425_v4, %v5426_v34  ;;  %v5429_v55 = vsel %vm5274_vm15, %v5162_v61, -inf  ;;  %v5158_v57 = vrot.slane %v5043_v32, 4  ;;  %v4323_v47 = vpop.f32.mrf.mxu3 }
 0x324   : > { %v5430_v0 = vmax.f32 %v5428_v23, %v5429_v55  ;;  %v5803_v53 = vsel %vm5274_vm15, %v5421_v3, -inf  ;;  %v4360_v50 = vadd.f32 %v4320_v18, %v4096_v14  ;;  %v5159_v15 = vrot.slane %v5043_v32, 6 }
 0x325   : > { %6192 = vst.msk [vmem:[%s8203_s23 + $0x14] sm:$0xf] %vm6186_vm10, %v6175_v22  ;;  %v5804_v17 = vrot.slane %v5803_v53, 4  ;;  %v5810_v25 = vsel %vm5274_vm15, %v5424_v48, -inf  ;;  %v5817_v51 = vsel %vm5274_vm15, %v5427_v13, -inf  ;;  %v5431_v10 = vsel %vm5274_vm15, %v5043_v32, -inf  ;;  %v3435_v38 = vpop.f32.mrf.mxu1 }
 0x326   : > { %v5811_v8 = vrot.slane %v5810_v25, 4  ;;  %v5818_v20 = vrot.slane %v5817_v51, 4  ;;  %v5824_v54 = vsel %vm5274_vm15, %v5430_v0, -inf  ;;  %v5013_v1 = vadd.f32 %v4973_v19, %v4360_v50 }
 0x327   : > { %v5434_v7 = vsel %vm5274_vm15, %v5157_v62, -inf  ;;  %v5805_v39 = vmax.f32 %v5803_v53, %v5804_v17  ;;  %v5825_v63 = vrot.slane %v5824_v54, 4  ;;  %v5437_v60 = vsel %vm5274_vm15, %v5158_v57, -inf }
 0x328   : > { %v5812_v46 = vmax.f32 %v5810_v25, %v5811_v8  ;;  %v5819_v40 = vmax.f32 %v5817_v51, %v5818_v20  ;;  %v5045_v52 = vmax.f32 %v5013_v1, 0.0  ;;  %v5440_v56 = vsel %vm5274_vm15, %v5159_v15, -inf }
 0x329   : > { %v5806_v2 = vrot.slane %v5805_v39, 2  ;;  %v5826_v37 = vmax.f32 %v5824_v54, %v5825_v63  ;;  %v3471_v11 = vadd.f32 %v3433_v59, %v8699_v49  ;;  %v4059_v33 = vpop.f32.mrf.mxu2 }
 0x32a   : > { %v5813_v9 = vrot.slane %v5812_v46, 2  ;;  %v5820_v29 = vrot.slane %v5819_v40, 2  ;;  %v5163_v21 = vrot.slane %v5045_v52, 2  ;;  %v5164_v58 = vrot.slane %v5045_v52, 4 }
 0x32b   : > { %v5807_v30 = vmax.f32 %v5805_v39, %v5806_v2  ;;  %v5827_v32 = vrot.slane %v5826_v37, 2  ;;  %v5165_v16 = vrot.slane %v5045_v52, 6  ;;  %v5432_v12 = vsel %vm5274_vm15, %v5045_v52, -inf  ;;  %v4325_v57 = vpop.f32.mrf.mxu3 }
 0x32c   : > { %v5814_v28 = vmax.f32 %v5812_v46, %v5813_v9  ;;  %v5821_v6 = vmax.f32 %v5819_v40, %v5820_v29  ;;  %v5433_v19 = vmax.f32 %v5431_v10, %v5432_v12  ;;  %v5435_v35 = vsel %vm5274_vm15, %v5163_v21, -inf }
 0x32d   : > { %v8726_v27 = vpop.f32.mrf.mxu0  ;;  %v5808_v24 = vrot.slane %v5807_v30, 1  ;;  %v5828_v4 = vmax.f32 %v5826_v37, %v5827_v32  ;;  %v5436_v23 = vmax.f32 %v5434_v7, %v5435_v35  ;;  %v5438_v49 = vsel %vm5274_vm15, %v5164_v58, -inf }
 0x32e   : > { %v5815_v26 = vrot.slane %v5814_v28, 1  ;;  %v5822_v18 = vrot.slane %v5821_v6, 1  ;;  %v5439_v5 = vmax.f32 %v5437_v60, %v5438_v49  ;;  %v5441_v45 = vsel %vm5274_vm15, %v5165_v16, -inf }
 0x32f   : > { %v5809_v36 = vmax.f32 %v5807_v30, %v5808_v24  ;;  %v5829_v61 = vrot.slane %v5828_v4, 1  ;;  %v5442_v41 = vmax.f32 %v5440_v56, %v5441_v45  ;;  %v5831_v62 = vsel %vm5274_vm15, %v5433_v19, -inf }
 0x330   : > { %v5816_v44 = vmax.f32 %v5814_v28, %v5815_v26  ;;  %v5823_v14 = vmax.f32 %v5821_v6, %v5822_v18  ;;  %v5832_v43 = vrot.slane %v5831_v62, 4  ;;  %v5838_v3 = vsel %vm5274_vm15, %v5436_v23, -inf }
 0x331   : > { %v5830_v34 = vmax.f32 %v5828_v4, %v5829_v61  ;;  %v5963_v22 = vpack.c.bf16 %v5809_v36, %v5809_v36  ;;  %v5839_v48 = vrot.slane %v5838_v3, 4  ;;  %v5845_v13 = vsel %vm5274_vm15, %v5439_v5, -inf  ;;  %v4061_v55 = vpop.f32.mrf.mxu2  ;;  %v3438_v16 = vpop.f32.mrf.mxu1 }
 0x332   : > { %v5964_v0 = vpack.c.bf16 %v5816_v44, %v5816_v44  ;;  %v5965_v53 = vpack.c.bf16 %v5823_v14, %v5823_v14  ;;  %v5833_v50 = vmax.f32 %v5831_v62, %v5832_v43  ;;  %v5846_v15 = vrot.slane %v5845_v13, 4  ;;  %v8853_v43 = vld [vmem:[#allocation7_spill] sm:$0xff] }
 0x333   : > { %v5966_v17 = vpack.c.bf16 %v5830_v34, %v5830_v34  ;;  %v6091_v25 = vunpack.c.l.b16 %v5963_v22  ;;  %v5840_v51 = vmax.f32 %v5838_v3, %v5839_v48  ;;  %v5852_v8 = vsel %vm5274_vm15, %v5442_v41, -inf  ;;  %v4328_v4 = vpop.f32.mrf.mxu3  ;;  %v8854_v3 = vld [vmem:[#allocation6_spill] sm:$0xff] }
 0x334   : > { %v6092_v54 = vunpack.c.l.b16 %v5964_v0  ;;  %v6093_v1 = vunpack.c.l.b16 %v5965_v53  ;;  %v5834_v10 = vrot.slane %v5833_v50, 2  ;;  %v5847_v7 = vmax.f32 %v5845_v13, %v5846_v15 }
 0x335   : > { %v4978_v20 = vpop.f32.mrf.mxu0  ;;  %v6094_v39 = vunpack.c.l.b16 %v5966_v17  ;;  %v5841_v63 = vrot.slane %v5840_v51, 2  ;;  %v5853_v60 = vrot.slane %v5852_v8, 4  ;;  %v4097_v46 = vadd.f32 %v4059_v33, %v3471_v11  ;;  %v8852_v33 = vld [vmem:[#allocation5_spill] sm:$0xff] }
 0x336   : > { %v6156_v40 = vsel %vm6107_vm0, %v6092_v54, %v6091_v25  ;;  %v5835_v52 = vmax.f32 %v5833_v50, %v5834_v10  ;;  %v5848_v59 = vrot.slane %v5847_v7, 2  ;;  %v3472_v56 = vadd.f32 %v3435_v38, %v8703_v42 }
 0x337   : > { %v6157_v2 = vsel %vm6109_vm1, %v6093_v1, %v6156_v40  ;;  %v5842_v37 = vmax.f32 %v5840_v51, %v5841_v63  ;;  %v5854_v9 = vmax.f32 %v5852_v8, %v5853_v60  ;;  %v4361_v29 = vadd.f32 %v4323_v47, %v4097_v46 }
 0x338   : > { %v6158_v21 = vsel %vm6111_vm2, %v6094_v39, %v6157_v2  ;;  %v5836_v58 = vrot.slane %v5835_v52, 1  ;;  %v5849_v30 = vmax.f32 %v5847_v7, %v5848_v59  ;;  %v4098_v32 = vadd.f32 %v4061_v55, %v3472_v56 }
 0x339   : > { %v5843_v12 = vrot.slane %v5842_v37, 1  ;;  %v5855_v28 = vrot.slane %v5854_v9, 2  ;;  %v5014_v11 = vadd.f32 %v8726_v27, %v4361_v29  ;;  %v2806_v6 = vadd.f32 %v8852_v33, %v7954_v31  ;;  %v3440_v13 = vpop.f32.mrf.mxu1 }
 0x33a   : > { %v5837_v42 = vmax.f32 %v5835_v52, %v5836_v58  ;;  %v5850_v35 = vrot.slane %v5849_v30, 1  ;;  %v4362_v24 = vadd.f32 %v4325_v57, %v4098_v32  ;;  %v2807_v38 = vadd.f32 %v8854_v3, %v8853_v43 }
 0x33b   : > { %v5844_v23 = vmax.f32 %v5842_v37, %v5843_v12  ;;  %v5856_v47 = vmax.f32 %v5854_v9, %v5855_v28  ;;  %v3473_v49 = vadd.f32 %v3438_v16, %v2806_v6  ;;  %v5046_v5 = vmax.f32 %v5014_v11, 0.0  ;;  %v4330_v10 = vpop.f32.mrf.mxu3 }
 0x33c   : > { %v4064_v19 = vpop.f32.mrf.mxu2  ;;  %v5851_v26 = vmax.f32 %v5849_v30, %v5850_v35  ;;  %v5967_v18 = vpack.c.bf16 %v5837_v42, %v5837_v42  ;;  %v5015_v44 = vadd.f32 %v4978_v20, %v4362_v24  ;;  %v3474_v53 = vadd.f32 %v3440_v13, %v2807_v38 }
 0x33d   : > { %v5857_v45 = vrot.slane %v5856_v47, 1  ;;  %v5968_v36 = vpack.c.bf16 %v5844_v23, %v5844_v23  ;;  %v4099_v41 = vadd.f32 %v4064_v19, %v3473_v49  ;;  %v5166_v48 = vrot.slane %v5046_v5, 2 }
 0x33e   : > { %v4981_v61 = vpop.f32.mrf.mxu0  ;;  %v5969_v62 = vpack.c.bf16 %v5851_v26, %v5851_v26  ;;  %v6095_v27 = vunpack.c.l.b16 %v5967_v18  ;;  %v5167_v17 = vrot.slane %v5046_v5, 4  ;;  %v5047_v25 = vmax.f32 %v5015_v44, 0.0 }
 0x33f   : > { %v5858_v14 = vmax.f32 %v5856_v47, %v5857_v45  ;;  %v6096_v31 = vunpack.c.l.b16 %v5968_v36  ;;  %v4363_v0 = vadd.f32 %v4328_v4, %v4099_v41  ;;  %v5168_v54 = vrot.slane %v5046_v5, 6 }
 0x340   : > { %v6097_v34 = vunpack.c.l.b16 %v5969_v62  ;;  %v6159_v22 = vsel %vm6113_vm3, %v6095_v27, %v6158_v21  ;;  %v5443_v1 = vsel %vm5274_vm15, %v5046_v5, -inf  ;;  %v5446_v39 = vsel %vm5274_vm15, %v5166_v48, -inf }
 0x341   : > { %v5970_v55 = vpack.c.bf16 %v5858_v14, %v5858_v14  ;;  %v6160_v57 = vsel %vm6115_vm5, %v6096_v31, %v6159_v22  ;;  %v5016_v8 = vadd.f32 %v4981_v61, %v4363_v0  ;;  %v5449_v40 = vsel %vm5274_vm15, %v5167_v17, -inf }
 0x342   : > { %v6161_v15 = vsel %vm6117_vm6, %v6097_v34, %v6160_v57  ;;  %v5169_v52 = vrot.slane %v5047_v25, 2  ;;  %v5170_v59 = vrot.slane %v5047_v25, 4  ;;  %v5452_v21 = vsel %vm5274_vm15, %v5168_v54, -inf }
 0x343   : > { %v6098_v51 = vunpack.c.l.b16 %v5970_v55  ;;  %v5048_v63 = vmax.f32 %v5016_v8, 0.0  ;;  %v5171_v58 = vrot.slane %v5047_v25, 6  ;;  %v5455_v16 = vsel %vm5274_vm15, %v5047_v25, -inf }
 0x344   : > { %v4066_v50 = vpop.f32.mrf.mxu2  ;;  %v5458_v35 = vsel %vm5274_vm15, %v5169_v52, -inf  ;;  %v5461_v24 = vsel %vm5274_vm15, %v5170_v59, -inf }
 0x345   : > { %v4100_v20 = vadd.f32 %v4066_v50, %v3474_v53  ;;  %v6162_v7 = vsel %vm6119_vm7, %v6098_v51, %v6161_v15  ;;  %v5172_v56 = vrot.slane %v5048_v63, 2  ;;  %v5173_v2 = vrot.slane %v5048_v63, 4 }
 0x346   : > { %v6176_v46 = vpack.c.b16 %v6162_v7, %v6162_v7  ;;  %v5174_v37 = vrot.slane %v5048_v63, 6  ;;  %v5444_v9 = vsel %vm5274_vm15, %v5048_v63, -inf  ;;  %v4983_v29 = vpop.f32.mrf.mxu0  ;;  %v5464_v47 = vsel %vm5274_vm15, %v5171_v58, -inf }
 0x347   : > { %v4364_v60 = vadd.f32 %v4330_v10, %v4100_v20  ;;  %v5445_v30 = vmax.f32 %v5443_v1, %v5444_v9  ;;  %v5447_v12 = vsel %vm5274_vm15, %v5172_v56, -inf  ;;  %v5450_v28 = vsel %vm5274_vm15, %v5173_v2, -inf }
 0x348   : > { %6193 = vst.msk [vmem:[%s8203_s23 + $0x18] sm:$0xf] %vm6186_vm10, %v6176_v46  ;;  %v5453_v11 = vsel %vm5274_vm15, %v5174_v37, -inf  ;;  %v5448_v33 = vmax.f32 %v5446_v39, %v5447_v12  ;;  %v5451_v6 = vmax.f32 %v5449_v40, %v5450_v28 }
 0x349   : > { %v5017_v32 = vadd.f32 %v4983_v29, %v4364_v60  ;;  %v5454_v19 = vmax.f32 %v5452_v21, %v5453_v11  ;;  %v5859_v42 = vsel %vm5274_vm15, %v5445_v30, -inf }
 0x34a   : > { %v5860_v4 = vrot.slane %v5859_v42, 4  ;;  %v5866_v49 = vsel %vm5274_vm15, %v5448_v33, -inf  ;;  %v5873_v26 = vsel %vm5274_vm15, %v5451_v6, -inf }
 0x34b   : > { %v5049_v23 = vmax.f32 %v5017_v32, 0.0  ;;  %v5880_v18 = vsel %vm5274_vm15, %v5454_v19, -inf  ;;  %v5867_v45 = vrot.slane %v5866_v49, 4  ;;  %v5874_v36 = vrot.slane %v5873_v26, 4 }
 0x34c   : > { %v5861_v5 = vmax.f32 %v5859_v42, %v5860_v4  ;;  %v5881_v61 = vrot.slane %v5880_v18, 4 }
 0x34d   : > { %v5175_v41 = vrot.slane %v5049_v23, 2  ;;  %v5176_v62 = vrot.slane %v5049_v23, 4  ;;  %v5177_v27 = vrot.slane %v5049_v23, 6  ;;  %v5456_v44 = vsel %vm5274_vm15, %v5049_v23, -inf }
 0x34e   : > { %v5862_v14 = vrot.slane %v5861_v5, 2  ;;  %v5868_v31 = vmax.f32 %v5866_v49, %v5867_v45  ;;  %v5875_v43 = vmax.f32 %v5873_v26, %v5874_v36  ;;  %v5882_v3 = vmax.f32 %v5880_v18, %v5881_v61 }
 0x34f   : > { %v5457_v38 = vmax.f32 %v5455_v16, %v5456_v44  ;;  %v5459_v34 = vsel %vm5274_vm15, %v5175_v41, -inf  ;;  %v5462_v22 = vsel %vm5274_vm15, %v5176_v62, -inf  ;;  %v5465_v48 = vsel %vm5274_vm15, %v5177_v27, -inf }
 0x350   : > { %v5863_v13 = vmax.f32 %v5861_v5, %v5862_v14  ;;  %v5869_v55 = vrot.slane %v5868_v31, 2  ;;  %v5876_v57 = vrot.slane %v5875_v43, 2  ;;  %v5883_v0 = vrot.slane %v5882_v3, 2 }
 0x351   : > { %v5460_v53 = vmax.f32 %v5458_v35, %v5459_v34  ;;  %v5463_v50 = vmax.f32 %v5461_v24, %v5462_v22  ;;  %v5466_v15 = vmax.f32 %v5464_v47, %v5465_v48  ;;  %v5887_v17 = vsel %vm5274_vm15, %v5457_v38, -inf }
 0x352   : > { %v5864_v25 = vrot.slane %v5863_v13, 1  ;;  %v5870_v51 = vmax.f32 %v5868_v31, %v5869_v55  ;;  %v5877_v8 = vmax.f32 %v5875_v43, %v5876_v57  ;;  %v5884_v20 = vmax.f32 %v5882_v3, %v5883_v0 }
 0x353   : > { %v5888_v54 = vrot.slane %v5887_v17, 4  ;;  %v5894_v1 = vsel %vm5274_vm15, %v5460_v53, -inf  ;;  %v5901_v10 = vsel %vm5274_vm15, %v5463_v50, -inf  ;;  %v5908_v7 = vsel %vm5274_vm15, %v5466_v15, -inf }
 0x354   : > { %v5865_v39 = vmax.f32 %v5863_v13, %v5864_v25  ;;  %v5871_v63 = vrot.slane %v5870_v51, 1  ;;  %v5878_v60 = vrot.slane %v5877_v8, 1  ;;  %v5885_v46 = vrot.slane %v5884_v20, 1 }
 0x355   : > { %v5889_v40 = vmax.f32 %v5887_v17, %v5888_v54  ;;  %v5895_v52 = vrot.slane %v5894_v1, 4  ;;  %v5902_v59 = vrot.slane %v5901_v10, 4  ;;  %v5909_v56 = vrot.slane %v5908_v7, 4 }
 0x356   : > { %v5872_v2 = vmax.f32 %v5870_v51, %v5871_v63  ;;  %v5879_v37 = vmax.f32 %v5877_v8, %v5878_v60  ;;  %v5886_v9 = vmax.f32 %v5884_v20, %v5885_v46  ;;  %v5971_v29 = vpack.c.bf16 %v5865_v39, %v5865_v39 }
 0x357   : > { %v5890_v21 = vrot.slane %v5889_v40, 2  ;;  %v5896_v58 = vmax.f32 %v5894_v1, %v5895_v52  ;;  %v5903_v30 = vmax.f32 %v5901_v10, %v5902_v59  ;;  %v5910_v32 = vmax.f32 %v5908_v7, %v5909_v56 }
 0x358   : > { %v5972_v16 = vpack.c.bf16 %v5872_v2, %v5872_v2  ;;  %v5973_v12 = vpack.c.bf16 %v5879_v37, %v5879_v37  ;;  %v5974_v28 = vpack.c.bf16 %v5886_v9, %v5886_v9  ;;  %v6099_v42 = vunpack.c.l.b16 %v5971_v29 }
 0x359   : > { %v5891_v11 = vmax.f32 %v5889_v40, %v5890_v21  ;;  %v5897_v33 = vrot.slane %v5896_v58, 2  ;;  %v5904_v6 = vrot.slane %v5903_v30, 2  ;;  %v5911_v19 = vrot.slane %v5910_v32, 2 }
 0x35a   : > { %v6100_v35 = vunpack.c.l.b16 %v5972_v16  ;;  %v6101_v24 = vunpack.c.l.b16 %v5973_v12  ;;  %v6102_v26 = vunpack.c.l.b16 %v5974_v28 }
 0x35b   : > { %v5892_v4 = vrot.slane %v5891_v11, 1  ;;  %v5898_v23 = vmax.f32 %v5896_v58, %v5897_v33  ;;  %v5905_v47 = vmax.f32 %v5903_v30, %v5904_v6  ;;  %v5912_v49 = vmax.f32 %v5910_v32, %v5911_v19 }
 0x35c   : > { %v6163_v18 = vsel %vm6107_vm0, %v6100_v35, %v6099_v42 }
 0x35d   : > { %v6164_v5 = vsel %vm6109_vm1, %v6101_v24, %v6163_v18  ;;  %v5893_v45 = vmax.f32 %v5891_v11, %v5892_v4  ;;  %v5899_v36 = vrot.slane %v5898_v23, 1  ;;  %v5906_v61 = vrot.slane %v5905_v47, 1 }
 0x35e   : > { %v6165_v41 = vsel %vm6111_vm2, %v6102_v26, %v6164_v5  ;;  %v5913_v62 = vrot.slane %v5912_v49, 1 }
 0x35f   : > { %v5900_v27 = vmax.f32 %v5898_v23, %v5899_v36  ;;  %v5907_v44 = vmax.f32 %v5905_v47, %v5906_v61  ;;  %v5975_v14 = vpack.c.bf16 %v5893_v45, %v5893_v45 }
 0x360   : > { %v5914_v31 = vmax.f32 %v5912_v49, %v5913_v62 }
 0x361   : > { %v5976_v43 = vpack.c.bf16 %v5900_v27, %v5900_v27  ;;  %v5977_v3 = vpack.c.bf16 %v5907_v44, %v5907_v44  ;;  %v6103_v38 = vunpack.c.l.b16 %v5975_v14 }
 0x362   : > { %v5978_v34 = vpack.c.bf16 %v5914_v31, %v5914_v31 }
 0x363   : > { %v6104_v22 = vunpack.c.l.b16 %v5976_v43  ;;  %v6105_v48 = vunpack.c.l.b16 %v5977_v3  ;;  %v6166_v13 = vsel %vm6113_vm3, %v6103_v38, %v6165_v41 }
 0x364   : > { %v6106_v55 = vunpack.c.l.b16 %v5978_v34 }
 0x365   : > { %v6167_v57 = vsel %vm6115_vm5, %v6104_v22, %v6166_v13 }
 0x366   : > { %v6168_v0 = vsel %vm6117_vm6, %v6105_v48, %v6167_v57 }
 0x367   : > { %v6169_v53 = vsel %vm6119_vm7, %v6106_v55, %v6168_v0 }
 0x368   : > { %v6177_v50 = vpack.c.b16 %v6169_v53, %v6169_v53 }
 0x36a   : > { %6194 = vst.msk [vmem:[%s8203_s23 + $0x1c] sm:$0xf] %vm6186_vm10, %v6177_v50 }
 0x36b PF: > { %s13_s12 = sadd.s32 1, %s6727_s12  }
 0x36c   : > { %p10_p4 = scmp.ge.s32.totalorder %s13_s12, 4  }
 0x36e   :  { %12 = sbr.rel (!%p10_p4) target bundleno = 1 (0x1), region = 65 }

</bundles_post_ra>
